<compile_context>
chip_gen: v6e
topology: v6e:2x2x1
jax: 0.10.0
libtpu: 0.0.40
codegen_flags: <defaults>
</compile_context>

<pallas_src>
import jax
import jax.numpy as jnp
from jax.experimental import pallas as pl
from jax.experimental.pallas import tpu as pltpu

# ----------------------------- constants ------------------------------------
H_OUT = W_OUT = 26
P = H_OUT * W_OUT          # 676 patches per image
TAPS = 9                   # 3x3 taps, t = dy*3 + dx
C_OUT = 16                 # conv output channels
N_CLS = 10                 # fc output features
P_PAD = 768                # 676 padded up to a multiple of 128 (single k-tile)
OUT_PAD = 128              # fc output columns padded 10 -> 128 (lane-dense)

MXU_DTYPE = jnp.bfloat16   # MXU operands (all generations); f32 accumulation


def _round_up(a, b):
    return (a + b - 1) // b * b


def _pick_conv_dtype():
    """bf16 conv/ReLU on v6e/v7x-class chips (bf16 VALU); f32 on v5e & older."""
    try:
        kind = jax.devices()[0].device_kind.lower()
    except Exception:
        return jnp.float32
    if any(tag in kind for tag in ("v2", "v3", "v4", "v5")):
        return jnp.float32
    return jnp.bfloat16


CONV_DTYPE = _pick_conv_dtype()


# ----------------------------- Pallas kernel --------------------------------

def fused_conv_relu_fc_kernel(wc_ref, bc_ref, p_ref, w1_ref, b1_ref, o_ref):
    """One grid step = one batch tile; full conv + ReLU + FC for that tile.

    wc_ref : SMEM (16, 9)          conv weight [c, t], f32 scalars
    bc_ref : SMEM (16,)            conv bias, f32 scalars
    p_ref  : VMEM (9, BN, 768)     tap-major im2col patches (lane-dense)
    w1_ref : VMEM (16, 768, 128)   permuted + zero-padded FC weight (resident)
    b1_ref : VMEM (1, 128)         padded FC bias, f32
    o_ref  : VMEM (BN, 128)        f32 logits (lane-dense, unmasked stores)
    """
    cdt = p_ref.dtype                                   # conv compute dtype
    acc = jnp.zeros(o_ref.shape, jnp.float32)
    for c in range(C_OUT):                              # static unroll (16)
        # conv channel c: 9 broadcast FMAs on the VPU over lane-dense (BN, 768)
        conv = p_ref[0] * wc_ref[c, 0].astype(cdt) + bc_ref[c].astype(cdt)
        for t in range(1, TAPS):
            conv = conv + p_ref[t] * wc_ref[c, t].astype(cdt)
        feat_c = jnp.maximum(conv, 0.0)                 # ReLU, stays in VMEM
        # FC contraction for this channel on the MXU: (BN,768) @ (768,128),
        # bf16 operands, f32 accumulation.
        acc = acc + jnp.dot(feat_c.astype(w1_ref.dtype), w1_ref[c],
                            preferred_element_type=jnp.float32)
    o_ref[...] = acc + b1_ref[...]


# ----------------------------- parameter prep (hoisted, done once) ----------

def prepare_params(conv_w, conv_b, fc_w, fc_b):
    wc = conv_w.reshape(C_OUT, TAPS).astype(jnp.float32)            # (16, 9)
    bc = conv_b.astype(jnp.float32)                                 # (16,)
    # fc_w[o, c*676 + p]  ->  w1[c, p, o], zero-padded in p and o.
    # NOTE: padded patch columns p in [676, 768) receive ReLU(conv_bias) != 0
    # inside the kernel; correctness relies on these w1 rows being exactly
    # zero (jnp.pad guarantees it -- keep this if the layout ever changes).
    w1 = fc_w.reshape(N_CLS, C_OUT, P).transpose(1, 2, 0)           # (16,676,10)
    w1 = jnp.pad(w1, ((0, 0), (0, P_PAD - P), (0, OUT_PAD - N_CLS)))
    w1 = w1.astype(MXU_DTYPE)                                       # (16,768,128) bf16
    b1 = jnp.pad(fc_b, (0, OUT_PAD - N_CLS)).reshape(1, OUT_PAD)
    b1 = b1.astype(jnp.float32)
    return wc, bc, w1, b1


# ----------------------------- forward (wrapper) ----------------------------

@jax.jit
def student_cnn_forward(x, wc, bc, w1, b1):
    """x: (N,1,28,28) f32 -> (N,10) f32, matching StudentCNN.forward."""
    N = x.shape[0]
    # Batch tile: multiple of 8 sublanes, capped at 128.  For N >= 16 ensure
    # nb >= 2 so the "parallel" batch axis can be split across v7x's two TCs.
    if N < 16:
        BN = _round_up(N, 8)
    else:
        BN = min(128, _round_up(_round_up(N, 8) // 2, 8))
    N_pad = _round_up(N, BN)
    nb = N_pad // BN

    # im2col, tap-major: patches[t, n, h*26 + w] = x[n, 0, h+dy, w+dx]
    xs = x[:, 0].astype(jnp.float32)
    taps = [xs[:, dy:dy + H_OUT, dx:dx + W_OUT].reshape(N, P)
            for dy in range(3) for dx in range(3)]
    patches = jnp.stack(taps, axis=0).astype(CONV_DTYPE)            # (9, N, 676)
    patches = jnp.pad(patches, ((0, 0), (0, N_pad - N), (0, P_PAD - P)))

    # Cost estimate reflecting the actual executed (padded) work and traffic.
    conv_flops = N_pad * P_PAD * C_OUT * 2 * TAPS
    fc_flops = 2 * N_pad * C_OUT * P_PAD * OUT_PAD
    bytes_accessed = (patches.size * patches.dtype.itemsize
                      + w1.size * w1.dtype.itemsize
                      + wc.size * 4 + bc.size * 4 + b1.size * 4
                      + N_pad * OUT_PAD * 4)

    out_pad = pl.pallas_call(
        fused_conv_relu_fc_kernel,
        out_shape=jax.ShapeDtypeStruct((N_pad, OUT_PAD), jnp.float32),
        grid=(nb,),
        in_specs=[
            pl.BlockSpec(memory_space=pltpu.MemorySpace.SMEM),             # wc
            pl.BlockSpec(memory_space=pltpu.MemorySpace.SMEM),             # bc
            pl.BlockSpec((TAPS, BN, P_PAD), lambda b: (0, b, 0)),          # patches
            # Resident FC weight: full array, constant block index -> DMA'd once.
            # (v7x nicety: pipeline_mode=pl.Buffered(1) would drop its 2nd buffer.)
            pl.BlockSpec((C_OUT, P_PAD, OUT_PAD), lambda b: (0, 0, 0)),    # w1
            pl.BlockSpec((1, OUT_PAD), lambda b: (0, 0)),                  # b1
        ],
        out_specs=pl.BlockSpec((BN, OUT_PAD), lambda b: (b, 0)),
        compiler_params=pltpu.CompilerParams(
            dimension_semantics=("parallel",),
            vmem_limit_bytes=48 * 1024 * 1024,
        ),
        cost_estimate=pl.CostEstimate(
            flops=conv_flops + fc_flops, transcendentals=0,
            bytes_accessed=bytes_accessed),
    )(wc, bc, patches, w1, b1)

    return out_pad[:N, :N_CLS]


# ----------------------------- pure-JAX reference ---------------------------

def reference_forward(x, conv_w, conv_b, fc_w, fc_b):
    y = jax.lax.conv_general_dilated(
        x, conv_w, window_strides=(1, 1), padding="VALID",
        dimension_numbers=("NCHW", "OIHW", "NCHW"),
    )
    y = jax.nn.relu(y + conv_b[None, :, None, None])
    y = y.reshape(y.shape[0], -1)                    # NCHW flatten: c*676 + p
    return y @ fc_w.T + fc_b


# --------------------------------- main --------------------------------------

if __name__ == "__main__":
    key = jax.random.PRNGKey(0)
    k_x, k_cw, k_cb, k_fw, k_fb = jax.random.split(key, 5)

    N = 2
    x = jax.random.normal(k_x, (N, 1, 28, 28), dtype=jnp.float32)

    # Deterministic synthetic parameters (shapes from the module's __init__)
    conv_w = jax.random.normal(k_cw, (16, 1, 3, 3), dtype=jnp.float32) * 0.1
    conv_b = jax.random.normal(k_cb, (16,), dtype=jnp.float32) * 0.1
    fc_w = jax.random.normal(k_fw, (10, 16 * 26 * 26), dtype=jnp.float32) * 0.01
    fc_b = jax.random.normal(k_fb, (10,), dtype=jnp.float32) * 0.01

    params = prepare_params(conv_w, conv_b, fc_w, fc_b)   # hoisted, once
    # Guard the padded-column / zero-weight-row invariant (see prepare_params).
    assert bool(jnp.all(params[2][:, P:, :] == 0))

    out = jax.block_until_ready(student_cnn_forward(x, *params))
    ref = jax.block_until_ready(reference_forward(x, conv_w, conv_b, fc_w, fc_b))

    assert out.shape == (N, 10), out.shape
    # Tolerance accounts for bf16 MXU operands (and bf16 conv on v6e/v7x);
    # accumulation is f32, observed error is ~1e-3 on these magnitudes.
    max_err = float(jnp.max(jnp.abs(out - ref)))
    assert jnp.allclose(out, ref, rtol=2e-2, atol=2e-2), max_err
    print("KERNEL_OK")
</pallas_src>

<mosaic_0001>
module attributes {stable_mosaic.version = 11 : i64} {
  func.func @fused_conv_relu_fc_kernel(%arg0: i32, %arg1: memref<16x9xf32, #tpu.memory_space<smem>>, %arg2: memref<16xf32, #tpu.memory_space<smem>>, %arg3: memref<9x8x768xbf16, #tpu.memory_space<vmem>>, %arg4: memref<16x768x128xbf16, #tpu.memory_space<vmem>>, %arg5: memref<1x128xf32, #tpu.memory_space<vmem>>, %arg6: memref<8x128xf32, #tpu.memory_space<vmem>>) attributes {dimension_semantics = [#tpu.dimension_semantics<parallel>], iteration_bounds = array<i64: 1>, scalar_prefetch = 0 : i64, scratch_operands = 0 : i64, tpu.core_type = #tpu.core_type<tc>, window_params = [{transform_indices = @transform_0, window_bounds = array<i64: 16, 9>}, {transform_indices = @transform_1, window_bounds = array<i64: 16>}, {transform_indices = @transform_2, window_bounds = array<i64: 9, 8, 768>}, {pipeline_mode = #tpu.pipeline_mode<synchronous>, transform_indices = @transform_3, window_bounds = array<i64: 16, 768, 128>}, {pipeline_mode = #tpu.pipeline_mode<synchronous>, transform_indices = @transform_4, window_bounds = array<i64: 1, 128>}, {transform_indices = @transform_5, window_bounds = array<i64: 8, 128>}]} {
    %cst = arith.constant 0.000000e+00 : f32
    %0 = vector.broadcast %cst : f32 to vector<8x128xf32>
    %c0 = arith.constant 0 : index
    %c0_0 = arith.constant 0 : index
    %c0_1 = arith.constant 0 : index
    %1 = vector.load %arg3[%c0, %c0_0, %c0_1] : memref<9x8x768xbf16, #tpu.memory_space<vmem>>, vector<1x8x768xbf16>
    %2 = vector.shape_cast %1 : vector<1x8x768xbf16> to vector<8x768xbf16>
    %c0_2 = arith.constant 0 : index
    %c0_3 = arith.constant 0 : index
    %3 = memref.load %arg1[%c0_2, %c0_3] : memref<16x9xf32, #tpu.memory_space<smem>>
    %4 = arith.truncf %3 : f32 to bf16
    %5 = vector.broadcast %4 : bf16 to vector<8x768xbf16>
    %6 = arith.mulf %2, %5 : vector<8x768xbf16>
    %c0_4 = arith.constant 0 : index
    %7 = memref.load %arg2[%c0_4] : memref<16xf32, #tpu.memory_space<smem>>
    %8 = arith.truncf %7 : f32 to bf16
    %9 = vector.broadcast %8 : bf16 to vector<8x768xbf16>
    %10 = arith.addf %6, %9 : vector<8x768xbf16>
    %c1 = arith.constant 1 : index
    %c0_5 = arith.constant 0 : index
    %c0_6 = arith.constant 0 : index
    %11 = vector.load %arg3[%c1, %c0_5, %c0_6] : memref<9x8x768xbf16, #tpu.memory_space<vmem>>, vector<1x8x768xbf16>
    %12 = vector.shape_cast %11 : vector<1x8x768xbf16> to vector<8x768xbf16>
    %c0_7 = arith.constant 0 : index
    %c1_8 = arith.constant 1 : index
    %13 = memref.load %arg1[%c0_7, %c1_8] : memref<16x9xf32, #tpu.memory_space<smem>>
    %14 = arith.truncf %13 : f32 to bf16
    %15 = vector.broadcast %14 : bf16 to vector<8x768xbf16>
    %16 = arith.mulf %12, %15 : vector<8x768xbf16>
    %17 = arith.addf %10, %16 : vector<8x768xbf16>
    %c2 = arith.constant 2 : index
    %c0_9 = arith.constant 0 : index
    %c0_10 = arith.constant 0 : index
    %18 = vector.load %arg3[%c2, %c0_9, %c0_10] : memref<9x8x768xbf16, #tpu.memory_space<vmem>>, vector<1x8x768xbf16>
    %19 = vector.shape_cast %18 : vector<1x8x768xbf16> to vector<8x768xbf16>
    %c0_11 = arith.constant 0 : index
    %c2_12 = arith.constant 2 : index
    %20 = memref.load %arg1[%c0_11, %c2_12] : memref<16x9xf32, #tpu.memory_space<smem>>
    %21 = arith.truncf %20 : f32 to bf16
    %22 = vector.broadcast %21 : bf16 to vector<8x768xbf16>
    %23 = arith.mulf %19, %22 : vector<8x768xbf16>
    %24 = arith.addf %17, %23 : vector<8x768xbf16>
    %c3 = arith.constant 3 : index
    %c0_13 = arith.constant 0 : index
    %c0_14 = arith.constant 0 : index
    %25 = vector.load %arg3[%c3, %c0_13, %c0_14] : memref<9x8x768xbf16, #tpu.memory_space<vmem>>, vector<1x8x768xbf16>
    %26 = vector.shape_cast %25 : vector<1x8x768xbf16> to vector<8x768xbf16>
    %c0_15 = arith.constant 0 : index
    %c3_16 = arith.constant 3 : index
    %27 = memref.load %arg1[%c0_15, %c3_16] : memref<16x9xf32, #tpu.memory_space<smem>>
    %28 = arith.truncf %27 : f32 to bf16
    %29 = vector.broadcast %28 : bf16 to vector<8x768xbf16>
    %30 = arith.mulf %26, %29 : vector<8x768xbf16>
    %31 = arith.addf %24, %30 : vector<8x768xbf16>
    %c4 = arith.constant 4 : index
    %c0_17 = arith.constant 0 : index
    %c0_18 = arith.constant 0 : index
    %32 = vector.load %arg3[%c4, %c0_17, %c0_18] : memref<9x8x768xbf16, #tpu.memory_space<vmem>>, vector<1x8x768xbf16>
    %33 = vector.shape_cast %32 : vector<1x8x768xbf16> to vector<8x768xbf16>
    %c0_19 = arith.constant 0 : index
    %c4_20 = arith.constant 4 : index
    %34 = memref.load %arg1[%c0_19, %c4_20] : memref<16x9xf32, #tpu.memory_space<smem>>
    %35 = arith.truncf %34 : f32 to bf16
    %36 = vector.broadcast %35 : bf16 to vector<8x768xbf16>
    %37 = arith.mulf %33, %36 : vector<8x768xbf16>
    %38 = arith.addf %31, %37 : vector<8x768xbf16>
    %c5 = arith.constant 5 : index
    %c0_21 = arith.constant 0 : index
    %c0_22 = arith.constant 0 : index
    %39 = vector.load %arg3[%c5, %c0_21, %c0_22] : memref<9x8x768xbf16, #tpu.memory_space<vmem>>, vector<1x8x768xbf16>
    %40 = vector.shape_cast %39 : vector<1x8x768xbf16> to vector<8x768xbf16>
    %c0_23 = arith.constant 0 : index
    %c5_24 = arith.constant 5 : index
    %41 = memref.load %arg1[%c0_23, %c5_24] : memref<16x9xf32, #tpu.memory_space<smem>>
    %42 = arith.truncf %41 : f32 to bf16
    %43 = vector.broadcast %42 : bf16 to vector<8x768xbf16>
    %44 = arith.mulf %40, %43 : vector<8x768xbf16>
    %45 = arith.addf %38, %44 : vector<8x768xbf16>
    %c6 = arith.constant 6 : index
    %c0_25 = arith.constant 0 : index
    %c0_26 = arith.constant 0 : index
    %46 = vector.load %arg3[%c6, %c0_25, %c0_26] : memref<9x8x768xbf16, #tpu.memory_space<vmem>>, vector<1x8x768xbf16>
    %47 = vector.shape_cast %46 : vector<1x8x768xbf16> to vector<8x768xbf16>
    %c0_27 = arith.constant 0 : index
    %c6_28 = arith.constant 6 : index
    %48 = memref.load %arg1[%c0_27, %c6_28] : memref<16x9xf32, #tpu.memory_space<smem>>
    %49 = arith.truncf %48 : f32 to bf16
    %50 = vector.broadcast %49 : bf16 to vector<8x768xbf16>
    %51 = arith.mulf %47, %50 : vector<8x768xbf16>
    %52 = arith.addf %45, %51 : vector<8x768xbf16>
    %c7 = arith.constant 7 : index
    %c0_29 = arith.constant 0 : index
    %c0_30 = arith.constant 0 : index
    %53 = vector.load %arg3[%c7, %c0_29, %c0_30] : memref<9x8x768xbf16, #tpu.memory_space<vmem>>, vector<1x8x768xbf16>
    %54 = vector.shape_cast %53 : vector<1x8x768xbf16> to vector<8x768xbf16>
    %c0_31 = arith.constant 0 : index
    %c7_32 = arith.constant 7 : index
    %55 = memref.load %arg1[%c0_31, %c7_32] : memref<16x9xf32, #tpu.memory_space<smem>>
    %56 = arith.truncf %55 : f32 to bf16
    %57 = vector.broadcast %56 : bf16 to vector<8x768xbf16>
    %58 = arith.mulf %54, %57 : vector<8x768xbf16>
    %59 = arith.addf %52, %58 : vector<8x768xbf16>
    %c8 = arith.constant 8 : index
    %c0_33 = arith.constant 0 : index
    %c0_34 = arith.constant 0 : index
    %60 = vector.load %arg3[%c8, %c0_33, %c0_34] : memref<9x8x768xbf16, #tpu.memory_space<vmem>>, vector<1x8x768xbf16>
    %61 = vector.shape_cast %60 : vector<1x8x768xbf16> to vector<8x768xbf16>
    %c0_35 = arith.constant 0 : index
    %c8_36 = arith.constant 8 : index
    %62 = memref.load %arg1[%c0_35, %c8_36] : memref<16x9xf32, #tpu.memory_space<smem>>
    %63 = arith.truncf %62 : f32 to bf16
    %64 = vector.broadcast %63 : bf16 to vector<8x768xbf16>
    %65 = arith.mulf %61, %64 : vector<8x768xbf16>
    %66 = arith.addf %59, %65 : vector<8x768xbf16>
    %cst_37 = arith.constant 0.000000e+00 : bf16
    %67 = vector.broadcast %cst_37 : bf16 to vector<8x768xbf16>
    %68 = arith.maximumf %66, %67 : vector<8x768xbf16>
    %c0_38 = arith.constant 0 : index
    %c0_39 = arith.constant 0 : index
    %c0_40 = arith.constant 0 : index
    %69 = vector.load %arg4[%c0_38, %c0_39, %c0_40] : memref<16x768x128xbf16, #tpu.memory_space<vmem>>, vector<1x768x128xbf16>
    %70 = vector.shape_cast %69 : vector<1x768x128xbf16> to vector<768x128xbf16>
    %cst_41 = arith.constant dense<0.000000e+00> : vector<8x128xf32>
    %71 = tpu.matmul %68, %70, %cst_41 {dimension_numbers = #tpu.dot_dimension_numbers<[1], [0], [0], [1], [0, 0, 1, 1], [], []>} : vector<8x768xbf16>, vector<768x128xbf16>, vector<8x128xf32> -> vector<8x128xf32>
    %72 = arith.addf %0, %71 : vector<8x128xf32>
    %c0_42 = arith.constant 0 : index
    %c0_43 = arith.constant 0 : index
    %c0_44 = arith.constant 0 : index
    %73 = vector.load %arg3[%c0_42, %c0_43, %c0_44] : memref<9x8x768xbf16, #tpu.memory_space<vmem>>, vector<1x8x768xbf16>
    %74 = vector.shape_cast %73 : vector<1x8x768xbf16> to vector<8x768xbf16>
    %c1_45 = arith.constant 1 : index
    %c0_46 = arith.constant 0 : index
    %75 = memref.load %arg1[%c1_45, %c0_46] : memref<16x9xf32, #tpu.memory_space<smem>>
    %76 = arith.truncf %75 : f32 to bf16
    %77 = vector.broadcast %76 : bf16 to vector<8x768xbf16>
    %78 = arith.mulf %74, %77 : vector<8x768xbf16>
    %c1_47 = arith.constant 1 : index
    %79 = memref.load %arg2[%c1_47] : memref<16xf32, #tpu.memory_space<smem>>
    %80 = arith.truncf %79 : f32 to bf16
    %81 = vector.broadcast %80 : bf16 to vector<8x768xbf16>
    %82 = arith.addf %78, %81 : vector<8x768xbf16>
    %c1_48 = arith.constant 1 : index
    %c0_49 = arith.constant 0 : index
    %c0_50 = arith.constant 0 : index
    %83 = vector.load %arg3[%c1_48, %c0_49, %c0_50] : memref<9x8x768xbf16, #tpu.memory_space<vmem>>, vector<1x8x768xbf16>
    %84 = vector.shape_cast %83 : vector<1x8x768xbf16> to vector<8x768xbf16>
    %c1_51 = arith.constant 1 : index
    %c1_52 = arith.constant 1 : index
    %85 = memref.load %arg1[%c1_51, %c1_52] : memref<16x9xf32, #tpu.memory_space<smem>>
    %86 = arith.truncf %85 : f32 to bf16
    %87 = vector.broadcast %86 : bf16 to vector<8x768xbf16>
    %88 = arith.mulf %84, %87 : vector<8x768xbf16>
    %89 = arith.addf %82, %88 : vector<8x768xbf16>
    %c2_53 = arith.constant 2 : index
    %c0_54 = arith.constant 0 : index
    %c0_55 = arith.constant 0 : index
    %90 = vector.load %arg3[%c2_53, %c0_54, %c0_55] : memref<9x8x768xbf16, #tpu.memory_space<vmem>>, vector<1x8x768xbf16>
    %91 = vector.shape_cast %90 : vector<1x8x768xbf16> to vector<8x768xbf16>
    %c1_56 = arith.constant 1 : index
    %c2_57 = arith.constant 2 : index
    %92 = memref.load %arg1[%c1_56, %c2_57] : memref<16x9xf32, #tpu.memory_space<smem>>
    %93 = arith.truncf %92 : f32 to bf16
    %94 = vector.broadcast %93 : bf16 to vector<8x768xbf16>
    %95 = arith.mulf %91, %94 : vector<8x768xbf16>
    %96 = arith.addf %89, %95 : vector<8x768xbf16>
    %c3_58 = arith.constant 3 : index
    %c0_59 = arith.constant 0 : index
    %c0_60 = arith.constant 0 : index
    %97 = vector.load %arg3[%c3_58, %c0_59, %c0_60] : memref<9x8x768xbf16, #tpu.memory_space<vmem>>, vector<1x8x768xbf16>
    %98 = vector.shape_cast %97 : vector<1x8x768xbf16> to vector<8x768xbf16>
    %c1_61 = arith.constant 1 : index
    %c3_62 = arith.constant 3 : index
    %99 = memref.load %arg1[%c1_61, %c3_62] : memref<16x9xf32, #tpu.memory_space<smem>>
    %100 = arith.truncf %99 : f32 to bf16
    %101 = vector.broadcast %100 : bf16 to vector<8x768xbf16>
    %102 = arith.mulf %98, %101 : vector<8x768xbf16>
    %103 = arith.addf %96, %102 : vector<8x768xbf16>
    %c4_63 = arith.constant 4 : index
    %c0_64 = arith.constant 0 : index
    %c0_65 = arith.constant 0 : index
    %104 = vector.load %arg3[%c4_63, %c0_64, %c0_65] : memref<9x8x768xbf16, #tpu.memory_space<vmem>>, vector<1x8x768xbf16>
    %105 = vector.shape_cast %104 : vector<1x8x768xbf16> to vector<8x768xbf16>
    %c1_66 = arith.constant 1 : index
    %c4_67 = arith.constant 4 : index
    %106 = memref.load %arg1[%c1_66, %c4_67] : memref<16x9xf32, #tpu.memory_space<smem>>
    %107 = arith.truncf %106 : f32 to bf16
    %108 = vector.broadcast %107 : bf16 to vector<8x768xbf16>
    %109 = arith.mulf %105, %108 : vector<8x768xbf16>
    %110 = arith.addf %103, %109 : vector<8x768xbf16>
    %c5_68 = arith.constant 5 : index
    %c0_69 = arith.constant 0 : index
    %c0_70 = arith.constant 0 : index
    %111 = vector.load %arg3[%c5_68, %c0_69, %c0_70] : memref<9x8x768xbf16, #tpu.memory_space<vmem>>, vector<1x8x768xbf16>
    %112 = vector.shape_cast %111 : vector<1x8x768xbf16> to vector<8x768xbf16>
    %c1_71 = arith.constant 1 : index
    %c5_72 = arith.constant 5 : index
    %113 = memref.load %arg1[%c1_71, %c5_72] : memref<16x9xf32, #tpu.memory_space<smem>>
    %114 = arith.truncf %113 : f32 to bf16
    %115 = vector.broadcast %114 : bf16 to vector<8x768xbf16>
    %116 = arith.mulf %112, %115 : vector<8x768xbf16>
    %117 = arith.addf %110, %116 : vector<8x768xbf16>
    %c6_73 = arith.constant 6 : index
    %c0_74 = arith.constant 0 : index
    %c0_75 = arith.constant 0 : index
    %118 = vector.load %arg3[%c6_73, %c0_74, %c0_75] : memref<9x8x768xbf16, #tpu.memory_space<vmem>>, vector<1x8x768xbf16>
    %119 = vector.shape_cast %118 : vector<1x8x768xbf16> to vector<8x768xbf16>
    %c1_76 = arith.constant 1 : index
    %c6_77 = arith.constant 6 : index
    %120 = memref.load %arg1[%c1_76, %c6_77] : memref<16x9xf32, #tpu.memory_space<smem>>
    %121 = arith.truncf %120 : f32 to bf16
    %122 = vector.broadcast %121 : bf16 to vector<8x768xbf16>
    %123 = arith.mulf %119, %122 : vector<8x768xbf16>
    %124 = arith.addf %117, %123 : vector<8x768xbf16>
    %c7_78 = arith.constant 7 : index
    %c0_79 = arith.constant 0 : index
    %c0_80 = arith.constant 0 : index
    %125 = vector.load %arg3[%c7_78, %c0_79, %c0_80] : memref<9x8x768xbf16, #tpu.memory_space<vmem>>, vector<1x8x768xbf16>
    %126 = vector.shape_cast %125 : vector<1x8x768xbf16> to vector<8x768xbf16>
    %c1_81 = arith.constant 1 : index
    %c7_82 = arith.constant 7 : index
    %127 = memref.load %arg1[%c1_81, %c7_82] : memref<16x9xf32, #tpu.memory_space<smem>>
    %128 = arith.truncf %127 : f32 to bf16
    %129 = vector.broadcast %128 : bf16 to vector<8x768xbf16>
    %130 = arith.mulf %126, %129 : vector<8x768xbf16>
    %131 = arith.addf %124, %130 : vector<8x768xbf16>
    %c8_83 = arith.constant 8 : index
    %c0_84 = arith.constant 0 : index
    %c0_85 = arith.constant 0 : index
    %132 = vector.load %arg3[%c8_83, %c0_84, %c0_85] : memref<9x8x768xbf16, #tpu.memory_space<vmem>>, vector<1x8x768xbf16>
    %133 = vector.shape_cast %132 : vector<1x8x768xbf16> to vector<8x768xbf16>
    %c1_86 = arith.constant 1 : index
    %c8_87 = arith.constant 8 : index
    %134 = memref.load %arg1[%c1_86, %c8_87] : memref<16x9xf32, #tpu.memory_space<smem>>
    %135 = arith.truncf %134 : f32 to bf16
    %136 = vector.broadcast %135 : bf16 to vector<8x768xbf16>
    %137 = arith.mulf %133, %136 : vector<8x768xbf16>
    %138 = arith.addf %131, %137 : vector<8x768xbf16>
    %cst_88 = arith.constant 0.000000e+00 : bf16
    %139 = vector.broadcast %cst_88 : bf16 to vector<8x768xbf16>
    %140 = arith.maximumf %138, %139 : vector<8x768xbf16>
    %c1_89 = arith.constant 1 : index
    %c0_90 = arith.constant 0 : index
    %c0_91 = arith.constant 0 : index
    %141 = vector.load %arg4[%c1_89, %c0_90, %c0_91] : memref<16x768x128xbf16, #tpu.memory_space<vmem>>, vector<1x768x128xbf16>
    %142 = vector.shape_cast %141 : vector<1x768x128xbf16> to vector<768x128xbf16>
    %cst_92 = arith.constant dense<0.000000e+00> : vector<8x128xf32>
    %143 = tpu.matmul %140, %142, %cst_92 {dimension_numbers = #tpu.dot_dimension_numbers<[1], [0], [0], [1], [0, 0, 1, 1], [], []>} : vector<8x768xbf16>, vector<768x128xbf16>, vector<8x128xf32> -> vector<8x128xf32>
    %144 = arith.addf %72, %143 : vector<8x128xf32>
    %c0_93 = arith.constant 0 : index
    %c0_94 = arith.constant 0 : index
    %c0_95 = arith.constant 0 : index
    %145 = vector.load %arg3[%c0_93, %c0_94, %c0_95] : memref<9x8x768xbf16, #tpu.memory_space<vmem>>, vector<1x8x768xbf16>
    %146 = vector.shape_cast %145 : vector<1x8x768xbf16> to vector<8x768xbf16>
    %c2_96 = arith.constant 2 : index
    %c0_97 = arith.constant 0 : index
    %147 = memref.load %arg1[%c2_96, %c0_97] : memref<16x9xf32, #tpu.memory_space<smem>>
    %148 = arith.truncf %147 : f32 to bf16
    %149 = vector.broadcast %148 : bf16 to vector<8x768xbf16>
    %150 = arith.mulf %146, %149 : vector<8x768xbf16>
    %c2_98 = arith.constant 2 : index
    %151 = memref.load %arg2[%c2_98] : memref<16xf32, #tpu.memory_space<smem>>
    %152 = arith.truncf %151 : f32 to bf16
    %153 = vector.broadcast %152 : bf16 to vector<8x768xbf16>
    %154 = arith.addf %150, %153 : vector<8x768xbf16>
    %c1_99 = arith.constant 1 : index
    %c0_100 = arith.constant 0 : index
    %c0_101 = arith.constant 0 : index
    %155 = vector.load %arg3[%c1_99, %c0_100, %c0_101] : memref<9x8x768xbf16, #tpu.memory_space<vmem>>, vector<1x8x768xbf16>
    %156 = vector.shape_cast %155 : vector<1x8x768xbf16> to vector<8x768xbf16>
    %c2_102 = arith.constant 2 : index
    %c1_103 = arith.constant 1 : index
    %157 = memref.load %arg1[%c2_102, %c1_103] : memref<16x9xf32, #tpu.memory_space<smem>>
    %158 = arith.truncf %157 : f32 to bf16
    %159 = vector.broadcast %158 : bf16 to vector<8x768xbf16>
    %160 = arith.mulf %156, %159 : vector<8x768xbf16>
    %161 = arith.addf %154, %160 : vector<8x768xbf16>
    %c2_104 = arith.constant 2 : index
    %c0_105 = arith.constant 0 : index
    %c0_106 = arith.constant 0 : index
    %162 = vector.load %arg3[%c2_104, %c0_105, %c0_106] : memref<9x8x768xbf16, #tpu.memory_space<vmem>>, vector<1x8x768xbf16>
    %163 = vector.shape_cast %162 : vector<1x8x768xbf16> to vector<8x768xbf16>
    %c2_107 = arith.constant 2 : index
    %c2_108 = arith.constant 2 : index
    %164 = memref.load %arg1[%c2_107, %c2_108] : memref<16x9xf32, #tpu.memory_space<smem>>
    %165 = arith.truncf %164 : f32 to bf16
    %166 = vector.broadcast %165 : bf16 to vector<8x768xbf16>
    %167 = arith.mulf %163, %166 : vector<8x768xbf16>
    %168 = arith.addf %161, %167 : vector<8x768xbf16>
    %c3_109 = arith.constant 3 : index
    %c0_110 = arith.constant 0 : index
    %c0_111 = arith.constant 0 : index
    %169 = vector.load %arg3[%c3_109, %c0_110, %c0_111] : memref<9x8x768xbf16, #tpu.memory_space<vmem>>, vector<1x8x768xbf16>
    %170 = vector.shape_cast %169 : vector<1x8x768xbf16> to vector<8x768xbf16>
    %c2_112 = arith.constant 2 : index
    %c3_113 = arith.constant 3 : index
    %171 = memref.load %arg1[%c2_112, %c3_113] : memref<16x9xf32, #tpu.memory_space<smem>>
    %172 = arith.truncf %171 : f32 to bf16
    %173 = vector.broadcast %172 : bf16 to vector<8x768xbf16>
    %174 = arith.mulf %170, %173 : vector<8x768xbf16>
    %175 = arith.addf %168, %174 : vector<8x768xbf16>
    %c4_114 = arith.constant 4 : index
    %c0_115 = arith.constant 0 : index
    %c0_116 = arith.constant 0 : index
    %176 = vector.load %arg3[%c4_114, %c0_115, %c0_116] : memref<9x8x768xbf16, #tpu.memory_space<vmem>>, vector<1x8x768xbf16>
    %177 = vector.shape_cast %176 : vector<1x8x768xbf16> to vector<8x768xbf16>
    %c2_117 = arith.constant 2 : index
    %c4_118 = arith.constant 4 : index
    %178 = memref.load %arg1[%c2_117, %c4_118] : memref<16x9xf32, #tpu.memory_space<smem>>
    %179 = arith.truncf %178 : f32 to bf16
    %180 = vector.broadcast %179 : bf16 to vector<8x768xbf16>
    %181 = arith.mulf %177, %180 : vector<8x768xbf16>
    %182 = arith.addf %175, %181 : vector<8x768xbf16>
    %c5_119 = arith.constant 5 : index
    %c0_120 = arith.constant 0 : index
    %c0_121 = arith.constant 0 : index
    %183 = vector.load %arg3[%c5_119, %c0_120, %c0_121] : memref<9x8x768xbf16, #tpu.memory_space<vmem>>, vector<1x8x768xbf16>
    %184 = vector.shape_cast %183 : vector<1x8x768xbf16> to vector<8x768xbf16>
    %c2_122 = arith.constant 2 : index
    %c5_123 = arith.constant 5 : index
    %185 = memref.load %arg1[%c2_122, %c5_123] : memref<16x9xf32, #tpu.memory_space<smem>>
    %186 = arith.truncf %185 : f32 to bf16
    %187 = vector.broadcast %186 : bf16 to vector<8x768xbf16>
    %188 = arith.mulf %184, %187 : vector<8x768xbf16>
    %189 = arith.addf %182, %188 : vector<8x768xbf16>
    %c6_124 = arith.constant 6 : index
    %c0_125 = arith.constant 0 : index
    %c0_126 = arith.constant 0 : index
    %190 = vector.load %arg3[%c6_124, %c0_125, %c0_126] : memref<9x8x768xbf16, #tpu.memory_space<vmem>>, vector<1x8x768xbf16>
    %191 = vector.shape_cast %190 : vector<1x8x768xbf16> to vector<8x768xbf16>
    %c2_127 = arith.constant 2 : index
    %c6_128 = arith.constant 6 : index
    %192 = memref.load %arg1[%c2_127, %c6_128] : memref<16x9xf32, #tpu.memory_space<smem>>
    %193 = arith.truncf %192 : f32 to bf16
    %194 = vector.broadcast %193 : bf16 to vector<8x768xbf16>
    %195 = arith.mulf %191, %194 : vector<8x768xbf16>
    %196 = arith.addf %189, %195 : vector<8x768xbf16>
    %c7_129 = arith.constant 7 : index
    %c0_130 = arith.constant 0 : index
    %c0_131 = arith.constant 0 : index
    %197 = vector.load %arg3[%c7_129, %c0_130, %c0_131] : memref<9x8x768xbf16, #tpu.memory_space<vmem>>, vector<1x8x768xbf16>
    %198 = vector.shape_cast %197 : vector<1x8x768xbf16> to vector<8x768xbf16>
    %c2_132 = arith.constant 2 : index
    %c7_133 = arith.constant 7 : index
    %199 = memref.load %arg1[%c2_132, %c7_133] : memref<16x9xf32, #tpu.memory_space<smem>>
    %200 = arith.truncf %199 : f32 to bf16
    %201 = vector.broadcast %200 : bf16 to vector<8x768xbf16>
    %202 = arith.mulf %198, %201 : vector<8x768xbf16>
    %203 = arith.addf %196, %202 : vector<8x768xbf16>
    %c8_134 = arith.constant 8 : index
    %c0_135 = arith.constant 0 : index
    %c0_136 = arith.constant 0 : index
    %204 = vector.load %arg3[%c8_134, %c0_135, %c0_136] : memref<9x8x768xbf16, #tpu.memory_space<vmem>>, vector<1x8x768xbf16>
    %205 = vector.shape_cast %204 : vector<1x8x768xbf16> to vector<8x768xbf16>
    %c2_137 = arith.constant 2 : index
    %c8_138 = arith.constant 8 : index
    %206 = memref.load %arg1[%c2_137, %c8_138] : memref<16x9xf32, #tpu.memory_space<smem>>
    %207 = arith.truncf %206 : f32 to bf16
    %208 = vector.broadcast %207 : bf16 to vector<8x768xbf16>
    %209 = arith.mulf %205, %208 : vector<8x768xbf16>
    %210 = arith.addf %203, %209 : vector<8x768xbf16>
    %cst_139 = arith.constant 0.000000e+00 : bf16
    %211 = vector.broadcast %cst_139 : bf16 to vector<8x768xbf16>
    %212 = arith.maximumf %210, %211 : vector<8x768xbf16>
    %c2_140 = arith.constant 2 : index
    %c0_141 = arith.constant 0 : index
    %c0_142 = arith.constant 0 : index
    %213 = vector.load %arg4[%c2_140, %c0_141, %c0_142] : memref<16x768x128xbf16, #tpu.memory_space<vmem>>, vector<1x768x128xbf16>
    %214 = vector.shape_cast %213 : vector<1x768x128xbf16> to vector<768x128xbf16>
    %cst_143 = arith.constant dense<0.000000e+00> : vector<8x128xf32>
    %215 = tpu.matmul %212, %214, %cst_143 {dimension_numbers = #tpu.dot_dimension_numbers<[1], [0], [0], [1], [0, 0, 1, 1], [], []>} : vector<8x768xbf16>, vector<768x128xbf16>, vector<8x128xf32> -> vector<8x128xf32>
    %216 = arith.addf %144, %215 : vector<8x128xf32>
    %c0_144 = arith.constant 0 : index
    %c0_145 = arith.constant 0 : index
    %c0_146 = arith.constant 0 : index
    %217 = vector.load %arg3[%c0_144, %c0_145, %c0_146] : memref<9x8x768xbf16, #tpu.memory_space<vmem>>, vector<1x8x768xbf16>
    %218 = vector.shape_cast %217 : vector<1x8x768xbf16> to vector<8x768xbf16>
    %c3_147 = arith.constant 3 : index
    %c0_148 = arith.constant 0 : index
    %219 = memref.load %arg1[%c3_147, %c0_148] : memref<16x9xf32, #tpu.memory_space<smem>>
    %220 = arith.truncf %219 : f32 to bf16
    %221 = vector.broadcast %220 : bf16 to vector<8x768xbf16>
    %222 = arith.mulf %218, %221 : vector<8x768xbf16>
    %c3_149 = arith.constant 3 : index
    %223 = memref.load %arg2[%c3_149] : memref<16xf32, #tpu.memory_space<smem>>
    %224 = arith.truncf %223 : f32 to bf16
    %225 = vector.broadcast %224 : bf16 to vector<8x768xbf16>
    %226 = arith.addf %222, %225 : vector<8x768xbf16>
    %c1_150 = arith.constant 1 : index
    %c0_151 = arith.constant 0 : index
    %c0_152 = arith.constant 0 : index
    %227 = vector.load %arg3[%c1_150, %c0_151, %c0_152] : memref<9x8x768xbf16, #tpu.memory_space<vmem>>, vector<1x8x768xbf16>
    %228 = vector.shape_cast %227 : vector<1x8x768xbf16> to vector<8x768xbf16>
    %c3_153 = arith.constant 3 : index
    %c1_154 = arith.constant 1 : index
    %229 = memref.load %arg1[%c3_153, %c1_154] : memref<16x9xf32, #tpu.memory_space<smem>>
    %230 = arith.truncf %229 : f32 to bf16
    %231 = vector.broadcast %230 : bf16 to vector<8x768xbf16>
    %232 = arith.mulf %228, %231 : vector<8x768xbf16>
    %233 = arith.addf %226, %232 : vector<8x768xbf16>
    %c2_155 = arith.constant 2 : index
    %c0_156 = arith.constant 0 : index
    %c0_157 = arith.constant 0 : index
    %234 = vector.load %arg3[%c2_155, %c0_156, %c0_157] : memref<9x8x768xbf16, #tpu.memory_space<vmem>>, vector<1x8x768xbf16>
    %235 = vector.shape_cast %234 : vector<1x8x768xbf16> to vector<8x768xbf16>
    %c3_158 = arith.constant 3 : index
    %c2_159 = arith.constant 2 : index
    %236 = memref.load %arg1[%c3_158, %c2_159] : memref<16x9xf32, #tpu.memory_space<smem>>
    %237 = arith.truncf %236 : f32 to bf16
    %238 = vector.broadcast %237 : bf16 to vector<8x768xbf16>
    %239 = arith.mulf %235, %238 : vector<8x768xbf16>
    %240 = arith.addf %233, %239 : vector<8x768xbf16>
    %c3_160 = arith.constant 3 : index
    %c0_161 = arith.constant 0 : index
    %c0_162 = arith.constant 0 : index
    %241 = vector.load %arg3[%c3_160, %c0_161, %c0_162] : memref<9x8x768xbf16, #tpu.memory_space<vmem>>, vector<1x8x768xbf16>
    %242 = vector.shape_cast %241 : vector<1x8x768xbf16> to vector<8x768xbf16>
    %c3_163 = arith.constant 3 : index
    %c3_164 = arith.constant 3 : index
    %243 = memref.load %arg1[%c3_163, %c3_164] : memref<16x9xf32, #tpu.memory_space<smem>>
    %244 = arith.truncf %243 : f32 to bf16
    %245 = vector.broadcast %244 : bf16 to vector<8x768xbf16>
    %246 = arith.mulf %242, %245 : vector<8x768xbf16>
    %247 = arith.addf %240, %246 : vector<8x768xbf16>
    %c4_165 = arith.constant 4 : index
    %c0_166 = arith.constant 0 : index
    %c0_167 = arith.constant 0 : index
    %248 = vector.load %arg3[%c4_165, %c0_166, %c0_167] : memref<9x8x768xbf16, #tpu.memory_space<vmem>>, vector<1x8x768xbf16>
    %249 = vector.shape_cast %248 : vector<1x8x768xbf16> to vector<8x768xbf16>
    %c3_168 = arith.constant 3 : index
    %c4_169 = arith.constant 4 : index
    %250 = memref.load %arg1[%c3_168, %c4_169] : memref<16x9xf32, #tpu.memory_space<smem>>
    %251 = arith.truncf %250 : f32 to bf16
    %252 = vector.broadcast %251 : bf16 to vector<8x768xbf16>
    %253 = arith.mulf %249, %252 : vector<8x768xbf16>
    %254 = arith.addf %247, %253 : vector<8x768xbf16>
    %c5_170 = arith.constant 5 : index
    %c0_171 = arith.constant 0 : index
    %c0_172 = arith.constant 0 : index
    %255 = vector.load %arg3[%c5_170, %c0_171, %c0_172] : memref<9x8x768xbf16, #tpu.memory_space<vmem>>, vector<1x8x768xbf16>
    %256 = vector.shape_cast %255 : vector<1x8x768xbf16> to vector<8x768xbf16>
    %c3_173 = arith.constant 3 : index
    %c5_174 = arith.constant 5 : index
    %257 = memref.load %arg1[%c3_173, %c5_174] : memref<16x9xf32, #tpu.memory_space<smem>>
    %258 = arith.truncf %257 : f32 to bf16
    %259 = vector.broadcast %258 : bf16 to vector<8x768xbf16>
    %260 = arith.mulf %256, %259 : vector<8x768xbf16>
    %261 = arith.addf %254, %260 : vector<8x768xbf16>
    %c6_175 = arith.constant 6 : index
    %c0_176 = arith.constant 0 : index
    %c0_177 = arith.constant 0 : index
    %262 = vector.load %arg3[%c6_175, %c0_176, %c0_177] : memref<9x8x768xbf16, #tpu.memory_space<vmem>>, vector<1x8x768xbf16>
    %263 = vector.shape_cast %262 : vector<1x8x768xbf16> to vector<8x768xbf16>
    %c3_178 = arith.constant 3 : index
    %c6_179 = arith.constant 6 : index
    %264 = memref.load %arg1[%c3_178, %c6_179] : memref<16x9xf32, #tpu.memory_space<smem>>
    %265 = arith.truncf %264 : f32 to bf16
    %266 = vector.broadcast %265 : bf16 to vector<8x768xbf16>
    %267 = arith.mulf %263, %266 : vector<8x768xbf16>
    %268 = arith.addf %261, %267 : vector<8x768xbf16>
    %c7_180 = arith.constant 7 : index
    %c0_181 = arith.constant 0 : index
    %c0_182 = arith.constant 0 : index
    %269 = vector.load %arg3[%c7_180, %c0_181, %c0_182] : memref<9x8x768xbf16, #tpu.memory_space<vmem>>, vector<1x8x768xbf16>
    %270 = vector.shape_cast %269 : vector<1x8x768xbf16> to vector<8x768xbf16>
    %c3_183 = arith.constant 3 : index
    %c7_184 = arith.constant 7 : index
    %271 = memref.load %arg1[%c3_183, %c7_184] : memref<16x9xf32, #tpu.memory_space<smem>>
    %272 = arith.truncf %271 : f32 to bf16
    %273 = vector.broadcast %272 : bf16 to vector<8x768xbf16>
    %274 = arith.mulf %270, %273 : vector<8x768xbf16>
    %275 = arith.addf %268, %274 : vector<8x768xbf16>
    %c8_185 = arith.constant 8 : index
    %c0_186 = arith.constant 0 : index
    %c0_187 = arith.constant 0 : index
    %276 = vector.load %arg3[%c8_185, %c0_186, %c0_187] : memref<9x8x768xbf16, #tpu.memory_space<vmem>>, vector<1x8x768xbf16>
    %277 = vector.shape_cast %276 : vector<1x8x768xbf16> to vector<8x768xbf16>
    %c3_188 = arith.constant 3 : index
    %c8_189 = arith.constant 8 : index
    %278 = memref.load %arg1[%c3_188, %c8_189] : memref<16x9xf32, #tpu.memory_space<smem>>
    %279 = arith.truncf %278 : f32 to bf16
    %280 = vector.broadcast %279 : bf16 to vector<8x768xbf16>
    %281 = arith.mulf %277, %280 : vector<8x768xbf16>
    %282 = arith.addf %275, %281 : vector<8x768xbf16>
    %cst_190 = arith.constant 0.000000e+00 : bf16
    %283 = vector.broadcast %cst_190 : bf16 to vector<8x768xbf16>
    %284 = arith.maximumf %282, %283 : vector<8x768xbf16>
    %c3_191 = arith.constant 3 : index
    %c0_192 = arith.constant 0 : index
    %c0_193 = arith.constant 0 : index
    %285 = vector.load %arg4[%c3_191, %c0_192, %c0_193] : memref<16x768x128xbf16, #tpu.memory_space<vmem>>, vector<1x768x128xbf16>
    %286 = vector.shape_cast %285 : vector<1x768x128xbf16> to vector<768x128xbf16>
    %cst_194 = arith.constant dense<0.000000e+00> : vector<8x128xf32>
    %287 = tpu.matmul %284, %286, %cst_194 {dimension_numbers = #tpu.dot_dimension_numbers<[1], [0], [0], [1], [0, 0, 1, 1], [], []>} : vector<8x768xbf16>, vector<768x128xbf16>, vector<8x128xf32> -> vector<8x128xf32>
    %288 = arith.addf %216, %287 : vector<8x128xf32>
    %c0_195 = arith.constant 0 : index
    %c0_196 = arith.constant 0 : index
    %c0_197 = arith.constant 0 : index
    %289 = vector.load %arg3[%c0_195, %c0_196, %c0_197] : memref<9x8x768xbf16, #tpu.memory_space<vmem>>, vector<1x8x768xbf16>
    %290 = vector.shape_cast %289 : vector<1x8x768xbf16> to vector<8x768xbf16>
    %c4_198 = arith.constant 4 : index
    %c0_199 = arith.constant 0 : index
    %291 = memref.load %arg1[%c4_198, %c0_199] : memref<16x9xf32, #tpu.memory_space<smem>>
    %292 = arith.truncf %291 : f32 to bf16
    %293 = vector.broadcast %292 : bf16 to vector<8x768xbf16>
    %294 = arith.mulf %290, %293 : vector<8x768xbf16>
    %c4_200 = arith.constant 4 : index
    %295 = memref.load %arg2[%c4_200] : memref<16xf32, #tpu.memory_space<smem>>
    %296 = arith.truncf %295 : f32 to bf16
    %297 = vector.broadcast %296 : bf16 to vector<8x768xbf16>
    %298 = arith.addf %294, %297 : vector<8x768xbf16>
    %c1_201 = arith.constant 1 : index
    %c0_202 = arith.constant 0 : index
    %c0_203 = arith.constant 0 : index
    %299 = vector.load %arg3[%c1_201, %c0_202, %c0_203] : memref<9x8x768xbf16, #tpu.memory_space<vmem>>, vector<1x8x768xbf16>
    %300 = vector.shape_cast %299 : vector<1x8x768xbf16> to vector<8x768xbf16>
    %c4_204 = arith.constant 4 : index
    %c1_205 = arith.constant 1 : index
    %301 = memref.load %arg1[%c4_204, %c1_205] : memref<16x9xf32, #tpu.memory_space<smem>>
    %302 = arith.truncf %301 : f32 to bf16
    %303 = vector.broadcast %302 : bf16 to vector<8x768xbf16>
    %304 = arith.mulf %300, %303 : vector<8x768xbf16>
    %305 = arith.addf %298, %304 : vector<8x768xbf16>
    %c2_206 = arith.constant 2 : index
    %c0_207 = arith.constant 0 : index
    %c0_208 = arith.constant 0 : index
    %306 = vector.load %arg3[%c2_206, %c0_207, %c0_208] : memref<9x8x768xbf16, #tpu.memory_space<vmem>>, vector<1x8x768xbf16>
    %307 = vector.shape_cast %306 : vector<1x8x768xbf16> to vector<8x768xbf16>
    %c4_209 = arith.constant 4 : index
    %c2_210 = arith.constant 2 : index
    %308 = memref.load %arg1[%c4_209, %c2_210] : memref<16x9xf32, #tpu.memory_space<smem>>
    %309 = arith.truncf %308 : f32 to bf16
    %310 = vector.broadcast %309 : bf16 to vector<8x768xbf16>
    %311 = arith.mulf %307, %310 : vector<8x768xbf16>
    %312 = arith.addf %305, %311 : vector<8x768xbf16>
    %c3_211 = arith.constant 3 : index
    %c0_212 = arith.constant 0 : index
    %c0_213 = arith.constant 0 : index
    %313 = vector.load %arg3[%c3_211, %c0_212, %c0_213] : memref<9x8x768xbf16, #tpu.memory_space<vmem>>, vector<1x8x768xbf16>
    %314 = vector.shape_cast %313 : vector<1x8x768xbf16> to vector<8x768xbf16>
    %c4_214 = arith.constant 4 : index
    %c3_215 = arith.constant 3 : index
    %315 = memref.load %arg1[%c4_214, %c3_215] : memref<16x9xf32, #tpu.memory_space<smem>>
    %316 = arith.truncf %315 : f32 to bf16
    %317 = vector.broadcast %316 : bf16 to vector<8x768xbf16>
    %318 = arith.mulf %314, %317 : vector<8x768xbf16>
    %319 = arith.addf %312, %318 : vector<8x768xbf16>
    %c4_216 = arith.constant 4 : index
    %c0_217 = arith.constant 0 : index
    %c0_218 = arith.constant 0 : index
    %320 = vector.load %arg3[%c4_216, %c0_217, %c0_218] : memref<9x8x768xbf16, #tpu.memory_space<vmem>>, vector<1x8x768xbf16>
    %321 = vector.shape_cast %320 : vector<1x8x768xbf16> to vector<8x768xbf16>
    %c4_219 = arith.constant 4 : index
    %c4_220 = arith.constant 4 : index
    %322 = memref.load %arg1[%c4_219, %c4_220] : memref<16x9xf32, #tpu.memory_space<smem>>
    %323 = arith.truncf %322 : f32 to bf16
    %324 = vector.broadcast %323 : bf16 to vector<8x768xbf16>
    %325 = arith.mulf %321, %324 : vector<8x768xbf16>
    %326 = arith.addf %319, %325 : vector<8x768xbf16>
    %c5_221 = arith.constant 5 : index
    %c0_222 = arith.constant 0 : index
    %c0_223 = arith.constant 0 : index
    %327 = vector.load %arg3[%c5_221, %c0_222, %c0_223] : memref<9x8x768xbf16, #tpu.memory_space<vmem>>, vector<1x8x768xbf16>
    %328 = vector.shape_cast %327 : vector<1x8x768xbf16> to vector<8x768xbf16>
    %c4_224 = arith.constant 4 : index
    %c5_225 = arith.constant 5 : index
    %329 = memref.load %arg1[%c4_224, %c5_225] : memref<16x9xf32, #tpu.memory_space<smem>>
    %330 = arith.truncf %329 : f32 to bf16
    %331 = vector.broadcast %330 : bf16 to vector<8x768xbf16>
    %332 = arith.mulf %328, %331 : vector<8x768xbf16>
    %333 = arith.addf %326, %332 : vector<8x768xbf16>
    %c6_226 = arith.constant 6 : index
    %c0_227 = arith.constant 0 : index
    %c0_228 = arith.constant 0 : index
    %334 = vector.load %arg3[%c6_226, %c0_227, %c0_228] : memref<9x8x768xbf16, #tpu.memory_space<vmem>>, vector<1x8x768xbf16>
    %335 = vector.shape_cast %334 : vector<1x8x768xbf16> to vector<8x768xbf16>
    %c4_229 = arith.constant 4 : index
    %c6_230 = arith.constant 6 : index
    %336 = memref.load %arg1[%c4_229, %c6_230] : memref<16x9xf32, #tpu.memory_space<smem>>
    %337 = arith.truncf %336 : f32 to bf16
    %338 = vector.broadcast %337 : bf16 to vector<8x768xbf16>
    %339 = arith.mulf %335, %338 : vector<8x768xbf16>
    %340 = arith.addf %333, %339 : vector<8x768xbf16>
    %c7_231 = arith.constant 7 : index
    %c0_232 = arith.constant 0 : index
    %c0_233 = arith.constant 0 : index
    %341 = vector.load %arg3[%c7_231, %c0_232, %c0_233] : memref<9x8x768xbf16, #tpu.memory_space<vmem>>, vector<1x8x768xbf16>
    %342 = vector.shape_cast %341 : vector<1x8x768xbf16> to vector<8x768xbf16>
    %c4_234 = arith.constant 4 : index
    %c7_235 = arith.constant 7 : index
    %343 = memref.load %arg1[%c4_234, %c7_235] : memref<16x9xf32, #tpu.memory_space<smem>>
    %344 = arith.truncf %343 : f32 to bf16
    %345 = vector.broadcast %344 : bf16 to vector<8x768xbf16>
    %346 = arith.mulf %342, %345 : vector<8x768xbf16>
    %347 = arith.addf %340, %346 : vector<8x768xbf16>
    %c8_236 = arith.constant 8 : index
    %c0_237 = arith.constant 0 : index
    %c0_238 = arith.constant 0 : index
    %348 = vector.load %arg3[%c8_236, %c0_237, %c0_238] : memref<9x8x768xbf16, #tpu.memory_space<vmem>>, vector<1x8x768xbf16>
    %349 = vector.shape_cast %348 : vector<1x8x768xbf16> to vector<8x768xbf16>
    %c4_239 = arith.constant 4 : index
    %c8_240 = arith.constant 8 : index
    %350 = memref.load %arg1[%c4_239, %c8_240] : memref<16x9xf32, #tpu.memory_space<smem>>
    %351 = arith.truncf %350 : f32 to bf16
    %352 = vector.broadcast %351 : bf16 to vector<8x768xbf16>
    %353 = arith.mulf %349, %352 : vector<8x768xbf16>
    %354 = arith.addf %347, %353 : vector<8x768xbf16>
    %cst_241 = arith.constant 0.000000e+00 : bf16
    %355 = vector.broadcast %cst_241 : bf16 to vector<8x768xbf16>
    %356 = arith.maximumf %354, %355 : vector<8x768xbf16>
    %c4_242 = arith.constant 4 : index
    %c0_243 = arith.constant 0 : index
    %c0_244 = arith.constant 0 : index
    %357 = vector.load %arg4[%c4_242, %c0_243, %c0_244] : memref<16x768x128xbf16, #tpu.memory_space<vmem>>, vector<1x768x128xbf16>
    %358 = vector.shape_cast %357 : vector<1x768x128xbf16> to vector<768x128xbf16>
    %cst_245 = arith.constant dense<0.000000e+00> : vector<8x128xf32>
    %359 = tpu.matmul %356, %358, %cst_245 {dimension_numbers = #tpu.dot_dimension_numbers<[1], [0], [0], [1], [0, 0, 1, 1], [], []>} : vector<8x768xbf16>, vector<768x128xbf16>, vector<8x128xf32> -> vector<8x128xf32>
    %360 = arith.addf %288, %359 : vector<8x128xf32>
    %c0_246 = arith.constant 0 : index
    %c0_247 = arith.constant 0 : index
    %c0_248 = arith.constant 0 : index
    %361 = vector.load %arg3[%c0_246, %c0_247, %c0_248] : memref<9x8x768xbf16, #tpu.memory_space<vmem>>, vector<1x8x768xbf16>
    %362 = vector.shape_cast %361 : vector<1x8x768xbf16> to vector<8x768xbf16>
    %c5_249 = arith.constant 5 : index
    %c0_250 = arith.constant 0 : index
    %363 = memref.load %arg1[%c5_249, %c0_250] : memref<16x9xf32, #tpu.memory_space<smem>>
    %364 = arith.truncf %363 : f32 to bf16
    %365 = vector.broadcast %364 : bf16 to vector<8x768xbf16>
    %366 = arith.mulf %362, %365 : vector<8x768xbf16>
    %c5_251 = arith.constant 5 : index
    %367 = memref.load %arg2[%c5_251] : memref<16xf32, #tpu.memory_space<smem>>
    %368 = arith.truncf %367 : f32 to bf16
    %369 = vector.broadcast %368 : bf16 to vector<8x768xbf16>
    %370 = arith.addf %366, %369 : vector<8x768xbf16>
    %c1_252 = arith.constant 1 : index
    %c0_253 = arith.constant 0 : index
    %c0_254 = arith.constant 0 : index
    %371 = vector.load %arg3[%c1_252, %c0_253, %c0_254] : memref<9x8x768xbf16, #tpu.memory_space<vmem>>, vector<1x8x768xbf16>
    %372 = vector.shape_cast %371 : vector<1x8x768xbf16> to vector<8x768xbf16>
    %c5_255 = arith.constant 5 : index
    %c1_256 = arith.constant 1 : index
    %373 = memref.load %arg1[%c5_255, %c1_256] : memref<16x9xf32, #tpu.memory_space<smem>>
    %374 = arith.truncf %373 : f32 to bf16
    %375 = vector.broadcast %374 : bf16 to vector<8x768xbf16>
    %376 = arith.mulf %372, %375 : vector<8x768xbf16>
    %377 = arith.addf %370, %376 : vector<8x768xbf16>
    %c2_257 = arith.constant 2 : index
    %c0_258 = arith.constant 0 : index
    %c0_259 = arith.constant 0 : index
    %378 = vector.load %arg3[%c2_257, %c0_258, %c0_259] : memref<9x8x768xbf16, #tpu.memory_space<vmem>>, vector<1x8x768xbf16>
    %379 = vector.shape_cast %378 : vector<1x8x768xbf16> to vector<8x768xbf16>
    %c5_260 = arith.constant 5 : index
    %c2_261 = arith.constant 2 : index
    %380 = memref.load %arg1[%c5_260, %c2_261] : memref<16x9xf32, #tpu.memory_space<smem>>
    %381 = arith.truncf %380 : f32 to bf16
    %382 = vector.broadcast %381 : bf16 to vector<8x768xbf16>
    %383 = arith.mulf %379, %382 : vector<8x768xbf16>
    %384 = arith.addf %377, %383 : vector<8x768xbf16>
    %c3_262 = arith.constant 3 : index
    %c0_263 = arith.constant 0 : index
    %c0_264 = arith.constant 0 : index
    %385 = vector.load %arg3[%c3_262, %c0_263, %c0_264] : memref<9x8x768xbf16, #tpu.memory_space<vmem>>, vector<1x8x768xbf16>
    %386 = vector.shape_cast %385 : vector<1x8x768xbf16> to vector<8x768xbf16>
    %c5_265 = arith.constant 5 : index
    %c3_266 = arith.constant 3 : index
    %387 = memref.load %arg1[%c5_265, %c3_266] : memref<16x9xf32, #tpu.memory_space<smem>>
    %388 = arith.truncf %387 : f32 to bf16
    %389 = vector.broadcast %388 : bf16 to vector<8x768xbf16>
    %390 = arith.mulf %386, %389 : vector<8x768xbf16>
    %391 = arith.addf %384, %390 : vector<8x768xbf16>
    %c4_267 = arith.constant 4 : index
    %c0_268 = arith.constant 0 : index
    %c0_269 = arith.constant 0 : index
    %392 = vector.load %arg3[%c4_267, %c0_268, %c0_269] : memref<9x8x768xbf16, #tpu.memory_space<vmem>>, vector<1x8x768xbf16>
    %393 = vector.shape_cast %392 : vector<1x8x768xbf16> to vector<8x768xbf16>
    %c5_270 = arith.constant 5 : index
    %c4_271 = arith.constant 4 : index
    %394 = memref.load %arg1[%c5_270, %c4_271] : memref<16x9xf32, #tpu.memory_space<smem>>
    %395 = arith.truncf %394 : f32 to bf16
    %396 = vector.broadcast %395 : bf16 to vector<8x768xbf16>
    %397 = arith.mulf %393, %396 : vector<8x768xbf16>
    %398 = arith.addf %391, %397 : vector<8x768xbf16>
    %c5_272 = arith.constant 5 : index
    %c0_273 = arith.constant 0 : index
    %c0_274 = arith.constant 0 : index
    %399 = vector.load %arg3[%c5_272, %c0_273, %c0_274] : memref<9x8x768xbf16, #tpu.memory_space<vmem>>, vector<1x8x768xbf16>
    %400 = vector.shape_cast %399 : vector<1x8x768xbf16> to vector<8x768xbf16>
    %c5_275 = arith.constant 5 : index
    %c5_276 = arith.constant 5 : index
    %401 = memref.load %arg1[%c5_275, %c5_276] : memref<16x9xf32, #tpu.memory_space<smem>>
    %402 = arith.truncf %401 : f32 to bf16
    %403 = vector.broadcast %402 : bf16 to vector<8x768xbf16>
    %404 = arith.mulf %400, %403 : vector<8x768xbf16>
    %405 = arith.addf %398, %404 : vector<8x768xbf16>
    %c6_277 = arith.constant 6 : index
    %c0_278 = arith.constant 0 : index
    %c0_279 = arith.constant 0 : index
    %406 = vector.load %arg3[%c6_277, %c0_278, %c0_279] : memref<9x8x768xbf16, #tpu.memory_space<vmem>>, vector<1x8x768xbf16>
    %407 = vector.shape_cast %406 : vector<1x8x768xbf16> to vector<8x768xbf16>
    %c5_280 = arith.constant 5 : index
    %c6_281 = arith.constant 6 : index
    %408 = memref.load %arg1[%c5_280, %c6_281] : memref<16x9xf32, #tpu.memory_space<smem>>
    %409 = arith.truncf %408 : f32 to bf16
    %410 = vector.broadcast %409 : bf16 to vector<8x768xbf16>
    %411 = arith.mulf %407, %410 : vector<8x768xbf16>
    %412 = arith.addf %405, %411 : vector<8x768xbf16>
    %c7_282 = arith.constant 7 : index
    %c0_283 = arith.constant 0 : index
    %c0_284 = arith.constant 0 : index
    %413 = vector.load %arg3[%c7_282, %c0_283, %c0_284] : memref<9x8x768xbf16, #tpu.memory_space<vmem>>, vector<1x8x768xbf16>
    %414 = vector.shape_cast %413 : vector<1x8x768xbf16> to vector<8x768xbf16>
    %c5_285 = arith.constant 5 : index
    %c7_286 = arith.constant 7 : index
    %415 = memref.load %arg1[%c5_285, %c7_286] : memref<16x9xf32, #tpu.memory_space<smem>>
    %416 = arith.truncf %415 : f32 to bf16
    %417 = vector.broadcast %416 : bf16 to vector<8x768xbf16>
    %418 = arith.mulf %414, %417 : vector<8x768xbf16>
    %419 = arith.addf %412, %418 : vector<8x768xbf16>
    %c8_287 = arith.constant 8 : index
    %c0_288 = arith.constant 0 : index
    %c0_289 = arith.constant 0 : index
    %420 = vector.load %arg3[%c8_287, %c0_288, %c0_289] : memref<9x8x768xbf16, #tpu.memory_space<vmem>>, vector<1x8x768xbf16>
    %421 = vector.shape_cast %420 : vector<1x8x768xbf16> to vector<8x768xbf16>
    %c5_290 = arith.constant 5 : index
    %c8_291 = arith.constant 8 : index
    %422 = memref.load %arg1[%c5_290, %c8_291] : memref<16x9xf32, #tpu.memory_space<smem>>
    %423 = arith.truncf %422 : f32 to bf16
    %424 = vector.broadcast %423 : bf16 to vector<8x768xbf16>
    %425 = arith.mulf %421, %424 : vector<8x768xbf16>
    %426 = arith.addf %419, %425 : vector<8x768xbf16>
    %cst_292 = arith.constant 0.000000e+00 : bf16
    %427 = vector.broadcast %cst_292 : bf16 to vector<8x768xbf16>
    %428 = arith.maximumf %426, %427 : vector<8x768xbf16>
    %c5_293 = arith.constant 5 : index
    %c0_294 = arith.constant 0 : index
    %c0_295 = arith.constant 0 : index
    %429 = vector.load %arg4[%c5_293, %c0_294, %c0_295] : memref<16x768x128xbf16, #tpu.memory_space<vmem>>, vector<1x768x128xbf16>
    %430 = vector.shape_cast %429 : vector<1x768x128xbf16> to vector<768x128xbf16>
    %cst_296 = arith.constant dense<0.000000e+00> : vector<8x128xf32>
    %431 = tpu.matmul %428, %430, %cst_296 {dimension_numbers = #tpu.dot_dimension_numbers<[1], [0], [0], [1], [0, 0, 1, 1], [], []>} : vector<8x768xbf16>, vector<768x128xbf16>, vector<8x128xf32> -> vector<8x128xf32>
    %432 = arith.addf %360, %431 : vector<8x128xf32>
    %c0_297 = arith.constant 0 : index
    %c0_298 = arith.constant 0 : index
    %c0_299 = arith.constant 0 : index
    %433 = vector.load %arg3[%c0_297, %c0_298, %c0_299] : memref<9x8x768xbf16, #tpu.memory_space<vmem>>, vector<1x8x768xbf16>
    %434 = vector.shape_cast %433 : vector<1x8x768xbf16> to vector<8x768xbf16>
    %c6_300 = arith.constant 6 : index
    %c0_301 = arith.constant 0 : index
    %435 = memref.load %arg1[%c6_300, %c0_301] : memref<16x9xf32, #tpu.memory_space<smem>>
    %436 = arith.truncf %435 : f32 to bf16
    %437 = vector.broadcast %436 : bf16 to vector<8x768xbf16>
    %438 = arith.mulf %434, %437 : vector<8x768xbf16>
    %c6_302 = arith.constant 6 : index
    %439 = memref.load %arg2[%c6_302] : memref<16xf32, #tpu.memory_space<smem>>
    %440 = arith.truncf %439 : f32 to bf16
    %441 = vector.broadcast %440 : bf16 to vector<8x768xbf16>
    %442 = arith.addf %438, %441 : vector<8x768xbf16>
    %c1_303 = arith.constant 1 : index
    %c0_304 = arith.constant 0 : index
    %c0_305 = arith.constant 0 : index
    %443 = vector.load %arg3[%c1_303, %c0_304, %c0_305] : memref<9x8x768xbf16, #tpu.memory_space<vmem>>, vector<1x8x768xbf16>
    %444 = vector.shape_cast %443 : vector<1x8x768xbf16> to vector<8x768xbf16>
    %c6_306 = arith.constant 6 : index
    %c1_307 = arith.constant 1 : index
    %445 = memref.load %arg1[%c6_306, %c1_307] : memref<16x9xf32, #tpu.memory_space<smem>>
    %446 = arith.truncf %445 : f32 to bf16
    %447 = vector.broadcast %446 : bf16 to vector<8x768xbf16>
    %448 = arith.mulf %444, %447 : vector<8x768xbf16>
    %449 = arith.addf %442, %448 : vector<8x768xbf16>
    %c2_308 = arith.constant 2 : index
    %c0_309 = arith.constant 0 : index
    %c0_310 = arith.constant 0 : index
    %450 = vector.load %arg3[%c2_308, %c0_309, %c0_310] : memref<9x8x768xbf16, #tpu.memory_space<vmem>>, vector<1x8x768xbf16>
    %451 = vector.shape_cast %450 : vector<1x8x768xbf16> to vector<8x768xbf16>
    %c6_311 = arith.constant 6 : index
    %c2_312 = arith.constant 2 : index
    %452 = memref.load %arg1[%c6_311, %c2_312] : memref<16x9xf32, #tpu.memory_space<smem>>
    %453 = arith.truncf %452 : f32 to bf16
    %454 = vector.broadcast %453 : bf16 to vector<8x768xbf16>
    %455 = arith.mulf %451, %454 : vector<8x768xbf16>
    %456 = arith.addf %449, %455 : vector<8x768xbf16>
    %c3_313 = arith.constant 3 : index
    %c0_314 = arith.constant 0 : index
    %c0_315 = arith.constant 0 : index
    %457 = vector.load %arg3[%c3_313, %c0_314, %c0_315] : memref<9x8x768xbf16, #tpu.memory_space<vmem>>, vector<1x8x768xbf16>
    %458 = vector.shape_cast %457 : vector<1x8x768xbf16> to vector<8x768xbf16>
    %c6_316 = arith.constant 6 : index
    %c3_317 = arith.constant 3 : index
    %459 = memref.load %arg1[%c6_316, %c3_317] : memref<16x9xf32, #tpu.memory_space<smem>>
    %460 = arith.truncf %459 : f32 to bf16
    %461 = vector.broadcast %460 : bf16 to vector<8x768xbf16>
    %462 = arith.mulf %458, %461 : vector<8x768xbf16>
    %463 = arith.addf %456, %462 : vector<8x768xbf16>
    %c4_318 = arith.constant 4 : index
    %c0_319 = arith.constant 0 : index
    %c0_320 = arith.constant 0 : index
    %464 = vector.load %arg3[%c4_318, %c0_319, %c0_320] : memref<9x8x768xbf16, #tpu.memory_space<vmem>>, vector<1x8x768xbf16>
    %465 = vector.shape_cast %464 : vector<1x8x768xbf16> to vector<8x768xbf16>
    %c6_321 = arith.constant 6 : index
    %c4_322 = arith.constant 4 : index
    %466 = memref.load %arg1[%c6_321, %c4_322] : memref<16x9xf32, #tpu.memory_space<smem>>
    %467 = arith.truncf %466 : f32 to bf16
    %468 = vector.broadcast %467 : bf16 to vector<8x768xbf16>
    %469 = arith.mulf %465, %468 : vector<8x768xbf16>
    %470 = arith.addf %463, %469 : vector<8x768xbf16>
    %c5_323 = arith.constant 5 : index
    %c0_324 = arith.constant 0 : index
    %c0_325 = arith.constant 0 : index
    %471 = vector.load %arg3[%c5_323, %c0_324, %c0_325] : memref<9x8x768xbf16, #tpu.memory_space<vmem>>, vector<1x8x768xbf16>
    %472 = vector.shape_cast %471 : vector<1x8x768xbf16> to vector<8x768xbf16>
    %c6_326 = arith.constant 6 : index
    %c5_327 = arith.constant 5 : index
    %473 = memref.load %arg1[%c6_326, %c5_327] : memref<16x9xf32, #tpu.memory_space<smem>>
    %474 = arith.truncf %473 : f32 to bf16
    %475 = vector.broadcast %474 : bf16 to vector<8x768xbf16>
    %476 = arith.mulf %472, %475 : vector<8x768xbf16>
    %477 = arith.addf %470, %476 : vector<8x768xbf16>
    %c6_328 = arith.constant 6 : index
    %c0_329 = arith.constant 0 : index
    %c0_330 = arith.constant 0 : index
    %478 = vector.load %arg3[%c6_328, %c0_329, %c0_330] : memref<9x8x768xbf16, #tpu.memory_space<vmem>>, vector<1x8x768xbf16>
    %479 = vector.shape_cast %478 : vector<1x8x768xbf16> to vector<8x768xbf16>
    %c6_331 = arith.constant 6 : index
    %c6_332 = arith.constant 6 : index
    %480 = memref.load %arg1[%c6_331, %c6_332] : memref<16x9xf32, #tpu.memory_space<smem>>
    %481 = arith.truncf %480 : f32 to bf16
    %482 = vector.broadcast %481 : bf16 to vector<8x768xbf16>
    %483 = arith.mulf %479, %482 : vector<8x768xbf16>
    %484 = arith.addf %477, %483 : vector<8x768xbf16>
    %c7_333 = arith.constant 7 : index
    %c0_334 = arith.constant 0 : index
    %c0_335 = arith.constant 0 : index
    %485 = vector.load %arg3[%c7_333, %c0_334, %c0_335] : memref<9x8x768xbf16, #tpu.memory_space<vmem>>, vector<1x8x768xbf16>
    %486 = vector.shape_cast %485 : vector<1x8x768xbf16> to vector<8x768xbf16>
    %c6_336 = arith.constant 6 : index
    %c7_337 = arith.constant 7 : index
    %487 = memref.load %arg1[%c6_336, %c7_337] : memref<16x9xf32, #tpu.memory_space<smem>>
    %488 = arith.truncf %487 : f32 to bf16
    %489 = vector.broadcast %488 : bf16 to vector<8x768xbf16>
    %490 = arith.mulf %486, %489 : vector<8x768xbf16>
    %491 = arith.addf %484, %490 : vector<8x768xbf16>
    %c8_338 = arith.constant 8 : index
    %c0_339 = arith.constant 0 : index
    %c0_340 = arith.constant 0 : index
    %492 = vector.load %arg3[%c8_338, %c0_339, %c0_340] : memref<9x8x768xbf16, #tpu.memory_space<vmem>>, vector<1x8x768xbf16>
    %493 = vector.shape_cast %492 : vector<1x8x768xbf16> to vector<8x768xbf16>
    %c6_341 = arith.constant 6 : index
    %c8_342 = arith.constant 8 : index
    %494 = memref.load %arg1[%c6_341, %c8_342] : memref<16x9xf32, #tpu.memory_space<smem>>
    %495 = arith.truncf %494 : f32 to bf16
    %496 = vector.broadcast %495 : bf16 to vector<8x768xbf16>
    %497 = arith.mulf %493, %496 : vector<8x768xbf16>
    %498 = arith.addf %491, %497 : vector<8x768xbf16>
    %cst_343 = arith.constant 0.000000e+00 : bf16
    %499 = vector.broadcast %cst_343 : bf16 to vector<8x768xbf16>
    %500 = arith.maximumf %498, %499 : vector<8x768xbf16>
    %c6_344 = arith.constant 6 : index
    %c0_345 = arith.constant 0 : index
    %c0_346 = arith.constant 0 : index
    %501 = vector.load %arg4[%c6_344, %c0_345, %c0_346] : memref<16x768x128xbf16, #tpu.memory_space<vmem>>, vector<1x768x128xbf16>
    %502 = vector.shape_cast %501 : vector<1x768x128xbf16> to vector<768x128xbf16>
    %cst_347 = arith.constant dense<0.000000e+00> : vector<8x128xf32>
    %503 = tpu.matmul %500, %502, %cst_347 {dimension_numbers = #tpu.dot_dimension_numbers<[1], [0], [0], [1], [0, 0, 1, 1], [], []>} : vector<8x768xbf16>, vector<768x128xbf16>, vector<8x128xf32> -> vector<8x128xf32>
    %504 = arith.addf %432, %503 : vector<8x128xf32>
    %c0_348 = arith.constant 0 : index
    %c0_349 = arith.constant 0 : index
    %c0_350 = arith.constant 0 : index
    %505 = vector.load %arg3[%c0_348, %c0_349, %c0_350] : memref<9x8x768xbf16, #tpu.memory_space<vmem>>, vector<1x8x768xbf16>
    %506 = vector.shape_cast %505 : vector<1x8x768xbf16> to vector<8x768xbf16>
    %c7_351 = arith.constant 7 : index
    %c0_352 = arith.constant 0 : index
    %507 = memref.load %arg1[%c7_351, %c0_352] : memref<16x9xf32, #tpu.memory_space<smem>>
    %508 = arith.truncf %507 : f32 to bf16
    %509 = vector.broadcast %508 : bf16 to vector<8x768xbf16>
    %510 = arith.mulf %506, %509 : vector<8x768xbf16>
    %c7_353 = arith.constant 7 : index
    %511 = memref.load %arg2[%c7_353] : memref<16xf32, #tpu.memory_space<smem>>
    %512 = arith.truncf %511 : f32 to bf16
    %513 = vector.broadcast %512 : bf16 to vector<8x768xbf16>
    %514 = arith.addf %510, %513 : vector<8x768xbf16>
    %c1_354 = arith.constant 1 : index
    %c0_355 = arith.constant 0 : index
    %c0_356 = arith.constant 0 : index
    %515 = vector.load %arg3[%c1_354, %c0_355, %c0_356] : memref<9x8x768xbf16, #tpu.memory_space<vmem>>, vector<1x8x768xbf16>
    %516 = vector.shape_cast %515 : vector<1x8x768xbf16> to vector<8x768xbf16>
    %c7_357 = arith.constant 7 : index
    %c1_358 = arith.constant 1 : index
    %517 = memref.load %arg1[%c7_357, %c1_358] : memref<16x9xf32, #tpu.memory_space<smem>>
    %518 = arith.truncf %517 : f32 to bf16
    %519 = vector.broadcast %518 : bf16 to vector<8x768xbf16>
    %520 = arith.mulf %516, %519 : vector<8x768xbf16>
    %521 = arith.addf %514, %520 : vector<8x768xbf16>
    %c2_359 = arith.constant 2 : index
    %c0_360 = arith.constant 0 : index
    %c0_361 = arith.constant 0 : index
    %522 = vector.load %arg3[%c2_359, %c0_360, %c0_361] : memref<9x8x768xbf16, #tpu.memory_space<vmem>>, vector<1x8x768xbf16>
    %523 = vector.shape_cast %522 : vector<1x8x768xbf16> to vector<8x768xbf16>
    %c7_362 = arith.constant 7 : index
    %c2_363 = arith.constant 2 : index
    %524 = memref.load %arg1[%c7_362, %c2_363] : memref<16x9xf32, #tpu.memory_space<smem>>
    %525 = arith.truncf %524 : f32 to bf16
    %526 = vector.broadcast %525 : bf16 to vector<8x768xbf16>
    %527 = arith.mulf %523, %526 : vector<8x768xbf16>
    %528 = arith.addf %521, %527 : vector<8x768xbf16>
    %c3_364 = arith.constant 3 : index
    %c0_365 = arith.constant 0 : index
    %c0_366 = arith.constant 0 : index
    %529 = vector.load %arg3[%c3_364, %c0_365, %c0_366] : memref<9x8x768xbf16, #tpu.memory_space<vmem>>, vector<1x8x768xbf16>
    %530 = vector.shape_cast %529 : vector<1x8x768xbf16> to vector<8x768xbf16>
    %c7_367 = arith.constant 7 : index
    %c3_368 = arith.constant 3 : index
    %531 = memref.load %arg1[%c7_367, %c3_368] : memref<16x9xf32, #tpu.memory_space<smem>>
    %532 = arith.truncf %531 : f32 to bf16
    %533 = vector.broadcast %532 : bf16 to vector<8x768xbf16>
    %534 = arith.mulf %530, %533 : vector<8x768xbf16>
    %535 = arith.addf %528, %534 : vector<8x768xbf16>
    %c4_369 = arith.constant 4 : index
    %c0_370 = arith.constant 0 : index
    %c0_371 = arith.constant 0 : index
    %536 = vector.load %arg3[%c4_369, %c0_370, %c0_371] : memref<9x8x768xbf16, #tpu.memory_space<vmem>>, vector<1x8x768xbf16>
    %537 = vector.shape_cast %536 : vector<1x8x768xbf16> to vector<8x768xbf16>
    %c7_372 = arith.constant 7 : index
    %c4_373 = arith.constant 4 : index
    %538 = memref.load %arg1[%c7_372, %c4_373] : memref<16x9xf32, #tpu.memory_space<smem>>
    %539 = arith.truncf %538 : f32 to bf16
    %540 = vector.broadcast %539 : bf16 to vector<8x768xbf16>
    %541 = arith.mulf %537, %540 : vector<8x768xbf16>
    %542 = arith.addf %535, %541 : vector<8x768xbf16>
    %c5_374 = arith.constant 5 : index
    %c0_375 = arith.constant 0 : index
    %c0_376 = arith.constant 0 : index
    %543 = vector.load %arg3[%c5_374, %c0_375, %c0_376] : memref<9x8x768xbf16, #tpu.memory_space<vmem>>, vector<1x8x768xbf16>
    %544 = vector.shape_cast %543 : vector<1x8x768xbf16> to vector<8x768xbf16>
    %c7_377 = arith.constant 7 : index
    %c5_378 = arith.constant 5 : index
    %545 = memref.load %arg1[%c7_377, %c5_378] : memref<16x9xf32, #tpu.memory_space<smem>>
    %546 = arith.truncf %545 : f32 to bf16
    %547 = vector.broadcast %546 : bf16 to vector<8x768xbf16>
    %548 = arith.mulf %544, %547 : vector<8x768xbf16>
    %549 = arith.addf %542, %548 : vector<8x768xbf16>
    %c6_379 = arith.constant 6 : index
    %c0_380 = arith.constant 0 : index
    %c0_381 = arith.constant 0 : index
    %550 = vector.load %arg3[%c6_379, %c0_380, %c0_381] : memref<9x8x768xbf16, #tpu.memory_space<vmem>>, vector<1x8x768xbf16>
    %551 = vector.shape_cast %550 : vector<1x8x768xbf16> to vector<8x768xbf16>
    %c7_382 = arith.constant 7 : index
    %c6_383 = arith.constant 6 : index
    %552 = memref.load %arg1[%c7_382, %c6_383] : memref<16x9xf32, #tpu.memory_space<smem>>
    %553 = arith.truncf %552 : f32 to bf16
    %554 = vector.broadcast %553 : bf16 to vector<8x768xbf16>
    %555 = arith.mulf %551, %554 : vector<8x768xbf16>
    %556 = arith.addf %549, %555 : vector<8x768xbf16>
    %c7_384 = arith.constant 7 : index
    %c0_385 = arith.constant 0 : index
    %c0_386 = arith.constant 0 : index
    %557 = vector.load %arg3[%c7_384, %c0_385, %c0_386] : memref<9x8x768xbf16, #tpu.memory_space<vmem>>, vector<1x8x768xbf16>
    %558 = vector.shape_cast %557 : vector<1x8x768xbf16> to vector<8x768xbf16>
    %c7_387 = arith.constant 7 : index
    %c7_388 = arith.constant 7 : index
    %559 = memref.load %arg1[%c7_387, %c7_388] : memref<16x9xf32, #tpu.memory_space<smem>>
    %560 = arith.truncf %559 : f32 to bf16
    %561 = vector.broadcast %560 : bf16 to vector<8x768xbf16>
    %562 = arith.mulf %558, %561 : vector<8x768xbf16>
    %563 = arith.addf %556, %562 : vector<8x768xbf16>
    %c8_389 = arith.constant 8 : index
    %c0_390 = arith.constant 0 : index
    %c0_391 = arith.constant 0 : index
    %564 = vector.load %arg3[%c8_389, %c0_390, %c0_391] : memref<9x8x768xbf16, #tpu.memory_space<vmem>>, vector<1x8x768xbf16>
    %565 = vector.shape_cast %564 : vector<1x8x768xbf16> to vector<8x768xbf16>
    %c7_392 = arith.constant 7 : index
    %c8_393 = arith.constant 8 : index
    %566 = memref.load %arg1[%c7_392, %c8_393] : memref<16x9xf32, #tpu.memory_space<smem>>
    %567 = arith.truncf %566 : f32 to bf16
    %568 = vector.broadcast %567 : bf16 to vector<8x768xbf16>
    %569 = arith.mulf %565, %568 : vector<8x768xbf16>
    %570 = arith.addf %563, %569 : vector<8x768xbf16>
    %cst_394 = arith.constant 0.000000e+00 : bf16
    %571 = vector.broadcast %cst_394 : bf16 to vector<8x768xbf16>
    %572 = arith.maximumf %570, %571 : vector<8x768xbf16>
    %c7_395 = arith.constant 7 : index
    %c0_396 = arith.constant 0 : index
    %c0_397 = arith.constant 0 : index
    %573 = vector.load %arg4[%c7_395, %c0_396, %c0_397] : memref<16x768x128xbf16, #tpu.memory_space<vmem>>, vector<1x768x128xbf16>
    %574 = vector.shape_cast %573 : vector<1x768x128xbf16> to vector<768x128xbf16>
    %cst_398 = arith.constant dense<0.000000e+00> : vector<8x128xf32>
    %575 = tpu.matmul %572, %574, %cst_398 {dimension_numbers = #tpu.dot_dimension_numbers<[1], [0], [0], [1], [0, 0, 1, 1], [], []>} : vector<8x768xbf16>, vector<768x128xbf16>, vector<8x128xf32> -> vector<8x128xf32>
    %576 = arith.addf %504, %575 : vector<8x128xf32>
    %c0_399 = arith.constant 0 : index
    %c0_400 = arith.constant 0 : index
    %c0_401 = arith.constant 0 : index
    %577 = vector.load %arg3[%c0_399, %c0_400, %c0_401] : memref<9x8x768xbf16, #tpu.memory_space<vmem>>, vector<1x8x768xbf16>
    %578 = vector.shape_cast %577 : vector<1x8x768xbf16> to vector<8x768xbf16>
    %c8_402 = arith.constant 8 : index
    %c0_403 = arith.constant 0 : index
    %579 = memref.load %arg1[%c8_402, %c0_403] : memref<16x9xf32, #tpu.memory_space<smem>>
    %580 = arith.truncf %579 : f32 to bf16
    %581 = vector.broadcast %580 : bf16 to vector<8x768xbf16>
    %582 = arith.mulf %578, %581 : vector<8x768xbf16>
    %c8_404 = arith.constant 8 : index
    %583 = memref.load %arg2[%c8_404] : memref<16xf32, #tpu.memory_space<smem>>
    %584 = arith.truncf %583 : f32 to bf16
    %585 = vector.broadcast %584 : bf16 to vector<8x768xbf16>
    %586 = arith.addf %582, %585 : vector<8x768xbf16>
    %c1_405 = arith.constant 1 : index
    %c0_406 = arith.constant 0 : index
    %c0_407 = arith.constant 0 : index
    %587 = vector.load %arg3[%c1_405, %c0_406, %c0_407] : memref<9x8x768xbf16, #tpu.memory_space<vmem>>, vector<1x8x768xbf16>
    %588 = vector.shape_cast %587 : vector<1x8x768xbf16> to vector<8x768xbf16>
    %c8_408 = arith.constant 8 : index
    %c1_409 = arith.constant 1 : index
    %589 = memref.load %arg1[%c8_408, %c1_409] : memref<16x9xf32, #tpu.memory_space<smem>>
    %590 = arith.truncf %589 : f32 to bf16
    %591 = vector.broadcast %590 : bf16 to vector<8x768xbf16>
    %592 = arith.mulf %588, %591 : vector<8x768xbf16>
    %593 = arith.addf %586, %592 : vector<8x768xbf16>
    %c2_410 = arith.constant 2 : index
    %c0_411 = arith.constant 0 : index
    %c0_412 = arith.constant 0 : index
    %594 = vector.load %arg3[%c2_410, %c0_411, %c0_412] : memref<9x8x768xbf16, #tpu.memory_space<vmem>>, vector<1x8x768xbf16>
    %595 = vector.shape_cast %594 : vector<1x8x768xbf16> to vector<8x768xbf16>
    %c8_413 = arith.constant 8 : index
    %c2_414 = arith.constant 2 : index
    %596 = memref.load %arg1[%c8_413, %c2_414] : memref<16x9xf32, #tpu.memory_space<smem>>
    %597 = arith.truncf %596 : f32 to bf16
    %598 = vector.broadcast %597 : bf16 to vector<8x768xbf16>
    %599 = arith.mulf %595, %598 : vector<8x768xbf16>
    %600 = arith.addf %593, %599 : vector<8x768xbf16>
    %c3_415 = arith.constant 3 : index
    %c0_416 = arith.constant 0 : index
    %c0_417 = arith.constant 0 : index
    %601 = vector.load %arg3[%c3_415, %c0_416, %c0_417] : memref<9x8x768xbf16, #tpu.memory_space<vmem>>, vector<1x8x768xbf16>
    %602 = vector.shape_cast %601 : vector<1x8x768xbf16> to vector<8x768xbf16>
    %c8_418 = arith.constant 8 : index
    %c3_419 = arith.constant 3 : index
    %603 = memref.load %arg1[%c8_418, %c3_419] : memref<16x9xf32, #tpu.memory_space<smem>>
    %604 = arith.truncf %603 : f32 to bf16
    %605 = vector.broadcast %604 : bf16 to vector<8x768xbf16>
    %606 = arith.mulf %602, %605 : vector<8x768xbf16>
    %607 = arith.addf %600, %606 : vector<8x768xbf16>
    %c4_420 = arith.constant 4 : index
    %c0_421 = arith.constant 0 : index
    %c0_422 = arith.constant 0 : index
    %608 = vector.load %arg3[%c4_420, %c0_421, %c0_422] : memref<9x8x768xbf16, #tpu.memory_space<vmem>>, vector<1x8x768xbf16>
    %609 = vector.shape_cast %608 : vector<1x8x768xbf16> to vector<8x768xbf16>
    %c8_423 = arith.constant 8 : index
    %c4_424 = arith.constant 4 : index
    %610 = memref.load %arg1[%c8_423, %c4_424] : memref<16x9xf32, #tpu.memory_space<smem>>
    %611 = arith.truncf %610 : f32 to bf16
    %612 = vector.broadcast %611 : bf16 to vector<8x768xbf16>
    %613 = arith.mulf %609, %612 : vector<8x768xbf16>
    %614 = arith.addf %607, %613 : vector<8x768xbf16>
    %c5_425 = arith.constant 5 : index
    %c0_426 = arith.constant 0 : index
    %c0_427 = arith.constant 0 : index
    %615 = vector.load %arg3[%c5_425, %c0_426, %c0_427] : memref<9x8x768xbf16, #tpu.memory_space<vmem>>, vector<1x8x768xbf16>
    %616 = vector.shape_cast %615 : vector<1x8x768xbf16> to vector<8x768xbf16>
    %c8_428 = arith.constant 8 : index
    %c5_429 = arith.constant 5 : index
    %617 = memref.load %arg1[%c8_428, %c5_429] : memref<16x9xf32, #tpu.memory_space<smem>>
    %618 = arith.truncf %617 : f32 to bf16
    %619 = vector.broadcast %618 : bf16 to vector<8x768xbf16>
    %620 = arith.mulf %616, %619 : vector<8x768xbf16>
    %621 = arith.addf %614, %620 : vector<8x768xbf16>
    %c6_430 = arith.constant 6 : index
    %c0_431 = arith.constant 0 : index
    %c0_432 = arith.constant 0 : index
    %622 = vector.load %arg3[%c6_430, %c0_431, %c0_432] : memref<9x8x768xbf16, #tpu.memory_space<vmem>>, vector<1x8x768xbf16>
    %623 = vector.shape_cast %622 : vector<1x8x768xbf16> to vector<8x768xbf16>
    %c8_433 = arith.constant 8 : index
    %c6_434 = arith.constant 6 : index
    %624 = memref.load %arg1[%c8_433, %c6_434] : memref<16x9xf32, #tpu.memory_space<smem>>
    %625 = arith.truncf %624 : f32 to bf16
    %626 = vector.broadcast %625 : bf16 to vector<8x768xbf16>
    %627 = arith.mulf %623, %626 : vector<8x768xbf16>
    %628 = arith.addf %621, %627 : vector<8x768xbf16>
    %c7_435 = arith.constant 7 : index
    %c0_436 = arith.constant 0 : index
    %c0_437 = arith.constant 0 : index
    %629 = vector.load %arg3[%c7_435, %c0_436, %c0_437] : memref<9x8x768xbf16, #tpu.memory_space<vmem>>, vector<1x8x768xbf16>
    %630 = vector.shape_cast %629 : vector<1x8x768xbf16> to vector<8x768xbf16>
    %c8_438 = arith.constant 8 : index
    %c7_439 = arith.constant 7 : index
    %631 = memref.load %arg1[%c8_438, %c7_439] : memref<16x9xf32, #tpu.memory_space<smem>>
    %632 = arith.truncf %631 : f32 to bf16
    %633 = vector.broadcast %632 : bf16 to vector<8x768xbf16>
    %634 = arith.mulf %630, %633 : vector<8x768xbf16>
    %635 = arith.addf %628, %634 : vector<8x768xbf16>
    %c8_440 = arith.constant 8 : index
    %c0_441 = arith.constant 0 : index
    %c0_442 = arith.constant 0 : index
    %636 = vector.load %arg3[%c8_440, %c0_441, %c0_442] : memref<9x8x768xbf16, #tpu.memory_space<vmem>>, vector<1x8x768xbf16>
    %637 = vector.shape_cast %636 : vector<1x8x768xbf16> to vector<8x768xbf16>
    %c8_443 = arith.constant 8 : index
    %c8_444 = arith.constant 8 : index
    %638 = memref.load %arg1[%c8_443, %c8_444] : memref<16x9xf32, #tpu.memory_space<smem>>
    %639 = arith.truncf %638 : f32 to bf16
    %640 = vector.broadcast %639 : bf16 to vector<8x768xbf16>
    %641 = arith.mulf %637, %640 : vector<8x768xbf16>
    %642 = arith.addf %635, %641 : vector<8x768xbf16>
    %cst_445 = arith.constant 0.000000e+00 : bf16
    %643 = vector.broadcast %cst_445 : bf16 to vector<8x768xbf16>
    %644 = arith.maximumf %642, %643 : vector<8x768xbf16>
    %c8_446 = arith.constant 8 : index
    %c0_447 = arith.constant 0 : index
    %c0_448 = arith.constant 0 : index
    %645 = vector.load %arg4[%c8_446, %c0_447, %c0_448] : memref<16x768x128xbf16, #tpu.memory_space<vmem>>, vector<1x768x128xbf16>
    %646 = vector.shape_cast %645 : vector<1x768x128xbf16> to vector<768x128xbf16>
    %cst_449 = arith.constant dense<0.000000e+00> : vector<8x128xf32>
    %647 = tpu.matmul %644, %646, %cst_449 {dimension_numbers = #tpu.dot_dimension_numbers<[1], [0], [0], [1], [0, 0, 1, 1], [], []>} : vector<8x768xbf16>, vector<768x128xbf16>, vector<8x128xf32> -> vector<8x128xf32>
    %648 = arith.addf %576, %647 : vector<8x128xf32>
    %c0_450 = arith.constant 0 : index
    %c0_451 = arith.constant 0 : index
    %c0_452 = arith.constant 0 : index
    %649 = vector.load %arg3[%c0_450, %c0_451, %c0_452] : memref<9x8x768xbf16, #tpu.memory_space<vmem>>, vector<1x8x768xbf16>
    %650 = vector.shape_cast %649 : vector<1x8x768xbf16> to vector<8x768xbf16>
    %c9 = arith.constant 9 : index
    %c0_453 = arith.constant 0 : index
    %651 = memref.load %arg1[%c9, %c0_453] : memref<16x9xf32, #tpu.memory_space<smem>>
    %652 = arith.truncf %651 : f32 to bf16
    %653 = vector.broadcast %652 : bf16 to vector<8x768xbf16>
    %654 = arith.mulf %650, %653 : vector<8x768xbf16>
    %c9_454 = arith.constant 9 : index
    %655 = memref.load %arg2[%c9_454] : memref<16xf32, #tpu.memory_space<smem>>
    %656 = arith.truncf %655 : f32 to bf16
    %657 = vector.broadcast %656 : bf16 to vector<8x768xbf16>
    %658 = arith.addf %654, %657 : vector<8x768xbf16>
    %c1_455 = arith.constant 1 : index
    %c0_456 = arith.constant 0 : index
    %c0_457 = arith.constant 0 : index
    %659 = vector.load %arg3[%c1_455, %c0_456, %c0_457] : memref<9x8x768xbf16, #tpu.memory_space<vmem>>, vector<1x8x768xbf16>
    %660 = vector.shape_cast %659 : vector<1x8x768xbf16> to vector<8x768xbf16>
    %c9_458 = arith.constant 9 : index
    %c1_459 = arith.constant 1 : index
    %661 = memref.load %arg1[%c9_458, %c1_459] : memref<16x9xf32, #tpu.memory_space<smem>>
    %662 = arith.truncf %661 : f32 to bf16
    %663 = vector.broadcast %662 : bf16 to vector<8x768xbf16>
    %664 = arith.mulf %660, %663 : vector<8x768xbf16>
    %665 = arith.addf %658, %664 : vector<8x768xbf16>
    %c2_460 = arith.constant 2 : index
    %c0_461 = arith.constant 0 : index
    %c0_462 = arith.constant 0 : index
    %666 = vector.load %arg3[%c2_460, %c0_461, %c0_462] : memref<9x8x768xbf16, #tpu.memory_space<vmem>>, vector<1x8x768xbf16>
    %667 = vector.shape_cast %666 : vector<1x8x768xbf16> to vector<8x768xbf16>
    %c9_463 = arith.constant 9 : index
    %c2_464 = arith.constant 2 : index
    %668 = memref.load %arg1[%c9_463, %c2_464] : memref<16x9xf32, #tpu.memory_space<smem>>
    %669 = arith.truncf %668 : f32 to bf16
    %670 = vector.broadcast %669 : bf16 to vector<8x768xbf16>
    %671 = arith.mulf %667, %670 : vector<8x768xbf16>
    %672 = arith.addf %665, %671 : vector<8x768xbf16>
    %c3_465 = arith.constant 3 : index
    %c0_466 = arith.constant 0 : index
    %c0_467 = arith.constant 0 : index
    %673 = vector.load %arg3[%c3_465, %c0_466, %c0_467] : memref<9x8x768xbf16, #tpu.memory_space<vmem>>, vector<1x8x768xbf16>
    %674 = vector.shape_cast %673 : vector<1x8x768xbf16> to vector<8x768xbf16>
    %c9_468 = arith.constant 9 : index
    %c3_469 = arith.constant 3 : index
    %675 = memref.load %arg1[%c9_468, %c3_469] : memref<16x9xf32, #tpu.memory_space<smem>>
    %676 = arith.truncf %675 : f32 to bf16
    %677 = vector.broadcast %676 : bf16 to vector<8x768xbf16>
    %678 = arith.mulf %674, %677 : vector<8x768xbf16>
    %679 = arith.addf %672, %678 : vector<8x768xbf16>
    %c4_470 = arith.constant 4 : index
    %c0_471 = arith.constant 0 : index
    %c0_472 = arith.constant 0 : index
    %680 = vector.load %arg3[%c4_470, %c0_471, %c0_472] : memref<9x8x768xbf16, #tpu.memory_space<vmem>>, vector<1x8x768xbf16>
    %681 = vector.shape_cast %680 : vector<1x8x768xbf16> to vector<8x768xbf16>
    %c9_473 = arith.constant 9 : index
    %c4_474 = arith.constant 4 : index
    %682 = memref.load %arg1[%c9_473, %c4_474] : memref<16x9xf32, #tpu.memory_space<smem>>
    %683 = arith.truncf %682 : f32 to bf16
    %684 = vector.broadcast %683 : bf16 to vector<8x768xbf16>
    %685 = arith.mulf %681, %684 : vector<8x768xbf16>
    %686 = arith.addf %679, %685 : vector<8x768xbf16>
    %c5_475 = arith.constant 5 : index
    %c0_476 = arith.constant 0 : index
    %c0_477 = arith.constant 0 : index
    %687 = vector.load %arg3[%c5_475, %c0_476, %c0_477] : memref<9x8x768xbf16, #tpu.memory_space<vmem>>, vector<1x8x768xbf16>
    %688 = vector.shape_cast %687 : vector<1x8x768xbf16> to vector<8x768xbf16>
    %c9_478 = arith.constant 9 : index
    %c5_479 = arith.constant 5 : index
    %689 = memref.load %arg1[%c9_478, %c5_479] : memref<16x9xf32, #tpu.memory_space<smem>>
    %690 = arith.truncf %689 : f32 to bf16
    %691 = vector.broadcast %690 : bf16 to vector<8x768xbf16>
    %692 = arith.mulf %688, %691 : vector<8x768xbf16>
    %693 = arith.addf %686, %692 : vector<8x768xbf16>
    %c6_480 = arith.constant 6 : index
    %c0_481 = arith.constant 0 : index
    %c0_482 = arith.constant 0 : index
    %694 = vector.load %arg3[%c6_480, %c0_481, %c0_482] : memref<9x8x768xbf16, #tpu.memory_space<vmem>>, vector<1x8x768xbf16>
    %695 = vector.shape_cast %694 : vector<1x8x768xbf16> to vector<8x768xbf16>
    %c9_483 = arith.constant 9 : index
    %c6_484 = arith.constant 6 : index
    %696 = memref.load %arg1[%c9_483, %c6_484] : memref<16x9xf32, #tpu.memory_space<smem>>
    %697 = arith.truncf %696 : f32 to bf16
    %698 = vector.broadcast %697 : bf16 to vector<8x768xbf16>
    %699 = arith.mulf %695, %698 : vector<8x768xbf16>
    %700 = arith.addf %693, %699 : vector<8x768xbf16>
    %c7_485 = arith.constant 7 : index
    %c0_486 = arith.constant 0 : index
    %c0_487 = arith.constant 0 : index
    %701 = vector.load %arg3[%c7_485, %c0_486, %c0_487] : memref<9x8x768xbf16, #tpu.memory_space<vmem>>, vector<1x8x768xbf16>
    %702 = vector.shape_cast %701 : vector<1x8x768xbf16> to vector<8x768xbf16>
    %c9_488 = arith.constant 9 : index
    %c7_489 = arith.constant 7 : index
    %703 = memref.load %arg1[%c9_488, %c7_489] : memref<16x9xf32, #tpu.memory_space<smem>>
    %704 = arith.truncf %703 : f32 to bf16
    %705 = vector.broadcast %704 : bf16 to vector<8x768xbf16>
    %706 = arith.mulf %702, %705 : vector<8x768xbf16>
    %707 = arith.addf %700, %706 : vector<8x768xbf16>
    %c8_490 = arith.constant 8 : index
    %c0_491 = arith.constant 0 : index
    %c0_492 = arith.constant 0 : index
    %708 = vector.load %arg3[%c8_490, %c0_491, %c0_492] : memref<9x8x768xbf16, #tpu.memory_space<vmem>>, vector<1x8x768xbf16>
    %709 = vector.shape_cast %708 : vector<1x8x768xbf16> to vector<8x768xbf16>
    %c9_493 = arith.constant 9 : index
    %c8_494 = arith.constant 8 : index
    %710 = memref.load %arg1[%c9_493, %c8_494] : memref<16x9xf32, #tpu.memory_space<smem>>
    %711 = arith.truncf %710 : f32 to bf16
    %712 = vector.broadcast %711 : bf16 to vector<8x768xbf16>
    %713 = arith.mulf %709, %712 : vector<8x768xbf16>
    %714 = arith.addf %707, %713 : vector<8x768xbf16>
    %cst_495 = arith.constant 0.000000e+00 : bf16
    %715 = vector.broadcast %cst_495 : bf16 to vector<8x768xbf16>
    %716 = arith.maximumf %714, %715 : vector<8x768xbf16>
    %c9_496 = arith.constant 9 : index
    %c0_497 = arith.constant 0 : index
    %c0_498 = arith.constant 0 : index
    %717 = vector.load %arg4[%c9_496, %c0_497, %c0_498] : memref<16x768x128xbf16, #tpu.memory_space<vmem>>, vector<1x768x128xbf16>
    %718 = vector.shape_cast %717 : vector<1x768x128xbf16> to vector<768x128xbf16>
    %cst_499 = arith.constant dense<0.000000e+00> : vector<8x128xf32>
    %719 = tpu.matmul %716, %718, %cst_499 {dimension_numbers = #tpu.dot_dimension_numbers<[1], [0], [0], [1], [0, 0, 1, 1], [], []>} : vector<8x768xbf16>, vector<768x128xbf16>, vector<8x128xf32> -> vector<8x128xf32>
    %720 = arith.addf %648, %719 : vector<8x128xf32>
    %c0_500 = arith.constant 0 : index
    %c0_501 = arith.constant 0 : index
    %c0_502 = arith.constant 0 : index
    %721 = vector.load %arg3[%c0_500, %c0_501, %c0_502] : memref<9x8x768xbf16, #tpu.memory_space<vmem>>, vector<1x8x768xbf16>
    %722 = vector.shape_cast %721 : vector<1x8x768xbf16> to vector<8x768xbf16>
    %c10 = arith.constant 10 : index
    %c0_503 = arith.constant 0 : index
    %723 = memref.load %arg1[%c10, %c0_503] : memref<16x9xf32, #tpu.memory_space<smem>>
    %724 = arith.truncf %723 : f32 to bf16
    %725 = vector.broadcast %724 : bf16 to vector<8x768xbf16>
    %726 = arith.mulf %722, %725 : vector<8x768xbf16>
    %c10_504 = arith.constant 10 : index
    %727 = memref.load %arg2[%c10_504] : memref<16xf32, #tpu.memory_space<smem>>
    %728 = arith.truncf %727 : f32 to bf16
    %729 = vector.broadcast %728 : bf16 to vector<8x768xbf16>
    %730 = arith.addf %726, %729 : vector<8x768xbf16>
    %c1_505 = arith.constant 1 : index
    %c0_506 = arith.constant 0 : index
    %c0_507 = arith.constant 0 : index
    %731 = vector.load %arg3[%c1_505, %c0_506, %c0_507] : memref<9x8x768xbf16, #tpu.memory_space<vmem>>, vector<1x8x768xbf16>
    %732 = vector.shape_cast %731 : vector<1x8x768xbf16> to vector<8x768xbf16>
    %c10_508 = arith.constant 10 : index
    %c1_509 = arith.constant 1 : index
    %733 = memref.load %arg1[%c10_508, %c1_509] : memref<16x9xf32, #tpu.memory_space<smem>>
    %734 = arith.truncf %733 : f32 to bf16
    %735 = vector.broadcast %734 : bf16 to vector<8x768xbf16>
    %736 = arith.mulf %732, %735 : vector<8x768xbf16>
    %737 = arith.addf %730, %736 : vector<8x768xbf16>
    %c2_510 = arith.constant 2 : index
    %c0_511 = arith.constant 0 : index
    %c0_512 = arith.constant 0 : index
    %738 = vector.load %arg3[%c2_510, %c0_511, %c0_512] : memref<9x8x768xbf16, #tpu.memory_space<vmem>>, vector<1x8x768xbf16>
    %739 = vector.shape_cast %738 : vector<1x8x768xbf16> to vector<8x768xbf16>
    %c10_513 = arith.constant 10 : index
    %c2_514 = arith.constant 2 : index
    %740 = memref.load %arg1[%c10_513, %c2_514] : memref<16x9xf32, #tpu.memory_space<smem>>
    %741 = arith.truncf %740 : f32 to bf16
    %742 = vector.broadcast %741 : bf16 to vector<8x768xbf16>
    %743 = arith.mulf %739, %742 : vector<8x768xbf16>
    %744 = arith.addf %737, %743 : vector<8x768xbf16>
    %c3_515 = arith.constant 3 : index
    %c0_516 = arith.constant 0 : index
    %c0_517 = arith.constant 0 : index
    %745 = vector.load %arg3[%c3_515, %c0_516, %c0_517] : memref<9x8x768xbf16, #tpu.memory_space<vmem>>, vector<1x8x768xbf16>
    %746 = vector.shape_cast %745 : vector<1x8x768xbf16> to vector<8x768xbf16>
    %c10_518 = arith.constant 10 : index
    %c3_519 = arith.constant 3 : index
    %747 = memref.load %arg1[%c10_518, %c3_519] : memref<16x9xf32, #tpu.memory_space<smem>>
    %748 = arith.truncf %747 : f32 to bf16
    %749 = vector.broadcast %748 : bf16 to vector<8x768xbf16>
    %750 = arith.mulf %746, %749 : vector<8x768xbf16>
    %751 = arith.addf %744, %750 : vector<8x768xbf16>
    %c4_520 = arith.constant 4 : index
    %c0_521 = arith.constant 0 : index
    %c0_522 = arith.constant 0 : index
    %752 = vector.load %arg3[%c4_520, %c0_521, %c0_522] : memref<9x8x768xbf16, #tpu.memory_space<vmem>>, vector<1x8x768xbf16>
    %753 = vector.shape_cast %752 : vector<1x8x768xbf16> to vector<8x768xbf16>
    %c10_523 = arith.constant 10 : index
    %c4_524 = arith.constant 4 : index
    %754 = memref.load %arg1[%c10_523, %c4_524] : memref<16x9xf32, #tpu.memory_space<smem>>
    %755 = arith.truncf %754 : f32 to bf16
    %756 = vector.broadcast %755 : bf16 to vector<8x768xbf16>
    %757 = arith.mulf %753, %756 : vector<8x768xbf16>
    %758 = arith.addf %751, %757 : vector<8x768xbf16>
    %c5_525 = arith.constant 5 : index
    %c0_526 = arith.constant 0 : index
    %c0_527 = arith.constant 0 : index
    %759 = vector.load %arg3[%c5_525, %c0_526, %c0_527] : memref<9x8x768xbf16, #tpu.memory_space<vmem>>, vector<1x8x768xbf16>
    %760 = vector.shape_cast %759 : vector<1x8x768xbf16> to vector<8x768xbf16>
    %c10_528 = arith.constant 10 : index
    %c5_529 = arith.constant 5 : index
    %761 = memref.load %arg1[%c10_528, %c5_529] : memref<16x9xf32, #tpu.memory_space<smem>>
    %762 = arith.truncf %761 : f32 to bf16
    %763 = vector.broadcast %762 : bf16 to vector<8x768xbf16>
    %764 = arith.mulf %760, %763 : vector<8x768xbf16>
    %765 = arith.addf %758, %764 : vector<8x768xbf16>
    %c6_530 = arith.constant 6 : index
    %c0_531 = arith.constant 0 : index
    %c0_532 = arith.constant 0 : index
    %766 = vector.load %arg3[%c6_530, %c0_531, %c0_532] : memref<9x8x768xbf16, #tpu.memory_space<vmem>>, vector<1x8x768xbf16>
    %767 = vector.shape_cast %766 : vector<1x8x768xbf16> to vector<8x768xbf16>
    %c10_533 = arith.constant 10 : index
    %c6_534 = arith.constant 6 : index
    %768 = memref.load %arg1[%c10_533, %c6_534] : memref<16x9xf32, #tpu.memory_space<smem>>
    %769 = arith.truncf %768 : f32 to bf16
    %770 = vector.broadcast %769 : bf16 to vector<8x768xbf16>
    %771 = arith.mulf %767, %770 : vector<8x768xbf16>
    %772 = arith.addf %765, %771 : vector<8x768xbf16>
    %c7_535 = arith.constant 7 : index
    %c0_536 = arith.constant 0 : index
    %c0_537 = arith.constant 0 : index
    %773 = vector.load %arg3[%c7_535, %c0_536, %c0_537] : memref<9x8x768xbf16, #tpu.memory_space<vmem>>, vector<1x8x768xbf16>
    %774 = vector.shape_cast %773 : vector<1x8x768xbf16> to vector<8x768xbf16>
    %c10_538 = arith.constant 10 : index
    %c7_539 = arith.constant 7 : index
    %775 = memref.load %arg1[%c10_538, %c7_539] : memref<16x9xf32, #tpu.memory_space<smem>>
    %776 = arith.truncf %775 : f32 to bf16
    %777 = vector.broadcast %776 : bf16 to vector<8x768xbf16>
    %778 = arith.mulf %774, %777 : vector<8x768xbf16>
    %779 = arith.addf %772, %778 : vector<8x768xbf16>
    %c8_540 = arith.constant 8 : index
    %c0_541 = arith.constant 0 : index
    %c0_542 = arith.constant 0 : index
    %780 = vector.load %arg3[%c8_540, %c0_541, %c0_542] : memref<9x8x768xbf16, #tpu.memory_space<vmem>>, vector<1x8x768xbf16>
    %781 = vector.shape_cast %780 : vector<1x8x768xbf16> to vector<8x768xbf16>
    %c10_543 = arith.constant 10 : index
    %c8_544 = arith.constant 8 : index
    %782 = memref.load %arg1[%c10_543, %c8_544] : memref<16x9xf32, #tpu.memory_space<smem>>
    %783 = arith.truncf %782 : f32 to bf16
    %784 = vector.broadcast %783 : bf16 to vector<8x768xbf16>
    %785 = arith.mulf %781, %784 : vector<8x768xbf16>
    %786 = arith.addf %779, %785 : vector<8x768xbf16>
    %cst_545 = arith.constant 0.000000e+00 : bf16
    %787 = vector.broadcast %cst_545 : bf16 to vector<8x768xbf16>
    %788 = arith.maximumf %786, %787 : vector<8x768xbf16>
    %c10_546 = arith.constant 10 : index
    %c0_547 = arith.constant 0 : index
    %c0_548 = arith.constant 0 : index
    %789 = vector.load %arg4[%c10_546, %c0_547, %c0_548] : memref<16x768x128xbf16, #tpu.memory_space<vmem>>, vector<1x768x128xbf16>
    %790 = vector.shape_cast %789 : vector<1x768x128xbf16> to vector<768x128xbf16>
    %cst_549 = arith.constant dense<0.000000e+00> : vector<8x128xf32>
    %791 = tpu.matmul %788, %790, %cst_549 {dimension_numbers = #tpu.dot_dimension_numbers<[1], [0], [0], [1], [0, 0, 1, 1], [], []>} : vector<8x768xbf16>, vector<768x128xbf16>, vector<8x128xf32> -> vector<8x128xf32>
    %792 = arith.addf %720, %791 : vector<8x128xf32>
    %c0_550 = arith.constant 0 : index
    %c0_551 = arith.constant 0 : index
    %c0_552 = arith.constant 0 : index
    %793 = vector.load %arg3[%c0_550, %c0_551, %c0_552] : memref<9x8x768xbf16, #tpu.memory_space<vmem>>, vector<1x8x768xbf16>
    %794 = vector.shape_cast %793 : vector<1x8x768xbf16> to vector<8x768xbf16>
    %c11 = arith.constant 11 : index
    %c0_553 = arith.constant 0 : index
    %795 = memref.load %arg1[%c11, %c0_553] : memref<16x9xf32, #tpu.memory_space<smem>>
    %796 = arith.truncf %795 : f32 to bf16
    %797 = vector.broadcast %796 : bf16 to vector<8x768xbf16>
    %798 = arith.mulf %794, %797 : vector<8x768xbf16>
    %c11_554 = arith.constant 11 : index
    %799 = memref.load %arg2[%c11_554] : memref<16xf32, #tpu.memory_space<smem>>
    %800 = arith.truncf %799 : f32 to bf16
    %801 = vector.broadcast %800 : bf16 to vector<8x768xbf16>
    %802 = arith.addf %798, %801 : vector<8x768xbf16>
    %c1_555 = arith.constant 1 : index
    %c0_556 = arith.constant 0 : index
    %c0_557 = arith.constant 0 : index
    %803 = vector.load %arg3[%c1_555, %c0_556, %c0_557] : memref<9x8x768xbf16, #tpu.memory_space<vmem>>, vector<1x8x768xbf16>
    %804 = vector.shape_cast %803 : vector<1x8x768xbf16> to vector<8x768xbf16>
    %c11_558 = arith.constant 11 : index
    %c1_559 = arith.constant 1 : index
    %805 = memref.load %arg1[%c11_558, %c1_559] : memref<16x9xf32, #tpu.memory_space<smem>>
    %806 = arith.truncf %805 : f32 to bf16
    %807 = vector.broadcast %806 : bf16 to vector<8x768xbf16>
    %808 = arith.mulf %804, %807 : vector<8x768xbf16>
    %809 = arith.addf %802, %808 : vector<8x768xbf16>
    %c2_560 = arith.constant 2 : index
    %c0_561 = arith.constant 0 : index
    %c0_562 = arith.constant 0 : index
    %810 = vector.load %arg3[%c2_560, %c0_561, %c0_562] : memref<9x8x768xbf16, #tpu.memory_space<vmem>>, vector<1x8x768xbf16>
    %811 = vector.shape_cast %810 : vector<1x8x768xbf16> to vector<8x768xbf16>
    %c11_563 = arith.constant 11 : index
    %c2_564 = arith.constant 2 : index
    %812 = memref.load %arg1[%c11_563, %c2_564] : memref<16x9xf32, #tpu.memory_space<smem>>
    %813 = arith.truncf %812 : f32 to bf16
    %814 = vector.broadcast %813 : bf16 to vector<8x768xbf16>
    %815 = arith.mulf %811, %814 : vector<8x768xbf16>
    %816 = arith.addf %809, %815 : vector<8x768xbf16>
    %c3_565 = arith.constant 3 : index
    %c0_566 = arith.constant 0 : index
    %c0_567 = arith.constant 0 : index
    %817 = vector.load %arg3[%c3_565, %c0_566, %c0_567] : memref<9x8x768xbf16, #tpu.memory_space<vmem>>, vector<1x8x768xbf16>
    %818 = vector.shape_cast %817 : vector<1x8x768xbf16> to vector<8x768xbf16>
    %c11_568 = arith.constant 11 : index
    %c3_569 = arith.constant 3 : index
    %819 = memref.load %arg1[%c11_568, %c3_569] : memref<16x9xf32, #tpu.memory_space<smem>>
    %820 = arith.truncf %819 : f32 to bf16
    %821 = vector.broadcast %820 : bf16 to vector<8x768xbf16>
    %822 = arith.mulf %818, %821 : vector<8x768xbf16>
    %823 = arith.addf %816, %822 : vector<8x768xbf16>
    %c4_570 = arith.constant 4 : index
    %c0_571 = arith.constant 0 : index
    %c0_572 = arith.constant 0 : index
    %824 = vector.load %arg3[%c4_570, %c0_571, %c0_572] : memref<9x8x768xbf16, #tpu.memory_space<vmem>>, vector<1x8x768xbf16>
    %825 = vector.shape_cast %824 : vector<1x8x768xbf16> to vector<8x768xbf16>
    %c11_573 = arith.constant 11 : index
    %c4_574 = arith.constant 4 : index
    %826 = memref.load %arg1[%c11_573, %c4_574] : memref<16x9xf32, #tpu.memory_space<smem>>
    %827 = arith.truncf %826 : f32 to bf16
    %828 = vector.broadcast %827 : bf16 to vector<8x768xbf16>
    %829 = arith.mulf %825, %828 : vector<8x768xbf16>
    %830 = arith.addf %823, %829 : vector<8x768xbf16>
    %c5_575 = arith.constant 5 : index
    %c0_576 = arith.constant 0 : index
    %c0_577 = arith.constant 0 : index
    %831 = vector.load %arg3[%c5_575, %c0_576, %c0_577] : memref<9x8x768xbf16, #tpu.memory_space<vmem>>, vector<1x8x768xbf16>
    %832 = vector.shape_cast %831 : vector<1x8x768xbf16> to vector<8x768xbf16>
    %c11_578 = arith.constant 11 : index
    %c5_579 = arith.constant 5 : index
    %833 = memref.load %arg1[%c11_578, %c5_579] : memref<16x9xf32, #tpu.memory_space<smem>>
    %834 = arith.truncf %833 : f32 to bf16
    %835 = vector.broadcast %834 : bf16 to vector<8x768xbf16>
    %836 = arith.mulf %832, %835 : vector<8x768xbf16>
    %837 = arith.addf %830, %836 : vector<8x768xbf16>
    %c6_580 = arith.constant 6 : index
    %c0_581 = arith.constant 0 : index
    %c0_582 = arith.constant 0 : index
    %838 = vector.load %arg3[%c6_580, %c0_581, %c0_582] : memref<9x8x768xbf16, #tpu.memory_space<vmem>>, vector<1x8x768xbf16>
    %839 = vector.shape_cast %838 : vector<1x8x768xbf16> to vector<8x768xbf16>
    %c11_583 = arith.constant 11 : index
    %c6_584 = arith.constant 6 : index
    %840 = memref.load %arg1[%c11_583, %c6_584] : memref<16x9xf32, #tpu.memory_space<smem>>
    %841 = arith.truncf %840 : f32 to bf16
    %842 = vector.broadcast %841 : bf16 to vector<8x768xbf16>
    %843 = arith.mulf %839, %842 : vector<8x768xbf16>
    %844 = arith.addf %837, %843 : vector<8x768xbf16>
    %c7_585 = arith.constant 7 : index
    %c0_586 = arith.constant 0 : index
    %c0_587 = arith.constant 0 : index
    %845 = vector.load %arg3[%c7_585, %c0_586, %c0_587] : memref<9x8x768xbf16, #tpu.memory_space<vmem>>, vector<1x8x768xbf16>
    %846 = vector.shape_cast %845 : vector<1x8x768xbf16> to vector<8x768xbf16>
    %c11_588 = arith.constant 11 : index
    %c7_589 = arith.constant 7 : index
    %847 = memref.load %arg1[%c11_588, %c7_589] : memref<16x9xf32, #tpu.memory_space<smem>>
    %848 = arith.truncf %847 : f32 to bf16
    %849 = vector.broadcast %848 : bf16 to vector<8x768xbf16>
    %850 = arith.mulf %846, %849 : vector<8x768xbf16>
    %851 = arith.addf %844, %850 : vector<8x768xbf16>
    %c8_590 = arith.constant 8 : index
    %c0_591 = arith.constant 0 : index
    %c0_592 = arith.constant 0 : index
    %852 = vector.load %arg3[%c8_590, %c0_591, %c0_592] : memref<9x8x768xbf16, #tpu.memory_space<vmem>>, vector<1x8x768xbf16>
    %853 = vector.shape_cast %852 : vector<1x8x768xbf16> to vector<8x768xbf16>
    %c11_593 = arith.constant 11 : index
    %c8_594 = arith.constant 8 : index
    %854 = memref.load %arg1[%c11_593, %c8_594] : memref<16x9xf32, #tpu.memory_space<smem>>
    %855 = arith.truncf %854 : f32 to bf16
    %856 = vector.broadcast %855 : bf16 to vector<8x768xbf16>
    %857 = arith.mulf %853, %856 : vector<8x768xbf16>
    %858 = arith.addf %851, %857 : vector<8x768xbf16>
    %cst_595 = arith.constant 0.000000e+00 : bf16
    %859 = vector.broadcast %cst_595 : bf16 to vector<8x768xbf16>
    %860 = arith.maximumf %858, %859 : vector<8x768xbf16>
    %c11_596 = arith.constant 11 : index
    %c0_597 = arith.constant 0 : index
    %c0_598 = arith.constant 0 : index
    %861 = vector.load %arg4[%c11_596, %c0_597, %c0_598] : memref<16x768x128xbf16, #tpu.memory_space<vmem>>, vector<1x768x128xbf16>
    %862 = vector.shape_cast %861 : vector<1x768x128xbf16> to vector<768x128xbf16>
    %cst_599 = arith.constant dense<0.000000e+00> : vector<8x128xf32>
    %863 = tpu.matmul %860, %862, %cst_599 {dimension_numbers = #tpu.dot_dimension_numbers<[1], [0], [0], [1], [0, 0, 1, 1], [], []>} : vector<8x768xbf16>, vector<768x128xbf16>, vector<8x128xf32> -> vector<8x128xf32>
    %864 = arith.addf %792, %863 : vector<8x128xf32>
    %c0_600 = arith.constant 0 : index
    %c0_601 = arith.constant 0 : index
    %c0_602 = arith.constant 0 : index
    %865 = vector.load %arg3[%c0_600, %c0_601, %c0_602] : memref<9x8x768xbf16, #tpu.memory_space<vmem>>, vector<1x8x768xbf16>
    %866 = vector.shape_cast %865 : vector<1x8x768xbf16> to vector<8x768xbf16>
    %c12 = arith.constant 12 : index
    %c0_603 = arith.constant 0 : index
    %867 = memref.load %arg1[%c12, %c0_603] : memref<16x9xf32, #tpu.memory_space<smem>>
    %868 = arith.truncf %867 : f32 to bf16
    %869 = vector.broadcast %868 : bf16 to vector<8x768xbf16>
    %870 = arith.mulf %866, %869 : vector<8x768xbf16>
    %c12_604 = arith.constant 12 : index
    %871 = memref.load %arg2[%c12_604] : memref<16xf32, #tpu.memory_space<smem>>
    %872 = arith.truncf %871 : f32 to bf16
    %873 = vector.broadcast %872 : bf16 to vector<8x768xbf16>
    %874 = arith.addf %870, %873 : vector<8x768xbf16>
    %c1_605 = arith.constant 1 : index
    %c0_606 = arith.constant 0 : index
    %c0_607 = arith.constant 0 : index
    %875 = vector.load %arg3[%c1_605, %c0_606, %c0_607] : memref<9x8x768xbf16, #tpu.memory_space<vmem>>, vector<1x8x768xbf16>
    %876 = vector.shape_cast %875 : vector<1x8x768xbf16> to vector<8x768xbf16>
    %c12_608 = arith.constant 12 : index
    %c1_609 = arith.constant 1 : index
    %877 = memref.load %arg1[%c12_608, %c1_609] : memref<16x9xf32, #tpu.memory_space<smem>>
    %878 = arith.truncf %877 : f32 to bf16
    %879 = vector.broadcast %878 : bf16 to vector<8x768xbf16>
    %880 = arith.mulf %876, %879 : vector<8x768xbf16>
    %881 = arith.addf %874, %880 : vector<8x768xbf16>
    %c2_610 = arith.constant 2 : index
    %c0_611 = arith.constant 0 : index
    %c0_612 = arith.constant 0 : index
    %882 = vector.load %arg3[%c2_610, %c0_611, %c0_612] : memref<9x8x768xbf16, #tpu.memory_space<vmem>>, vector<1x8x768xbf16>
    %883 = vector.shape_cast %882 : vector<1x8x768xbf16> to vector<8x768xbf16>
    %c12_613 = arith.constant 12 : index
    %c2_614 = arith.constant 2 : index
    %884 = memref.load %arg1[%c12_613, %c2_614] : memref<16x9xf32, #tpu.memory_space<smem>>
    %885 = arith.truncf %884 : f32 to bf16
    %886 = vector.broadcast %885 : bf16 to vector<8x768xbf16>
    %887 = arith.mulf %883, %886 : vector<8x768xbf16>
    %888 = arith.addf %881, %887 : vector<8x768xbf16>
    %c3_615 = arith.constant 3 : index
    %c0_616 = arith.constant 0 : index
    %c0_617 = arith.constant 0 : index
    %889 = vector.load %arg3[%c3_615, %c0_616, %c0_617] : memref<9x8x768xbf16, #tpu.memory_space<vmem>>, vector<1x8x768xbf16>
    %890 = vector.shape_cast %889 : vector<1x8x768xbf16> to vector<8x768xbf16>
    %c12_618 = arith.constant 12 : index
    %c3_619 = arith.constant 3 : index
    %891 = memref.load %arg1[%c12_618, %c3_619] : memref<16x9xf32, #tpu.memory_space<smem>>
    %892 = arith.truncf %891 : f32 to bf16
    %893 = vector.broadcast %892 : bf16 to vector<8x768xbf16>
    %894 = arith.mulf %890, %893 : vector<8x768xbf16>
    %895 = arith.addf %888, %894 : vector<8x768xbf16>
    %c4_620 = arith.constant 4 : index
    %c0_621 = arith.constant 0 : index
    %c0_622 = arith.constant 0 : index
    %896 = vector.load %arg3[%c4_620, %c0_621, %c0_622] : memref<9x8x768xbf16, #tpu.memory_space<vmem>>, vector<1x8x768xbf16>
    %897 = vector.shape_cast %896 : vector<1x8x768xbf16> to vector<8x768xbf16>
    %c12_623 = arith.constant 12 : index
    %c4_624 = arith.constant 4 : index
    %898 = memref.load %arg1[%c12_623, %c4_624] : memref<16x9xf32, #tpu.memory_space<smem>>
    %899 = arith.truncf %898 : f32 to bf16
    %900 = vector.broadcast %899 : bf16 to vector<8x768xbf16>
    %901 = arith.mulf %897, %900 : vector<8x768xbf16>
    %902 = arith.addf %895, %901 : vector<8x768xbf16>
    %c5_625 = arith.constant 5 : index
    %c0_626 = arith.constant 0 : index
    %c0_627 = arith.constant 0 : index
    %903 = vector.load %arg3[%c5_625, %c0_626, %c0_627] : memref<9x8x768xbf16, #tpu.memory_space<vmem>>, vector<1x8x768xbf16>
    %904 = vector.shape_cast %903 : vector<1x8x768xbf16> to vector<8x768xbf16>
    %c12_628 = arith.constant 12 : index
    %c5_629 = arith.constant 5 : index
    %905 = memref.load %arg1[%c12_628, %c5_629] : memref<16x9xf32, #tpu.memory_space<smem>>
    %906 = arith.truncf %905 : f32 to bf16
    %907 = vector.broadcast %906 : bf16 to vector<8x768xbf16>
    %908 = arith.mulf %904, %907 : vector<8x768xbf16>
    %909 = arith.addf %902, %908 : vector<8x768xbf16>
    %c6_630 = arith.constant 6 : index
    %c0_631 = arith.constant 0 : index
    %c0_632 = arith.constant 0 : index
    %910 = vector.load %arg3[%c6_630, %c0_631, %c0_632] : memref<9x8x768xbf16, #tpu.memory_space<vmem>>, vector<1x8x768xbf16>
    %911 = vector.shape_cast %910 : vector<1x8x768xbf16> to vector<8x768xbf16>
    %c12_633 = arith.constant 12 : index
    %c6_634 = arith.constant 6 : index
    %912 = memref.load %arg1[%c12_633, %c6_634] : memref<16x9xf32, #tpu.memory_space<smem>>
    %913 = arith.truncf %912 : f32 to bf16
    %914 = vector.broadcast %913 : bf16 to vector<8x768xbf16>
    %915 = arith.mulf %911, %914 : vector<8x768xbf16>
    %916 = arith.addf %909, %915 : vector<8x768xbf16>
    %c7_635 = arith.constant 7 : index
    %c0_636 = arith.constant 0 : index
    %c0_637 = arith.constant 0 : index
    %917 = vector.load %arg3[%c7_635, %c0_636, %c0_637] : memref<9x8x768xbf16, #tpu.memory_space<vmem>>, vector<1x8x768xbf16>
    %918 = vector.shape_cast %917 : vector<1x8x768xbf16> to vector<8x768xbf16>
    %c12_638 = arith.constant 12 : index
    %c7_639 = arith.constant 7 : index
    %919 = memref.load %arg1[%c12_638, %c7_639] : memref<16x9xf32, #tpu.memory_space<smem>>
    %920 = arith.truncf %919 : f32 to bf16
    %921 = vector.broadcast %920 : bf16 to vector<8x768xbf16>
    %922 = arith.mulf %918, %921 : vector<8x768xbf16>
    %923 = arith.addf %916, %922 : vector<8x768xbf16>
    %c8_640 = arith.constant 8 : index
    %c0_641 = arith.constant 0 : index
    %c0_642 = arith.constant 0 : index
    %924 = vector.load %arg3[%c8_640, %c0_641, %c0_642] : memref<9x8x768xbf16, #tpu.memory_space<vmem>>, vector<1x8x768xbf16>
    %925 = vector.shape_cast %924 : vector<1x8x768xbf16> to vector<8x768xbf16>
    %c12_643 = arith.constant 12 : index
    %c8_644 = arith.constant 8 : index
    %926 = memref.load %arg1[%c12_643, %c8_644] : memref<16x9xf32, #tpu.memory_space<smem>>
    %927 = arith.truncf %926 : f32 to bf16
    %928 = vector.broadcast %927 : bf16 to vector<8x768xbf16>
    %929 = arith.mulf %925, %928 : vector<8x768xbf16>
    %930 = arith.addf %923, %929 : vector<8x768xbf16>
    %cst_645 = arith.constant 0.000000e+00 : bf16
    %931 = vector.broadcast %cst_645 : bf16 to vector<8x768xbf16>
    %932 = arith.maximumf %930, %931 : vector<8x768xbf16>
    %c12_646 = arith.constant 12 : index
    %c0_647 = arith.constant 0 : index
    %c0_648 = arith.constant 0 : index
    %933 = vector.load %arg4[%c12_646, %c0_647, %c0_648] : memref<16x768x128xbf16, #tpu.memory_space<vmem>>, vector<1x768x128xbf16>
    %934 = vector.shape_cast %933 : vector<1x768x128xbf16> to vector<768x128xbf16>
    %cst_649 = arith.constant dense<0.000000e+00> : vector<8x128xf32>
    %935 = tpu.matmul %932, %934, %cst_649 {dimension_numbers = #tpu.dot_dimension_numbers<[1], [0], [0], [1], [0, 0, 1, 1], [], []>} : vector<8x768xbf16>, vector<768x128xbf16>, vector<8x128xf32> -> vector<8x128xf32>
    %936 = arith.addf %864, %935 : vector<8x128xf32>
    %c0_650 = arith.constant 0 : index
    %c0_651 = arith.constant 0 : index
    %c0_652 = arith.constant 0 : index
    %937 = vector.load %arg3[%c0_650, %c0_651, %c0_652] : memref<9x8x768xbf16, #tpu.memory_space<vmem>>, vector<1x8x768xbf16>
    %938 = vector.shape_cast %937 : vector<1x8x768xbf16> to vector<8x768xbf16>
    %c13 = arith.constant 13 : index
    %c0_653 = arith.constant 0 : index
    %939 = memref.load %arg1[%c13, %c0_653] : memref<16x9xf32, #tpu.memory_space<smem>>
    %940 = arith.truncf %939 : f32 to bf16
    %941 = vector.broadcast %940 : bf16 to vector<8x768xbf16>
    %942 = arith.mulf %938, %941 : vector<8x768xbf16>
    %c13_654 = arith.constant 13 : index
    %943 = memref.load %arg2[%c13_654] : memref<16xf32, #tpu.memory_space<smem>>
    %944 = arith.truncf %943 : f32 to bf16
    %945 = vector.broadcast %944 : bf16 to vector<8x768xbf16>
    %946 = arith.addf %942, %945 : vector<8x768xbf16>
    %c1_655 = arith.constant 1 : index
    %c0_656 = arith.constant 0 : index
    %c0_657 = arith.constant 0 : index
    %947 = vector.load %arg3[%c1_655, %c0_656, %c0_657] : memref<9x8x768xbf16, #tpu.memory_space<vmem>>, vector<1x8x768xbf16>
    %948 = vector.shape_cast %947 : vector<1x8x768xbf16> to vector<8x768xbf16>
    %c13_658 = arith.constant 13 : index
    %c1_659 = arith.constant 1 : index
    %949 = memref.load %arg1[%c13_658, %c1_659] : memref<16x9xf32, #tpu.memory_space<smem>>
    %950 = arith.truncf %949 : f32 to bf16
    %951 = vector.broadcast %950 : bf16 to vector<8x768xbf16>
    %952 = arith.mulf %948, %951 : vector<8x768xbf16>
    %953 = arith.addf %946, %952 : vector<8x768xbf16>
    %c2_660 = arith.constant 2 : index
    %c0_661 = arith.constant 0 : index
    %c0_662 = arith.constant 0 : index
    %954 = vector.load %arg3[%c2_660, %c0_661, %c0_662] : memref<9x8x768xbf16, #tpu.memory_space<vmem>>, vector<1x8x768xbf16>
    %955 = vector.shape_cast %954 : vector<1x8x768xbf16> to vector<8x768xbf16>
    %c13_663 = arith.constant 13 : index
    %c2_664 = arith.constant 2 : index
    %956 = memref.load %arg1[%c13_663, %c2_664] : memref<16x9xf32, #tpu.memory_space<smem>>
    %957 = arith.truncf %956 : f32 to bf16
    %958 = vector.broadcast %957 : bf16 to vector<8x768xbf16>
    %959 = arith.mulf %955, %958 : vector<8x768xbf16>
    %960 = arith.addf %953, %959 : vector<8x768xbf16>
    %c3_665 = arith.constant 3 : index
    %c0_666 = arith.constant 0 : index
    %c0_667 = arith.constant 0 : index
    %961 = vector.load %arg3[%c3_665, %c0_666, %c0_667] : memref<9x8x768xbf16, #tpu.memory_space<vmem>>, vector<1x8x768xbf16>
    %962 = vector.shape_cast %961 : vector<1x8x768xbf16> to vector<8x768xbf16>
    %c13_668 = arith.constant 13 : index
    %c3_669 = arith.constant 3 : index
    %963 = memref.load %arg1[%c13_668, %c3_669] : memref<16x9xf32, #tpu.memory_space<smem>>
    %964 = arith.truncf %963 : f32 to bf16
    %965 = vector.broadcast %964 : bf16 to vector<8x768xbf16>
    %966 = arith.mulf %962, %965 : vector<8x768xbf16>
    %967 = arith.addf %960, %966 : vector<8x768xbf16>
    %c4_670 = arith.constant 4 : index
    %c0_671 = arith.constant 0 : index
    %c0_672 = arith.constant 0 : index
    %968 = vector.load %arg3[%c4_670, %c0_671, %c0_672] : memref<9x8x768xbf16, #tpu.memory_space<vmem>>, vector<1x8x768xbf16>
    %969 = vector.shape_cast %968 : vector<1x8x768xbf16> to vector<8x768xbf16>
    %c13_673 = arith.constant 13 : index
    %c4_674 = arith.constant 4 : index
    %970 = memref.load %arg1[%c13_673, %c4_674] : memref<16x9xf32, #tpu.memory_space<smem>>
    %971 = arith.truncf %970 : f32 to bf16
    %972 = vector.broadcast %971 : bf16 to vector<8x768xbf16>
    %973 = arith.mulf %969, %972 : vector<8x768xbf16>
    %974 = arith.addf %967, %973 : vector<8x768xbf16>
    %c5_675 = arith.constant 5 : index
    %c0_676 = arith.constant 0 : index
    %c0_677 = arith.constant 0 : index
    %975 = vector.load %arg3[%c5_675, %c0_676, %c0_677] : memref<9x8x768xbf16, #tpu.memory_space<vmem>>, vector<1x8x768xbf16>
    %976 = vector.shape_cast %975 : vector<1x8x768xbf16> to vector<8x768xbf16>
    %c13_678 = arith.constant 13 : index
    %c5_679 = arith.constant 5 : index
    %977 = memref.load %arg1[%c13_678, %c5_679] : memref<16x9xf32, #tpu.memory_space<smem>>
    %978 = arith.truncf %977 : f32 to bf16
    %979 = vector.broadcast %978 : bf16 to vector<8x768xbf16>
    %980 = arith.mulf %976, %979 : vector<8x768xbf16>
    %981 = arith.addf %974, %980 : vector<8x768xbf16>
    %c6_680 = arith.constant 6 : index
    %c0_681 = arith.constant 0 : index
    %c0_682 = arith.constant 0 : index
    %982 = vector.load %arg3[%c6_680, %c0_681, %c0_682] : memref<9x8x768xbf16, #tpu.memory_space<vmem>>, vector<1x8x768xbf16>
    %983 = vector.shape_cast %982 : vector<1x8x768xbf16> to vector<8x768xbf16>
    %c13_683 = arith.constant 13 : index
    %c6_684 = arith.constant 6 : index
    %984 = memref.load %arg1[%c13_683, %c6_684] : memref<16x9xf32, #tpu.memory_space<smem>>
    %985 = arith.truncf %984 : f32 to bf16
    %986 = vector.broadcast %985 : bf16 to vector<8x768xbf16>
    %987 = arith.mulf %983, %986 : vector<8x768xbf16>
    %988 = arith.addf %981, %987 : vector<8x768xbf16>
    %c7_685 = arith.constant 7 : index
    %c0_686 = arith.constant 0 : index
    %c0_687 = arith.constant 0 : index
    %989 = vector.load %arg3[%c7_685, %c0_686, %c0_687] : memref<9x8x768xbf16, #tpu.memory_space<vmem>>, vector<1x8x768xbf16>
    %990 = vector.shape_cast %989 : vector<1x8x768xbf16> to vector<8x768xbf16>
    %c13_688 = arith.constant 13 : index
    %c7_689 = arith.constant 7 : index
    %991 = memref.load %arg1[%c13_688, %c7_689] : memref<16x9xf32, #tpu.memory_space<smem>>
    %992 = arith.truncf %991 : f32 to bf16
    %993 = vector.broadcast %992 : bf16 to vector<8x768xbf16>
    %994 = arith.mulf %990, %993 : vector<8x768xbf16>
    %995 = arith.addf %988, %994 : vector<8x768xbf16>
    %c8_690 = arith.constant 8 : index
    %c0_691 = arith.constant 0 : index
    %c0_692 = arith.constant 0 : index
    %996 = vector.load %arg3[%c8_690, %c0_691, %c0_692] : memref<9x8x768xbf16, #tpu.memory_space<vmem>>, vector<1x8x768xbf16>
    %997 = vector.shape_cast %996 : vector<1x8x768xbf16> to vector<8x768xbf16>
    %c13_693 = arith.constant 13 : index
    %c8_694 = arith.constant 8 : index
    %998 = memref.load %arg1[%c13_693, %c8_694] : memref<16x9xf32, #tpu.memory_space<smem>>
    %999 = arith.truncf %998 : f32 to bf16
    %1000 = vector.broadcast %999 : bf16 to vector<8x768xbf16>
    %1001 = arith.mulf %997, %1000 : vector<8x768xbf16>
    %1002 = arith.addf %995, %1001 : vector<8x768xbf16>
    %cst_695 = arith.constant 0.000000e+00 : bf16
    %1003 = vector.broadcast %cst_695 : bf16 to vector<8x768xbf16>
    %1004 = arith.maximumf %1002, %1003 : vector<8x768xbf16>
    %c13_696 = arith.constant 13 : index
    %c0_697 = arith.constant 0 : index
    %c0_698 = arith.constant 0 : index
    %1005 = vector.load %arg4[%c13_696, %c0_697, %c0_698] : memref<16x768x128xbf16, #tpu.memory_space<vmem>>, vector<1x768x128xbf16>
    %1006 = vector.shape_cast %1005 : vector<1x768x128xbf16> to vector<768x128xbf16>
    %cst_699 = arith.constant dense<0.000000e+00> : vector<8x128xf32>
    %1007 = tpu.matmul %1004, %1006, %cst_699 {dimension_numbers = #tpu.dot_dimension_numbers<[1], [0], [0], [1], [0, 0, 1, 1], [], []>} : vector<8x768xbf16>, vector<768x128xbf16>, vector<8x128xf32> -> vector<8x128xf32>
    %1008 = arith.addf %936, %1007 : vector<8x128xf32>
    %c0_700 = arith.constant 0 : index
    %c0_701 = arith.constant 0 : index
    %c0_702 = arith.constant 0 : index
    %1009 = vector.load %arg3[%c0_700, %c0_701, %c0_702] : memref<9x8x768xbf16, #tpu.memory_space<vmem>>, vector<1x8x768xbf16>
    %1010 = vector.shape_cast %1009 : vector<1x8x768xbf16> to vector<8x768xbf16>
    %c14 = arith.constant 14 : index
    %c0_703 = arith.constant 0 : index
    %1011 = memref.load %arg1[%c14, %c0_703] : memref<16x9xf32, #tpu.memory_space<smem>>
    %1012 = arith.truncf %1011 : f32 to bf16
    %1013 = vector.broadcast %1012 : bf16 to vector<8x768xbf16>
    %1014 = arith.mulf %1010, %1013 : vector<8x768xbf16>
    %c14_704 = arith.constant 14 : index
    %1015 = memref.load %arg2[%c14_704] : memref<16xf32, #tpu.memory_space<smem>>
    %1016 = arith.truncf %1015 : f32 to bf16
    %1017 = vector.broadcast %1016 : bf16 to vector<8x768xbf16>
    %1018 = arith.addf %1014, %1017 : vector<8x768xbf16>
    %c1_705 = arith.constant 1 : index
    %c0_706 = arith.constant 0 : index
    %c0_707 = arith.constant 0 : index
    %1019 = vector.load %arg3[%c1_705, %c0_706, %c0_707] : memref<9x8x768xbf16, #tpu.memory_space<vmem>>, vector<1x8x768xbf16>
    %1020 = vector.shape_cast %1019 : vector<1x8x768xbf16> to vector<8x768xbf16>
    %c14_708 = arith.constant 14 : index
    %c1_709 = arith.constant 1 : index
    %1021 = memref.load %arg1[%c14_708, %c1_709] : memref<16x9xf32, #tpu.memory_space<smem>>
    %1022 = arith.truncf %1021 : f32 to bf16
    %1023 = vector.broadcast %1022 : bf16 to vector<8x768xbf16>
    %1024 = arith.mulf %1020, %1023 : vector<8x768xbf16>
    %1025 = arith.addf %1018, %1024 : vector<8x768xbf16>
    %c2_710 = arith.constant 2 : index
    %c0_711 = arith.constant 0 : index
    %c0_712 = arith.constant 0 : index
    %1026 = vector.load %arg3[%c2_710, %c0_711, %c0_712] : memref<9x8x768xbf16, #tpu.memory_space<vmem>>, vector<1x8x768xbf16>
    %1027 = vector.shape_cast %1026 : vector<1x8x768xbf16> to vector<8x768xbf16>
    %c14_713 = arith.constant 14 : index
    %c2_714 = arith.constant 2 : index
    %1028 = memref.load %arg1[%c14_713, %c2_714] : memref<16x9xf32, #tpu.memory_space<smem>>
    %1029 = arith.truncf %1028 : f32 to bf16
    %1030 = vector.broadcast %1029 : bf16 to vector<8x768xbf16>
    %1031 = arith.mulf %1027, %1030 : vector<8x768xbf16>
    %1032 = arith.addf %1025, %1031 : vector<8x768xbf16>
    %c3_715 = arith.constant 3 : index
    %c0_716 = arith.constant 0 : index
    %c0_717 = arith.constant 0 : index
    %1033 = vector.load %arg3[%c3_715, %c0_716, %c0_717] : memref<9x8x768xbf16, #tpu.memory_space<vmem>>, vector<1x8x768xbf16>
    %1034 = vector.shape_cast %1033 : vector<1x8x768xbf16> to vector<8x768xbf16>
    %c14_718 = arith.constant 14 : index
    %c3_719 = arith.constant 3 : index
    %1035 = memref.load %arg1[%c14_718, %c3_719] : memref<16x9xf32, #tpu.memory_space<smem>>
    %1036 = arith.truncf %1035 : f32 to bf16
    %1037 = vector.broadcast %1036 : bf16 to vector<8x768xbf16>
    %1038 = arith.mulf %1034, %1037 : vector<8x768xbf16>
    %1039 = arith.addf %1032, %1038 : vector<8x768xbf16>
    %c4_720 = arith.constant 4 : index
    %c0_721 = arith.constant 0 : index
    %c0_722 = arith.constant 0 : index
    %1040 = vector.load %arg3[%c4_720, %c0_721, %c0_722] : memref<9x8x768xbf16, #tpu.memory_space<vmem>>, vector<1x8x768xbf16>
    %1041 = vector.shape_cast %1040 : vector<1x8x768xbf16> to vector<8x768xbf16>
    %c14_723 = arith.constant 14 : index
    %c4_724 = arith.constant 4 : index
    %1042 = memref.load %arg1[%c14_723, %c4_724] : memref<16x9xf32, #tpu.memory_space<smem>>
    %1043 = arith.truncf %1042 : f32 to bf16
    %1044 = vector.broadcast %1043 : bf16 to vector<8x768xbf16>
    %1045 = arith.mulf %1041, %1044 : vector<8x768xbf16>
    %1046 = arith.addf %1039, %1045 : vector<8x768xbf16>
    %c5_725 = arith.constant 5 : index
    %c0_726 = arith.constant 0 : index
    %c0_727 = arith.constant 0 : index
    %1047 = vector.load %arg3[%c5_725, %c0_726, %c0_727] : memref<9x8x768xbf16, #tpu.memory_space<vmem>>, vector<1x8x768xbf16>
    %1048 = vector.shape_cast %1047 : vector<1x8x768xbf16> to vector<8x768xbf16>
    %c14_728 = arith.constant 14 : index
    %c5_729 = arith.constant 5 : index
    %1049 = memref.load %arg1[%c14_728, %c5_729] : memref<16x9xf32, #tpu.memory_space<smem>>
    %1050 = arith.truncf %1049 : f32 to bf16
    %1051 = vector.broadcast %1050 : bf16 to vector<8x768xbf16>
    %1052 = arith.mulf %1048, %1051 : vector<8x768xbf16>
    %1053 = arith.addf %1046, %1052 : vector<8x768xbf16>
    %c6_730 = arith.constant 6 : index
    %c0_731 = arith.constant 0 : index
    %c0_732 = arith.constant 0 : index
    %1054 = vector.load %arg3[%c6_730, %c0_731, %c0_732] : memref<9x8x768xbf16, #tpu.memory_space<vmem>>, vector<1x8x768xbf16>
    %1055 = vector.shape_cast %1054 : vector<1x8x768xbf16> to vector<8x768xbf16>
    %c14_733 = arith.constant 14 : index
    %c6_734 = arith.constant 6 : index
    %1056 = memref.load %arg1[%c14_733, %c6_734] : memref<16x9xf32, #tpu.memory_space<smem>>
    %1057 = arith.truncf %1056 : f32 to bf16
    %1058 = vector.broadcast %1057 : bf16 to vector<8x768xbf16>
    %1059 = arith.mulf %1055, %1058 : vector<8x768xbf16>
    %1060 = arith.addf %1053, %1059 : vector<8x768xbf16>
    %c7_735 = arith.constant 7 : index
    %c0_736 = arith.constant 0 : index
    %c0_737 = arith.constant 0 : index
    %1061 = vector.load %arg3[%c7_735, %c0_736, %c0_737] : memref<9x8x768xbf16, #tpu.memory_space<vmem>>, vector<1x8x768xbf16>
    %1062 = vector.shape_cast %1061 : vector<1x8x768xbf16> to vector<8x768xbf16>
    %c14_738 = arith.constant 14 : index
    %c7_739 = arith.constant 7 : index
    %1063 = memref.load %arg1[%c14_738, %c7_739] : memref<16x9xf32, #tpu.memory_space<smem>>
    %1064 = arith.truncf %1063 : f32 to bf16
    %1065 = vector.broadcast %1064 : bf16 to vector<8x768xbf16>
    %1066 = arith.mulf %1062, %1065 : vector<8x768xbf16>
    %1067 = arith.addf %1060, %1066 : vector<8x768xbf16>
    %c8_740 = arith.constant 8 : index
    %c0_741 = arith.constant 0 : index
    %c0_742 = arith.constant 0 : index
    %1068 = vector.load %arg3[%c8_740, %c0_741, %c0_742] : memref<9x8x768xbf16, #tpu.memory_space<vmem>>, vector<1x8x768xbf16>
    %1069 = vector.shape_cast %1068 : vector<1x8x768xbf16> to vector<8x768xbf16>
    %c14_743 = arith.constant 14 : index
    %c8_744 = arith.constant 8 : index
    %1070 = memref.load %arg1[%c14_743, %c8_744] : memref<16x9xf32, #tpu.memory_space<smem>>
    %1071 = arith.truncf %1070 : f32 to bf16
    %1072 = vector.broadcast %1071 : bf16 to vector<8x768xbf16>
    %1073 = arith.mulf %1069, %1072 : vector<8x768xbf16>
    %1074 = arith.addf %1067, %1073 : vector<8x768xbf16>
    %cst_745 = arith.constant 0.000000e+00 : bf16
    %1075 = vector.broadcast %cst_745 : bf16 to vector<8x768xbf16>
    %1076 = arith.maximumf %1074, %1075 : vector<8x768xbf16>
    %c14_746 = arith.constant 14 : index
    %c0_747 = arith.constant 0 : index
    %c0_748 = arith.constant 0 : index
    %1077 = vector.load %arg4[%c14_746, %c0_747, %c0_748] : memref<16x768x128xbf16, #tpu.memory_space<vmem>>, vector<1x768x128xbf16>
    %1078 = vector.shape_cast %1077 : vector<1x768x128xbf16> to vector<768x128xbf16>
    %cst_749 = arith.constant dense<0.000000e+00> : vector<8x128xf32>
    %1079 = tpu.matmul %1076, %1078, %cst_749 {dimension_numbers = #tpu.dot_dimension_numbers<[1], [0], [0], [1], [0, 0, 1, 1], [], []>} : vector<8x768xbf16>, vector<768x128xbf16>, vector<8x128xf32> -> vector<8x128xf32>
    %1080 = arith.addf %1008, %1079 : vector<8x128xf32>
    %c0_750 = arith.constant 0 : index
    %c0_751 = arith.constant 0 : index
    %c0_752 = arith.constant 0 : index
    %1081 = vector.load %arg3[%c0_750, %c0_751, %c0_752] : memref<9x8x768xbf16, #tpu.memory_space<vmem>>, vector<1x8x768xbf16>
    %1082 = vector.shape_cast %1081 : vector<1x8x768xbf16> to vector<8x768xbf16>
    %c15 = arith.constant 15 : index
    %c0_753 = arith.constant 0 : index
    %1083 = memref.load %arg1[%c15, %c0_753] : memref<16x9xf32, #tpu.memory_space<smem>>
    %1084 = arith.truncf %1083 : f32 to bf16
    %1085 = vector.broadcast %1084 : bf16 to vector<8x768xbf16>
    %1086 = arith.mulf %1082, %1085 : vector<8x768xbf16>
    %c15_754 = arith.constant 15 : index
    %1087 = memref.load %arg2[%c15_754] : memref<16xf32, #tpu.memory_space<smem>>
    %1088 = arith.truncf %1087 : f32 to bf16
    %1089 = vector.broadcast %1088 : bf16 to vector<8x768xbf16>
    %1090 = arith.addf %1086, %1089 : vector<8x768xbf16>
    %c1_755 = arith.constant 1 : index
    %c0_756 = arith.constant 0 : index
    %c0_757 = arith.constant 0 : index
    %1091 = vector.load %arg3[%c1_755, %c0_756, %c0_757] : memref<9x8x768xbf16, #tpu.memory_space<vmem>>, vector<1x8x768xbf16>
    %1092 = vector.shape_cast %1091 : vector<1x8x768xbf16> to vector<8x768xbf16>
    %c15_758 = arith.constant 15 : index
    %c1_759 = arith.constant 1 : index
    %1093 = memref.load %arg1[%c15_758, %c1_759] : memref<16x9xf32, #tpu.memory_space<smem>>
    %1094 = arith.truncf %1093 : f32 to bf16
    %1095 = vector.broadcast %1094 : bf16 to vector<8x768xbf16>
    %1096 = arith.mulf %1092, %1095 : vector<8x768xbf16>
    %1097 = arith.addf %1090, %1096 : vector<8x768xbf16>
    %c2_760 = arith.constant 2 : index
    %c0_761 = arith.constant 0 : index
    %c0_762 = arith.constant 0 : index
    %1098 = vector.load %arg3[%c2_760, %c0_761, %c0_762] : memref<9x8x768xbf16, #tpu.memory_space<vmem>>, vector<1x8x768xbf16>
    %1099 = vector.shape_cast %1098 : vector<1x8x768xbf16> to vector<8x768xbf16>
    %c15_763 = arith.constant 15 : index
    %c2_764 = arith.constant 2 : index
    %1100 = memref.load %arg1[%c15_763, %c2_764] : memref<16x9xf32, #tpu.memory_space<smem>>
    %1101 = arith.truncf %1100 : f32 to bf16
    %1102 = vector.broadcast %1101 : bf16 to vector<8x768xbf16>
    %1103 = arith.mulf %1099, %1102 : vector<8x768xbf16>
    %1104 = arith.addf %1097, %1103 : vector<8x768xbf16>
    %c3_765 = arith.constant 3 : index
    %c0_766 = arith.constant 0 : index
    %c0_767 = arith.constant 0 : index
    %1105 = vector.load %arg3[%c3_765, %c0_766, %c0_767] : memref<9x8x768xbf16, #tpu.memory_space<vmem>>, vector<1x8x768xbf16>
    %1106 = vector.shape_cast %1105 : vector<1x8x768xbf16> to vector<8x768xbf16>
    %c15_768 = arith.constant 15 : index
    %c3_769 = arith.constant 3 : index
    %1107 = memref.load %arg1[%c15_768, %c3_769] : memref<16x9xf32, #tpu.memory_space<smem>>
    %1108 = arith.truncf %1107 : f32 to bf16
    %1109 = vector.broadcast %1108 : bf16 to vector<8x768xbf16>
    %1110 = arith.mulf %1106, %1109 : vector<8x768xbf16>
    %1111 = arith.addf %1104, %1110 : vector<8x768xbf16>
    %c4_770 = arith.constant 4 : index
    %c0_771 = arith.constant 0 : index
    %c0_772 = arith.constant 0 : index
    %1112 = vector.load %arg3[%c4_770, %c0_771, %c0_772] : memref<9x8x768xbf16, #tpu.memory_space<vmem>>, vector<1x8x768xbf16>
    %1113 = vector.shape_cast %1112 : vector<1x8x768xbf16> to vector<8x768xbf16>
    %c15_773 = arith.constant 15 : index
    %c4_774 = arith.constant 4 : index
    %1114 = memref.load %arg1[%c15_773, %c4_774] : memref<16x9xf32, #tpu.memory_space<smem>>
    %1115 = arith.truncf %1114 : f32 to bf16
    %1116 = vector.broadcast %1115 : bf16 to vector<8x768xbf16>
    %1117 = arith.mulf %1113, %1116 : vector<8x768xbf16>
    %1118 = arith.addf %1111, %1117 : vector<8x768xbf16>
    %c5_775 = arith.constant 5 : index
    %c0_776 = arith.constant 0 : index
    %c0_777 = arith.constant 0 : index
    %1119 = vector.load %arg3[%c5_775, %c0_776, %c0_777] : memref<9x8x768xbf16, #tpu.memory_space<vmem>>, vector<1x8x768xbf16>
    %1120 = vector.shape_cast %1119 : vector<1x8x768xbf16> to vector<8x768xbf16>
    %c15_778 = arith.constant 15 : index
    %c5_779 = arith.constant 5 : index
    %1121 = memref.load %arg1[%c15_778, %c5_779] : memref<16x9xf32, #tpu.memory_space<smem>>
    %1122 = arith.truncf %1121 : f32 to bf16
    %1123 = vector.broadcast %1122 : bf16 to vector<8x768xbf16>
    %1124 = arith.mulf %1120, %1123 : vector<8x768xbf16>
    %1125 = arith.addf %1118, %1124 : vector<8x768xbf16>
    %c6_780 = arith.constant 6 : index
    %c0_781 = arith.constant 0 : index
    %c0_782 = arith.constant 0 : index
    %1126 = vector.load %arg3[%c6_780, %c0_781, %c0_782] : memref<9x8x768xbf16, #tpu.memory_space<vmem>>, vector<1x8x768xbf16>
    %1127 = vector.shape_cast %1126 : vector<1x8x768xbf16> to vector<8x768xbf16>
    %c15_783 = arith.constant 15 : index
    %c6_784 = arith.constant 6 : index
    %1128 = memref.load %arg1[%c15_783, %c6_784] : memref<16x9xf32, #tpu.memory_space<smem>>
    %1129 = arith.truncf %1128 : f32 to bf16
    %1130 = vector.broadcast %1129 : bf16 to vector<8x768xbf16>
    %1131 = arith.mulf %1127, %1130 : vector<8x768xbf16>
    %1132 = arith.addf %1125, %1131 : vector<8x768xbf16>
    %c7_785 = arith.constant 7 : index
    %c0_786 = arith.constant 0 : index
    %c0_787 = arith.constant 0 : index
    %1133 = vector.load %arg3[%c7_785, %c0_786, %c0_787] : memref<9x8x768xbf16, #tpu.memory_space<vmem>>, vector<1x8x768xbf16>
    %1134 = vector.shape_cast %1133 : vector<1x8x768xbf16> to vector<8x768xbf16>
    %c15_788 = arith.constant 15 : index
    %c7_789 = arith.constant 7 : index
    %1135 = memref.load %arg1[%c15_788, %c7_789] : memref<16x9xf32, #tpu.memory_space<smem>>
    %1136 = arith.truncf %1135 : f32 to bf16
    %1137 = vector.broadcast %1136 : bf16 to vector<8x768xbf16>
    %1138 = arith.mulf %1134, %1137 : vector<8x768xbf16>
    %1139 = arith.addf %1132, %1138 : vector<8x768xbf16>
    %c8_790 = arith.constant 8 : index
    %c0_791 = arith.constant 0 : index
    %c0_792 = arith.constant 0 : index
    %1140 = vector.load %arg3[%c8_790, %c0_791, %c0_792] : memref<9x8x768xbf16, #tpu.memory_space<vmem>>, vector<1x8x768xbf16>
    %1141 = vector.shape_cast %1140 : vector<1x8x768xbf16> to vector<8x768xbf16>
    %c15_793 = arith.constant 15 : index
    %c8_794 = arith.constant 8 : index
    %1142 = memref.load %arg1[%c15_793, %c8_794] : memref<16x9xf32, #tpu.memory_space<smem>>
    %1143 = arith.truncf %1142 : f32 to bf16
    %1144 = vector.broadcast %1143 : bf16 to vector<8x768xbf16>
    %1145 = arith.mulf %1141, %1144 : vector<8x768xbf16>
    %1146 = arith.addf %1139, %1145 : vector<8x768xbf16>
    %cst_795 = arith.constant 0.000000e+00 : bf16
    %1147 = vector.broadcast %cst_795 : bf16 to vector<8x768xbf16>
    %1148 = arith.maximumf %1146, %1147 : vector<8x768xbf16>
    %c15_796 = arith.constant 15 : index
    %c0_797 = arith.constant 0 : index
    %c0_798 = arith.constant 0 : index
    %1149 = vector.load %arg4[%c15_796, %c0_797, %c0_798] : memref<16x768x128xbf16, #tpu.memory_space<vmem>>, vector<1x768x128xbf16>
    %1150 = vector.shape_cast %1149 : vector<1x768x128xbf16> to vector<768x128xbf16>
    %cst_799 = arith.constant dense<0.000000e+00> : vector<8x128xf32>
    %1151 = tpu.matmul %1148, %1150, %cst_799 {dimension_numbers = #tpu.dot_dimension_numbers<[1], [0], [0], [1], [0, 0, 1, 1], [], []>} : vector<8x768xbf16>, vector<768x128xbf16>, vector<8x128xf32> -> vector<8x128xf32>
    %1152 = arith.addf %1080, %1151 : vector<8x128xf32>
    %c0_800 = arith.constant 0 : index
    %c0_801 = arith.constant 0 : index
    %1153 = vector.load %arg5[%c0_800, %c0_801] : memref<1x128xf32, #tpu.memory_space<vmem>>, vector<1x128xf32>
    %1154 = vector.broadcast %1153 : vector<1x128xf32> to vector<8x128xf32>
    %1155 = arith.addf %1152, %1154 : vector<8x128xf32>
    %c0_802 = arith.constant 0 : index
    %c0_803 = arith.constant 0 : index
    %1156 = vector.load %arg6[%c0_802, %c0_803] : memref<8x128xf32, #tpu.memory_space<vmem>>, vector<8x128xf32>
    tpu.vector_store %arg6[%c0_802, %c0_803], %1155 {strides = array<i32>} : memref<8x128xf32, #tpu.memory_space<vmem>>, vector<8x128xf32>,
    return
  }
  func.func @transform_0(%arg0: i32) -> (i32, i32) {
    %c0_i32 = arith.constant 0 : i32
    %c0_i32_0 = arith.constant 0 : i32
    %c0_i32_1 = arith.constant 0 : i32
    return %c0_i32, %c0_i32_0 : i32, i32
  }
  func.func @transform_1(%arg0: i32) -> i32 {
    %c0_i32 = arith.constant 0 : i32
    %c0_i32_0 = arith.constant 0 : i32
    return %c0_i32 : i32
  }
  func.func @transform_2(%arg0: i32) -> (i32, i32, i32) {
    %c0_i32 = arith.constant 0 : i32
    %c0_i32_0 = arith.constant 0 : i32
    %c0_i32_1 = arith.constant 0 : i32
    return %c0_i32, %arg0, %c0_i32_0 : i32, i32, i32
  }
  func.func @transform_3(%arg0: i32) -> (i32, i32, i32) {
    %c0_i32 = arith.constant 0 : i32
    %c0_i32_0 = arith.constant 0 : i32
    %c0_i32_1 = arith.constant 0 : i32
    %c0_i32_2 = arith.constant 0 : i32
    return %c0_i32, %c0_i32_0, %c0_i32_1 : i32, i32, i32
  }
  func.func @transform_4(%arg0: i32) -> (i32, i32) {
    %c0_i32 = arith.constant 0 : i32
    %c0_i32_0 = arith.constant 0 : i32
    %c0_i32_1 = arith.constant 0 : i32
    return %c0_i32, %c0_i32_0 : i32, i32
  }
  func.func @transform_5(%arg0: i32) -> (i32, i32) {
    %c0_i32 = arith.constant 0 : i32
    %c0_i32_0 = arith.constant 0 : i32
    return %arg0, %c0_i32 : i32, i32
  }
}

</mosaic_0001>

<bundles_post_ra>
// kernel: student_cnn_forward.1
= control target key start
LH: loop header
LB: loop body
LE: loop exit
PB: predicated region body
PF: predicated region fallthrough
CT: control target
= control target key end

     0   :  { %10 = vsyncpa [#allocation4], 0  ;;  %s18442_s0 = inlined_call_operand.hbm [shape: f32[16,9], index: 0, kind: input, shape index: {}]   ;;  %s18443_s1 = inlined_call_operand.hbm [shape: f32[16], index: 1, kind: input, shape index: {}]   ;;  %s18444_s2 = inlined_call_operand.vmem [shape: bf16[9,8,768], index: 2, kind: input, shape index: {}]   ;;  %s18445_s3 = inlined_call_operand.hbm [shape: bf16[16,768,128], index: 3, kind: input, shape index: {}]   ;;  %s18446_s4 = inlined_call_operand.hbm [shape: f32[1,128], index: 4, kind: input, shape index: {}]   ;;  %s18447_s5 = inlined_call_operand.vmem [shape: f32[8,128], index: 5, kind: output, shape index: {}]  }
   0x1   :  { %11 = vsyncpa [#allocation6], 0 }
   0x2   :  { %12 = vsyncpa [#allocation3], 0 }
   0x3   :  { %13 = vsyncpa [#allocation9], 0  ;;  %s14996_s18 = smov [#allocation2]   ;;  %s14997_s19 = smov 128  }
   0x4   :  { %s14998_s20 = smov 8   ;;  %s14999_s23 = smov [#allocation5]  }
   0x5   :  { %23 = dma.hbm_to_smem %s18442_s0, 256, %s14996_s18, [#allocation4], %s14997_s19, %s14997_s19, %s14998_s20  }
   0x6   :  { %31 = dma.hbm_to_smem %s18443_s1, 16, %s14999_s23, [#allocation6]  }
   0x7   :  { %s15000_s26 = smov [#allocation7]  }
   0x8   :  { %s39_s27 = sshll.u32 %s15000_s26, 4  ;;  %s40_s27 = int_to_ptr.vmem [resolvable:$true] %s39_s27 }
   0x9   :  { %s14956_s28 = scalar_lea.vmem %s40_s27, 98304  ;;  %p14961_p1 = scmp.lt.s32.totalorder %s40_s27, %s40_s27 }
   0xa   :  { %p14957_p0 = scmp.ne.s32.totalorder %s40_s27, %s14956_s28  ;;  %p14962_p2 = scmp.lt.s32.totalorder %s14956_s28, %s14956_s28 }
   0xc   :  { %p14963_p3 = por %p14962_p2, %p14961_p1 }
   0xe   :  { %p14964_p4 = pnand %p14963_p3, %p14957_p0 }
  0x10   :  { %14967 = shalt.err (!%p14964_p4)
}
  0x11   :  { %s15001_s29 = smov 64   ;;  %s15002_s30 = smov 4  }
  0x12   :  { %45 = dma.hbm_to_vmem [thread:$0]  %s18445_s3, 98304, %s40_s27, [#allocation3], %s15001_s29, %s15001_s29, %s15002_s30  }
  0x13   :  { %s15003_s0 = smov [#allocation8]  }
  0x14   :  { %s52_s8 = sshll.u32 %s15003_s0, 4  ;;  %s53_s8 = int_to_ptr.vmem [resolvable:$true] %s52_s8 }
  0x15   :  { %s14976_s1 = scalar_lea.vmem %s53_s8, 16  ;;  %s14980_s9 = scalar_lea.vmem %s53_s8, 32 }
  0x16   :  { %p14977_p5 = scmp.ne.s32.totalorder %s53_s8, %s14976_s1  ;;  %p14981_p6 = scmp.lt.s32.totalorder %s53_s8, %s53_s8 }
  0x17   :  { %p14982_p7 = scmp.lt.s32.totalorder %s14980_s9, %s14976_s1 }
  0x19   :  { %p14983_p8 = por %p14982_p7, %p14981_p6 }
  0x1b   :  { %p14984_p9 = pnand %p14983_p8, %p14977_p5 }
  0x1d   :  { %14987 = shalt.err (!%p14984_p9)
}
  0x1e   :  { %55 = dma.hbm_to_vmem [thread:$0]  %s18446_s4, 16, %s53_s8, [#allocation9]  }
  0x1f   :  { %14988 = dma.done.wait [#allocation4], 256  }
  0x20   :  { %14989 = vsyncadd [#allocation4], 4294967040 }
  0x21   :  { %14990 = dma.done.wait [#allocation6], 16  }
  0x22   :  { %14991 = vsyncadd [#allocation6], 4294967280 }
  0x23   :  { %14992 = dma.done.wait [#allocation3], 98304  }
  0x24   :  { %14993 = vsyncadd [#allocation3], 4294868992 }
  0x25   :  { %14994 = dma.done.wait [#allocation9], 16  }
  0x26   :  { %14995 = vsyncadd [#allocation9], 4294967280 }
  0x27   :  { %68 = sfence }
  0x28   :  { %v13975_v0 = vld [vmem:[#allocation7 + $0x1f8] sm:$0xff]   ;;  %v13979_v4 = vld [vmem:[#allocation7 + $0x1f0] sm:$0xff]   ;;  %v13983_v8 = vld [vmem:[#allocation7 + $0x1e8] sm:$0xff]   ;;  %s11895_s3 = sld [smem:[#allocation2 + $0x80]] }
  0x29   :  { %v13976_v1 = vld [vmem:[#allocation7 + $0x278] sm:$0xff]   ;;  %12910 = vmatprep.subr.bf16.mxu0 %v13975_v0  ;;  %v13980_v5 = vld [vmem:[#allocation7 + $0x270] sm:$0xff]   ;;  %v13984_v9 = vld [vmem:[#allocation7 + $0x268] sm:$0xff]   ;;  %s11896_s4 = sld [smem:[#allocation5 + $0x1]] }
  0x2a   :  { %v13977_v2 = vld [vmem:[#allocation7 + $0x1b8] sm:$0xff]   ;;  %12932 = vmatprep.subr.bf16.mxu1 %v13976_v1  ;;  %v13981_v6 = vld [vmem:[#allocation7 + $0x1b0] sm:$0xff]   ;;  %v13985_v10 = vld [vmem:[#allocation7 + $0x1a8] sm:$0xff]   ;;  %s15047_s12 = sld [smem:[#allocation2 + $0x81]] }
  0x2b   :  { %v13978_v3 = vld [vmem:[#allocation7 + $0x238] sm:$0xff]   ;;  %12911 = vmatpush3.bf16.msra.mxu0 %v13977_v2  ;;  %v13982_v7 = vld [vmem:[#allocation7 + $0x230] sm:$0xff]   ;;  %v13986_v11 = vld [vmem:[#allocation7 + $0x228] sm:$0xff]   ;;  %s15049_s13 = sld [smem:[#allocation2 + $0x82]] }
  0x2c   :  { %12933 = vmatpush3.bf16.msra.mxu1 %v13978_v3  ;;  %12912 = vmatprep.subr.bf16.mxu0 %v13979_v4  ;;  %v13987_v12 = vld [vmem:[#allocation7 + $0x1e0] sm:$0xff]   ;;  %v13991_v16 = vld [vmem:[#allocation7 + $0x1d8] sm:$0xff]   ;;  %v13995_v20 = vld [vmem:[#allocation7 + $0x1d0] sm:$0xff]   ;;  %s15051_s14 = sld [smem:[#allocation2 + $0x83]] }
  0x2d   :  { %12934 = vmatprep.subr.bf16.mxu1 %v13980_v5  ;;  %v13988_v13 = vld [vmem:[#allocation7 + $0x260] sm:$0xff]   ;;  %v13992_v17 = vld [vmem:[#allocation7 + $0x258] sm:$0xff]   ;;  %v13996_v21 = vld [vmem:[#allocation7 + $0x250] sm:$0xff]   ;;  %s15053_s15 = sld [smem:[#allocation2 + $0x84]] }
  0x2e   :  { %v13989_v14 = vld [vmem:[#allocation7 + $0x1a0] sm:$0xff]   ;;  %v13993_v18 = vld [vmem:[#allocation7 + $0x198] sm:$0xff]   ;;  %v13997_v22 = vld [vmem:[#allocation7 + $0x190] sm:$0xff]   ;;  %p410_p10 = scmp.ne.f32.partialorder %s11895_s3, %s11895_s3  ;;  %s411_s16 = sshrl.u32 %s11895_s3, 16 }
  0x2f   :  { %12913 = vmatpush3.bf16.msra.mxu0 %v13981_v6  ;;  %v13990_v15 = vld [vmem:[#allocation7 + $0x220] sm:$0xff]   ;;  %v13994_v19 = vld [vmem:[#allocation7 + $0x218] sm:$0xff]   ;;  %v13998_v23 = vld [vmem:[#allocation7 + $0x210] sm:$0xff]   ;;  %s412_s17 = sand.u32 1, %s411_s16  ;;  %p428_p11 = scmp.ne.f32.partialorder %s11896_s4, %s11896_s4 }
  0x30   :  { %12935 = vmatpush3.bf16.msra.mxu1 %v13982_v7  ;;  %12914 = vmatprep.subr.bf16.mxu0 %v13983_v8  ;;  %v13999_v24 = vld [vmem:[#allocation7 + $0x1c8] sm:$0xff]   ;;  %v14003_v28 = vld [vmem:[#allocation7 + $0x1c0] sm:$0xff]   ;;  %v14007_v32 = vld [vmem:[#allocation7 + $0x2f8] sm:$0xff]   ;;  %s413_s18 = sadd.s32 32767, %s412_s17  ;;  %s429_s19 = sshrl.u32 %s11896_s4, 16 }
  0x31   :  { %12936 = vmatprep.subr.bf16.mxu1 %v13984_v9  ;;  %v14000_v25 = vld [vmem:[#allocation7 + $0x248] sm:$0xff]   ;;  %v14004_v29 = vld [vmem:[#allocation7 + $0x240] sm:$0xff]   ;;  %v14008_v33 = vld [vmem:[#allocation7 + $0x78] sm:$0xff]   ;;  %s414_s20 = sadd.s32 %s11895_s3, %s413_s18  ;;  %s430_s21 = sand.u32 1, %s429_s19 }
  0x32   :  { %v14001_v26 = vld [vmem:[#allocation7 + $0x188] sm:$0xff]   ;;  %v14005_v30 = vld [vmem:[#allocation7 + $0x180] sm:$0xff]   ;;  %s415_s22 = sand.u32 4294901760, %s414_s20  ;;  %s431_s23 = sadd.s32 32767, %s430_s21  ;;  %v15091_v37 = vld [vmem:[%s18444_s2 + $0x18] sm:$0xff] }
  0x33   :  { %12915 = vmatpush3.bf16.msra.mxu0 %v13985_v10  ;;  %v14002_v27 = vld [vmem:[#allocation7 + $0x208] sm:$0xff]   ;;  %v14006_v31 = vld [vmem:[#allocation7 + $0x200] sm:$0xff]   ;;  %s18449_s22 = smov (%p410_p10, %s415_s22), 2143289344  ;;  %s432_s24 = sadd.s32 %s11896_s4, %s431_s23  ;;  %v15109_v43 = vld [vmem:[%s18444_s2 + $0x30] sm:$0xff] }
  0x34   :  { %12937 = vmatpush3.bf16.msra.mxu1 %v13986_v11  ;;  %12916 = vmatprep.subr.bf16.mxu0 %v13987_v12  ;;  %p446_p12 = scmp.ne.f32.partialorder %s15047_s12, %s15047_s12  ;;  %s418_s25 = sshrl.u32 %s18449_s22, 16  ;;  %v15079_v34 = vld [vmem:[%s18444_s2] sm:$0xff]  ;;  %v15084_v36 = vld [vmem:[%s18444_s2 + $0x8] sm:$0xff]  ;;  %v15118_v47 = vld [vmem:[%s18444_s2 + $0x38] sm:$0xff] }
  0x35   :  { %12938 = vmatprep.subr.bf16.mxu1 %v13988_v13  ;;  %s433_s26 = sand.u32 4294901760, %s432_s24  ;;  %s419_s27 = sshll.u32 %s418_s25, 16  ;;  %v15102_v41 = vld [vmem:[%s18444_s2 + $0x20] sm:$0xff]  ;;  %v15130_v52 = vld [vmem:[%s18444_s2 + $0x10] sm:$0xff]  ;;  %v15135_v53 = vld [vmem:[%s18444_s2 + $0x28] sm:$0xff] }
  0x36   :  { %s447_s28 = sshrl.u32 %s15047_s12, 16  ;;  %s420_s29 = sor.u32 %s419_s27, %s418_s25  ;;  %v15141_v56 = vld [vmem:[%s18444_s2 + $0x40] sm:$0xff]  ;;  %v15148_v59 = vld [vmem:[%s18444_s2 + $0x48] sm:$0xff]  ;;  %v15155_v61 = vld [vmem:[%s18444_s2 + $0x50] sm:$0xff] }
  0x37   :  { %12917 = vmatpush3.bf16.msra.mxu0 %v13989_v14  ;;  %s448_s30 = sand.u32 1, %s447_s28  ;;  %s18451_s26 = smov (%p428_p11, %s433_s26), 2143289344  ;;  %v421_v35 = vstv %s420_s29  ;;  %v15163_v62 = vld [vmem:[%s18444_s2 + $0x58] sm:$0xff]  ;;  %v15169_v1 = vld [vmem:[%s18444_s2 + $0x60] sm:$0xff]  ;;  %v15180_v4 = vld [vmem:[%s18444_s2 + $0x68] sm:$0xff] }
  0x38   :  { %12939 = vmatpush3.bf16.msra.mxu1 %v13990_v15  ;;  %12918 = vmatprep.subr.bf16.mxu0 %v13991_v16  ;;  %s449_s6 = sadd.s32 32767, %s448_s30  ;;  %p467_p13 = scmp.ne.f32.partialorder %s15049_s13, %s15049_s13  ;;  %v423_v38 = vmul.bf16 %v421_v35, %v15079_v34  ;;  %v424_v42 = vmul.bf16 %v421_v35, %v15084_v36  ;;  %v425_v57 = vmul.bf16 %v421_v35, %v15130_v52  ;;  %v15187_v9 = vld [vmem:[%s18444_s2 + $0x70] sm:$0xff]  ;;  %v15195_v12 = vld [vmem:[%s18444_s2 + $0x78] sm:$0xff]  ;;  %v15245_v35 = vld [vmem:[%s18444_s2 + $0xa8] sm:$0xff] }
  0x39   :  { %12940 = vmatprep.subr.bf16.mxu1 %v13992_v17  ;;  %s436_s7 = sshrl.u32 %s18451_s26, 16  ;;  %s450_s0 = sadd.s32 %s15047_s12, %s449_s6 }
  0x3a   :  { %s437_s8 = sshll.u32 %s436_s7, 16  ;;  %s451_s1 = sand.u32 4294901760, %s450_s0 }
  0x3b   :  { %12919 = vmatpush3.bf16.msra.mxu0 %v13993_v18  ;;  %s438_s9 = sor.u32 %s437_s8, %s436_s7  ;;  %s468_s10 = sshrl.u32 %s15049_s13, 16  ;;  %v15205_v18 = vld [vmem:[%s18444_s2 + $0x80] sm:$0xff] }
  0x3c   :  { %12941 = vmatpush3.bf16.msra.mxu1 %v13994_v19  ;;  %12920 = vmatprep.subr.bf16.mxu0 %v13995_v20  ;;  %s18453_s1 = smov (%p446_p12, %s451_s1), 2143289344  ;;  %s469_s11 = sand.u32 1, %s468_s10  ;;  %v439_v39 = vstv %s438_s9 }
  0x3d   :  { %12942 = vmatprep.subr.bf16.mxu1 %v13996_v21  ;;  %p488_p0 = scmp.ne.f32.partialorder %s15051_s14, %s15051_s14  ;;  %s454_s3 = sshrl.u32 %s18453_s1, 16  ;;  %v441_v44 = vadd.bf16 %v439_v39, %v423_v38  ;;  %v442_v48 = vadd.bf16 %v439_v39, %v424_v42  ;;  %v443_v63 = vadd.bf16 %v439_v39, %v425_v57  ;;  %v15214_v21 = vld [vmem:[%s18444_s2 + $0x88] sm:$0xff]  ;;  %v15251_v39 = vld [vmem:[%s18444_s2 + $0xb0] sm:$0xff] }
  0x3e   :  { %s470_s4 = sadd.s32 32767, %s469_s11  ;;  %s455_s16 = sshll.u32 %s454_s3, 16 }
  0x3f   :  { %12921 = vmatpush3.bf16.msra.mxu0 %v13997_v22  ;;  %s471_s17 = sadd.s32 %s15049_s13, %s470_s4  ;;  %s456_s18 = sor.u32 %s455_s16, %s454_s3  ;;  %v15222_v22 = vld [vmem:[%s18444_s2 + $0x90] sm:$0xff] }
  0x40   :  { %12943 = vmatpush3.bf16.msra.mxu1 %v13998_v23  ;;  %12922 = vmatprep.subr.bf16.mxu0 %v13999_v24  ;;  %s472_s19 = sand.u32 4294901760, %s471_s17  ;;  %s489_s20 = sshrl.u32 %s15051_s14, 16  ;;  %v457_v40 = vstv %s456_s18 }
  0x41   :  { %12944 = vmatprep.subr.bf16.mxu1 %v14000_v25  ;;  %s18455_s19 = smov (%p467_p13, %s472_s19), 2143289344  ;;  %p509_p1 = scmp.ne.f32.partialorder %s15053_s15, %s15053_s15  ;;  %v459_v45 = vmul.bf16 %v15091_v37, %v457_v40  ;;  %v460_v49 = vmul.bf16 %v15102_v41, %v457_v40  ;;  %v461_v58 = vmul.bf16 %v15135_v53, %v457_v40  ;;  %v15228_v25 = vld [vmem:[%s18444_s2 + $0x98] sm:$0xff] }
  0x42   :  { %s475_s12 = sshrl.u32 %s18455_s19, 16  ;;  %s490_s21 = sand.u32 1, %s489_s20 }
  0x43   :  { %12923 = vmatpush3.bf16.msra.mxu0 %v14001_v26  ;;  %s476_s24 = sshll.u32 %s475_s12, 16  ;;  %s491_s25 = sadd.s32 32767, %s490_s21  ;;  %v462_v50 = vadd.bf16 %v459_v45, %v441_v44  ;;  %v463_v54 = vadd.bf16 %v460_v49, %v442_v48  ;;  %v464_v7 = vadd.bf16 %v461_v58, %v443_v63  ;;  %v15261_v45 = vld [vmem:[%s18444_s2 + $0xb8] sm:$0xff]  ;;  %v15280_v58 = vld [vmem:[%s18444_s2 + $0xc8] sm:$0xff] }
  0x44   :  { %12945 = vmatpush3.bf16.msra.mxu1 %v14002_v27  ;;  %12924 = vmatprep.subr.bf16.mxu0 %v14003_v28  ;;  %s477_s13 = sor.u32 %s476_s24, %s475_s12  ;;  %s492_s28 = sadd.s32 %s15051_s14, %s491_s25 }
  0x45   :  { %12946 = vmatprep.subr.bf16.mxu1 %v14004_v29  ;;  %s493_s30 = sand.u32 4294901760, %s492_s28  ;;  %s510_s6 = sshrl.u32 %s15053_s15, 16  ;;  %v478_v46 = vstv %s477_s13 }
  0x46   :  { %s18457_s30 = smov (%p488_p0, %s493_s30), 2143289344  ;;  %s511_s29 = sand.u32 1, %s510_s6  ;;  %v480_v51 = vmul.bf16 %v15109_v43, %v478_v46  ;;  %v481_v55 = vmul.bf16 %v15118_v47, %v478_v46  ;;  %v482_v0 = vmul.bf16 %v15141_v56, %v478_v46 }
  0x47   :  { %12925 = vmatpush3.bf16.msra.mxu0 %v14005_v30  ;;  %s15097_s8 = sld [smem:[#allocation2 + $0x85]]  ;;  %s496_s11 = sshrl.u32 %s18457_s30, 16  ;;  %v15236_v30 = vld [vmem:[%s18444_s2 + $0xa0] sm:$0xff] }
  0x48   :  { %12947 = vmatpush3.bf16.msra.mxu1 %v14006_v31  ;;  %12954 = vmatprep.subr.bf16.mxu0 %v14007_v32  ;;  %s512_s3 = sadd.s32 32767, %s511_s29  ;;  %s497_s4 = sshll.u32 %s496_s11, 16  ;;  %v483_v2 = vadd.bf16 %v480_v51, %v462_v50  ;;  %v484_v5 = vadd.bf16 %v481_v55, %v463_v54  ;;  %v485_v11 = vadd.bf16 %v482_v0, %v464_v7  ;;  %v15269_v51 = vld [vmem:[%s18444_s2 + $0xc0] sm:$0xff] }
  0x49   :  { %12976 = vmatprep.subr.bf16.mxu1 %v14008_v33  ;;  %s513_s14 = sadd.s32 %s15053_s15, %s512_s3  ;;  %s498_s20 = sor.u32 %s497_s4, %s496_s11 }
  0x4a   :  { %s514_s9 = sand.u32 4294901760, %s513_s14  ;;  %s15121_s12 = sld [smem:[#allocation2 + $0x86]]  ;;  %v499_v60 = vstv %s498_s20 }
  0x4b   :  { %s18459_s9 = smov (%p509_p1, %s514_s9), 2143289344  ;;  %s15150_s29 = sld [smem:[#allocation2 + $0x87]]  ;;  %v501_v3 = vmul.bf16 %v15148_v59, %v499_v60  ;;  %v502_v6 = vmul.bf16 %v15155_v61, %v499_v60  ;;  %v503_v10 = vmul.bf16 %v15163_v62, %v499_v60  ;;  %v15285_v60 = vld [vmem:[%s18444_s2 + $0xd0] sm:$0xff] }
  0x4c   :  { %s517_s21 = sshrl.u32 %s18459_s9, 16  ;;  %s15158_s3 = sld [smem:[#allocation2 + $0x88]] }
  0x4d   :  { %p530_p2 = scmp.ne.f32.partialorder %s15097_s8, %s15097_s8  ;;  %s518_s22 = sshll.u32 %s517_s21, 16  ;;  %v504_v13 = vadd.bf16 %v501_v3, %v483_v2  ;;  %v505_v15 = vadd.bf16 %v502_v6, %v484_v5  ;;  %v506_v19 = vadd.bf16 %v503_v10, %v485_v11 }
  0x4e   :  { %s531_s15 = sshrl.u32 %s15097_s8, 16  ;;  %s519_s27 = sor.u32 %s518_s22, %s517_s21 }
  0x4f   :  { %s532_s13 = sand.u32 1, %s531_s15  ;;  %v520_v8 = vstv %s519_s27  ;;  %s15313_s7 = sld [smem:[#allocation2 + $0x2]] }
  0x50   :  { %s533_s0 = sadd.s32 32767, %s532_s13  ;;  %p551_p3 = scmp.ne.f32.partialorder %s15121_s12, %s15121_s12  ;;  %v522_v14 = vmul.bf16 %v15169_v1, %v520_v8  ;;  %v523_v16 = vmul.bf16 %v15180_v4, %v520_v8  ;;  %v524_v20 = vmul.bf16 %v15187_v9, %v520_v8 }
  0x51   :  { %s534_s11 = sadd.s32 %s15097_s8, %s533_s0  ;;  %s552_s20 = sshrl.u32 %s15121_s12, 16 }
  0x52   :  { %s535_s9 = sand.u32 4294901760, %s534_s11  ;;  %s15190_s8 = sld [smem:[#allocation2]]  ;;  %v525_v23 = vadd.bf16 %v522_v14, %v504_v13  ;;  %v526_v26 = vadd.bf16 %v523_v16, %v505_v15  ;;  %v527_v28 = vadd.bf16 %v524_v20, %v506_v19  ;;  %v15004_v13 = vmov 0   ;;  %v14009_v16 = vld [vmem:[#allocation7 + $0x2b8] sm:$0xff]  }
  0x53   :  { %s18461_s9 = smov (%p530_p2, %s535_s9), 2143289344  ;;  %s553_s23 = sand.u32 1, %s552_s20  ;;  %v14010_v19 = vld [vmem:[#allocation7 + $0x38] sm:$0xff]  }
  0x54   :  { %s538_s15 = sshrl.u32 %s18461_s9, 16  ;;  %s554_s25 = sadd.s32 32767, %s553_s23 }
  0x55   :  { %s539_s24 = sshll.u32 %s538_s15, 16  ;;  %s555_s28 = sadd.s32 %s15121_s12, %s554_s25 }
  0x56   :  { %s540_s13 = sor.u32 %s539_s24, %s538_s15  ;;  %s556_s30 = sand.u32 4294901760, %s555_s28 }
  0x57   :  { %v541_v17 = vstv %s540_s13  ;;  %p572_p4 = scmp.ne.f32.partialorder %s15150_s29, %s15150_s29  ;;  %s18463_s30 = smov (%p551_p3, %s556_s30), 2143289344 }
  0x58   :  { %s573_s10 = sshrl.u32 %s15150_s29, 16  ;;  %p593_p5 = scmp.ne.f32.partialorder %s15158_s3, %s15158_s3  ;;  %v543_v24 = vmul.bf16 %v15195_v12, %v541_v17  ;;  %v544_v27 = vmul.bf16 %v15205_v18, %v541_v17  ;;  %v545_v29 = vmul.bf16 %v15214_v21, %v541_v17 }
  0x59   :  { %s559_s12 = sshrl.u32 %s18463_s30, 16  ;;  %s574_s14 = sand.u32 1, %s573_s10 }
  0x5a   :  { %s560_s9 = sshll.u32 %s559_s12, 16  ;;  %s575_s18 = sadd.s32 32767, %s574_s14  ;;  %v546_v32 = vadd.bf16 %v543_v24, %v525_v23  ;;  %v547_v33 = vadd.bf16 %v544_v27, %v526_v26  ;;  %v548_v42 = vadd.bf16 %v545_v29, %v527_v28  ;;  %v14011_v27 = vld [vmem:[#allocation7 + $0x2f0] sm:$0xff]  }
  0x5b   :  { %s561_s19 = sor.u32 %s560_s9, %s559_s12  ;;  %s576_s20 = sadd.s32 %s15150_s29, %s575_s18  ;;  %v14012_v28 = vld [vmem:[#allocation7 + $0x70] sm:$0xff]  }
  0x5c   :  { %v562_v31 = vstv %s561_s19  ;;  %s577_s15 = sand.u32 4294901760, %s576_s20  ;;  %s594_s23 = sshrl.u32 %s15158_s3, 16  ;;  %v14013_v29 = vld [vmem:[#allocation7 + $0x2b0] sm:$0xff]  }
  0x5d   :  { %s18465_s15 = smov (%p572_p4, %s577_s15), 2143289344  ;;  %v564_v38 = vmul.bf16 %v15222_v22, %v562_v31  ;;  %s595_s26 = sand.u32 1, %s594_s23  ;;  %v565_v40 = vmul.bf16 %v15228_v25, %v562_v31  ;;  %v566_v44 = vmul.bf16 %v15236_v30, %v562_v31  ;;  %v14014_v31 = vld [vmem:[#allocation7 + $0x30] sm:$0xff]  }
  0x5e   :  { %p75_p6 = scmp.ne.f32.partialorder %s15190_s8, %s15190_s8  ;;  %s580_s29 = sshrl.u32 %s18465_s15, 16 }
  0x5f   :  { %s596_s28 = sadd.s32 32767, %s595_s26  ;;  %s581_s30 = sshll.u32 %s580_s29, 16  ;;  %v567_v46 = vadd.bf16 %v564_v38, %v546_v32  ;;  %v568_v49 = vadd.bf16 %v565_v40, %v547_v33  ;;  %v569_v50 = vadd.bf16 %v566_v44, %v548_v42  ;;  %v14015_v33 = vld [vmem:[#allocation7 + $0x2e8] sm:$0xff]   ;;  %v14019_v44 = vld [vmem:[#allocation7 + $0x2e0] sm:$0xff]  }
  0x60   :  { %s597_s6 = sadd.s32 %s15158_s3, %s596_s28  ;;  %s582_s1 = sor.u32 %s581_s30, %s580_s29  ;;  %v14016_v38 = vld [vmem:[#allocation7 + $0x68] sm:$0xff]  }
  0x61   :  { %s598_s10 = sand.u32 4294901760, %s597_s6  ;;  %v583_v48 = vstv %s582_s1  ;;  %s76_s12 = sshrl.u32 %s15190_s8, 16  ;;  %v14017_v40 = vld [vmem:[#allocation7 + $0x2a8] sm:$0xff]  }
  0x62   :  { %s18467_s10 = smov (%p593_p5, %s598_s10), 2143289344  ;;  %v585_v54 = vmul.bf16 %v15245_v35, %v583_v48  ;;  %v586_v55 = vmul.bf16 %v15251_v39, %v583_v48  ;;  %v587_v57 = vmul.bf16 %v15261_v45, %v583_v48  ;;  %s15275_s14 = sld [smem:[#allocation5]]  ;;  %v14018_v42 = vld [vmem:[#allocation7 + $0x28] sm:$0xff]   ;;  %v14021_v48 = vld [vmem:[#allocation7 + $0x2a0] sm:$0xff]  }
  0x63   :  { %s601_s16 = sshrl.u32 %s18467_s10, 16  ;;  %s77_s3 = sand.u32 1, %s76_s12 }
  0x64   :  { %s602_s17 = sshll.u32 %s601_s16, 16  ;;  %s78_s21 = sadd.s32 32767, %s77_s3  ;;  %v588_v63 = vadd.bf16 %v585_v54, %v567_v46  ;;  %v589_v0 = vadd.bf16 %v586_v55, %v568_v49  ;;  %v590_v2 = vadd.bf16 %v587_v57, %v569_v50  ;;  %v14020_v46 = vld [vmem:[#allocation7 + $0x60] sm:$0xff]   ;;  %v14023_v50 = vld [vmem:[#allocation7 + $0x2d8] sm:$0xff]  }
  0x65   :  { %s603_s22 = sor.u32 %s602_s17, %s601_s16  ;;  %s79_s15 = sadd.s32 %s78_s21, %s15190_s8  ;;  %v14022_v49 = vld [vmem:[#allocation7 + $0x20] sm:$0xff]   ;;  %v14024_v54 = vld [vmem:[#allocation7 + $0x58] sm:$0xff]  }
  0x66   :  { %v604_v3 = vstv %s603_s22  ;;  %s80_s23 = sand.u32 4294901760, %s79_s15  ;;  %s15288_s24 = sld [smem:[#allocation2 + $0x1]]  ;;  %v14025_v55 = vld [vmem:[#allocation7 + $0x298] sm:$0xff]  }
  0x67   :  { %v606_v5 = vmul.bf16 %v15269_v51, %v604_v3  ;;  %v607_v6 = vmul.bf16 %v15280_v58, %v604_v3  ;;  %v608_v7 = vmul.bf16 %v15285_v60, %v604_v3  ;;  %s18469_s23 = smov (%p75_p6, %s80_s23), 2143289344  ;;  %s15320_s16 = sld [smem:[#allocation2 + $0x3]]  ;;  %v14026_v57 = vld [vmem:[#allocation7 + $0x18] sm:$0xff]   ;;  %v14029_v3 = vld [vmem:[#allocation7 + $0x290] sm:$0xff]  }
  0x68   :  { %p93_p7 = scmp.ne.f32.partialorder %s15275_s14, %s15275_s14  ;;  %s94_s25 = sshrl.u32 %s15275_s14, 16 }
  0x69   :  { %v609_v8 = vadd.bf16 %v606_v5, %v588_v63  ;;  %v610_v10 = vadd.bf16 %v607_v6, %v589_v0  ;;  %v611_v11 = vadd.bf16 %v608_v7, %v590_v2  ;;  %s83_s26 = sshrl.u32 %s18469_s23, 16  ;;  %s95_s27 = sand.u32 1, %s94_s25  ;;  %v14027_v63 = vld [vmem:[#allocation7 + $0x2d0] sm:$0xff]  }
  0x6a   :  { %s84_s13 = sshll.u32 %s83_s26, 16  ;;  %s96_s29 = sadd.s32 32767, %s95_s27  ;;  %v14028_v2 = vld [vmem:[#allocation7 + $0x50] sm:$0xff]  }
  0x6b   :  { %v612_v14 = vmax.bf16 %v15004_v13, %v609_v8  ;;  %v613_v15 = vmax.bf16 %v15004_v13, %v610_v10  ;;  %v15302_v17 = vmax.bf16 %v15004_v13, %v611_v11  ;;  %s15304_s8 = sor.u32 %s84_s13, %s83_s26  ;;  %s97_s28 = sadd.s32 %s96_s29, %s15275_s14  ;;  %v14030_v5 = vld [vmem:[#allocation7 + $0x10] sm:$0xff]   ;;  %v14031_v8 = vld [vmem:[#allocation7 + $0x2c8] sm:$0xff]  }
  0x6c   :  { %s98_s30 = sand.u32 4294901760, %s97_s28  ;;  %p115_p8 = scmp.ne.f32.partialorder %s15288_s24, %s15288_s24  ;;  %v86_v0 = vstv %s15304_s8  ;;  %v14032_v10 = vld [vmem:[#allocation7 + $0x48] sm:$0xff]  }
  0x6d   :  { %v11906_v20 = vcombine.high %v612_v14, %v612_v14  ;;  %v11908_v23 = vcombine.high %v613_v15, %v613_v15  ;;  %v11905_v24 = vcombine.low %v612_v14, %v612_v14  ;;  %v11907_v26 = vcombine.low %v613_v15, %v613_v15  ;;  %s18471_s30 = smov (%p93_p7, %s98_s30), 2143289344  ;;  %s116_s6 = sshrl.u32 %s15288_s24, 16 }
  0x6e   :  { %v11910_v32 = vcombine.high %v15302_v17, %v15302_v17  ;;  %s101_s0 = sshrl.u32 %s18471_s30, 16  ;;  %s117_s1 = sand.u32 1, %s116_s6  ;;  %v88_v6 = vmul.bf16 %v86_v0, %v15079_v34  ;;  %v89_v7 = vmul.bf16 %v86_v0, %v15084_v36  ;;  %v90_v15 = vmul.bf16 %v86_v0, %v15130_v52  ;;  %v14033_v34 = vld [vmem:[#allocation7 + $0x288] sm:$0xff]   ;;  %v14045_v0 = vld [vmem:[#allocation7 + $0xb0] sm:$0xff]  }
  0x6f   :  { %1053 = vmatprep.mubr.bf16.mxu0 %v11906_v20  ;;  %1093 = vmatprep.mubr.bf16.mxu1 %v11908_v23  ;;  %s102_s10 = sshll.u32 %s101_s0, 16  ;;  %s118_s11 = sadd.s32 32767, %s117_s1  ;;  %v14034_v36 = vld [vmem:[#allocation7 + $0x8] sm:$0xff]   ;;  %v14035_v23 = vld [vmem:[#allocation7 + $0x2c0] sm:$0xff]  }
  0x70   :  { %1054 = vmatmul.mubr.bf16.vlgmr.msra.gmra.mxu0 %v11905_v24  ;;  %1094 = vmatmul.mubr.bf16.vlgmr.msra.gmra.mxu1 %v11907_v26  ;;  %s15317_s4 = sor.u32 %s102_s10, %s101_s0  ;;  %s119_s12 = sadd.s32 %s15288_s24, %s118_s11 }
  0x71   :  { %12955 = vmatpush3.bf16.msra.mxu0 %v14009_v16  ;;  %12977 = vmatpush3.bf16.msra.mxu1 %v14010_v19  ;;  %s120_s14 = sand.u32 4294901760, %s119_s12  ;;  %p140_p9 = scmp.ne.f32.partialorder %s15313_s7, %s15313_s7  ;;  %v104_v11 = vstv %s15317_s4 }
  0x72   :  { %12956 = vmatprep.subr.bf16.mxu0 %v14011_v27  ;;  %12978 = vmatprep.subr.bf16.mxu1 %v14012_v28  ;;  %s18473_s14 = smov (%p115_p8, %s120_s14), 2143289344  ;;  %s141_s3 = sshrl.u32 %s15313_s7, 16  ;;  %v106_v16 = vadd.bf16 %v104_v11, %v88_v6  ;;  %v107_v52 = vadd.bf16 %v104_v11, %v89_v7  ;;  %v108_v26 = vadd.bf16 %v104_v11, %v90_v15  ;;  %v14036_v28 = vld [vmem:[#allocation7 + $0x40] sm:$0xff]  }
  0x73   :  { %1133 = vmatprep.mubr.bf16.mxu0 %v11910_v32  ;;  %s123_s17 = sshrl.u32 %s18473_s14, 16  ;;  %s142_s9 = sand.u32 1, %s141_s3 }
  0x74   :  { %s124_s18 = sshll.u32 %s123_s17, 16  ;;  %s143_s19 = sadd.s32 32767, %s142_s9 }
  0x75   :  { %12957 = vmatpush3.bf16.msra.mxu0 %v14013_v29  ;;  %12979 = vmatpush3.bf16.msra.mxu1 %v14014_v31  ;;  %s15328_s20 = sor.u32 %s124_s18, %s123_s17  ;;  %s144_s21 = sadd.s32 %s15313_s7, %s143_s19 }
  0x76   :  { %12958 = vmatprep.subr.bf16.mxu0 %v14015_v33  ;;  %12980 = vmatprep.subr.bf16.mxu1 %v14016_v38  ;;  %s145_s22 = sand.u32 4294901760, %s144_s21  ;;  %p165_p10 = scmp.ne.f32.partialorder %s15320_s16, %s15320_s16  ;;  %v126_v14 = vstv %s15328_s20 }
  0x77   :  { %s18475_s22 = smov (%p140_p9, %s145_s22), 2143289344  ;;  %s166_s15 = sshrl.u32 %s15320_s16, 16  ;;  %v128_v19 = vmul.bf16 %v15091_v37, %v126_v14  ;;  %v129_v20 = vmul.bf16 %v15102_v41, %v126_v14  ;;  %v130_v27 = vmul.bf16 %v15135_v53, %v126_v14  ;;  %v14037_v37 = vld [vmem:[#allocation7 + $0x280] sm:$0xff]   ;;  %v14039_v53 = vld [vmem:[#allocation7 + $0xf8] sm:$0xff]  }
  0x78   :  { %s15337_s23 = sld [smem:[#allocation2 + $0x4]]  ;;  %s148_s24 = sshrl.u32 %s18475_s22, 16  ;;  %v14038_v41 = vld [vmem:[#allocation7] sm:$0xff]  }
  0x79   :  { %12959 = vmatpush3.bf16.msra.mxu0 %v14017_v40  ;;  %12981 = vmatpush3.bf16.msra.mxu1 %v14018_v42  ;;  %s167_s25 = sand.u32 1, %s166_s15  ;;  %s149_s26 = sshll.u32 %s148_s24, 16  ;;  %v131_v29 = vadd.bf16 %v128_v19, %v106_v16  ;;  %v132_v32 = vadd.bf16 %v129_v20, %v107_v52  ;;  %v133_v40 = vadd.bf16 %v130_v27, %v108_v26  ;;  %v14059_v27 = vld [vmem:[#allocation7 + $0xd0] sm:$0xff]  }
  0x7a   :  { %12960 = vmatprep.subr.bf16.mxu0 %v14019_v44  ;;  %12982 = vmatprep.subr.bf16.mxu1 %v14020_v46  ;;  %s168_s27 = sadd.s32 32767, %s167_s25  ;;  %s15340_s13 = sor.u32 %s149_s26, %s148_s24 }
  0x7b   :  { %s169_s29 = sadd.s32 %s15320_s16, %s168_s27  ;;  %s15343_s30 = sld [smem:[#allocation2 + $0x5]]  ;;  %v151_v24 = vstv %s15340_s13 }
  0x7c   :  { %s170_s28 = sand.u32 4294901760, %s169_s29  ;;  %s15369_s14 = sld [smem:[#allocation2 + $0x6]]  ;;  %v153_v31 = vmul.bf16 %v15109_v43, %v151_v24  ;;  %v154_v33 = vmul.bf16 %v15118_v47, %v151_v24  ;;  %v155_v42 = vmul.bf16 %v15141_v56, %v151_v24  ;;  %v14040_v43 = vld [vmem:[#allocation7 + $0x178] sm:$0xff]   ;;  %v11909_v47 = vcombine.low %v15302_v17, %v15302_v17 }
  0x7d   :  { %12961 = vmatpush3.bf16.msra.mxu0 %v14021_v48  ;;  %12983 = vmatpush3.bf16.msra.mxu1 %v14022_v49  ;;  %s18477_s28 = smov (%p165_p10, %s170_s28), 2143289344  ;;  %s15376_s21 = sld [smem:[#allocation2 + $0x7]]  ;;  %v14041_v48 = vld [vmem:[#allocation7 + $0xb8] sm:$0xff]  }
  0x7e   :  { %12962 = vmatprep.subr.bf16.mxu0 %v14023_v50  ;;  %12984 = vmatprep.subr.bf16.mxu1 %v14024_v54  ;;  %p190_p11 = scmp.ne.f32.partialorder %s15337_s23, %s15337_s23  ;;  %s191_s8 = sshrl.u32 %s15337_s23, 16  ;;  %v156_v44 = vadd.bf16 %v153_v31, %v131_v29  ;;  %v157_v56 = vadd.bf16 %v154_v33, %v132_v32  ;;  %v158_v54 = vadd.bf16 %v155_v42, %v133_v40  ;;  %v14065_v33 = vld [vmem:[#allocation7 + $0x88] sm:$0xff]  }
  0x7f   :  { %s173_s6 = sshrl.u32 %s18477_s28, 16  ;;  %s192_s7 = sand.u32 1, %s191_s8 }
  0x80   :  { %s174_s0 = sshll.u32 %s173_s6, 16  ;;  %s193_s1 = sadd.s32 32767, %s192_s7 }
  0x81   :  { %12963 = vmatpush3.bf16.msra.mxu0 %v14025_v55  ;;  %12985 = vmatpush3.bf16.msra.mxu1 %v14026_v57  ;;  %s15356_s10 = sor.u32 %s174_s0, %s173_s6  ;;  %s194_s11 = sadd.s32 %s15337_s23, %s193_s1 }
  0x82   :  { %12964 = vmatprep.subr.bf16.mxu0 %v14027_v63  ;;  %12986 = vmatprep.subr.bf16.mxu1 %v14028_v2  ;;  %s195_s4 = sand.u32 4294901760, %s194_s11  ;;  %p215_p12 = scmp.ne.f32.partialorder %s15343_s30, %s15343_s30  ;;  %v176_v38 = vstv %s15356_s10 }
  0x83   :  { %s18479_s4 = smov (%p190_p11, %s195_s4), 2143289344  ;;  %s216_s12 = sshrl.u32 %s15343_s30, 16  ;;  %v178_v46 = vmul.bf16 %v15148_v59, %v176_v38  ;;  %v179_v49 = vmul.bf16 %v15155_v61, %v176_v38  ;;  %v180_v17 = vmul.bf16 %v15163_v62, %v176_v38  ;;  %v14043_v59 = vld [vmem:[#allocation7 + $0xf0] sm:$0xff]   ;;  %v14067_v38 = vld [vmem:[#allocation7 + $0xc0] sm:$0xff]  }
  0x84   :  { %s198_s16 = sshrl.u32 %s18479_s4, 16  ;;  %s217_s3 = sand.u32 1, %s216_s12 }
  0x85   :  { %12965 = vmatpush3.bf16.msra.mxu0 %v14029_v3  ;;  %12987 = vmatpush3.bf16.msra.mxu1 %v14030_v5  ;;  %s199_s17 = sshll.u32 %s198_s16, 16  ;;  %s218_s9 = sadd.s32 32767, %s217_s3  ;;  %v181_v61 = vadd.bf16 %v178_v46, %v156_v44  ;;  %v182_v57 = vadd.bf16 %v179_v49, %v157_v56  ;;  %v183_v2 = vadd.bf16 %v180_v17, %v158_v54  ;;  %v14046_v54 = vld [vmem:[#allocation7 + $0x130] sm:$0xff]   ;;  %v14048_v17 = vld [vmem:[#allocation7 + $0x168] sm:$0xff]  }
  0x86   :  { %12966 = vmatprep.subr.bf16.mxu0 %v14031_v8  ;;  %12988 = vmatprep.subr.bf16.mxu1 %v14032_v10  ;;  %s200_s18 = sor.u32 %s199_s17, %s198_s16  ;;  %s219_s19 = sadd.s32 %s15343_s30, %s218_s9 }
  0x87   :  { %s220_s20 = sand.u32 4294901760, %s219_s19  ;;  %p240_p13 = scmp.ne.f32.partialorder %s15369_s14, %s15369_s14  ;;  %v201_v50 = vstv %s200_s18 }
  0x88   :  { %s18481_s20 = smov (%p215_p12, %s220_s20), 2143289344  ;;  %s241_s22 = sshrl.u32 %s15369_s14, 16  ;;  %v203_v55 = vmul.bf16 %v15169_v1, %v201_v50  ;;  %v204_v62 = vmul.bf16 %v15180_v4, %v201_v50  ;;  %v205_v3 = vmul.bf16 %v15187_v9, %v201_v50  ;;  %v14047_v1 = vld [vmem:[#allocation7 + $0xe8] sm:$0xff]   ;;  %v14071_v50 = vld [vmem:[#allocation7 + $0x378] sm:$0xff]  }
  0x89   :  { %12967 = vmatpush3.bf16.msra.mxu0 %v14033_v34  ;;  %12989 = vmatpush3.bf16.msra.mxu1 %v14034_v36  ;;  %s223_s15 = sshrl.u32 %s18481_s20, 16  ;;  %s242_s23 = sand.u32 1, %s241_s22  ;;  %v14049_v9 = vld [vmem:[#allocation7 + $0xa8] sm:$0xff]  }
  0x8a   :  { %12968 = vmatprep.subr.bf16.mxu0 %v14035_v23  ;;  %12990 = vmatprep.subr.bf16.mxu1 %v14036_v28  ;;  %s224_s24 = sshll.u32 %s223_s15, 16  ;;  %s243_s25 = sadd.s32 32767, %s242_s23  ;;  %v206_v5 = vadd.bf16 %v203_v55, %v181_v61  ;;  %v207_v4 = vadd.bf16 %v204_v62, %v182_v57  ;;  %v208_v8 = vadd.bf16 %v205_v3, %v183_v2  ;;  %v14057_v23 = vld [vmem:[#allocation7 + $0x98] sm:$0xff]   ;;  %v14061_v28 = vld [vmem:[#allocation7 + $0x90] sm:$0xff]   ;;  %v14050_v57 = vld [vmem:[#allocation7 + $0x128] sm:$0xff]  }
  0x8b   :  { %s225_s26 = sor.u32 %s224_s24, %s223_s15  ;;  %s244_s27 = sadd.s32 %s15369_s14, %s243_s25  ;;  %v14073_v61 = vld [vmem:[#allocation7 + $0x338] sm:$0xff]   ;;  %v14075_v55 = vld [vmem:[#allocation7 + $0x370] sm:$0xff]   ;;  %v14054_v2 = vld [vmem:[#allocation7 + $0x120] sm:$0xff]  }
  0x8c   :  { %s245_s13 = sand.u32 4294901760, %s244_s27  ;;  %p265_p0 = scmp.ne.f32.partialorder %s15376_s21, %s15376_s21  ;;  %v226_v63 = vstv %s225_s26  ;;  %v14077_v62 = vld [vmem:[#allocation7 + $0x330] sm:$0xff]   ;;  %v14056_v3 = vld [vmem:[#allocation7 + $0x158] sm:$0xff]  }
  0x8d   :  { %12969 = vmatpush3.bf16.msra.mxu0 %v14037_v37  ;;  %12991 = vmatpush3.bf16.msra.mxu1 %v14038_v41  ;;  %s18483_s13 = smov (%p240_p13, %s245_s13), 2143289344  ;;  %s266_s29 = sshrl.u32 %s15376_s21, 16  ;;  %v228_v6 = vmul.bf16 %v15195_v12, %v226_v63  ;;  %v229_v7 = vmul.bf16 %v15205_v18, %v226_v63  ;;  %v230_v10 = vmul.bf16 %v15214_v21, %v226_v63  ;;  %v14051_v12 = vld [vmem:[#allocation7 + $0xe0] sm:$0xff]   ;;  %v14063_v41 = vld [vmem:[#allocation7 + $0xc8] sm:$0xff]  }
  0x8e   :  { %12998 = vmatprep.subr.bf16.mxu0 %v14039_v53  ;;  %13020 = vmatprep.subr.bf16.mxu1 %v14040_v43  ;;  %s15399_s28 = sld [smem:[#allocation2 + $0x8]]  ;;  %s248_s30 = sshrl.u32 %s18483_s13, 16  ;;  %v14053_v18 = vld [vmem:[#allocation7 + $0xa0] sm:$0xff]  }
  0x8f   :  { %s267_s8 = sand.u32 1, %s266_s29  ;;  %s249_s6 = sshll.u32 %s248_s30, 16  ;;  %v231_v14 = vadd.bf16 %v228_v6, %v206_v5  ;;  %v232_v34 = vadd.bf16 %v229_v7, %v207_v4  ;;  %v233_v21 = vadd.bf16 %v230_v10, %v208_v8  ;;  %v14052_v63 = vld [vmem:[#allocation7 + $0x160] sm:$0xff]   ;;  %v14058_v6 = vld [vmem:[#allocation7 + $0x118] sm:$0xff]   ;;  %v14060_v4 = vld [vmem:[#allocation7 + $0x150] sm:$0xff]  }
  0x90   :  { %1134 = vmatmul.mubr.bf16.vlgmr.msra.gmra.mxu0 %v11909_v47  ;;  %s268_s7 = sadd.s32 32767, %s267_s8  ;;  %s250_s0 = sor.u32 %s249_s6, %s248_s30  ;;  %v14044_v47 = vld [vmem:[#allocation7 + $0x170] sm:$0xff]   ;;  %v14083_v5 = vld [vmem:[#allocation7 + $0x360] sm:$0xff]   ;;  %v14087_v8 = vld [vmem:[#allocation7 + $0x358] sm:$0xff]  }
  0x91   :  { %12999 = vmatpush3.bf16.msra.mxu0 %v14041_v48  ;;  %s269_s1 = sadd.s32 %s15376_s21, %s268_s7  ;;  %v251_v11 = vstv %s250_s0  ;;  %s15405_s11 = sld [smem:[#allocation2 + $0x100]]  ;;  %v14069_v48 = vld [vmem:[#allocation7 + $0x80] sm:$0xff]   ;;  %v14062_v10 = vld [vmem:[#allocation7 + $0x110] sm:$0xff]  }
  0x92   :  { %13000 = vmatprep.subr.bf16.mxu0 %v14043_v59  ;;  %s270_s10 = sand.u32 4294901760, %s269_s1  ;;  %v253_v15 = vmul.bf16 %v15222_v22, %v251_v11  ;;  %v254_v36 = vmul.bf16 %v15228_v25, %v251_v11  ;;  %v255_v16 = vmul.bf16 %v15236_v30, %v251_v11  ;;  %v14055_v22 = vld [vmem:[#allocation7 + $0xd8] sm:$0xff]   ;;  %s15426_s20 = sld [smem:[#allocation5 + $0x2]]  ;;  %v14085_v7 = vld [vmem:[#allocation7 + $0x320] sm:$0xff]  }
  0x93   :  { %s18485_s10 = smov (%p265_p0, %s270_s10), 2143289344  ;;  %s15429_s27 = sld [smem:[#allocation2 + $0x101]]  ;;  %v14089_v11 = vld [vmem:[#allocation7 + $0x318] sm:$0xff]  }
  0x94   :  { %p290_p1 = scmp.ne.f32.partialorder %s15399_s28, %s15399_s28  ;;  %s291_s4 = sshrl.u32 %s15399_s28, 16  ;;  %v256_v19 = vadd.bf16 %v253_v15, %v231_v14  ;;  %v257_v25 = vadd.bf16 %v254_v36, %v232_v34  ;;  %v258_v24 = vadd.bf16 %v255_v16, %v233_v21  ;;  %v15501_v15 = vld [vmem:[%s18444_s2 + $0x8] sm:$0xff]  ;;  %v15509_v21 = vld [vmem:[%s18444_s2 + $0x10] sm:$0xff] }
  0x95   :  { %13001 = vmatpush3.bf16.msra.mxu0 %v14045_v0  ;;  %s273_s12 = sshrl.u32 %s18485_s10, 16  ;;  %s292_s14 = sand.u32 1, %s291_s4  ;;  %v14079_v0 = vld [vmem:[#allocation7 + $0x368] sm:$0xff]  }
  0x96   :  { %13002 = vmatprep.subr.bf16.mxu0 %v14047_v1  ;;  %s274_s16 = sshll.u32 %s273_s12, 16  ;;  %s293_s3 = sadd.s32 32767, %s292_s14  ;;  %v14081_v1 = vld [vmem:[#allocation7 + $0x328] sm:$0xff]  }
  0x97   :  { %s275_s17 = sor.u32 %s274_s16, %s273_s12  ;;  %s294_s9 = sadd.s32 %s15399_s28, %s293_s3 }
  0x98   :  { %v276_v52 = vstv %s275_s17  ;;  %s295_s18 = sand.u32 4294901760, %s294_s9  ;;  %p1572_p2 = scmp.ne.f32.partialorder %s15405_s11, %s15405_s11 }
  0x99   :  { %13003 = vmatpush3.bf16.msra.mxu0 %v14049_v9  ;;  %v278_v20 = vmul.bf16 %v15245_v35, %v276_v52  ;;  %s18487_s18 = smov (%p290_p1, %s295_s18), 2143289344  ;;  %v279_v30 = vmul.bf16 %v15251_v39, %v276_v52  ;;  %v280_v26 = vmul.bf16 %v15261_v45, %v276_v52  ;;  %s1573_s19 = sshrl.u32 %s15405_s11, 16  ;;  %v14066_v52 = vld [vmem:[#allocation7 + $0x108] sm:$0xff]  }
  0x9a   :  { %13004 = vmatprep.subr.bf16.mxu0 %v14051_v12  ;;  %s298_s21 = sshrl.u32 %s18487_s18, 16  ;;  %s1574_s22 = sand.u32 1, %s1573_s19  ;;  %v15492_v12 = vld [vmem:[%s18444_s2] sm:$0xff] }
  0x9b   :  { %s299_s15 = sshll.u32 %s298_s21, 16  ;;  %s1575_s23 = sadd.s32 32767, %s1574_s22  ;;  %v281_v35 = vadd.bf16 %v278_v20, %v256_v19  ;;  %v282_v39 = vadd.bf16 %v279_v30, %v257_v25  ;;  %v283_v37 = vadd.bf16 %v280_v26, %v258_v24  ;;  %v14091_v19 = vld [vmem:[#allocation7 + $0x350] sm:$0xff]   ;;  %v14068_v25 = vld [vmem:[#allocation7 + $0x140] sm:$0xff]  }
  0x9c   :  { %s300_s24 = sor.u32 %s299_s15, %s298_s21  ;;  %s1576_s25 = sadd.s32 %s15405_s11, %s1575_s23  ;;  %v15526_v26 = vld [vmem:[%s18444_s2 + $0x20] sm:$0xff] }
  0x9d   :  { %13005 = vmatpush3.bf16.msra.mxu0 %v14053_v18  ;;  %v301_v45 = vstv %s300_s24  ;;  %s1577_s26 = sand.u32 4294901760, %s1576_s25  ;;  %p1590_p3 = scmp.ne.f32.partialorder %s15426_s20, %s15426_s20 }
  0x9e   :  { %13006 = vmatprep.subr.bf16.mxu0 %v14055_v22  ;;  %v303_v29 = vmul.bf16 %v15269_v51, %v301_v45  ;;  %v304_v31 = vmul.bf16 %v15280_v58, %v301_v45  ;;  %v305_v53 = vmul.bf16 %v15285_v60, %v301_v45  ;;  %s18489_s26 = smov (%p1572_p2, %s1577_s26), 2143289344  ;;  %s1591_s13 = sshrl.u32 %s15426_s20, 16  ;;  %v14042_v58 = vld [vmem:[#allocation7 + $0x138] sm:$0xff]   ;;  %v14064_v22 = vld [vmem:[#allocation7 + $0x148] sm:$0xff]  }
  0x9f   :  { %s1580_s29 = sshrl.u32 %s18489_s26, 16  ;;  %s1592_s28 = sand.u32 1, %s1591_s13 }
  0xa0   :  { %v306_v32 = vadd.bf16 %v303_v29, %v281_v35  ;;  %v307_v40 = vadd.bf16 %v304_v31, %v282_v39  ;;  %v308_v42 = vadd.bf16 %v305_v53, %v283_v37  ;;  %s1581_s30 = sshll.u32 %s1580_s29, 16  ;;  %s1593_s8 = sadd.s32 32767, %s1592_s28  ;;  %v15536_v37 = vld [vmem:[%s18444_s2 + $0x28] sm:$0xff]  ;;  %v14070_v29 = vld [vmem:[#allocation7 + $0x100] sm:$0xff]   ;;  %v14072_v31 = vld [vmem:[#allocation7 + $0x3f8] sm:$0xff]  }
  0xa1   :  { %13007 = vmatpush3.bf16.msra.mxu0 %v14057_v23  ;;  %s15445_s6 = sor.u32 %s1581_s30, %s1580_s29  ;;  %s1594_s7 = sadd.s32 %s15426_s20, %s1593_s8  ;;  %v15518_v23 = vld [vmem:[%s18444_s2 + $0x18] sm:$0xff]  ;;  %v14097_v53 = vld [vmem:[#allocation7 + $0x308] sm:$0xff]  }
  0xa2   :  { %13008 = vmatprep.subr.bf16.mxu0 %v14059_v27  ;;  %v309_v51 = vmax.bf16 %v15004_v13, %v306_v32  ;;  %v310_v60 = vmax.bf16 %v15004_v13, %v307_v40  ;;  %v15443_v43 = vmax.bf16 %v15004_v13, %v308_v42  ;;  %s1595_s0 = sand.u32 4294901760, %s1594_s7  ;;  %p1608_p4 = scmp.ne.f32.partialorder %s15429_s27, %s15429_s27  ;;  %v1583_v9 = vstv %s15445_s6  ;;  %v15551_v42 = vld [vmem:[%s18444_s2 + $0x38] sm:$0xff] }
  0xa3   :  { %s18491_s0 = smov (%p1590_p3, %s1595_s0), 2143289344  ;;  %s1609_s1 = sshrl.u32 %s15429_s27, 16  ;;  %v1585_v14 = vmul.bf16 %v15492_v12, %v1583_v9  ;;  %v1586_v18 = vmul.bf16 %v15501_v15, %v1583_v9  ;;  %v1587_v16 = vmul.bf16 %v15509_v21, %v1583_v9  ;;  %v14078_v9 = vld [vmem:[#allocation7 + $0x3b0] sm:$0xff]  }
  0xa4   :  { %v11960_v44 = vcombine.high %v309_v51, %v309_v51  ;;  %v11959_v46 = vcombine.low %v309_v51, %v309_v51  ;;  %v11962_v56 = vcombine.high %v310_v60, %v310_v60  ;;  %v11964_v49 = vcombine.high %v15443_v43, %v15443_v43  ;;  %s15456_s10 = sld [smem:[#allocation2 + $0x102]]  ;;  %s1598_s11 = sshrl.u32 %s18491_s0, 16 }
  0xa5   :  { %13009 = vmatpush3.bf16.msra.mxu0 %v14061_v28  ;;  %s1610_s4 = sand.u32 1, %s1609_s1  ;;  %v11961_v59 = vcombine.low %v310_v60, %v310_v60  ;;  %s1599_s12 = sshll.u32 %s1598_s11, 16  ;;  %v14093_v28 = vld [vmem:[#allocation7 + $0x310] sm:$0xff]  }
  0xa6   :  { %13010 = vmatprep.subr.bf16.mxu0 %v14063_v41  ;;  %1482 = vmatprep.mubr.bf16.mxu1 %v11960_v44  ;;  %s1611_s14 = sadd.s32 32767, %s1610_s4  ;;  %s15458_s16 = sor.u32 %s1599_s12, %s1598_s11  ;;  %v14095_v41 = vld [vmem:[#allocation7 + $0x348] sm:$0xff]  }
  0xa7   :  { %1522 = vmatprep.mubr.bf16.mxu0 %v11962_v56  ;;  %1483 = vmatmul.mubr.bf16.vlgmr.msra.gmra.mxu1 %v11959_v46  ;;  %s1612_s3 = sadd.s32 %s15429_s27, %s1611_s14  ;;  %s15461_s9 = sld [smem:[#allocation2 + $0x103]]  ;;  %v1601_v34 = vstv %s15458_s16  ;;  %v14099_v46 = vld [vmem:[#allocation7 + $0x340] sm:$0xff]   ;;  %v14074_v56 = vld [vmem:[#allocation7 + $0x3b8] sm:$0xff]  }
  0xa8   :  { %13021 = vmatpush3.bf16.msra.mxu1 %v14042_v58  ;;  %1562 = vmatprep.mubr.bf16.mxu1 %v11964_v49  ;;  %s1613_s17 = sand.u32 4294901760, %s1612_s3  ;;  %s15478_s26 = sld [smem:[#allocation2 + $0x104]]  ;;  %v1603_v20 = vadd.bf16 %v1601_v34, %v1585_v14  ;;  %v1604_v24 = vadd.bf16 %v1601_v34, %v1586_v18  ;;  %v1605_v39 = vadd.bf16 %v1601_v34, %v1587_v16  ;;  %v14076_v49 = vld [vmem:[#allocation7 + $0x3f0] sm:$0xff]   ;;  %v14080_v18 = vld [vmem:[#allocation7 + $0x3e8] sm:$0xff]   ;;  %v15620_v16 = vld [vmem:[%s18444_s2 + $0x78] sm:$0xff] }
  0xa9   :  { %13011 = vmatpush3.bf16.msra.mxu0 %v14065_v33  ;;  %13022 = vmatprep.subr.bf16.mxu1 %v14044_v47  ;;  %s18493_s17 = smov (%p1608_p4, %s1613_s17), 2143289344  ;;  %s15484_s0 = sld [smem:[#allocation2 + $0x105]]  ;;  %v15545_v33 = vld [vmem:[%s18444_s2 + $0x30] sm:$0xff]  ;;  %v15559_v47 = vld [vmem:[%s18444_s2 + $0x40] sm:$0xff]  ;;  %v14082_v34 = vld [vmem:[#allocation7 + $0x3a8] sm:$0xff]  }
  0xaa   :  { %13012 = vmatprep.subr.bf16.mxu0 %v14067_v38  ;;  %p1629_p5 = scmp.ne.f32.partialorder %s15456_s10, %s15456_s10  ;;  %s1630_s18 = sshrl.u32 %s15456_s10, 16 }
  0xab   :  { %s1616_s19 = sshrl.u32 %s18493_s17, 16  ;;  %s1631_s20 = sand.u32 1, %s1630_s18 }
  0xac   :  { %13023 = vmatpush3.bf16.msra.mxu1 %v14046_v54  ;;  %s1617_s21 = sshll.u32 %s1616_s19, 16  ;;  %s1632_s22 = sadd.s32 32767, %s1631_s20  ;;  %v15572_v54 = vld [vmem:[%s18444_s2 + $0x48] sm:$0xff] }
  0xad   :  { %13013 = vmatpush3.bf16.msra.mxu0 %v14069_v48  ;;  %13024 = vmatprep.subr.bf16.mxu1 %v14048_v17  ;;  %s15469_s15 = sor.u32 %s1617_s21, %s1616_s19  ;;  %s1633_s23 = sadd.s32 %s15456_s10, %s1632_s22  ;;  %v11963_v48 = vcombine.low %v15443_v43, %v15443_v43  ;;  %v15581_v43 = vld [vmem:[%s18444_s2 + $0x50] sm:$0xff] }
  0xae   :  { %13042 = vmatprep.subr.bf16.mxu0 %v14071_v50  ;;  %s1634_s24 = sand.u32 4294901760, %s1633_s23  ;;  %p1650_p6 = scmp.ne.f32.partialorder %s15461_s9, %s15461_s9  ;;  %v1619_v36 = vstv %s15469_s15 }
  0xaf   :  { %s18495_s24 = smov (%p1629_p5, %s1634_s24), 2143289344  ;;  %s1651_s25 = sshrl.u32 %s15461_s9, 16  ;;  %v1621_v30 = vmul.bf16 %v15518_v23, %v1619_v36  ;;  %v1622_v27 = vmul.bf16 %v15526_v26, %v1619_v36  ;;  %v1623_v45 = vmul.bf16 %v15536_v37, %v1619_v36 }
  0xb0   :  { %1523 = vmatmul.mubr.bf16.vlgmr.msra.gmra.mxu0 %v11961_v59  ;;  %13025 = vmatpush3.bf16.msra.mxu1 %v14050_v57  ;;  %s1637_s27 = sshrl.u32 %s18495_s24, 16  ;;  %s1652_s13 = sand.u32 1, %s1651_s25 }
  0xb1   :  { %13043 = vmatpush3.bf16.msra.mxu0 %v14073_v61  ;;  %13026 = vmatprep.subr.bf16.mxu1 %v14052_v63  ;;  %s1638_s29 = sshll.u32 %s1637_s27, 16  ;;  %s1653_s28 = sadd.s32 32767, %s1652_s13  ;;  %v1624_v32 = vadd.bf16 %v1621_v30, %v1603_v20  ;;  %v1625_v40 = vadd.bf16 %v1622_v27, %v1604_v24  ;;  %v1626_v60 = vadd.bf16 %v1623_v45, %v1605_v39  ;;  %v15633_v30 = vld [vmem:[%s18444_s2 + $0x88] sm:$0xff]  ;;  %v14084_v27 = vld [vmem:[#allocation7 + $0x3e0] sm:$0xff]   ;;  %v15644_v45 = vld [vmem:[%s18444_s2 + $0x90] sm:$0xff] }
  0xb2   :  { %13044 = vmatprep.subr.bf16.mxu0 %v14075_v55  ;;  %s15481_s30 = sor.u32 %s1638_s29, %s1637_s27  ;;  %s1654_s8 = sadd.s32 %s15461_s9, %s1653_s28  ;;  %v14101_v55 = vld [vmem:[#allocation7 + $0x300] sm:$0xff]  }
  0xb3   :  { %s1655_s7 = sand.u32 4294901760, %s1654_s8  ;;  %p1671_p7 = scmp.ne.f32.partialorder %s15478_s26, %s15478_s26  ;;  %v1640_v35 = vstv %s15481_s30 }
  0xb4   :  { %13027 = vmatpush3.bf16.msra.mxu1 %v14054_v2  ;;  %s18497_s7 = smov (%p1650_p6, %s1655_s7), 2143289344  ;;  %s1672_s6 = sshrl.u32 %s15478_s26, 16  ;;  %v1642_v38 = vmul.bf16 %v15545_v33, %v1640_v35  ;;  %v1643_v51 = vmul.bf16 %v15551_v42, %v1640_v35  ;;  %v1644_v44 = vmul.bf16 %v15559_v47, %v1640_v35  ;;  %v14086_v35 = vld [vmem:[#allocation7 + $0x3a0] sm:$0xff]  }
  0xb5   :  { %13045 = vmatpush3.bf16.msra.mxu0 %v14077_v62  ;;  %13028 = vmatprep.subr.bf16.mxu1 %v14056_v3  ;;  %s1658_s12 = sshrl.u32 %s18497_s7, 16  ;;  %s1673_s14 = sand.u32 1, %s1672_s6  ;;  %v14103_v62 = vld [vmem:[#allocation7 + $0x478] sm:$0xff]  }
  0xb6   :  { %13046 = vmatprep.subr.bf16.mxu0 %v14079_v0  ;;  %s1659_s9 = sshll.u32 %s1658_s12, 16  ;;  %s1674_s18 = sadd.s32 32767, %s1673_s14  ;;  %v1645_v50 = vadd.bf16 %v1642_v38, %v1624_v32  ;;  %v1646_v59 = vadd.bf16 %v1643_v51, %v1625_v40  ;;  %v1647_v63 = vadd.bf16 %v1644_v44, %v1626_v60  ;;  %v15587_v0 = vld [vmem:[%s18444_s2 + $0x58] sm:$0xff]  ;;  %v15659_v38 = vld [vmem:[%s18444_s2 + $0xa0] sm:$0xff] }
  0xb7   :  { %s15512_s16 = sor.u32 %s1659_s9, %s1658_s12  ;;  %s1675_s19 = sadd.s32 %s15478_s26, %s1674_s18  ;;  %v14088_v51 = vld [vmem:[#allocation7 + $0x3d8] sm:$0xff]  }
  0xb8   :  { %13029 = vmatpush3.bf16.msra.mxu1 %v14058_v6  ;;  %s1676_s22 = sand.u32 4294901760, %s1675_s19  ;;  %p1692_p8 = scmp.ne.f32.partialorder %s15484_s0, %s15484_s0  ;;  %v1661_v58 = vstv %s15512_s16 }
  0xb9   :  { %13047 = vmatpush3.bf16.msra.mxu0 %v14081_v1  ;;  %13030 = vmatprep.subr.bf16.mxu1 %v14060_v4  ;;  %s18499_s22 = smov (%p1671_p7, %s1676_s22), 2143289344  ;;  %s1693_s27 = sshrl.u32 %s15484_s0, 16  ;;  %v1663_v17 = vmul.bf16 %v15572_v54, %v1661_v58  ;;  %v1664_v61 = vmul.bf16 %v15581_v43, %v1661_v58  ;;  %v1665_v2 = vmul.bf16 %v15587_v0, %v1661_v58  ;;  %v15594_v1 = vld [vmem:[%s18444_s2 + $0x60] sm:$0xff]  ;;  %v15602_v4 = vld [vmem:[%s18444_s2 + $0x68] sm:$0xff] }
  0xba   :  { %13048 = vmatprep.subr.bf16.mxu0 %v14083_v5  ;;  %s15540_s13 = sld [smem:[#allocation2 + $0x106]]  ;;  %s1679_s29 = sshrl.u32 %s18499_s22, 16 }
  0xbb   :  { %s1694_s26 = sand.u32 1, %s1693_s27  ;;  %s1680_s8 = sshll.u32 %s1679_s29, 16  ;;  %v1666_v3 = vadd.bf16 %v1663_v17, %v1645_v50  ;;  %v1667_v6 = vadd.bf16 %v1664_v61, %v1646_v59  ;;  %v15683_v59 = vld [vmem:[%s18444_s2 + $0xb8] sm:$0xff] }
  0xbc   :  { %13031 = vmatpush3.bf16.msra.mxu1 %v14062_v10  ;;  %s1695_s7 = sadd.s32 32767, %s1694_s26  ;;  %s1681_s6 = sor.u32 %s1680_s8, %s1679_s29  ;;  %v1668_v10 = vadd.bf16 %v1665_v2, %v1647_v63 }
  0xbd   :  { %13049 = vmatpush3.bf16.msra.mxu0 %v14085_v7  ;;  %13032 = vmatprep.subr.bf16.mxu1 %v14064_v22  ;;  %s1696_s11 = sadd.s32 %s15484_s0, %s1695_s7  ;;  %s15562_s3 = sld [smem:[#allocation2 + $0x107]]  ;;  %v1682_v57 = vstv %s1681_s6 }
  0xbe   :  { %13050 = vmatprep.subr.bf16.mxu0 %v14087_v8  ;;  %s1697_s14 = sand.u32 4294901760, %s1696_s11  ;;  %v1684_v5 = vmul.bf16 %v15594_v1, %v1682_v57  ;;  %v1685_v7 = vmul.bf16 %v15602_v4, %v1682_v57  ;;  %s15615_s10 = sld [smem:[#allocation2 + $0x108]] }
  0xbf   :  { %s18501_s14 = smov (%p1692_p8, %s1697_s14), 2143289344  ;;  %s15636_s21 = sld [smem:[#allocation2 + $0x180]] }
  0xc0   :  { %13033 = vmatpush3.bf16.msra.mxu1 %v14066_v52  ;;  %p1713_p9 = scmp.ne.f32.partialorder %s15540_s13, %s15540_s13  ;;  %s1714_s18 = sshrl.u32 %s15540_s13, 16  ;;  %v1687_v36 = vadd.bf16 %v1684_v5, %v1666_v3  ;;  %v15626_v52 = vld [vmem:[%s18444_s2 + $0x80] sm:$0xff]  ;;  %v14096_v3 = vld [vmem:[#allocation7 + $0x3c8] sm:$0xff]  }
  0xc1   :  { %13051 = vmatpush3.bf16.msra.mxu0 %v14089_v11  ;;  %13034 = vmatprep.subr.bf16.mxu1 %v14068_v25  ;;  %s1700_s0 = sshrl.u32 %s18501_s14, 16  ;;  %s1715_s20 = sand.u32 1, %s1714_s18  ;;  %v15611_v11 = vld [vmem:[%s18444_s2 + $0x70] sm:$0xff] }
  0xc2   :  { %13052 = vmatprep.subr.bf16.mxu0 %v14091_v19  ;;  %s1701_s15 = sshll.u32 %s1700_s0, 16  ;;  %s1716_s23 = sadd.s32 32767, %s1715_s20  ;;  %v1686_v14 = vmul.bf16 %v15611_v11, %v1682_v57  ;;  %v1688_v19 = vadd.bf16 %v1685_v7, %v1667_v6  ;;  %v14094_v57 = vld [vmem:[#allocation7 + $0x390] sm:$0xff]   ;;  %v15695_v6 = vld [vmem:[%s18444_s2 + $0xc0] sm:$0xff] }
  0xc3   :  { %s1702_s24 = sor.u32 %s1701_s15, %s1700_s0  ;;  %s1717_s25 = sadd.s32 %s15540_s13, %s1716_s23 }
  0xc4   :  { %13035 = vmatpush3.bf16.msra.mxu1 %v14070_v29  ;;  %s1718_s26 = sand.u32 4294901760, %s1717_s25  ;;  %p1734_p10 = scmp.ne.f32.partialorder %s15562_s3, %s15562_s3  ;;  %v1703_v8 = vstv %s1702_s24  ;;  %v1689_v20 = vadd.bf16 %v1686_v14, %v1668_v10  ;;  %v15707_v10 = vld [vmem:[%s18444_s2 + $0xd0] sm:$0xff] }
  0xc5   :  { %13053 = vmatpush3.bf16.msra.mxu0 %v14093_v28  ;;  %13064 = vmatprep.subr.bf16.mxu1 %v14072_v31  ;;  %s18503_s26 = smov (%p1713_p9, %s1718_s26), 2143289344  ;;  %s1735_s1 = sshrl.u32 %s15562_s3, 16  ;;  %v1705_v22 = vmul.bf16 %v15620_v16, %v1703_v8  ;;  %v1706_v25 = vmul.bf16 %v15626_v52, %v1703_v8  ;;  %v1707_v24 = vmul.bf16 %v15633_v30, %v1703_v8  ;;  %v15653_v31 = vld [vmem:[%s18444_s2 + $0x98] sm:$0xff] }
  0xc6   :  { %13054 = vmatprep.subr.bf16.mxu0 %v14095_v41  ;;  %s1721_s6 = sshrl.u32 %s18503_s26, 16  ;;  %s1736_s11 = sand.u32 1, %s1735_s1 }
  0xc7   :  { %1563 = vmatmul.mubr.bf16.vlgmr.msra.gmra.mxu1 %v11963_v48  ;;  %s1722_s12 = sshll.u32 %s1721_s6, 16  ;;  %s1737_s14 = sadd.s32 32767, %s1736_s11  ;;  %v1708_v39 = vadd.bf16 %v1705_v22, %v1687_v36  ;;  %v1709_v29 = vadd.bf16 %v1706_v25, %v1688_v19  ;;  %v1710_v32 = vadd.bf16 %v1707_v24, %v1689_v20  ;;  %v15668_v48 = vld [vmem:[%s18444_s2 + $0xa8] sm:$0xff]  ;;  %v14100_v19 = vld [vmem:[#allocation7 + $0x3c0] sm:$0xff]  }
  0xc8   :  { %13065 = vmatpush3.bf16.msra.mxu1 %v14074_v56  ;;  %s1723_s18 = sor.u32 %s1722_s12, %s1721_s6  ;;  %s1738_s16 = sadd.s32 %s15562_s3, %s1737_s14  ;;  %v14102_v25 = vld [vmem:[#allocation7 + $0x380] sm:$0xff]  }
  0xc9   :  { %13055 = vmatpush3.bf16.msra.mxu0 %v14097_v53  ;;  %13066 = vmatprep.subr.bf16.mxu1 %v14076_v49  ;;  %v1724_v28 = vstv %s1723_s18  ;;  %s1739_s20 = sand.u32 4294901760, %s1738_s16  ;;  %p1755_p11 = scmp.ne.f32.partialorder %s15615_s10, %s15615_s10  ;;  %v15677_v49 = vld [vmem:[%s18444_s2 + $0xb0] sm:$0xff] }
  0xca   :  { %13056 = vmatprep.subr.bf16.mxu0 %v14099_v46  ;;  %s18505_s20 = smov (%p1734_p10, %s1739_s20), 2143289344  ;;  %v1726_v41 = vmul.bf16 %v15644_v45, %v1724_v28  ;;  %s1756_s23 = sshrl.u32 %s15615_s10, 16  ;;  %v1727_v53 = vmul.bf16 %v15653_v31, %v1724_v28  ;;  %v1728_v40 = vmul.bf16 %v15659_v38, %v1724_v28  ;;  %v14090_v46 = vld [vmem:[#allocation7 + $0x398] sm:$0xff]  }
  0xcb   :  { %s1742_s3 = sshrl.u32 %s18505_s20, 16  ;;  %s1757_s27 = sand.u32 1, %s1756_s23  ;;  %v14104_v28 = vld [vmem:[#allocation7 + $0x4f8] sm:$0xff]  }
  0xcc   :  { %13067 = vmatpush3.bf16.msra.mxu1 %v14078_v9  ;;  %s1743_s28 = sshll.u32 %s1742_s3, 16  ;;  %s1758_s30 = sadd.s32 32767, %s1757_s27  ;;  %v1729_v58 = vadd.bf16 %v1726_v41, %v1708_v39  ;;  %v1730_v44 = vadd.bf16 %v1727_v53, %v1709_v29  ;;  %v1731_v17 = vadd.bf16 %v1728_v40, %v1710_v32  ;;  %v15701_v9 = vld [vmem:[%s18444_s2 + $0xc8] sm:$0xff]  ;;  %v14105_v29 = vld [vmem:[#allocation7 + $0x438] sm:$0xff]   ;;  %v14107_v53 = vld [vmem:[#allocation7 + $0x470] sm:$0xff]  }
  0xcd   :  { %13057 = vmatpush3.bf16.msra.mxu0 %v14101_v55  ;;  %13068 = vmatprep.subr.bf16.mxu1 %v14080_v18  ;;  %s1744_s8 = sor.u32 %s1743_s28, %s1742_s3  ;;  %s1759_s7 = sadd.s32 %s15615_s10, %s1758_s30  ;;  %v14092_v55 = vld [vmem:[#allocation7 + $0x3d0] sm:$0xff]   ;;  %v14098_v18 = vld [vmem:[#allocation7 + $0x388] sm:$0xff]   ;;  %v14106_v32 = vld [vmem:[#allocation7 + $0x4b8] sm:$0xff]  }
  0xce   :  { %13086 = vmatprep.subr.bf16.mxu0 %v14103_v62  ;;  %v1745_v60 = vstv %s1744_s8  ;;  %s1760_s1 = sand.u32 4294901760, %s1759_s7  ;;  %p2306_p12 = scmp.ne.f32.partialorder %s15636_s21, %s15636_s21 }
  0xcf   :  { %v1747_v56 = vmul.bf16 %v15668_v48, %v1745_v60  ;;  %s18507_s1 = smov (%p1755_p11, %s1760_s1), 2143289344  ;;  %v1748_v50 = vmul.bf16 %v15677_v49, %v1745_v60  ;;  %v1749_v61 = vmul.bf16 %v15683_v59, %v1745_v60  ;;  %s2307_s10 = sshrl.u32 %s15636_s21, 16  ;;  %v14109_v60 = vld [vmem:[#allocation7 + $0x430] sm:$0xff]  }
  0xd0   :  { %13069 = vmatpush3.bf16.msra.mxu1 %v14082_v34  ;;  %s15687_s17 = sld [smem:[#allocation5 + $0x3]]  ;;  %s1763_s9 = sshrl.u32 %s18507_s1, 16 }
  0xd1   :  { %13070 = vmatprep.subr.bf16.mxu1 %v14084_v27  ;;  %s2308_s18 = sand.u32 1, %s2307_s10  ;;  %s1764_s16 = sshll.u32 %s1763_s9, 16  ;;  %v1750_v62 = vadd.bf16 %v1747_v56, %v1729_v58  ;;  %v1751_v63 = vadd.bf16 %v1748_v50, %v1730_v44  ;;  %v1752_v2 = vadd.bf16 %v1749_v61, %v1731_v17  ;;  %v14108_v58 = vld [vmem:[#allocation7 + $0x4f0] sm:$0xff]   ;;  %v14111_v44 = vld [vmem:[#allocation7 + $0x468] sm:$0xff]   ;;  %v14115_v17 = vld [vmem:[#allocation7 + $0x460] sm:$0xff]  }
  0xd2   :  { %s2309_s19 = sadd.s32 32767, %s2308_s18  ;;  %s1765_s0 = sor.u32 %s1764_s16, %s1763_s9  ;;  %v14112_v56 = vld [vmem:[#allocation7 + $0x4e8] sm:$0xff]  }
  0xd3   :  { %s2310_s20 = sadd.s32 %s15636_s21, %s2309_s19  ;;  %v1766_v5 = vstv %s1765_s0  ;;  %s15690_s15 = sld [smem:[#allocation2 + $0x181]]  ;;  %v14113_v50 = vld [vmem:[#allocation7 + $0x428] sm:$0xff]  }
  0xd4   :  { %13071 = vmatpush3.bf16.msra.mxu1 %v14086_v35  ;;  %s2311_s22 = sand.u32 4294901760, %s2310_s20  ;;  %v1768_v7 = vmul.bf16 %v15695_v6, %v1766_v5  ;;  %v1769_v8 = vmul.bf16 %v15701_v9, %v1766_v5  ;;  %v1770_v14 = vmul.bf16 %v15707_v10, %v1766_v5  ;;  %s15730_s13 = sld [smem:[#allocation2 + $0x182]]  ;;  %v14114_v61 = vld [vmem:[#allocation7 + $0x4a8] sm:$0xff]  }
  0xd5   :  { %13072 = vmatprep.subr.bf16.mxu1 %v14088_v51  ;;  %s18509_s22 = smov (%p2306_p12, %s2311_s22), 2143289344  ;;  %s15737_s16 = sld [smem:[#allocation2 + $0x183]] }
  0xd6   :  { %p2324_p13 = scmp.ne.f32.partialorder %s15687_s17, %s15687_s17  ;;  %s2325_s26 = sshrl.u32 %s15687_s17, 16  ;;  %v1771_v34 = vadd.bf16 %v1768_v7, %v1750_v62  ;;  %v1772_v36 = vadd.bf16 %v1769_v8, %v1751_v63  ;;  %v1773_v22 = vadd.bf16 %v1770_v14, %v1752_v2  ;;  %v14119_v62 = vld [vmem:[#allocation7 + $0x458] sm:$0xff]   ;;  %v14118_v63 = vld [vmem:[#allocation7 + $0x4a0] sm:$0xff]   ;;  %v14123_v7 = vld [vmem:[#allocation7 + $0x450] sm:$0xff]  }
  0xd7   :  { %s2314_s28 = sshrl.u32 %s18509_s22, 16  ;;  %s2326_s30 = sand.u32 1, %s2325_s26  ;;  %v14120_v2 = vld [vmem:[#allocation7 + $0x4d8] sm:$0xff]   ;;  %v14125_v14 = vld [vmem:[#allocation7 + $0x410] sm:$0xff]  }
  0xd8   :  { %13073 = vmatpush3.bf16.msra.mxu1 %v14090_v46  ;;  %s2315_s8 = sshll.u32 %s2314_s28, 16  ;;  %s2327_s7 = sadd.s32 32767, %s2326_s30  ;;  %v1774_v20 = vmax.bf16 %v15004_v13, %v1771_v34  ;;  %v1775_v24 = vmax.bf16 %v15004_v13, %v1772_v36  ;;  %v15719_v27 = vmax.bf16 %v15004_v13, %v1773_v22  ;;  %v14110_v46 = vld [vmem:[#allocation7 + $0x4b0] sm:$0xff]   ;;  %v14122_v8 = vld [vmem:[#allocation7 + $0x498] sm:$0xff]  }
  0xd9   :  { %13074 = vmatprep.subr.bf16.mxu1 %v14092_v55  ;;  %s15721_s21 = sor.u32 %s2315_s8, %s2314_s28  ;;  %s2328_s1 = sadd.s32 %s15687_s17, %s2327_s7  ;;  %v14116_v55 = vld [vmem:[#allocation7 + $0x4e0] sm:$0xff]  }
  0xda   :  { %s2329_s6 = sand.u32 4294901760, %s2328_s1  ;;  %p2342_p0 = scmp.ne.f32.partialorder %s15690_s15, %s15690_s15  ;;  %v12024_v35 = vcombine.high %v1774_v20, %v1774_v20  ;;  %v12026_v39 = vcombine.high %v1775_v24, %v1775_v24  ;;  %v12023_v41 = vcombine.low %v1774_v20, %v1774_v20  ;;  %v12028_v40 = vcombine.high %v15719_v27, %v15719_v27  ;;  %v14127_v20 = vld [vmem:[#allocation7 + $0x448] sm:$0xff]  }
  0xdb   :  { %s18511_s6 = smov (%p2324_p13, %s2329_s6), 2143289344  ;;  %s2343_s11 = sshrl.u32 %s15690_s15, 16  ;;  %v12025_v51 = vcombine.low %v1775_v24, %v1775_v24  ;;  %v2317_v5 = vstv %s15721_s21 }
  0xdc   :  { %13075 = vmatpush3.bf16.msra.mxu1 %v14094_v57  ;;  %2215 = vmatprep.mubr.bf16.mxu0 %v12024_v35  ;;  %s2332_s4 = sshrl.u32 %s18511_s6, 16  ;;  %s2344_s12 = sand.u32 1, %s2343_s11  ;;  %v14117_v57 = vld [vmem:[#allocation7 + $0x420] sm:$0xff]   ;;  %v2320_v34 = vmul.bf16 %v15501_v15, %v2317_v5  ;;  %v14128_v15 = vld [vmem:[#allocation7 + $0x4c8] sm:$0xff]  }
  0xdd   :  { %13076 = vmatprep.subr.bf16.mxu1 %v14096_v3  ;;  %2255 = vmatprep.mubr.bf16.mxu1 %v12026_v39  ;;  %s2333_s14 = sshll.u32 %s2332_s4, 16  ;;  %s2345_s10 = sadd.s32 32767, %s2344_s12  ;;  %v14121_v3 = vld [vmem:[#allocation7 + $0x418] sm:$0xff]   ;;  %v14129_v39 = vld [vmem:[#allocation7 + $0x408] sm:$0xff]  }
  0xde   :  { %2216 = vmatmul.mubr.bf16.vlgmr.msra.gmra.mxu0 %v12023_v41  ;;  %s15734_s17 = sor.u32 %s2333_s14, %s2332_s4  ;;  %s2346_s9 = sadd.s32 %s15690_s15, %s2345_s10 }
  0xdf   :  { %13087 = vmatpush3.bf16.msra.mxu0 %v14105_v29  ;;  %s2347_s18 = sand.u32 4294901760, %s2346_s9  ;;  %2295 = vmatprep.mubr.bf16.mxu0 %v12028_v40  ;;  %p2363_p1 = scmp.ne.f32.partialorder %s15730_s13, %s15730_s13  ;;  %v2335_v36 = vstv %s15734_s17 }
  0xe0   :  { %13077 = vmatpush3.bf16.msra.mxu1 %v14098_v18  ;;  %13088 = vmatprep.subr.bf16.mxu0 %v14107_v53  ;;  %s18513_s18 = smov (%p2342_p0, %s2347_s18), 2143289344  ;;  %s2364_s19 = sshrl.u32 %s15730_s13, 16  ;;  %v2319_v18 = vmul.bf16 %v15492_v12, %v2317_v5  ;;  %v14126_v12 = vld [vmem:[#allocation7 + $0x490] sm:$0xff]  }
  0xe1   :  { %13078 = vmatprep.subr.bf16.mxu1 %v14100_v19  ;;  %s2350_s0 = sshrl.u32 %s18513_s18, 16  ;;  %s2365_s20 = sand.u32 1, %s2364_s19  ;;  %v2321_v19 = vmul.bf16 %v15509_v21, %v2317_v5  ;;  %v2338_v21 = vadd.bf16 %v2335_v36, %v2320_v34 }
  0xe2   :  { %s2351_s22 = sshll.u32 %s2350_s0, 16  ;;  %s2366_s15 = sadd.s32 32767, %s2365_s20  ;;  %v2337_v24 = vadd.bf16 %v2335_v36, %v2319_v18 }
  0xe3   :  { %13089 = vmatpush3.bf16.msra.mxu0 %v14109_v60  ;;  %s15745_s23 = sor.u32 %s2351_s22, %s2350_s0  ;;  %s2367_s24 = sadd.s32 %s15730_s13, %s2366_s15  ;;  %v2339_v29 = vadd.bf16 %v2335_v36, %v2321_v19  ;;  %v14133_v60 = vld [vmem:[#allocation7 + $0x400] sm:$0xff]   ;;  %v14145_v36 = vld [vmem:[#allocation7 + $0x528] sm:$0xff]  }
  0xe4   :  { %13079 = vmatpush3.bf16.msra.mxu1 %v14102_v25  ;;  %13090 = vmatprep.subr.bf16.mxu0 %v14111_v44  ;;  %s2368_s25 = sand.u32 4294901760, %s2367_s24  ;;  %p2384_p2 = scmp.ne.f32.partialorder %s15737_s16, %s15737_s16  ;;  %v2353_v22 = vstv %s15745_s23  ;;  %v14124_v25 = vld [vmem:[#allocation7 + $0x4d0] sm:$0xff]  }
  0xe5   :  { %13108 = vmatprep.subr.bf16.mxu1 %v14104_v28  ;;  %s18515_s25 = smov (%p2363_p1, %s2368_s25), 2143289344  ;;  %s2385_s3 = sshrl.u32 %s15737_s16, 16  ;;  %v2355_v28 = vmul.bf16 %v15518_v23, %v2353_v22  ;;  %v2356_v35 = vmul.bf16 %v15526_v26, %v2353_v22  ;;  %v2357_v53 = vmul.bf16 %v15536_v37, %v2353_v22  ;;  %v14130_v23 = vld [vmem:[#allocation7 + $0x488] sm:$0xff]   ;;  %v14132_v26 = vld [vmem:[#allocation7 + $0x4c0] sm:$0xff]  }
  0xe6   :  { %s15754_s27 = sld [smem:[#allocation2 + $0x184]]  ;;  %s2371_s29 = sshrl.u32 %s18515_s25, 16 }
  0xe7   :  { %2256 = vmatmul.mubr.bf16.vlgmr.msra.gmra.mxu1 %v12025_v51  ;;  %13091 = vmatpush3.bf16.msra.mxu0 %v14113_v50  ;;  %s2386_s26 = sand.u32 1, %s2385_s3  ;;  %s2372_s28 = sshll.u32 %s2371_s29, 16  ;;  %v2358_v40 = vadd.bf16 %v2355_v28, %v2337_v24  ;;  %v14134_v50 = vld [vmem:[#allocation7 + $0x480] sm:$0xff]   ;;  %v14151_v28 = vld [vmem:[#allocation7 + $0x558] sm:$0xff]  }
  0xe8   :  { %13109 = vmatpush3.bf16.msra.mxu1 %v14106_v32  ;;  %13092 = vmatprep.subr.bf16.mxu0 %v14115_v17  ;;  %s2387_s30 = sadd.s32 32767, %s2386_s26  ;;  %s15757_s8 = sor.u32 %s2372_s28, %s2371_s29  ;;  %v14131_v32 = vld [vmem:[#allocation7 + $0x440] sm:$0xff]  }
  0xe9   :  { %13110 = vmatprep.subr.bf16.mxu1 %v14108_v58  ;;  %s2388_s7 = sadd.s32 %s15737_s16, %s2387_s30  ;;  %s15760_s6 = sld [smem:[#allocation2 + $0x185]]  ;;  %v2374_v41 = vstv %s15757_s8  ;;  %v2359_v58 = vadd.bf16 %v2356_v35, %v2338_v21 }
  0xea   :  { %s2389_s1 = sand.u32 4294901760, %s2388_s7  ;;  %s15786_s18 = sld [smem:[#allocation2 + $0x186]]  ;;  %v2376_v51 = vmul.bf16 %v15545_v33, %v2374_v41  ;;  %v2377_v37 = vmul.bf16 %v15551_v42, %v2374_v41  ;;  %v14135_v33 = vld [vmem:[#allocation7 + $0x578] sm:$0xff]   ;;  %v12027_v42 = vcombine.low %v15719_v27, %v15719_v27 }
  0xeb   :  { %13093 = vmatpush3.bf16.msra.mxu0 %v14117_v57  ;;  %s18517_s1 = smov (%p2384_p2, %s2389_s1), 2143289344  ;;  %s15793_s24 = sld [smem:[#allocation2 + $0x187]] }
  0xec   :  { %13111 = vmatpush3.bf16.msra.mxu1 %v14110_v46  ;;  %13094 = vmatprep.subr.bf16.mxu0 %v14119_v62  ;;  %p2405_p3 = scmp.ne.f32.partialorder %s15754_s27, %s15754_s27  ;;  %s2406_s21 = sshrl.u32 %s15754_s27, 16  ;;  %v2360_v46 = vadd.bf16 %v2357_v53, %v2339_v29  ;;  %v2379_v17 = vadd.bf16 %v2376_v51, %v2358_v40  ;;  %v14153_v29 = vld [vmem:[#allocation7 + $0x518] sm:$0xff]   ;;  %v14159_v51 = vld [vmem:[#allocation7 + $0x548] sm:$0xff]  }
  0xed   :  { %13112 = vmatprep.subr.bf16.mxu1 %v14112_v56  ;;  %s2392_s11 = sshrl.u32 %s18517_s1, 16  ;;  %s2407_s13 = sand.u32 1, %s2406_s21  ;;  %v2378_v56 = vmul.bf16 %v15559_v47, %v2374_v41  ;;  %v2380_v47 = vadd.bf16 %v2377_v37, %v2359_v58 }
  0xee   :  { %s2393_s4 = sshll.u32 %s2392_s11, 16  ;;  %s2408_s12 = sadd.s32 32767, %s2407_s13 }
  0xef   :  { %13095 = vmatpush3.bf16.msra.mxu0 %v14121_v3  ;;  %s15773_s14 = sor.u32 %s2393_s4, %s2392_s11  ;;  %s2409_s10 = sadd.s32 %s15754_s27, %s2408_s12 }
  0xf0   :  { %13113 = vmatpush3.bf16.msra.mxu1 %v14114_v61  ;;  %13096 = vmatprep.subr.bf16.mxu0 %v14123_v7  ;;  %s2410_s17 = sand.u32 4294901760, %s2409_s10  ;;  %p2426_p4 = scmp.ne.f32.partialorder %s15760_s6, %s15760_s6  ;;  %v2395_v44 = vstv %s15773_s14 }
  0xf1   :  { %13114 = vmatprep.subr.bf16.mxu1 %v14116_v55  ;;  %s18519_s17 = smov (%p2405_p3, %s2410_s17), 2143289344  ;;  %s2427_s9 = sshrl.u32 %s15760_s6, 16  ;;  %v2397_v61 = vmul.bf16 %v15572_v54, %v2395_v44  ;;  %v14137_v55 = vld [vmem:[#allocation7 + $0x538] sm:$0xff]   ;;  %v2398_v57 = vmul.bf16 %v15581_v43, %v2395_v44  ;;  %v2399_v27 = vmul.bf16 %v15587_v0, %v2395_v44  ;;  %v14161_v44 = vld [vmem:[#allocation7 + $0x508] sm:$0xff]  }
  0xf2   :  { %s2413_s16 = sshrl.u32 %s18519_s17, 16  ;;  %s2428_s19 = sand.u32 1, %s2427_s9  ;;  %v14136_v54 = vld [vmem:[#allocation7 + $0x5f8] sm:$0xff]  }
  0xf3   :  { %13097 = vmatpush3.bf16.msra.mxu0 %v14125_v14  ;;  %s2414_s0 = sshll.u32 %s2413_s16, 16  ;;  %s2429_s20 = sadd.s32 32767, %s2428_s19  ;;  %v2400_v43 = vadd.bf16 %v2397_v61, %v2379_v17  ;;  %v2401_v5 = vadd.bf16 %v2398_v57, %v2380_v47  ;;  %v14140_v57 = vld [vmem:[#allocation7 + $0x5f0] sm:$0xff]  }
  0xf4   :  { %13115 = vmatpush3.bf16.msra.mxu1 %v14118_v63  ;;  %13098 = vmatprep.subr.bf16.mxu0 %v14127_v20  ;;  %s2415_s22 = sor.u32 %s2414_s0, %s2413_s16  ;;  %s2430_s15 = sadd.s32 %s15760_s6, %s2429_s20  ;;  %v2381_v63 = vadd.bf16 %v2378_v56, %v2360_v46 }
  0xf5   :  { %13116 = vmatprep.subr.bf16.mxu1 %v14120_v2  ;;  %s2431_s23 = sand.u32 4294901760, %s2430_s15  ;;  %p2447_p5 = scmp.ne.f32.partialorder %s15786_s18, %s15786_s18  ;;  %v2416_v62 = vstv %s2415_s22  ;;  %v14139_v2 = vld [vmem:[#allocation7 + $0x570] sm:$0xff]  }
  0xf6   :  { %s18521_s23 = smov (%p2426_p4, %s2431_s23), 2143289344  ;;  %s2448_s25 = sshrl.u32 %s15786_s18, 16  ;;  %v2418_v3 = vmul.bf16 %v15594_v1, %v2416_v62  ;;  %v2419_v0 = vmul.bf16 %v15602_v4, %v2416_v62  ;;  %v2402_v14 = vadd.bf16 %v2399_v27, %v2381_v63  ;;  %v2420_v18 = vmul.bf16 %v15611_v11, %v2416_v62  ;;  %v14143_v1 = vld [vmem:[#allocation7 + $0x568] sm:$0xff]   ;;  %v14142_v63 = vld [vmem:[#allocation7 + $0x5b0] sm:$0xff]   ;;  %v14167_v27 = vld [vmem:[#allocation7 + $0x678] sm:$0xff]  }
  0xf7   :  { %13099 = vmatpush3.bf16.msra.mxu0 %v14129_v39  ;;  %s2434_s3 = sshrl.u32 %s18521_s23, 16  ;;  %s2449_s27 = sand.u32 1, %s2448_s25 }
  0xf8   :  { %13117 = vmatpush3.bf16.msra.mxu1 %v14122_v8  ;;  %13100 = vmatprep.subr.bf16.mxu0 %v14131_v32  ;;  %s2435_s29 = sshll.u32 %s2434_s3, 16  ;;  %s2450_s26 = sadd.s32 32767, %s2449_s27  ;;  %v14141_v8 = vld [vmem:[#allocation7 + $0x530] sm:$0xff]   ;;  %v2421_v34 = vadd.bf16 %v2418_v3, %v2400_v43  ;;  %v2422_v22 = vadd.bf16 %v2419_v0, %v2401_v5  ;;  %v2423_v19 = vadd.bf16 %v2420_v18, %v2402_v14  ;;  %v14169_v43 = vld [vmem:[#allocation7 + $0x638] sm:$0xff]   ;;  %v14146_v5 = vld [vmem:[#allocation7 + $0x5a8] sm:$0xff]  }
  0xf9   :  { %13118 = vmatprep.subr.bf16.mxu1 %v14124_v25  ;;  %s2436_s28 = sor.u32 %s2435_s29, %s2434_s3  ;;  %s2451_s30 = sadd.s32 %s15786_s18, %s2450_s26  ;;  %v14171_v3 = vld [vmem:[#allocation7 + $0x670] sm:$0xff]   ;;  %v14150_v14 = vld [vmem:[#allocation7 + $0x5a0] sm:$0xff]   ;;  %v14152_v18 = vld [vmem:[#allocation7 + $0x5d8] sm:$0xff]  }
  0xfa   :  { %s2452_s8 = sand.u32 4294901760, %s2451_s30  ;;  %p2468_p6 = scmp.ne.f32.partialorder %s15793_s24, %s15793_s24  ;;  %v2437_v7 = vstv %s2436_s28  ;;  %v14173_v0 = vld [vmem:[#allocation7 + $0x630] sm:$0xff]  }
  0xfb   :  { %13101 = vmatpush3.bf16.msra.mxu0 %v14133_v60  ;;  %s18523_s8 = smov (%p2447_p5, %s2452_s8), 2143289344  ;;  %s2469_s7 = sshrl.u32 %s15793_s24, 16  ;;  %v2439_v4 = vmul.bf16 %v15620_v16, %v2437_v7  ;;  %v2440_v11 = vmul.bf16 %v15626_v52, %v2437_v7  ;;  %v2441_v25 = vmul.bf16 %v15633_v30, %v2437_v7  ;;  %v14147_v16 = vld [vmem:[#allocation7 + $0x560] sm:$0xff]  }
  0xfc   :  { %13119 = vmatpush3.bf16.msra.mxu1 %v14126_v12  ;;  %13130 = vmatprep.subr.bf16.mxu0 %v14135_v33  ;;  %s15816_s1 = sld [smem:[#allocation2 + $0x188]]  ;;  %s2455_s6 = sshrl.u32 %s18523_s8, 16  ;;  %v14149_v30 = vld [vmem:[#allocation7 + $0x520] sm:$0xff]  }
  0xfd   :  { %13120 = vmatprep.subr.bf16.mxu1 %v14128_v15  ;;  %s2470_s21 = sand.u32 1, %s2469_s7  ;;  %s2456_s11 = sshll.u32 %s2455_s6, 16  ;;  %v2442_v12 = vadd.bf16 %v2439_v4, %v2421_v34  ;;  %v2443_v52 = vadd.bf16 %v2440_v11, %v2422_v22  ;;  %v2444_v21 = vadd.bf16 %v2441_v25, %v2423_v19  ;;  %v14148_v7 = vld [vmem:[#allocation7 + $0x5e0] sm:$0xff]   ;;  %v14154_v4 = vld [vmem:[#allocation7 + $0x598] sm:$0xff]  }
  0xfe   :  { %2296 = vmatmul.mubr.bf16.vlgmr.msra.gmra.mxu0 %v12027_v42  ;;  %s2471_s13 = sadd.s32 32767, %s2470_s21  ;;  %s2457_s4 = sor.u32 %s2456_s11, %s2455_s6  ;;  %v14138_v42 = vld [vmem:[#allocation7 + $0x5b8] sm:$0xff]   ;;  %v14179_v34 = vld [vmem:[#allocation7 + $0x660] sm:$0xff]  }
  0xff   :  { %13131 = vmatpush3.bf16.msra.mxu0 %v14137_v55  ;;  %s2472_s12 = sadd.s32 %s15793_s24, %s2471_s13  ;;  %v2458_v20 = vstv %s2457_s4  ;;  %s15822_s10 = sld [smem:[#allocation2 + $0x200]]  ;;  %v14165_v55 = vld [vmem:[#allocation7 + $0x500] sm:$0xff]  }
 0x100   :  { %13121 = vmatpush3.bf16.msra.mxu1 %v14130_v23  ;;  %13132 = vmatprep.subr.bf16.mxu0 %v14139_v2  ;;  %s2473_s14 = sand.u32 4294901760, %s2472_s12  ;;  %v2460_v15 = vmul.bf16 %v15644_v45, %v2458_v20  ;;  %v2461_v24 = vmul.bf16 %v15653_v31, %v2458_v20  ;;  %v2462_v35 = vmul.bf16 %v15659_v38, %v2458_v20  ;;  %v14155_v23 = vld [vmem:[#allocation7 + $0x550] sm:$0xff]   ;;  %s15843_s23 = sld [smem:[#allocation5 + $0x4]]  ;;  %v14181_v22 = vld [vmem:[#allocation7 + $0x620] sm:$0xff]   ;;  %v14183_v20 = vld [vmem:[#allocation7 + $0x658] sm:$0xff]  }
 0x101   :  { %13122 = vmatprep.subr.bf16.mxu1 %v14132_v26  ;;  %s18525_s14 = smov (%p2468_p6, %s2473_s14), 2143289344  ;;  %v14157_v26 = vld [vmem:[#allocation7 + $0x510] sm:$0xff]   ;;  %s15846_s30 = sld [smem:[#allocation2 + $0x201]] }
 0x102   :  { %p2489_p7 = scmp.ne.f32.partialorder %s15816_s1, %s15816_s1  ;;  %s2490_s17 = sshrl.u32 %s15816_s1, 16  ;;  %v2463_v45 = vadd.bf16 %v2460_v15, %v2442_v12  ;;  %v2464_v31 = vadd.bf16 %v2461_v24, %v2443_v52  ;;  %v2465_v53 = vadd.bf16 %v2462_v35, %v2444_v21  ;;  %v14158_v15 = vld [vmem:[#allocation7 + $0x590] sm:$0xff]   ;;  %v15920_v35 = vld [vmem:[%s18444_s2 + $0x8] sm:$0xff] }
 0x103   :  { %13133 = vmatpush3.bf16.msra.mxu0 %v14141_v8  ;;  %s2476_s9 = sshrl.u32 %s18525_s14, 16  ;;  %s2491_s18 = sand.u32 1, %s2490_s17  ;;  %v14175_v8 = vld [vmem:[#allocation7 + $0x668] sm:$0xff]  }
 0x104   :  { %13123 = vmatpush3.bf16.msra.mxu1 %v14134_v50  ;;  %13134 = vmatprep.subr.bf16.mxu0 %v14143_v1  ;;  %s2477_s16 = sshll.u32 %s2476_s9, 16  ;;  %s2492_s19 = sadd.s32 32767, %s2491_s18  ;;  %v14177_v1 = vld [vmem:[#allocation7 + $0x628] sm:$0xff]  }
 0x105   :  { %13152 = vmatprep.subr.bf16.mxu1 %v14136_v54  ;;  %s2478_s0 = sor.u32 %s2477_s16, %s2476_s9  ;;  %s2493_s20 = sadd.s32 %s15816_s1, %s2492_s19  ;;  %v14144_v54 = vld [vmem:[#allocation7 + $0x5e8] sm:$0xff]  }
 0x106   :  { %v2479_v39 = vstv %s2478_s0  ;;  %s2494_s22 = sand.u32 4294901760, %s2493_s20  ;;  %p3040_p8 = scmp.ne.f32.partialorder %s15822_s10, %s15822_s10 }
 0x107   :  { %13135 = vmatpush3.bf16.msra.mxu0 %v14145_v36  ;;  %v2481_v41 = vmul.bf16 %v15668_v48, %v2479_v39  ;;  %s18527_s22 = smov (%p2489_p7, %s2494_s22), 2143289344  ;;  %v2482_v38 = vmul.bf16 %v15677_v49, %v2479_v39  ;;  %v2483_v32 = vmul.bf16 %v15683_v59, %v2479_v39  ;;  %s3041_s15 = sshrl.u32 %s15822_s10, 16  ;;  %v14156_v36 = vld [vmem:[#allocation7 + $0x5d0] sm:$0xff]  }
 0x108   :  { %13136 = vmatprep.subr.bf16.mxu0 %v14147_v16  ;;  %s2497_s24 = sshrl.u32 %s18527_s22, 16  ;;  %s3042_s25 = sand.u32 1, %s3041_s15 }
 0x109   :  { %s2498_s3 = sshll.u32 %s2497_s24, 16  ;;  %s3043_s27 = sadd.s32 32767, %s3042_s25  ;;  %v2484_v48 = vadd.bf16 %v2481_v41, %v2463_v45  ;;  %v2485_v49 = vadd.bf16 %v2482_v38, %v2464_v31  ;;  %v2486_v40 = vadd.bf16 %v2483_v32, %v2465_v53  ;;  %v14185_v41 = vld [vmem:[#allocation7 + $0x618] sm:$0xff]  }
 0x10a   :  { %s2499_s29 = sor.u32 %s2498_s3, %s2497_s24  ;;  %s3044_s26 = sadd.s32 %s15822_s10, %s3043_s27 }
 0x10b   :  { %13137 = vmatpush3.bf16.msra.mxu0 %v14149_v30  ;;  %v2500_v59 = vstv %s2499_s29  ;;  %s3045_s28 = sand.u32 4294901760, %s3044_s26  ;;  %p3058_p9 = scmp.ne.f32.partialorder %s15843_s23, %s15843_s23  ;;  %v14160_v30 = vld [vmem:[#allocation7 + $0x5c8] sm:$0xff]  }
 0x10c   :  { %13138 = vmatprep.subr.bf16.mxu0 %v14151_v28  ;;  %v2502_v58 = vmul.bf16 %v15695_v6, %v2500_v59  ;;  %v2503_v37 = vmul.bf16 %v15701_v9, %v2500_v59  ;;  %v2504_v60 = vmul.bf16 %v15707_v10, %v2500_v59  ;;  %s18529_s28 = smov (%p3040_p8, %s3045_s28), 2143289344  ;;  %s3059_s8 = sshrl.u32 %s15843_s23, 16  ;;  %v14163_v6 = vld [vmem:[#allocation7 + $0x540] sm:$0xff]  }
 0x10d   :  { %s3048_s7 = sshrl.u32 %s18529_s28, 16  ;;  %s3060_s1 = sand.u32 1, %s3059_s8  ;;  %v15911_v28 = vld [vmem:[%s18444_s2] sm:$0xff] }
 0x10e   :  { %v2505_v46 = vadd.bf16 %v2502_v58, %v2484_v48  ;;  %v2506_v56 = vadd.bf16 %v2503_v37, %v2485_v49  ;;  %v2507_v33 = vadd.bf16 %v2504_v60, %v2486_v40  ;;  %s3049_s6 = sshll.u32 %s3048_s7, 16  ;;  %s3061_s21 = sadd.s32 32767, %s3060_s1  ;;  %v14162_v40 = vld [vmem:[#allocation7 + $0x588] sm:$0xff]   ;;  %v14164_v59 = vld [vmem:[#allocation7 + $0x5c0] sm:$0xff]   ;;  %v15940_v58 = vld [vmem:[%s18444_s2 + $0x18] sm:$0xff] }
 0x10f   :  { %13139 = vmatpush3.bf16.msra.mxu0 %v14153_v29  ;;  %s15862_s11 = sor.u32 %s3049_s6, %s3048_s7  ;;  %s3062_s13 = sadd.s32 %s15843_s23, %s3061_s21  ;;  %v14187_v29 = vld [vmem:[#allocation7 + $0x650] sm:$0xff]  }
 0x110   :  { %13140 = vmatprep.subr.bf16.mxu0 %v14155_v23  ;;  %v2508_v9 = vmax.bf16 %v15004_v13, %v2505_v46  ;;  %v2509_v10 = vmax.bf16 %v15004_v13, %v2506_v56  ;;  %v15860_v50 = vmax.bf16 %v15004_v13, %v2507_v33  ;;  %s3063_s4 = sand.u32 4294901760, %s3062_s13  ;;  %p3076_p10 = scmp.ne.f32.partialorder %s15846_s30, %s15846_s30  ;;  %v3051_v25 = vstv %s15862_s11  ;;  %v15931_v23 = vld [vmem:[%s18444_s2 + $0x10] sm:$0xff] }
 0x111   :  { %s18531_s4 = smov (%p3058_p9, %s3063_s4), 2143289344  ;;  %s3077_s12 = sshrl.u32 %s15846_s30, 16  ;;  %v3053_v21 = vmul.bf16 %v15911_v28, %v3051_v25  ;;  %v3054_v45 = vmul.bf16 %v15920_v35, %v3051_v25  ;;  %v14189_v56 = vld [vmem:[#allocation7 + $0x610] sm:$0xff]  }
 0x112   :  { %v12088_v17 = vcombine.high %v2508_v9, %v2508_v9  ;;  %v12087_v61 = vcombine.low %v2508_v9, %v2508_v9  ;;  %v12090_v47 = vcombine.high %v2509_v10, %v2509_v10  ;;  %v12092_v62 = vcombine.high %v15860_v50, %v15860_v50  ;;  %s15873_s14 = sld [smem:[#allocation2 + $0x202]]  ;;  %s3066_s10 = sshrl.u32 %s18531_s4, 16  ;;  %v15958_v9 = vld [vmem:[%s18444_s2 + $0x28] sm:$0xff] }
 0x113   :  { %13141 = vmatpush3.bf16.msra.mxu0 %v14157_v26  ;;  %s3078_s17 = sand.u32 1, %s3077_s12  ;;  %v12089_v2 = vcombine.low %v2509_v10, %v2509_v10  ;;  %s3067_s9 = sshll.u32 %s3066_s10, 16  ;;  %v3055_v26 = vmul.bf16 %v15931_v23, %v3051_v25 }
 0x114   :  { %13142 = vmatprep.subr.bf16.mxu0 %v14159_v51  ;;  %2949 = vmatprep.mubr.bf16.mxu1 %v12088_v17  ;;  %s3079_s18 = sadd.s32 32767, %s3078_s17  ;;  %s15875_s16 = sor.u32 %s3067_s9, %s3066_s10  ;;  %v14166_v17 = vld [vmem:[#allocation7 + $0x580] sm:$0xff]  }
 0x115   :  { %2989 = vmatprep.mubr.bf16.mxu0 %v12090_v47  ;;  %2950 = vmatmul.mubr.bf16.vlgmr.msra.gmra.mxu1 %v12087_v61  ;;  %s3080_s19 = sadd.s32 %s15846_s30, %s3079_s18  ;;  %s15878_s20 = sld [smem:[#allocation2 + $0x203]]  ;;  %v3069_v38 = vstv %s15875_s16  ;;  %v14168_v61 = vld [vmem:[#allocation7 + $0x6f8] sm:$0xff]  }
 0x116   :  { %13153 = vmatpush3.bf16.msra.mxu1 %v14138_v42  ;;  %3029 = vmatprep.mubr.bf16.mxu1 %v12092_v62  ;;  %s3081_s0 = sand.u32 4294901760, %s3080_s19  ;;  %s15895_s28 = sld [smem:[#allocation2 + $0x204]]  ;;  %v3071_v51 = vadd.bf16 %v3069_v38, %v3053_v21  ;;  %v3072_v60 = vadd.bf16 %v3069_v38, %v3054_v45  ;;  %v14191_v42 = vld [vmem:[#allocation7 + $0x648] sm:$0xff]   ;;  %v14174_v45 = vld [vmem:[#allocation7 + $0x6b0] sm:$0xff]  }
 0x117   :  { %13143 = vmatpush3.bf16.msra.mxu0 %v14161_v44  ;;  %13154 = vmatprep.subr.bf16.mxu1 %v14140_v57  ;;  %s18533_s0 = smov (%p3076_p10, %s3081_s0), 2143289344  ;;  %s15901_s4 = sld [smem:[#allocation2 + $0x205]]  ;;  %v15948_v44 = vld [vmem:[%s18444_s2 + $0x20] sm:$0xff]  ;;  %v15967_v57 = vld [vmem:[%s18444_s2 + $0x30] sm:$0xff] }
 0x118   :  { %13144 = vmatprep.subr.bf16.mxu0 %v14163_v6  ;;  %p3097_p11 = scmp.ne.f32.partialorder %s15873_s14, %s15873_s14  ;;  %s3098_s22 = sshrl.u32 %s15873_s14, 16  ;;  %v3073_v6 = vadd.bf16 %v3069_v38, %v3055_v26  ;;  %v14176_v38 = vld [vmem:[#allocation7 + $0x6e8] sm:$0xff]   ;;  %v16042_v26 = vld [vmem:[%s18444_s2 + $0x78] sm:$0xff] }
 0x119   :  { %s3084_s15 = sshrl.u32 %s18533_s0, 16  ;;  %s3099_s23 = sand.u32 1, %s3098_s22 }
 0x11a   :  { %13155 = vmatpush3.bf16.msra.mxu1 %v14142_v63  ;;  %s3085_s24 = sshll.u32 %s3084_s15, 16  ;;  %s3100_s25 = sadd.s32 32767, %s3099_s23 }
 0x11b   :  { %13145 = vmatpush3.bf16.msra.mxu0 %v14165_v55  ;;  %13156 = vmatprep.subr.bf16.mxu1 %v14144_v54  ;;  %s15886_s3 = sor.u32 %s3085_s24, %s3084_s15  ;;  %s3101_s27 = sadd.s32 %s15873_s14, %s3100_s25  ;;  %v14193_v55 = vld [vmem:[#allocation7 + $0x608] sm:$0xff]  }
 0x11c   :  { %13174 = vmatprep.subr.bf16.mxu0 %v14167_v27  ;;  %s3102_s29 = sand.u32 4294901760, %s3101_s27  ;;  %p3118_p12 = scmp.ne.f32.partialorder %s15878_s20, %s15878_s20  ;;  %v3087_v53 = vstv %s15886_s3  ;;  %v15973_v27 = vld [vmem:[%s18444_s2 + $0x38] sm:$0xff] }
 0x11d   :  { %s18535_s29 = smov (%p3097_p11, %s3102_s29), 2143289344  ;;  %s3119_s26 = sshrl.u32 %s15878_s20, 16  ;;  %v3089_v37 = vmul.bf16 %v15940_v58, %v3087_v53  ;;  %v3090_v46 = vmul.bf16 %v15948_v44, %v3087_v53  ;;  %v3091_v10 = vmul.bf16 %v15958_v9, %v3087_v53 }
 0x11e   :  { %2990 = vmatmul.mubr.bf16.vlgmr.msra.gmra.mxu0 %v12089_v2  ;;  %13157 = vmatpush3.bf16.msra.mxu1 %v14146_v5  ;;  %s3105_s30 = sshrl.u32 %s18535_s29, 16  ;;  %s3120_s8 = sand.u32 1, %s3119_s26 }
 0x11f   :  { %13175 = vmatpush3.bf16.msra.mxu0 %v14169_v43  ;;  %13158 = vmatprep.subr.bf16.mxu1 %v14148_v7  ;;  %s3106_s7 = sshll.u32 %s3105_s30, 16  ;;  %s3121_s1 = sadd.s32 32767, %s3120_s8  ;;  %v3092_v47 = vadd.bf16 %v3089_v37, %v3071_v51  ;;  %v3093_v63 = vadd.bf16 %v3090_v46, %v3072_v60  ;;  %v3094_v43 = vadd.bf16 %v3091_v10, %v3073_v6  ;;  %v14178_v51 = vld [vmem:[#allocation7 + $0x6a8] sm:$0xff]   ;;  %v14182_v6 = vld [vmem:[#allocation7 + $0x6a0] sm:$0xff]  }
 0x120   :  { %13176 = vmatprep.subr.bf16.mxu0 %v14171_v3  ;;  %s15898_s6 = sor.u32 %s3106_s7, %s3105_s30  ;;  %s3122_s21 = sadd.s32 %s15878_s20, %s3121_s1  ;;  %v15981_v3 = vld [vmem:[%s18444_s2 + $0x40] sm:$0xff]  ;;  %v12091_v7 = vcombine.low %v15860_v50, %v15860_v50  ;;  %v16003_v50 = vld [vmem:[%s18444_s2 + $0x50] sm:$0xff]  ;;  %v16055_v60 = vld [vmem:[%s18444_s2 + $0x88] sm:$0xff] }
 0x121   :  { %s3123_s13 = sand.u32 4294901760, %s3122_s21  ;;  %p3139_p13 = scmp.ne.f32.partialorder %s15895_s28, %s15895_s28  ;;  %v3108_v33 = vstv %s15898_s6 }
 0x122   :  { %13159 = vmatpush3.bf16.msra.mxu1 %v14150_v14  ;;  %s18537_s13 = smov (%p3118_p12, %s3123_s13), 2143289344  ;;  %s3140_s14 = sshrl.u32 %s15895_s28, 16  ;;  %v3110_v62 = vmul.bf16 %v15967_v57, %v3108_v33  ;;  %v3111_v54 = vmul.bf16 %v15973_v27, %v3108_v33  ;;  %v3112_v5 = vmul.bf16 %v15981_v3, %v3108_v33  ;;  %v14197_v14 = vld [vmem:[#allocation7 + $0x600] sm:$0xff]  }
 0x123   :  { %13177 = vmatpush3.bf16.msra.mxu0 %v14173_v0  ;;  %13160 = vmatprep.subr.bf16.mxu1 %v14152_v18  ;;  %s3126_s9 = sshrl.u32 %s18537_s13, 16  ;;  %s3141_s18 = sand.u32 1, %s3140_s14  ;;  %v14195_v0 = vld [vmem:[#allocation7 + $0x640] sm:$0xff]  }
 0x124   :  { %13178 = vmatprep.subr.bf16.mxu0 %v14175_v8  ;;  %s3127_s20 = sshll.u32 %s3126_s9, 16  ;;  %s3142_s22 = sadd.s32 32767, %s3141_s18  ;;  %v14170_v8 = vld [vmem:[#allocation7 + $0x6b8] sm:$0xff]   ;;  %v3113_v18 = vadd.bf16 %v3110_v62, %v3092_v47 }
 0x125   :  { %s15934_s16 = sor.u32 %s3127_s20, %s3126_s9  ;;  %s3143_s15 = sadd.s32 %s15895_s28, %s3142_s22 }
 0x126   :  { %13161 = vmatpush3.bf16.msra.mxu1 %v14154_v4  ;;  %s3144_s25 = sand.u32 4294901760, %s3143_s15  ;;  %p3160_p0 = scmp.ne.f32.partialorder %s15901_s4, %s15901_s4  ;;  %v3129_v2 = vstv %s15934_s16  ;;  %v3114_v4 = vadd.bf16 %v3111_v54, %v3093_v63  ;;  %v16081_v63 = vld [vmem:[%s18444_s2 + $0xa0] sm:$0xff] }
 0x127   :  { %13179 = vmatpush3.bf16.msra.mxu0 %v14177_v1  ;;  %13162 = vmatprep.subr.bf16.mxu1 %v14156_v36  ;;  %s18539_s25 = smov (%p3139_p13, %s3144_s25), 2143289344  ;;  %s3161_s30 = sshrl.u32 %s15901_s4, 16  ;;  %v15994_v1 = vld [vmem:[%s18444_s2 + $0x48] sm:$0xff]  ;;  %v3132_v36 = vmul.bf16 %v16003_v50, %v3129_v2 }
 0x128   :  { %13180 = vmatprep.subr.bf16.mxu0 %v14179_v34  ;;  %s15962_s8 = sld [smem:[#allocation2 + $0x206]]  ;;  %s3147_s7 = sshrl.u32 %s18539_s25, 16  ;;  %v3131_v34 = vmul.bf16 %v15994_v1, %v3129_v2 }
 0x129   :  { %s3162_s28 = sand.u32 1, %s3161_s30  ;;  %s3148_s21 = sshll.u32 %s3147_s7, 16 }
 0x12a   :  { %13163 = vmatpush3.bf16.msra.mxu1 %v14158_v15  ;;  %s3163_s13 = sadd.s32 32767, %s3162_s28  ;;  %s3149_s14 = sor.u32 %s3148_s21, %s3147_s7  ;;  %v16016_v15 = vld [vmem:[%s18444_s2 + $0x60] sm:$0xff] }
 0x12b   :  { %13181 = vmatpush3.bf16.msra.mxu0 %v14181_v22  ;;  %13164 = vmatprep.subr.bf16.mxu1 %v14160_v30  ;;  %s3164_s10 = sadd.s32 %s15901_s4, %s3163_s13  ;;  %s15984_s19 = sld [smem:[#allocation2 + $0x207]]  ;;  %v3150_v22 = vstv %s3149_s14  ;;  %v16024_v30 = vld [vmem:[%s18444_s2 + $0x68] sm:$0xff] }
 0x12c   :  { %13182 = vmatprep.subr.bf16.mxu0 %v14183_v20  ;;  %s3165_s18 = sand.u32 4294901760, %s3164_s10  ;;  %v14172_v20 = vld [vmem:[#allocation7 + $0x6f0] sm:$0xff]   ;;  %v3153_v21 = vmul.bf16 %v16024_v30, %v3150_v22  ;;  %s16037_s12 = sld [smem:[#allocation2 + $0x208]] }
 0x12d   :  { %s18541_s18 = smov (%p3160_p0, %s3165_s18), 2143289344  ;;  %s16058_s24 = sld [smem:[#allocation2 + $0x280]] }
 0x12e   :  { %13165 = vmatpush3.bf16.msra.mxu1 %v14162_v40  ;;  %p3181_p1 = scmp.ne.f32.partialorder %s15962_s8, %s15962_s8  ;;  %s3182_s22 = sshrl.u32 %s15962_s8, 16  ;;  %v16048_v40 = vld [vmem:[%s18444_s2 + $0x80] sm:$0xff] }
 0x12f   :  { %13183 = vmatpush3.bf16.msra.mxu0 %v14185_v41  ;;  %13166 = vmatprep.subr.bf16.mxu1 %v14164_v59  ;;  %s3168_s4 = sshrl.u32 %s18541_s18, 16  ;;  %s3183_s23 = sand.u32 1, %s3182_s22  ;;  %v16033_v41 = vld [vmem:[%s18444_s2 + $0x70] sm:$0xff] }
 0x130   :  { %v12926_v11 = vpop.f32.mrf.mxu0  ;;  %v12948_v19 = vpop.f32.mrf.mxu1  ;;  %13184 = vmatprep.subr.bf16.mxu0 %v14187_v29  ;;  %s3169_s3 = sshll.u32 %s3168_s4, 16  ;;  %s3184_s27 = sadd.s32 32767, %s3183_s23  ;;  %v3154_v29 = vmul.bf16 %v16033_v41, %v3150_v22 }
 0x131   :  { %s3170_s29 = sor.u32 %s3169_s3, %s3168_s4  ;;  %s3185_s26 = sadd.s32 %s15962_s8, %s3184_s27 }
 0x132   :  { %v12927_v16 = vpop.f32.mrf.mxu0  ;;  %v12949_v12 = vpop.f32.mrf.mxu1  ;;  %13167 = vmatpush3.bf16.msra.mxu1 %v14166_v17  ;;  %s3186_s28 = sand.u32 4294901760, %s3185_s26  ;;  %p3202_p2 = scmp.ne.f32.partialorder %s15984_s19, %s15984_s19 }
 0x133   :  { %v12928_v52 = vadd.f32 %v12927_v16, %v12926_v11  ;;  %v12950_v24 = vadd.f32 %v12949_v12, %v12948_v19  ;;  %13185 = vmatpush3.bf16.msra.mxu0 %v14189_v56  ;;  %v3115_v11 = vadd.bf16 %v3112_v5, %v3094_v43  ;;  %v16009_v19 = vld [vmem:[%s18444_s2 + $0x58] sm:$0xff]  ;;  %13196 = vmatprep.subr.bf16.mxu1 %v14168_v61  ;;  %s18543_s28 = smov (%p3181_p1, %s3186_s28), 2143289344  ;;  %s3203_s11 = sshrl.u32 %s15984_s19, 16  ;;  %v14180_v56 = vld [vmem:[#allocation7 + $0x6e0] sm:$0xff]  }
 0x134   :  { %v12929_v39 = vpop.f32.mrf.mxu0  ;;  %v12951_v31 = vpop.f32.mrf.mxu1  ;;  %13186 = vmatprep.subr.bf16.mxu0 %v14191_v42  ;;  %v3133_v25 = vmul.bf16 %v16009_v19, %v3129_v2  ;;  %v14199_v16 = vld [vmem:[#allocation7 + $0x778] sm:$0xff]   ;;  %v3134_v12 = vadd.bf16 %v3131_v34, %v3113_v18  ;;  %s3189_s14 = sshrl.u32 %s18543_s28, 16  ;;  %s3204_s10 = sand.u32 1, %s3203_s11  ;;  %v16066_v42 = vld [vmem:[%s18444_s2 + $0x90] sm:$0xff] }
 0x135   :  { %v15926_v32 = vadd.f32 %v12950_v24, %v12928_v52  ;;  %3030 = vmatmul.mubr.bf16.vlgmr.msra.gmra.mxu1 %v12091_v7  ;;  %v3152_v52 = vmul.bf16 %v16016_v15, %v3150_v22  ;;  %v3135_v24 = vadd.bf16 %v3132_v36, %v3114_v4  ;;  %v3171_v39 = vstv %s3170_s29  ;;  %s3190_s9 = sshll.u32 %s3189_s14, 16  ;;  %s3205_s18 = sadd.s32 32767, %s3204_s10  ;;  %v14184_v2 = vld [vmem:[#allocation7 + $0x6d8] sm:$0xff]   ;;  %v16099_v34 = vld [vmem:[%s18444_s2 + $0xb0] sm:$0xff] }
 0x136   :  { %v12930_v48 = vpop.f32.mrf.mxu0  ;;  %v12952_v49 = vpop.f32.mrf.mxu1  ;;  %13197 = vmatpush3.bf16.msra.mxu1 %v14170_v8  ;;  %v3136_v31 = vadd.bf16 %v3133_v25, %v3115_v11  ;;  %v3174_v59 = vmul.bf16 %v16048_v40, %v3171_v39  ;;  %s3191_s22 = sor.u32 %s3190_s9, %s3189_s14  ;;  %s3206_s16 = sadd.s32 %s15984_s19, %s3205_s18  ;;  %v3175_v46 = vmul.bf16 %v16055_v60, %v3171_v39  ;;  %v14186_v8 = vld [vmem:[#allocation7 + $0x698] sm:$0xff]   ;;  %v14188_v25 = vld [vmem:[#allocation7 + $0x6d0] sm:$0xff]  }
 0x137   :  { %13187 = vmatpush3.bf16.msra.mxu0 %v14193_v55  ;;  %13198 = vmatprep.subr.bf16.mxu1 %v14172_v20  ;;  %v3155_v53 = vadd.bf16 %v3152_v52, %v3134_v12  ;;  %v3173_v48 = vmul.bf16 %v16042_v26, %v3171_v39  ;;  %v3156_v49 = vadd.bf16 %v3153_v21, %v3135_v24  ;;  %v3192_v33 = vstv %s3191_s22  ;;  %s3207_s23 = sand.u32 4294901760, %s3206_s16  ;;  %p3223_p3 = scmp.ne.f32.partialorder %s16037_s12, %s16037_s12  ;;  %v16075_v55 = vld [vmem:[%s18444_s2 + $0x98] sm:$0xff]  ;;  %v14190_v12 = vld [vmem:[#allocation7 + $0x690] sm:$0xff]  }
 0x138   :  { %13188 = vmatprep.subr.bf16.mxu0 %v14195_v0  ;;  %v3157_v37 = vadd.bf16 %v3154_v29, %v3136_v31  ;;  %s18545_s23 = smov (%p3202_p2, %s3207_s23), 2143289344  ;;  %v3194_v17 = vmul.bf16 %v16066_v42, %v3192_v33  ;;  %s3224_s27 = sshrl.u32 %s16037_s12, 16  ;;  %v3195_v47 = vmul.bf16 %v16075_v55, %v3192_v33  ;;  %v3196_v54 = vmul.bf16 %v16081_v63, %v3192_v33  ;;  %v16105_v22 = vld [vmem:[%s18444_s2 + $0xb8] sm:$0xff]  ;;  %v14192_v31 = vld [vmem:[#allocation7 + $0x6c8] sm:$0xff]  }
 0x139   :  { %v3176_v10 = vadd.bf16 %v3173_v48, %v3155_v53  ;;  %v3177_v61 = vadd.bf16 %v3174_v59, %v3156_v49  ;;  %s3210_s19 = sshrl.u32 %s18545_s23, 16  ;;  %s3225_s30 = sand.u32 1, %s3224_s27  ;;  %v16120_v53 = vld [vmem:[%s18444_s2 + $0xc0] sm:$0xff]  ;;  %v16126_v49 = vld [vmem:[%s18444_s2 + $0xc8] sm:$0xff]  ;;  %v16132_v59 = vld [vmem:[%s18444_s2 + $0xd0] sm:$0xff] }
 0x13a   :  { %13199 = vmatpush3.bf16.msra.mxu1 %v14174_v45  ;;  %v3178_v62 = vadd.bf16 %v3175_v46, %v3157_v37  ;;  %s3211_s1 = sshll.u32 %s3210_s19, 16  ;;  %s3226_s6 = sadd.s32 32767, %s3225_s30  ;;  %v14194_v37 = vld [vmem:[#allocation7 + $0x688] sm:$0xff]   ;;  %v14196_v46 = vld [vmem:[#allocation7 + $0x6c0] sm:$0xff]  }
 0x13b   :  { %13189 = vmatpush3.bf16.msra.mxu0 %v14197_v14  ;;  %13200 = vmatprep.subr.bf16.mxu1 %v14176_v38  ;;  %s3212_s21 = sor.u32 %s3211_s1, %s3210_s19  ;;  %s3227_s13 = sadd.s32 %s16037_s12, %s3226_s6  ;;  %v3197_v43 = vadd.bf16 %v3194_v17, %v3176_v10  ;;  %v3198_v0 = vadd.bf16 %v3195_v47, %v3177_v61  ;;  %v16090_v14 = vld [vmem:[%s18444_s2 + $0xa8] sm:$0xff]  ;;  %v14198_v10 = vld [vmem:[#allocation7 + $0x680] sm:$0xff]  }
 0x13c   :  { %13218 = vmatprep.subr.bf16.mxu0 %v14199_v16  ;;  %v3213_v5 = vstv %s3212_s21  ;;  %s3228_s11 = sand.u32 4294901760, %s3227_s13  ;;  %p3774_p4 = scmp.ne.f32.partialorder %s16058_s24, %s16058_s24  ;;  %v3199_v36 = vadd.bf16 %v3196_v54, %v3178_v62  ;;  %v14200_v62 = vld [vmem:[#allocation7 + $0x7f8] sm:$0xff]  }
 0x13d   :  { %v3215_v18 = vmul.bf16 %v16090_v14, %v3213_v5  ;;  %s18547_s11 = smov (%p3223_p3, %s3228_s11), 2143289344  ;;  %v3216_v4 = vmul.bf16 %v16099_v34, %v3213_v5  ;;  %v3217_v11 = vmul.bf16 %v16105_v22, %v3213_v5  ;;  %s3775_s12 = sshrl.u32 %s16058_s24, 16  ;;  %v14201_v5 = vld [vmem:[#allocation7 + $0x738] sm:$0xff]  }
 0x13e   :  { %13201 = vmatpush3.bf16.msra.mxu1 %v14178_v51  ;;  %s16109_s0 = sld [smem:[#allocation5 + $0x5]]  ;;  %s3231_s20 = sshrl.u32 %s18547_s11, 16 }
 0x13f   :  { %13202 = vmatprep.subr.bf16.mxu1 %v14180_v56  ;;  %s3776_s22 = sand.u32 1, %s3775_s12  ;;  %s3232_s16 = sshll.u32 %s3231_s20, 16  ;;  %v3218_v24 = vadd.bf16 %v3215_v18, %v3197_v43  ;;  %v3219_v21 = vadd.bf16 %v3216_v4, %v3198_v0  ;;  %v3220_v45 = vadd.bf16 %v3217_v11, %v3199_v36  ;;  %v14203_v0 = vld [vmem:[#allocation7 + $0x770] sm:$0xff]   ;;  %v14207_v11 = vld [vmem:[#allocation7 + $0x768] sm:$0xff]  }
 0x140   :  { %s3777_s15 = sadd.s32 32767, %s3776_s22  ;;  %s3233_s4 = sor.u32 %s3232_s16, %s3231_s20  ;;  %v14204_v4 = vld [vmem:[#allocation7 + $0x7f0] sm:$0xff]  }
 0x141   :  { %s3778_s23 = sadd.s32 %s16058_s24, %s3777_s15  ;;  %v3234_v29 = vstv %s3233_s4  ;;  %s16115_s3 = sld [smem:[#allocation2 + $0x281]]  ;;  %v14205_v36 = vld [vmem:[#allocation7 + $0x730] sm:$0xff]  }
 0x142   :  { %13203 = vmatpush3.bf16.msra.mxu1 %v14182_v6  ;;  %s3779_s25 = sand.u32 4294901760, %s3778_s23  ;;  %v3236_v48 = vmul.bf16 %v16120_v53, %v3234_v29  ;;  %v3238_v51 = vmul.bf16 %v16132_v59, %v3234_v29  ;;  %s16155_s8 = sld [smem:[#allocation2 + $0x282]] }
 0x143   :  { %13204 = vmatprep.subr.bf16.mxu1 %v14184_v2  ;;  %s18549_s25 = smov (%p3774_p4, %s3779_s25), 2143289344  ;;  %s16162_s16 = sld [smem:[#allocation2 + $0x283]] }
 0x144   :  { %p3792_p5 = scmp.ne.f32.partialorder %s16109_s0, %s16109_s0  ;;  %s3793_s28 = sshrl.u32 %s16109_s0, 16  ;;  %v3239_v56 = vadd.bf16 %v3236_v48, %v3218_v24  ;;  %v3241_v6 = vadd.bf16 %v3238_v51, %v3220_v45  ;;  %v14212_v24 = vld [vmem:[#allocation7 + $0x7e0] sm:$0xff]   ;;  %v14215_v45 = vld [vmem:[#allocation7 + $0x758] sm:$0xff]   ;;  %v14219_v51 = vld [vmem:[#allocation7 + $0x750] sm:$0xff]  }
 0x145   :  { %s3782_s1 = sshrl.u32 %s18549_s25, 16  ;;  %s3794_s6 = sand.u32 1, %s3793_s28  ;;  %v14217_v48 = vld [vmem:[#allocation7 + $0x718] sm:$0xff]  }
 0x146   :  { %13205 = vmatpush3.bf16.msra.mxu1 %v14186_v8  ;;  %s3783_s21 = sshll.u32 %s3782_s1, 16  ;;  %s3795_s13 = sadd.s32 32767, %s3794_s6  ;;  %v3242_v17 = vmax.bf16 %v15004_v13, %v3239_v56  ;;  %v16144_v47 = vmax.bf16 %v15004_v13, %v3241_v6 }
 0x147   :  { %13206 = vmatprep.subr.bf16.mxu1 %v14188_v25  ;;  %s16146_s24 = sor.u32 %s3783_s21, %s3782_s1  ;;  %s3796_s11 = sadd.s32 %s16109_s0, %s3795_s13  ;;  %v14206_v25 = vld [vmem:[#allocation7 + $0x7b0] sm:$0xff]  }
 0x148   :  { %s3797_s14 = sand.u32 4294901760, %s3796_s11  ;;  %p3810_p6 = scmp.ne.f32.partialorder %s16115_s3, %s16115_s3  ;;  %v12152_v54 = vcombine.high %v3242_v17, %v3242_v17  ;;  %v12151_v43 = vcombine.low %v3242_v17, %v3242_v17  ;;  %v12156_v8 = vcombine.high %v16144_v47, %v16144_v47 }
 0x149   :  { %s18551_s14 = smov (%p3792_p5, %s3797_s14), 2143289344  ;;  %s3811_s10 = sshrl.u32 %s16115_s3, 16 }
 0x14a   :  { %13207 = vmatpush3.bf16.msra.mxu1 %v14190_v12  ;;  %3683 = vmatprep.mubr.bf16.mxu0 %v12152_v54  ;;  %s3800_s17 = sshrl.u32 %s18551_s14, 16  ;;  %s3812_s9 = sand.u32 1, %s3811_s10  ;;  %v14211_v12 = vld [vmem:[#allocation7 + $0x760] sm:$0xff]  }
 0x14b   :  { %13208 = vmatprep.subr.bf16.mxu1 %v14192_v31  ;;  %3684 = vmatmul.mubr.bf16.vlgmr.msra.gmra.mxu0 %v12151_v43  ;;  %s3801_s18 = sshll.u32 %s3800_s17, 16  ;;  %s3813_s12 = sadd.s32 32767, %s3812_s9  ;;  %v14214_v31 = vld [vmem:[#allocation7 + $0x7a0] sm:$0xff]  }
 0x14c   :  { %13219 = vmatpush3.bf16.msra.mxu0 %v14201_v5  ;;  %s16159_s0 = sor.u32 %s3801_s18, %s3800_s17  ;;  %s3814_s20 = sadd.s32 %s16115_s3, %s3813_s12  ;;  %3763 = vmatprep.mubr.bf16.mxu0 %v12156_v8  ;;  %v14223_v5 = vld [vmem:[#allocation7 + $0x748] sm:$0xff]  }
 0x14d   :  { %13220 = vmatprep.subr.bf16.mxu0 %v14203_v0  ;;  %s3815_s22 = sand.u32 4294901760, %s3814_s20  ;;  %p3831_p7 = scmp.ne.f32.partialorder %s16155_s8, %s16155_s8 }
 0x14e   :  { %13209 = vmatpush3.bf16.msra.mxu1 %v14194_v37  ;;  %s18553_s22 = smov (%p3810_p6, %s3815_s22), 2143289344  ;;  %s3832_s15 = sshrl.u32 %s16155_s8, 16 }
 0x14f   :  { %13210 = vmatprep.subr.bf16.mxu1 %v14196_v46  ;;  %s3818_s4 = sshrl.u32 %s18553_s22, 16  ;;  %s3833_s23 = sand.u32 1, %s3832_s15  ;;  %v14218_v46 = vld [vmem:[#allocation7 + $0x798] sm:$0xff]  }
 0x150   :  { %v12970_v7 = vpop.f32.mrf.mxu0  ;;  %13221 = vmatpush3.bf16.msra.mxu0 %v14205_v36  ;;  %s3819_s25 = sshll.u32 %s3818_s4, 16  ;;  %s3834_s3 = sadd.s32 32767, %s3833_s23 }
 0x151   :  { %13222 = vmatprep.subr.bf16.mxu0 %v14207_v11  ;;  %s16170_s27 = sor.u32 %s3819_s25, %s3818_s4  ;;  %s3835_s29 = sadd.s32 %s16155_s8, %s3834_s3 }
 0x152   :  { %v12971_v20 = vpop.f32.mrf.mxu0  ;;  %13211 = vmatpush3.bf16.msra.mxu1 %v14198_v10  ;;  %s3836_s26 = sand.u32 4294901760, %s3835_s29  ;;  %p3852_p8 = scmp.ne.f32.partialorder %s16162_s16, %s16162_s16  ;;  %v3821_v54 = vstv %s16170_s27 }
 0x153   :  { %v12972_v16 = vadd.f32 %v12971_v20, %v12970_v7  ;;  %v14202_v7 = vld [vmem:[#allocation7 + $0x7b8] sm:$0xff]   ;;  %13240 = vmatprep.subr.bf16.mxu1 %v14200_v62  ;;  %v14209_v20 = vld [vmem:[#allocation7 + $0x728] sm:$0xff]   ;;  %s18555_s26 = smov (%p3831_p7, %s3836_s26), 2143289344  ;;  %s3853_s19 = sshrl.u32 %s16162_s16, 16  ;;  %v3803_v62 = vstv %s16159_s0  ;;  %v3824_v36 = vmul.bf16 %v15948_v44, %v3821_v54 }
 0x154   :  { %v12973_v52 = vpop.f32.mrf.mxu0  ;;  %13223 = vmatpush3.bf16.msra.mxu0 %v14209_v20  ;;  %s16179_s30 = sld [smem:[#allocation2 + $0x284]]  ;;  %s3839_s7 = sshrl.u32 %s18555_s26, 16 }
 0x155   :  { %v16113_v39 = vadd.f32 %v12972_v16, %v15926_v32  ;;  %v3237_v32 = vmul.bf16 %v16126_v49, %v3234_v29  ;;  %v14208_v16 = vld [vmem:[#allocation7 + $0x7e8] sm:$0xff]   ;;  %13224 = vmatprep.subr.bf16.mxu0 %v14211_v12  ;;  %s3854_s28 = sand.u32 1, %s3853_s19  ;;  %v14216_v29 = vld [vmem:[#allocation7 + $0x7d8] sm:$0xff]   ;;  %s3840_s1 = sshll.u32 %s3839_s7, 16  ;;  %v3825_v12 = vmul.bf16 %v15958_v9, %v3821_v54 }
 0x156   :  { %v12974_v38 = vpop.f32.mrf.mxu0  ;;  %v14210_v52 = vld [vmem:[#allocation7 + $0x7a8] sm:$0xff]   ;;  %s3855_s6 = sadd.s32 32767, %s3854_s28  ;;  %s16182_s21 = sor.u32 %s3840_s1, %s3839_s7 }
 0x157   :  { %v3240_v33 = vadd.bf16 %v3237_v32, %v3219_v21  ;;  %v14213_v21 = vld [vmem:[#allocation7 + $0x720] sm:$0xff]   ;;  %v3785_v32 = vstv %s16146_s24  ;;  %s3856_s13 = sadd.s32 %s16162_s16, %s3855_s6  ;;  %s16185_s14 = sld [smem:[#allocation2 + $0x285]]  ;;  %v3842_v20 = vstv %s16182_s21 }
 0x158   :  { %13225 = vmatpush3.bf16.msra.mxu0 %v14213_v21  ;;  %s3857_s11 = sand.u32 4294901760, %s3856_s13  ;;  %v3787_v6 = vmul.bf16 %v15911_v28, %v3785_v32  ;;  %v3788_v17 = vmul.bf16 %v15920_v35, %v3785_v32  ;;  %v3789_v43 = vmul.bf16 %v15931_v23, %v3785_v32  ;;  %v14220_v28 = vld [vmem:[#allocation7 + $0x7d0] sm:$0xff]   ;;  %v3823_v23 = vmul.bf16 %v15940_v58, %v3821_v54  ;;  %v14227_v58 = vld [vmem:[#allocation7 + $0x740] sm:$0xff]   ;;  %s16212_s22 = sld [smem:[#allocation2 + $0x286]] }
 0x159   :  { %v3243_v61 = vmax.bf16 %v15004_v13, %v3240_v33  ;;  %13226 = vmatprep.subr.bf16.mxu0 %v14215_v45  ;;  %s18557_s11 = smov (%p3852_p8, %s3857_s11), 2143289344  ;;  %v14221_v33 = vld [vmem:[#allocation7 + $0x710] sm:$0xff]   ;;  %v14228_v21 = vld [vmem:[#allocation7 + $0x7c0] sm:$0xff]   ;;  %s16221_s29 = sld [smem:[#allocation2 + $0x287]] }
 0x15a   :  { %p3873_p9 = scmp.ne.f32.partialorder %s16179_s30, %s16179_s30  ;;  %s3874_s24 = sshrl.u32 %s16179_s30, 16  ;;  %v14229_v45 = vld [vmem:[#allocation7 + $0x700] sm:$0xff]  }
 0x15b   :  { %v12154_v2 = vcombine.high %v3243_v61, %v3243_v61  ;;  %v12153_v18 = vcombine.low %v3243_v61, %v3243_v61  ;;  %s3860_s10 = sshrl.u32 %s18557_s11, 16  ;;  %s3875_s8 = sand.u32 1, %s3874_s24 }
 0x15c   :  { %13227 = vmatpush3.bf16.msra.mxu0 %v14217_v48  ;;  %s3861_s17 = sshll.u32 %s3860_s10, 16  ;;  %s3876_s9 = sadd.s32 32767, %s3875_s8 }
 0x15d   :  { %3723 = vmatprep.mubr.bf16.mxu1 %v12154_v2  ;;  %13228 = vmatprep.subr.bf16.mxu0 %v14219_v51  ;;  %s16199_s18 = sor.u32 %s3861_s17, %s3860_s10  ;;  %s3877_s12 = sadd.s32 %s16179_s30, %s3876_s9  ;;  %v3846_v51 = vmul.bf16 %v15981_v3, %v3842_v20 }
 0x15e   :  { %3724 = vmatmul.mubr.bf16.vlgmr.msra.gmra.mxu1 %v12153_v18  ;;  %v3805_v18 = vadd.bf16 %v3803_v62, %v3787_v6  ;;  %s3878_s0 = sand.u32 4294901760, %s3877_s12  ;;  %p3894_p10 = scmp.ne.f32.partialorder %s16185_s14, %s16185_s14  ;;  %v3863_v48 = vstv %s16199_s18 }
 0x15f   :  { %13241 = vmatpush3.bf16.msra.mxu1 %v14202_v7  ;;  %v14222_v7 = vld [vmem:[#allocation7 + $0x790] sm:$0xff]   ;;  %s18559_s0 = smov (%p3873_p9, %s3878_s0), 2143289344  ;;  %s3895_s20 = sshrl.u32 %s16185_s14, 16  ;;  %v3866_v6 = vmul.bf16 %v16003_v50, %v3863_v48 }
 0x160   :  { %13242 = vmatprep.subr.bf16.mxu1 %v14204_v4  ;;  %v3806_v4 = vadd.bf16 %v3803_v62, %v3788_v17  ;;  %13229 = vmatpush3.bf16.msra.mxu0 %v14221_v33  ;;  %s3881_s16 = sshrl.u32 %s18559_s0, 16  ;;  %s3896_s15 = sand.u32 1, %s3895_s20  ;;  %v14232_v33 = vld [vmem:[#allocation7 + $0x8f8] sm:$0xff]  }
 0x161   :  { %13230 = vmatprep.subr.bf16.mxu0 %v14223_v5  ;;  %s3882_s4 = sshll.u32 %s3881_s16, 16  ;;  %s3897_s23 = sadd.s32 32767, %s3896_s15  ;;  %v14233_v17 = vld [vmem:[#allocation7 + $0x838] sm:$0xff]  }
 0x162   :  { %v3827_v9 = vadd.bf16 %v3824_v36, %v3806_v4  ;;  %s3883_s25 = sor.u32 %s3882_s4, %s3881_s16  ;;  %s3898_s3 = sadd.s32 %s16185_s14, %s3897_s23 }
 0x163   :  { %13243 = vmatpush3.bf16.msra.mxu1 %v14206_v25  ;;  %v14225_v25 = vld [vmem:[#allocation7 + $0x708] sm:$0xff]   ;;  %s3899_s27 = sand.u32 4294901760, %s3898_s3  ;;  %p3915_p11 = scmp.ne.f32.partialorder %s16212_s22, %s16212_s22 }
 0x164   :  { %13244 = vmatprep.subr.bf16.mxu1 %v14208_v16  ;;  %v3807_v16 = vadd.bf16 %v3803_v62, %v3789_v43  ;;  %13231 = vmatpush3.bf16.msra.mxu0 %v14225_v25  ;;  %s18561_s27 = smov (%p3894_p10, %s3899_s27), 2143289344  ;;  %s3916_s26 = sshrl.u32 %s16212_s22, 16  ;;  %v3867_v62 = vmul.bf16 %v16009_v19, %v3863_v48  ;;  %v14237_v43 = vld [vmem:[#allocation7 + $0x830] sm:$0xff]  }
 0x165   :  { %13232 = vmatprep.subr.bf16.mxu0 %v14227_v58  ;;  %s3902_s19 = sshrl.u32 %s18561_s27, 16  ;;  %s3917_s30 = sand.u32 1, %s3916_s26 }
 0x166   :  { %v3828_v32 = vadd.bf16 %v3825_v12, %v3807_v16  ;;  %s3903_s7 = sshll.u32 %s3902_s19, 16  ;;  %s3918_s28 = sadd.s32 32767, %s3917_s30 }
 0x167   :  { %v12992_v38 = vpop.f32.mrf.mxu1  ;;  %13245 = vmatpush3.bf16.msra.mxu1 %v14210_v52  ;;  %s3904_s1 = sor.u32 %s3903_s7, %s3902_s19  ;;  %s3919_s6 = sadd.s32 %s16212_s22, %s3918_s28 }
 0x168   :  { %13246 = vmatprep.subr.bf16.mxu1 %v14212_v24  ;;  %v14226_v24 = vld [vmem:[#allocation7 + $0x788] sm:$0xff]   ;;  %13233 = vmatpush3.bf16.msra.mxu0 %v14229_v45  ;;  %s3920_s21 = sand.u32 4294901760, %s3919_s6  ;;  %p3936_p12 = scmp.ne.f32.partialorder %s16221_s29, %s16221_s29  ;;  %v3905_v19 = vstv %s3904_s1  ;;  %v14251_v45 = vld [vmem:[#allocation7 + $0x850] sm:$0xff]  }
 0x169   :  { %v12993_v37 = vpop.f32.mrf.mxu1  ;;  %s18563_s21 = smov (%p3915_p11, %s3920_s21), 2143289344  ;;  %s3937_s13 = sshrl.u32 %s16221_s29, 16 }
 0x16a   :  { %v12994_v56 = vadd.f32 %v12993_v37, %v12992_v38  ;;  %v3845_v38 = vmul.bf16 %v15973_v27, %v3842_v20  ;;  %v14230_v37 = vld [vmem:[#allocation7 + $0x780] sm:$0xff]   ;;  %v12155_v27 = vcombine.low %v16144_v47, %v16144_v47  ;;  %v3849_v47 = vadd.bf16 %v3846_v51, %v3828_v32  ;;  %s16244_s11 = sld [smem:[#allocation2 + $0x288]]  ;;  %s3923_s14 = sshrl.u32 %s18563_s21, 16  ;;  %v14255_v51 = vld [vmem:[#allocation7 + $0x848] sm:$0xff]  }
 0x16b   :  { %v12995_v10 = vpop.f32.mrf.mxu1  ;;  %13247 = vmatpush3.bf16.msra.mxu1 %v14214_v31  ;;  %v3826_v31 = vadd.bf16 %v3823_v23, %v3805_v18  ;;  %s3938_s24 = sand.u32 1, %s3937_s13  ;;  %s3924_s10 = sshll.u32 %s3923_s14, 16 }
 0x16c   :  { %v1485_v2 = vadd.f32 %v12994_v56, %v16113_v39  ;;  %13248 = vmatprep.subr.bf16.mxu1 %v14216_v29  ;;  %v14224_v39 = vld [vmem:[#allocation7 + $0x7c8] sm:$0xff]   ;;  %v3844_v29 = vmul.bf16 %v15967_v57, %v3842_v20  ;;  %v14231_v57 = vld [vmem:[#allocation7 + $0x878] sm:$0xff]   ;;  %v3865_v56 = vmul.bf16 %v15994_v1, %v3863_v48  ;;  %v3848_v3 = vadd.bf16 %v3845_v38, %v3827_v9  ;;  %s3939_s8 = sadd.s32 32767, %s3938_s24  ;;  %s3925_s17 = sor.u32 %s3924_s10, %s3923_s14 }
 0x16d   :  { %v12996_v35 = vpop.f32.mrf.mxu1  ;;  %v3884_v10 = vstv %s3883_s25  ;;  %13262 = vmatprep.subr.bf16.mxu0 %v14231_v57  ;;  %3764 = vmatmul.mubr.bf16.vlgmr.msra.gmra.mxu0 %v12155_v27  ;;  %s3940_s9 = sadd.s32 %s16221_s29, %s3939_s8  ;;  %v3926_v18 = vstv %s3925_s17  ;;  %s16250_s12 = sld [smem:[#allocation2 + $0x300]] }
 0x16e   :  { %v3886_v50 = vmul.bf16 %v16016_v15, %v3884_v10  ;;  %v3869_v54 = vadd.bf16 %v3866_v6, %v3848_v3  ;;  %13263 = vmatpush3.bf16.msra.mxu0 %v14233_v17  ;;  %v3888_v5 = vmul.bf16 %v16033_v41, %v3884_v10  ;;  %v14239_v15 = vld [vmem:[#allocation7 + $0x868] sm:$0xff]   ;;  %v3908_v41 = vmul.bf16 %v16048_v40, %v3905_v19  ;;  %s3941_s18 = sand.u32 4294901760, %s3940_s9  ;;  %v14245_v40 = vld [vmem:[#allocation7 + $0x820] sm:$0xff]   ;;  %s16271_s27 = sld [smem:[#allocation5 + $0x6]]  ;;  %v14236_v17 = vld [vmem:[#allocation7 + $0x8f0] sm:$0xff]  }
 0x16f   :  { %13249 = vmatpush3.bf16.msra.mxu1 %v14218_v46  ;;  %v3847_v46 = vadd.bf16 %v3844_v29, %v3826_v31  ;;  %s18565_s18 = smov (%p3936_p12, %s3941_s18), 2143289344  ;;  %v3928_v4 = vmul.bf16 %v16066_v42, %v3926_v18  ;;  %v3930_v25 = vmul.bf16 %v16081_v63, %v3926_v18  ;;  %v14247_v42 = vld [vmem:[#allocation7 + $0x858] sm:$0xff]   ;;  %s16277_s6 = sld [smem:[#allocation2 + $0x301]] }
 0x170   :  { %v13014_v61 = vpop.f32.mrf.mxu0  ;;  %13250 = vmatprep.subr.bf16.mxu1 %v14220_v28  ;;  %v3870_v28 = vadd.bf16 %v3867_v62, %v3849_v47  ;;  %p3957_p13 = scmp.ne.f32.partialorder %s16244_s11, %s16244_s11  ;;  %s3958_s0 = sshrl.u32 %s16244_s11, 16  ;;  %v14249_v63 = vld [vmem:[#allocation7 + $0x818] sm:$0xff]   ;;  %v14261_v62 = vld [vmem:[#allocation7 + $0x800] sm:$0xff]  }
 0x171   :  { %v3868_v1 = vadd.bf16 %v3865_v56, %v3847_v46  ;;  %s3944_s20 = sshrl.u32 %s18565_s18, 16  ;;  %s3959_s22 = sand.u32 1, %s3958_s0  ;;  %v14257_v56 = vld [vmem:[#allocation7 + $0x808] sm:$0xff]  }
 0x172   :  { %v13015_v0 = vpop.f32.mrf.mxu0  ;;  %s3945_s16 = sshll.u32 %s3944_s20, 16  ;;  %s3960_s15 = sadd.s32 32767, %s3959_s22 }
 0x173   :  { %v13016_v8 = vadd.f32 %v13015_v0, %v13014_v61  ;;  %13251 = vmatpush3.bf16.msra.mxu1 %v14222_v7  ;;  %v14235_v61 = vld [vmem:[#allocation7 + $0x870] sm:$0xff]   ;;  %v3889_v35 = vadd.bf16 %v3886_v50, %v3868_v1  ;;  %v14241_v0 = vld [vmem:[#allocation7 + $0x828] sm:$0xff]   ;;  %s3946_s4 = sor.u32 %s3945_s16, %s3944_s20  ;;  %s3961_s23 = sadd.s32 %s16244_s11, %s3960_s15 }
 0x174   :  { %v13017_v11 = vpop.f32.mrf.mxu0  ;;  %13252 = vmatprep.subr.bf16.mxu1 %v14224_v39  ;;  %13264 = vmatprep.subr.bf16.mxu0 %v14235_v61  ;;  %v3909_v39 = vmul.bf16 %v16055_v60, %v3905_v19  ;;  %v3947_v16 = vstv %s3946_s4  ;;  %s3962_s25 = sand.u32 4294901760, %s3961_s23  ;;  %p4508_p0 = scmp.ne.f32.partialorder %s16250_s12, %s16250_s12 }
 0x175   :  { %v16214_v52 = vadd.f32 %v13016_v8, %v1485_v2  ;;  %v3887_v2 = vmul.bf16 %v16024_v30, %v3884_v10  ;;  %v3907_v30 = vmul.bf16 %v16042_v26, %v3905_v19  ;;  %13265 = vmatpush3.bf16.msra.mxu0 %v14237_v43  ;;  %v3891_v8 = vadd.bf16 %v3888_v5, %v3870_v28  ;;  %v14243_v26 = vld [vmem:[#allocation7 + $0x860] sm:$0xff]   ;;  %s18567_s25 = smov (%p3957_p13, %s3962_s25), 2143289344  ;;  %s4509_s3 = sshrl.u32 %s16250_s12, 16  ;;  %v14240_v19 = vld [vmem:[#allocation7 + $0x8e8] sm:$0xff]   ;;  %v14265_v28 = vld [vmem:[#allocation7 + $0x938] sm:$0xff]  }
 0x176   :  { %v13018_v44 = vpop.f32.mrf.mxu0  ;;  %13266 = vmatprep.subr.bf16.mxu0 %v14239_v15  ;;  %v3929_v11 = vmul.bf16 %v16075_v55, %v3926_v18  ;;  %v3949_v58 = vmul.bf16 %v16090_v14, %v3947_v16  ;;  %s3965_s29 = sshrl.u32 %s18567_s25, 16  ;;  %s4510_s26 = sand.u32 1, %s4509_s3  ;;  %v14267_v5 = vld [vmem:[#allocation7 + $0x970] sm:$0xff]   ;;  %v14242_v15 = vld [vmem:[#allocation7 + $0x8a8] sm:$0xff]   ;;  %v14250_v18 = vld [vmem:[#allocation7 + $0x898] sm:$0xff]  }
 0x177   :  { %13253 = vmatpush3.bf16.msra.mxu1 %v14226_v24  ;;  %v3890_v7 = vadd.bf16 %v3887_v2, %v3869_v54  ;;  %v3910_v23 = vadd.bf16 %v3907_v30, %v3889_v35  ;;  %v3912_v60 = vadd.bf16 %v3909_v39, %v3891_v8  ;;  %v3950_v44 = vmul.bf16 %v16099_v34, %v3947_v16  ;;  %s3966_s19 = sshll.u32 %s3965_s29, 16  ;;  %s4511_s30 = sadd.s32 32767, %s4510_s26  ;;  %v14253_v34 = vld [vmem:[#allocation7 + $0x810] sm:$0xff]   ;;  %v14263_v54 = vld [vmem:[#allocation7 + $0x978] sm:$0xff]   ;;  %v14244_v35 = vld [vmem:[#allocation7 + $0x8e0] sm:$0xff]  }
 0x178   :  { %13254 = vmatprep.subr.bf16.mxu1 %v14228_v21  ;;  %v3951_v21 = vmul.bf16 %v16105_v22, %v3947_v16  ;;  %s3967_s7 = sor.u32 %s3966_s19, %s3965_s29  ;;  %s4512_s28 = sadd.s32 %s16250_s12, %s4511_s30  ;;  %v14238_v2 = vld [vmem:[#allocation7 + $0x8b0] sm:$0xff]   ;;  %v14273_v8 = vld [vmem:[#allocation7 + $0x928] sm:$0xff]   ;;  %v14275_v39 = vld [vmem:[#allocation7 + $0x960] sm:$0xff]  }
 0x179   :  { %v3911_v36 = vadd.bf16 %v3908_v41, %v3890_v7  ;;  %13267 = vmatpush3.bf16.msra.mxu0 %v14241_v0  ;;  %v3931_v20 = vadd.bf16 %v3928_v4, %v3910_v23  ;;  %v3933_v24 = vadd.bf16 %v3930_v25, %v3912_v60  ;;  %v3968_v32 = vstv %s3967_s7  ;;  %s4513_s1 = sand.u32 4294901760, %s4512_s28  ;;  %p4526_p1 = scmp.ne.f32.partialorder %s16271_s27, %s16271_s27  ;;  %v14269_v30 = vld [vmem:[#allocation7 + $0x930] sm:$0xff]   ;;  %v14271_v0 = vld [vmem:[#allocation7 + $0x968] sm:$0xff]   ;;  %v14246_v7 = vld [vmem:[#allocation7 + $0x8a0] sm:$0xff]  }
 0x17a   :  { %13268 = vmatprep.subr.bf16.mxu0 %v14243_v26  ;;  %v3971_v27 = vmul.bf16 %v16126_v49, %v3968_v32  ;;  %v3972_v46 = vmul.bf16 %v16132_v59, %v3968_v32  ;;  %s18569_s1 = smov (%p4508_p0, %s4513_s1), 2143289344  ;;  %s4527_s21 = sshrl.u32 %s16271_s27, 16  ;;  %v14234_v59 = vld [vmem:[#allocation7 + $0x8b8] sm:$0xff]   ;;  %v14252_v26 = vld [vmem:[#allocation7 + $0x8d0] sm:$0xff]   ;;  %v14277_v23 = vld [vmem:[#allocation7 + $0x920] sm:$0xff]  }
 0x17b   :  { %13255 = vmatpush3.bf16.msra.mxu1 %v14230_v37  ;;  %v3932_v55 = vadd.bf16 %v3929_v11, %v3911_v36  ;;  %v3952_v9 = vadd.bf16 %v3949_v58, %v3931_v20  ;;  %v3954_v38 = vadd.bf16 %v3951_v21, %v3933_v24  ;;  %v3970_v37 = vmul.bf16 %v16120_v53, %v3968_v32  ;;  %s4516_s13 = sshrl.u32 %s18569_s1, 16  ;;  %s4528_s11 = sand.u32 1, %s4527_s21  ;;  %v14259_v53 = vld [vmem:[#allocation7 + $0x840] sm:$0xff]   ;;  %v14248_v41 = vld [vmem:[#allocation7 + $0x8d8] sm:$0xff]   ;;  %v14254_v60 = vld [vmem:[#allocation7 + $0x890] sm:$0xff]  }
 0x17c   :  { %13284 = vmatprep.subr.bf16.mxu1 %v14232_v33  ;;  %s4517_s14 = sshll.u32 %s4516_s13, 16  ;;  %s4529_s24 = sadd.s32 32767, %s4528_s11  ;;  %v14279_v36 = vld [vmem:[#allocation7 + $0x958] sm:$0xff]   ;;  %v16342_v20 = vld [vmem:[%s18444_s2] sm:$0xff]  ;;  %v16360_v21 = vld [vmem:[%s18444_s2 + $0x10] sm:$0xff] }
 0x17d   :  { %13269 = vmatpush3.bf16.msra.mxu0 %v14245_v40  ;;  %v3953_v22 = vadd.bf16 %v3950_v44, %v3932_v55  ;;  %v3975_v3 = vadd.bf16 %v3972_v46, %v3954_v38  ;;  %s16293_s10 = sor.u32 %s4517_s14, %s4516_s13  ;;  %s4530_s8 = sadd.s32 %s16271_s27, %s4529_s24  ;;  %v16351_v55 = vld [vmem:[%s18444_s2 + $0x8] sm:$0xff]  ;;  %v14260_v38 = vld [vmem:[#allocation7 + $0x8c0] sm:$0xff]  }
 0x17e   :  { %13270 = vmatprep.subr.bf16.mxu0 %v14247_v42  ;;  %s4531_s17 = sand.u32 4294901760, %s4530_s8  ;;  %p4544_p2 = scmp.ne.f32.partialorder %s16277_s6, %s16277_s6  ;;  %v4519_v40 = vstv %s16293_s10  ;;  %v14281_v42 = vld [vmem:[#allocation7 + $0x918] sm:$0xff]  }
 0x17f   :  { %v3974_v33 = vadd.bf16 %v3971_v27, %v3953_v22  ;;  %v16291_v10 = vmax.bf16 %v15004_v13, %v3975_v3  ;;  %s18571_s17 = smov (%p4526_p1, %s4531_s17), 2143289344  ;;  %s4545_s9 = sshrl.u32 %s16277_s6, 16  ;;  %v4521_v16 = vmul.bf16 %v16342_v20, %v4519_v40  ;;  %v16377_v27 = vld [vmem:[%s18444_s2 + $0x20] sm:$0xff] }
 0x180   :  { %s16304_s18 = sld [smem:[#allocation2 + $0x302]]  ;;  %s4534_s12 = sshrl.u32 %s18571_s17, 16 }
 0x181   :  { %13271 = vmatpush3.bf16.msra.mxu0 %v14249_v63  ;;  %v3977_v6 = vmax.bf16 %v15004_v13, %v3974_v33  ;;  %v12220_v50 = vcombine.high %v16291_v10, %v16291_v10  ;;  %s4546_s0 = sand.u32 1, %s4545_s9  ;;  %s4535_s20 = sshll.u32 %s4534_s12, 16 }
 0x182   :  { %13272 = vmatprep.subr.bf16.mxu0 %v14251_v45  ;;  %s4547_s22 = sadd.s32 32767, %s4546_s0  ;;  %s16306_s16 = sor.u32 %s4535_s20, %s4534_s12  ;;  %v4523_v45 = vmul.bf16 %v16360_v21, %v4519_v40 }
 0x183   :  { %v12218_v1 = vcombine.high %v3977_v6, %v3977_v6  ;;  %v12217_v43 = vcombine.low %v3977_v6, %v3977_v6  ;;  %s4548_s15 = sadd.s32 %s16277_s6, %s4547_s22  ;;  %s16309_s23 = sld [smem:[#allocation2 + $0x303]]  ;;  %v4537_v44 = vstv %s16306_s16  ;;  %v14287_v6 = vld [vmem:[#allocation7 + $0x948] sm:$0xff]  }
 0x184   :  { %s4549_s4 = sand.u32 4294901760, %s4548_s15  ;;  %s16326_s1 = sld [smem:[#allocation2 + $0x304]]  ;;  %v4539_v32 = vadd.bf16 %v4537_v44, %v4521_v16  ;;  %v16447_v16 = vld [vmem:[%s18444_s2 + $0x60] sm:$0xff] }
 0x185   :  { %13273 = vmatpush3.bf16.msra.mxu0 %v14253_v34  ;;  %4457 = vmatprep.mubr.bf16.mxu0 %v12218_v1  ;;  %s18573_s4 = smov (%p4544_p2, %s4549_s4), 2143289344  ;;  %s16332_s17 = sld [smem:[#allocation2 + $0x305]]  ;;  %v14258_v34 = vld [vmem:[#allocation7 + $0x888] sm:$0xff]   ;;  %v16398_v1 = vld [vmem:[%s18444_s2 + $0x30] sm:$0xff] }
 0x186   :  { %13274 = vmatprep.subr.bf16.mxu0 %v14255_v51  ;;  %p4565_p3 = scmp.ne.f32.partialorder %s16304_s18, %s16304_s18  ;;  %s4566_s25 = sshrl.u32 %s16304_s18, 16  ;;  %v16369_v51 = vld [vmem:[%s18444_s2 + $0x18] sm:$0xff] }
 0x187   :  { %v13036_v12 = vpop.f32.mrf.mxu1  ;;  %s4552_s3 = sshrl.u32 %s18573_s4, 16  ;;  %s4567_s27 = sand.u32 1, %s4566_s25 }
 0x188   :  { %s4553_s29 = sshll.u32 %s4552_s3, 16  ;;  %s4568_s26 = sadd.s32 32767, %s4567_s27 }
 0x189   :  { %v13037_v31 = vpop.f32.mrf.mxu1  ;;  %13275 = vmatpush3.bf16.msra.mxu0 %v14257_v56  ;;  %s16317_s19 = sor.u32 %s4553_s29, %s4552_s3  ;;  %s4569_s30 = sadd.s32 %s16304_s18, %s4568_s26 }
 0x18a   :  { %v13038_v29 = vadd.f32 %v13037_v31, %v13036_v12  ;;  %13276 = vmatprep.subr.bf16.mxu0 %v14259_v53  ;;  %s4570_s7 = sand.u32 4294901760, %s4569_s30  ;;  %p4586_p4 = scmp.ne.f32.partialorder %s16309_s23, %s16309_s23  ;;  %v4522_v12 = vmul.bf16 %v16351_v55, %v4519_v40  ;;  %v4555_v24 = vstv %s16317_s19  ;;  %v14256_v31 = vld [vmem:[#allocation7 + $0x8c8] sm:$0xff]   ;;  %v4541_v53 = vadd.bf16 %v4537_v44, %v4523_v45 }
 0x18b   :  { %v13039_v14 = vpop.f32.mrf.mxu1  ;;  %s18575_s7 = smov (%p4565_p3, %s4570_s7), 2143289344  ;;  %s4587_s28 = sshrl.u32 %s16309_s23, 16  ;;  %v4558_v46 = vmul.bf16 %v16377_v27, %v4555_v24 }
 0x18c   :  { %v16274_v48 = vadd.f32 %v13038_v29, %v16214_v52  ;;  %v3973_v52 = vadd.bf16 %v3970_v37, %v3952_v9  ;;  %s4573_s6 = sshrl.u32 %s18575_s7, 16  ;;  %s4588_s21 = sand.u32 1, %s4587_s28  ;;  %v14283_v29 = vld [vmem:[#allocation7 + $0x950] sm:$0xff]   ;;  %v4540_v37 = vadd.bf16 %v4537_v44, %v4522_v12 }
 0x18d   :  { %v13040_v57 = vpop.f32.mrf.mxu1  ;;  %13277 = vmatpush3.bf16.msra.mxu0 %v14261_v62  ;;  %s4574_s13 = sshll.u32 %s4573_s6, 16  ;;  %s4589_s11 = sadd.s32 32767, %s4588_s21 }
 0x18e   :  { %v3976_v49 = vmax.bf16 %v15004_v13, %v3973_v52  ;;  %13306 = vmatprep.subr.bf16.mxu0 %v14263_v54  ;;  %s16329_s14 = sor.u32 %s4574_s13, %s4573_s6  ;;  %s4590_s24 = sadd.s32 %s16309_s23, %s4589_s11  ;;  %v4557_v57 = vmul.bf16 %v16369_v51, %v4555_v24  ;;  %v14285_v52 = vld [vmem:[#allocation7 + $0x910] sm:$0xff]   ;;  %v4561_v54 = vadd.bf16 %v4558_v46, %v4540_v37  ;;  %v16479_v37 = vld [vmem:[%s18444_s2 + $0x80] sm:$0xff] }
 0x18f   :  { %s4591_s8 = sand.u32 4294901760, %s4590_s24  ;;  %p4607_p5 = scmp.ne.f32.partialorder %s16326_s1, %s16326_s1  ;;  %v4576_v33 = vstv %s16329_s14 }
 0x190   :  { %v12216_v61 = vcombine.high %v3976_v49, %v3976_v49  ;;  %v12215_v47 = vcombine.low %v3976_v49, %v3976_v49  ;;  %4458 = vmatmul.mubr.bf16.vlgmr.msra.gmra.mxu0 %v12217_v43  ;;  %s18577_s8 = smov (%p4586_p4, %s4591_s8), 2143289344  ;;  %s4608_s18 = sshrl.u32 %s16326_s1, 16  ;;  %v16389_v49 = vld [vmem:[%s18444_s2 + $0x28] sm:$0xff]  ;;  %v4560_v62 = vadd.bf16 %v4557_v57, %v4539_v32 }
 0x191   :  { %13307 = vmatpush3.bf16.msra.mxu0 %v14265_v28  ;;  %s4594_s20 = sshrl.u32 %s18577_s8, 16  ;;  %s4609_s22 = sand.u32 1, %s4608_s18  ;;  %v14289_v43 = vld [vmem:[#allocation7 + $0x908] sm:$0xff]  }
 0x192   :  { %4417 = vmatprep.mubr.bf16.mxu1 %v12216_v61  ;;  %13308 = vmatprep.subr.bf16.mxu0 %v14267_v5  ;;  %s4595_s23 = sshll.u32 %s4594_s20, 16  ;;  %s4610_s25 = sadd.s32 32767, %s4609_s22  ;;  %v14262_v61 = vld [vmem:[#allocation7 + $0x880] sm:$0xff]  }
 0x193   :  { %4418 = vmatmul.mubr.bf16.vlgmr.msra.gmra.mxu1 %v12215_v47  ;;  %s16363_s16 = sor.u32 %s4595_s23, %s4594_s20  ;;  %s4611_s3 = sadd.s32 %s16326_s1, %s4610_s25  ;;  %v14264_v47 = vld [vmem:[#allocation7 + $0x9f8] sm:$0xff]  }
 0x194   :  { %13285 = vmatpush3.bf16.msra.mxu1 %v14234_v59  ;;  %4497 = vmatprep.mubr.bf16.mxu1 %v12220_v50  ;;  %s4612_s26 = sand.u32 4294901760, %s4611_s3  ;;  %p4628_p6 = scmp.ne.f32.partialorder %s16332_s17, %s16332_s17  ;;  %v4559_v59 = vmul.bf16 %v16389_v49, %v4555_v24  ;;  %v4578_v50 = vmul.bf16 %v16398_v1, %v4576_v33  ;;  %v4597_v28 = vstv %s16363_s16  ;;  %v14270_v24 = vld [vmem:[#allocation7 + $0x9b0] sm:$0xff]  }
 0x195   :  { %13286 = vmatprep.subr.bf16.mxu1 %v14236_v17  ;;  %13309 = vmatpush3.bf16.msra.mxu0 %v14269_v30  ;;  %s18579_s26 = smov (%p4607_p5, %s4612_s26), 2143289344  ;;  %s4629_s6 = sshrl.u32 %s16332_s17, 16  ;;  %v14291_v30 = vld [vmem:[#allocation7 + $0x940] sm:$0xff]  }
 0x196   :  { %13310 = vmatprep.subr.bf16.mxu0 %v14271_v0  ;;  %s16393_s21 = sld [smem:[#allocation2 + $0x306]]  ;;  %s4615_s1 = sshrl.u32 %s18579_s26, 16  ;;  %v4562_v5 = vadd.bf16 %v4559_v59, %v4541_v53  ;;  %v12219_v0 = vcombine.low %v16291_v10, %v16291_v10  ;;  %v16434_v10 = vld [vmem:[%s18444_s2 + $0x50] sm:$0xff]  ;;  %v14276_v53 = vld [vmem:[#allocation7 + $0x9e0] sm:$0xff]  }
 0x197   :  { %s4630_s13 = sand.u32 1, %s4629_s6  ;;  %s4616_s24 = sshll.u32 %s4615_s1, 16 }
 0x198   :  { %13287 = vmatpush3.bf16.msra.mxu1 %v14238_v2  ;;  %s4631_s8 = sadd.s32 32767, %s4630_s13  ;;  %v16404_v2 = vld [vmem:[%s18444_s2 + $0x38] sm:$0xff]  ;;  %s4617_s18 = sor.u32 %s4616_s24, %s4615_s1 }
 0x199   :  { %13288 = vmatprep.subr.bf16.mxu1 %v14240_v19  ;;  %13311 = vmatpush3.bf16.msra.mxu0 %v14273_v8  ;;  %v4579_v19 = vmul.bf16 %v16404_v2, %v4576_v33  ;;  %s4632_s12 = sadd.s32 %s16332_s17, %s4631_s8  ;;  %s16415_s15 = sld [smem:[#allocation2 + $0x307]]  ;;  %v4581_v8 = vadd.bf16 %v4578_v50, %v4560_v62  ;;  %v16506_v62 = vld [vmem:[%s18444_s2 + $0x98] sm:$0xff] }
 0x19a   :  { %13312 = vmatprep.subr.bf16.mxu0 %v14275_v39  ;;  %s4633_s22 = sand.u32 4294901760, %s4632_s12  ;;  %v16425_v39 = vld [vmem:[%s18444_s2 + $0x48] sm:$0xff]  ;;  %s16468_s9 = sld [smem:[#allocation2 + $0x308]] }
 0x19b   :  { %s18581_s22 = smov (%p4628_p6, %s4633_s22), 2143289344  ;;  %s16489_s29 = sld [smem:[#allocation2 + $0x380]] }
 0x19c   :  { %13289 = vmatpush3.bf16.msra.mxu1 %v14242_v15  ;;  %v16412_v15 = vld [vmem:[%s18444_s2 + $0x40] sm:$0xff]  ;;  %p4649_p7 = scmp.ne.f32.partialorder %s16393_s21, %s16393_s21  ;;  %s4650_s25 = sshrl.u32 %s16393_s21, 16 }
 0x19d   :  { %13290 = vmatprep.subr.bf16.mxu1 %v14244_v35  ;;  %13313 = vmatpush3.bf16.msra.mxu0 %v14277_v23  ;;  %v4580_v35 = vmul.bf16 %v16412_v15, %v4576_v33  ;;  %v4600_v23 = vmul.bf16 %v16434_v10, %v4597_v28  ;;  %s4636_s17 = sshrl.u32 %s18581_s22, 16  ;;  %s4651_s27 = sand.u32 1, %s4650_s25 }
 0x19e   :  { %v13058_v4 = vpop.f32.mrf.mxu0  ;;  %13314 = vmatprep.subr.bf16.mxu0 %v14279_v36  ;;  %v16440_v36 = vld [vmem:[%s18444_s2 + $0x58] sm:$0xff]  ;;  %s4637_s19 = sshll.u32 %s4636_s17, 16  ;;  %s4652_s30 = sadd.s32 32767, %s4651_s27 }
 0x19f   :  { %v4583_v40 = vadd.bf16 %v4580_v35, %v4562_v5  ;;  %s4638_s7 = sor.u32 %s4637_s19, %s4636_s17  ;;  %s4653_s28 = sadd.s32 %s16393_s21, %s4652_s30 }
 0x1a0   :  { %13291 = vmatpush3.bf16.msra.mxu1 %v14246_v7  ;;  %v13059_v11 = vpop.f32.mrf.mxu0  ;;  %v14266_v7 = vld [vmem:[#allocation7 + $0x9b8] sm:$0xff]   ;;  %s4654_s13 = sand.u32 4294901760, %s4653_s28  ;;  %p4670_p8 = scmp.ne.f32.partialorder %s16415_s15, %s16415_s15  ;;  %v4639_v45 = vstv %s4638_s7 }
 0x1a1   :  { %13292 = vmatprep.subr.bf16.mxu1 %v14248_v41  ;;  %v13060_v25 = vadd.f32 %v13059_v11, %v13058_v4  ;;  %13315 = vmatpush3.bf16.msra.mxu0 %v14281_v42  ;;  %v14293_v41 = vld [vmem:[#allocation7 + $0x900] sm:$0xff]   ;;  %v4618_v4 = vstv %s4617_s18  ;;  %v4601_v11 = vmul.bf16 %v16440_v36, %v4597_v28  ;;  %s18583_s13 = smov (%p4649_p7, %s4654_s13), 2143289344  ;;  %s4671_s10 = sshrl.u32 %s16415_s15, 16  ;;  %v4642_v46 = vmul.bf16 %v16479_v37, %v4639_v45 }
 0x1a2   :  { %v13061_v63 = vpop.f32.mrf.mxu0  ;;  %13316 = vmatprep.subr.bf16.mxu0 %v14283_v29  ;;  %v4620_v12 = vmul.bf16 %v16447_v16, %v4618_v4  ;;  %v16464_v29 = vld [vmem:[%s18444_s2 + $0x70] sm:$0xff]  ;;  %s4657_s18 = sshrl.u32 %s18583_s13, 16  ;;  %s4672_s12 = sand.u32 1, %s4671_s10 }
 0x1a3   :  { %v16455_v63 = vld [vmem:[%s18444_s2 + $0x68] sm:$0xff]  ;;  %s4658_s20 = sshll.u32 %s4657_s18, 16  ;;  %s4673_s22 = sadd.s32 32767, %s4672_s12 }
 0x1a4   :  { %13293 = vmatpush3.bf16.msra.mxu1 %v14250_v18  ;;  %v13062_v9 = vpop.f32.mrf.mxu0  ;;  %v4599_v18 = vmul.bf16 %v16425_v39, %v4597_v28  ;;  %v4621_v44 = vmul.bf16 %v16455_v63, %v4618_v4  ;;  %s4659_s25 = sor.u32 %s4658_s20, %s4657_s18  ;;  %s4674_s16 = sadd.s32 %s16415_s15, %s4673_s22  ;;  %v16512_v28 = vld [vmem:[%s18444_s2 + $0xa0] sm:$0xff] }
 0x1a5   :  { %13294 = vmatprep.subr.bf16.mxu1 %v14252_v26  ;;  %13317 = vmatpush3.bf16.msra.mxu0 %v14285_v52  ;;  %v4582_v26 = vadd.bf16 %v4579_v19, %v4561_v54  ;;  %v14272_v9 = vld [vmem:[#allocation7 + $0x9e8] sm:$0xff]   ;;  %v4660_v59 = vstv %s4659_s25  ;;  %s4675_s27 = sand.u32 4294901760, %s4674_s16  ;;  %p4691_p9 = scmp.ne.f32.partialorder %s16468_s9, %s16468_s9  ;;  %v14278_v54 = vld [vmem:[#allocation7 + $0x9a0] sm:$0xff]   ;;  %v14280_v19 = vld [vmem:[#allocation7 + $0x9d8] sm:$0xff]  }
 0x1a6   :  { %13318 = vmatprep.subr.bf16.mxu0 %v14287_v6  ;;  %v4602_v42 = vadd.bf16 %v4599_v18, %v4581_v8  ;;  %v16486_v52 = vld [vmem:[%s18444_s2 + $0x88] sm:$0xff]  ;;  %s18585_s27 = smov (%p4670_p8, %s4675_s27), 2143289344  ;;  %s4692_s30 = sshrl.u32 %s16468_s9, 16  ;;  %v4663_v50 = vmul.bf16 %v16506_v62, %v4660_v59  ;;  %v4664_v5 = vmul.bf16 %v16512_v28, %v4660_v59 }
 0x1a7   :  { %v13080_v58 = vpop.f32.mrf.mxu1  ;;  %v4643_v33 = vmul.bf16 %v16486_v52, %v4639_v45  ;;  %s4678_s15 = sshrl.u32 %s18585_s27, 16  ;;  %s4693_s6 = sand.u32 1, %s4692_s30  ;;  %v16521_v8 = vld [vmem:[%s18444_s2 + $0xa8] sm:$0xff] }
 0x1a8   :  { %13295 = vmatpush3.bf16.msra.mxu1 %v14254_v60  ;;  %v14268_v60 = vld [vmem:[#allocation7 + $0x9f0] sm:$0xff]   ;;  %s4679_s11 = sshll.u32 %s4678_s15, 16  ;;  %s4694_s14 = sadd.s32 32767, %s4693_s6 }
 0x1a9   :  { %v13081_v14 = vpop.f32.mrf.mxu1  ;;  %13296 = vmatprep.subr.bf16.mxu1 %v14256_v31  ;;  %13319 = vmatpush3.bf16.msra.mxu0 %v14289_v43  ;;  %v4604_v31 = vadd.bf16 %v4601_v11, %v4583_v40  ;;  %s4680_s24 = sor.u32 %s4679_s11, %s4678_s15  ;;  %s4695_s8 = sadd.s32 %s16468_s9, %s4694_s14  ;;  %v16536_v40 = vld [vmem:[%s18444_s2 + $0xb8] sm:$0xff] }
 0x1aa   :  { %v13082_v22 = vadd.f32 %v13081_v14, %v13080_v58  ;;  %13320 = vmatprep.subr.bf16.mxu0 %v14291_v30  ;;  %v4603_v58 = vadd.bf16 %v4600_v23, %v4582_v26  ;;  %v4622_v14 = vmul.bf16 %v16464_v29, %v4618_v4  ;;  %v4681_v30 = vstv %s4680_s24  ;;  %s4696_s10 = sand.u32 4294901760, %s4695_s8  ;;  %p5242_p10 = scmp.ne.f32.partialorder %s16489_s29, %s16489_s29  ;;  %v16530_v26 = vld [vmem:[%s18444_s2 + $0xb0] sm:$0xff] }
 0x1ab   :  { %v13083_v56 = vpop.f32.mrf.mxu1  ;;  %v4683_v18 = vmul.bf16 %v16521_v8, %v4681_v30  ;;  %s18587_s10 = smov (%p4691_p9, %s4696_s10), 2143289344  ;;  %v4684_v23 = vmul.bf16 %v16530_v26, %v4681_v30  ;;  %v4685_v11 = vmul.bf16 %v16536_v40, %v4681_v30  ;;  %s5243_s9 = sshrl.u32 %s16489_s29, 16 }
 0x1ac   :  { %v16384_v3 = vadd.f32 %v13082_v22, %v13060_v25  ;;  %13297 = vmatpush3.bf16.msra.mxu1 %v14258_v34  ;;  %v14295_v25 = vld [vmem:[#allocation7 + $0xa78] sm:$0xff]   ;;  %v14274_v34 = vld [vmem:[#allocation7 + $0x9a8] sm:$0xff]   ;;  %v4623_v22 = vadd.bf16 %v4620_v12, %v4602_v42  ;;  %v4624_v57 = vadd.bf16 %v4621_v44, %v4603_v58  ;;  %v4625_v56 = vadd.bf16 %v4622_v14, %v4604_v31  ;;  %s16540_s4 = sld [smem:[#allocation5 + $0x7]]  ;;  %s4699_s23 = sshrl.u32 %s18587_s10, 16  ;;  %v14286_v12 = vld [vmem:[#allocation7 + $0x990] sm:$0xff]  }
 0x1ad   :  { %v13084_v17 = vpop.f32.mrf.mxu1  ;;  %13298 = vmatprep.subr.bf16.mxu1 %v14260_v38  ;;  %13321 = vmatpush3.bf16.msra.mxu0 %v14293_v41  ;;  %v16473_v38 = vld [vmem:[%s18444_s2 + $0x78] sm:$0xff]  ;;  %s5244_s25 = sand.u32 1, %s5243_s9  ;;  %s4700_s16 = sshll.u32 %s4699_s23, 16  ;;  %v14288_v14 = vld [vmem:[#allocation7 + $0x9c8] sm:$0xff]  }
 0x1ae   :  { %13350 = vmatprep.subr.bf16.mxu0 %v14295_v25  ;;  %v4641_v32 = vmul.bf16 %v16473_v38, %v4639_v45  ;;  %v16497_v17 = vld [vmem:[%s18444_s2 + $0x90] sm:$0xff]  ;;  %v4646_v43 = vadd.bf16 %v4643_v33, %v4625_v56  ;;  %v14282_v41 = vld [vmem:[#allocation7 + $0x998] sm:$0xff]   ;;  %s5245_s3 = sadd.s32 32767, %s5244_s25  ;;  %s4701_s17 = sor.u32 %s4700_s16, %s4699_s23 }
 0x1af   :  { %s5246_s27 = sadd.s32 %s16489_s29, %s5245_s3  ;;  %s16544_s19 = sld [smem:[#allocation2 + $0x381]] }
 0x1b0   :  { %13299 = vmatpush3.bf16.msra.mxu1 %v14262_v61  ;;  %v4644_v6 = vadd.bf16 %v4641_v32, %v4623_v22  ;;  %v4662_v61 = vmul.bf16 %v16497_v17, %v4660_v59  ;;  %v4667_v4 = vadd.bf16 %v4664_v5, %v4646_v43  ;;  %s5247_s26 = sand.u32 4294901760, %s5246_s27  ;;  %v16549_v22 = vld [vmem:[%s18444_s2 + $0xc0] sm:$0xff]  ;;  %v14296_v43 = vld [vmem:[#allocation7 + $0xaf8] sm:$0xff]   ;;  %s16587_s21 = sld [smem:[#allocation2 + $0x382]] }
 0x1b1   :  { %13328 = vmatprep.subr.bf16.mxu1 %v14264_v47  ;;  %v4645_v47 = vadd.bf16 %v4642_v46, %v4624_v57  ;;  %v16561_v46 = vld [vmem:[%s18444_s2 + $0xd0] sm:$0xff]  ;;  %s18589_s26 = smov (%p5242_p10, %s5247_s26), 2143289344  ;;  %s16594_s16 = sld [smem:[#allocation2 + $0x383]] }
 0x1b2   :  { %v4665_v35 = vadd.bf16 %v4662_v61, %v4644_v6  ;;  %v4688_v45 = vadd.bf16 %v4685_v11, %v4667_v4  ;;  %p5260_p11 = scmp.ne.f32.partialorder %s16540_s4, %s16540_s4  ;;  %s5261_s13 = sshrl.u32 %s16540_s4, 16  ;;  %v14300_v4 = vld [vmem:[#allocation7 + $0xaf0] sm:$0xff]  }
 0x1b3   :  { %4498 = vmatmul.mubr.bf16.vlgmr.msra.gmra.mxu1 %v12219_v0  ;;  %v4666_v0 = vadd.bf16 %v4663_v50, %v4645_v47  ;;  %s5250_s11 = sshrl.u32 %s18589_s26, 16  ;;  %s5262_s14 = sand.u32 1, %s5261_s13  ;;  %v14292_v47 = vld [vmem:[#allocation7 + $0x9c0] sm:$0xff]   ;;  %v14301_v11 = vld [vmem:[#allocation7 + $0xa30] sm:$0xff]  }
 0x1b4   :  { %13329 = vmatpush3.bf16.msra.mxu1 %v14266_v7  ;;  %v4686_v44 = vadd.bf16 %v4683_v18, %v4665_v35  ;;  %s5251_s24 = sshll.u32 %s5250_s11, 16  ;;  %s5263_s29 = sadd.s32 32767, %s5262_s14 }
 0x1b5   :  { %13330 = vmatprep.subr.bf16.mxu1 %v14268_v60  ;;  %v14284_v60 = vld [vmem:[#allocation7 + $0x9d0] sm:$0xff]   ;;  %s16578_s8 = sor.u32 %s5251_s24, %s5250_s11  ;;  %s5264_s10 = sadd.s32 %s16540_s4, %s5263_s29 }
 0x1b6   :  { %s5265_s18 = sand.u32 4294901760, %s5264_s10  ;;  %p5278_p12 = scmp.ne.f32.partialorder %s16544_s19, %s16544_s19 }
 0x1b7   :  { %s18591_s18 = smov (%p5260_p11, %s5265_s18), 2143289344  ;;  %s5279_s12 = sshrl.u32 %s16544_s19, 16 }
 0x1b8   :  { %13331 = vmatpush3.bf16.msra.mxu1 %v14270_v24  ;;  %v4687_v24 = vadd.bf16 %v4684_v23, %v4666_v0  ;;  %v14297_v0 = vld [vmem:[#allocation7 + $0xa38] sm:$0xff]   ;;  %s5268_s0 = sshrl.u32 %s18591_s18, 16  ;;  %s5280_s20 = sand.u32 1, %s5279_s12 }
 0x1b9   :  { %13332 = vmatprep.subr.bf16.mxu1 %v14272_v9  ;;  %v4702_v9 = vstv %s4701_s17  ;;  %s5269_s22 = sshll.u32 %s5268_s0, 16  ;;  %s5281_s9 = sadd.s32 32767, %s5280_s20 }
 0x1ba   :  { %v4704_v32 = vmul.bf16 %v16549_v22, %v4702_v9  ;;  %v4706_v56 = vmul.bf16 %v16561_v46, %v4702_v9  ;;  %s16591_s4 = sor.u32 %s5269_s22, %s5268_s0  ;;  %s5282_s23 = sadd.s32 %s16544_s19, %s5281_s9 }
 0x1bb   :  { %s5283_s25 = sand.u32 4294901760, %s5282_s23  ;;  %p5299_p13 = scmp.ne.f32.partialorder %s16587_s21, %s16587_s21 }
 0x1bc   :  { %13333 = vmatpush3.bf16.msra.mxu1 %v14274_v34  ;;  %v4707_v59 = vadd.bf16 %v4704_v32, %v4686_v44  ;;  %v4709_v61 = vadd.bf16 %v4706_v56, %v4688_v45  ;;  %s18593_s25 = smov (%p5278_p12, %s5283_s25), 2143289344  ;;  %s5300_s3 = sshrl.u32 %s16587_s21, 16  ;;  %v14306_v44 = vld [vmem:[#allocation7 + $0xaa8] sm:$0xff]   ;;  %v14309_v45 = vld [vmem:[#allocation7 + $0xa20] sm:$0xff]   ;;  %v14315_v56 = vld [vmem:[#allocation7 + $0xa50] sm:$0xff]  }
 0x1bd   :  { %13334 = vmatprep.subr.bf16.mxu1 %v14276_v53  ;;  %v14290_v53 = vld [vmem:[#allocation7 + $0x988] sm:$0xff]   ;;  %s5286_s17 = sshrl.u32 %s18593_s25, 16  ;;  %s5301_s27 = sand.u32 1, %s5300_s3 }
 0x1be   :  { %v13102_v7 = vpop.f32.mrf.mxu0  ;;  %v4710_v50 = vmax.bf16 %v15004_v13, %v4707_v59  ;;  %s5287_s26 = sshll.u32 %s5286_s17, 16  ;;  %s5302_s19 = sadd.s32 32767, %s5301_s27  ;;  %v14314_v59 = vld [vmem:[#allocation7 + $0xa98] sm:$0xff]  }
 0x1bf   :  { %s16602_s30 = sor.u32 %s5287_s26, %s5286_s17  ;;  %s5303_s7 = sadd.s32 %s16587_s21, %s5302_s19 }
 0x1c0   :  { %13335 = vmatpush3.bf16.msra.mxu1 %v14278_v54  ;;  %v13103_v25 = vpop.f32.mrf.mxu0  ;;  %v12280_v5 = vcombine.high %v4710_v50, %v4710_v50  ;;  %v12279_v30 = vcombine.low %v4710_v50, %v4710_v50  ;;  %s5304_s28 = sand.u32 4294901760, %s5303_s7  ;;  %p5320_p0 = scmp.ne.f32.partialorder %s16594_s16, %s16594_s16 }
 0x1c1   :  { %13336 = vmatprep.subr.bf16.mxu1 %v14280_v19  ;;  %v13104_v42 = vadd.f32 %v13103_v25, %v13102_v7  ;;  %v16576_v19 = vmax.bf16 %v15004_v13, %v4709_v61  ;;  %v14299_v7 = vld [vmem:[#allocation7 + $0xa70] sm:$0xff]   ;;  %s18595_s28 = smov (%p5299_p13, %s5304_s28), 2143289344  ;;  %s5321_s15 = sshrl.u32 %s16594_s16, 16 }
 0x1c2   :  { %v13105_v58 = vpop.f32.mrf.mxu0  ;;  %5151 = vmatprep.mubr.bf16.mxu0 %v12280_v5  ;;  %v14302_v25 = vld [vmem:[#allocation7 + $0xab0] sm:$0xff]   ;;  %s16611_s6 = sld [smem:[#allocation2 + $0x384]]  ;;  %s5307_s1 = sshrl.u32 %s18595_s28, 16  ;;  %v14319_v5 = vld [vmem:[#allocation7 + $0xa48] sm:$0xff]  }
 0x1c3   :  { %v2298_v31 = vadd.f32 %v13104_v42, %v16384_v3  ;;  %v16555_v3 = vld [vmem:[%s18444_s2 + $0xc8] sm:$0xff]  ;;  %v12284_v18 = vcombine.high %v16576_v19, %v16576_v19  ;;  %5152 = vmatmul.mubr.bf16.vlgmr.msra.gmra.mxu0 %v12279_v30  ;;  %v14307_v58 = vld [vmem:[#allocation7 + $0xa60] sm:$0xff]   ;;  %s5322_s13 = sand.u32 1, %s5321_s15  ;;  %s5308_s11 = sshll.u32 %s5307_s1, 16  ;;  %v14316_v61 = vld [vmem:[#allocation7 + $0xad0] sm:$0xff]   ;;  %v5289_v30 = vstv %s16602_s30 }
 0x1c4   :  { %13337 = vmatpush3.bf16.msra.mxu1 %v14282_v41  ;;  %v13106_v34 = vpop.f32.mrf.mxu0  ;;  %v4705_v57 = vmul.bf16 %v16555_v3, %v4702_v9  ;;  %v14298_v41 = vld [vmem:[#allocation7 + $0xab8] sm:$0xff]   ;;  %13351 = vmatpush3.bf16.msra.mxu0 %v14297_v0  ;;  %v14305_v42 = vld [vmem:[#allocation7 + $0xa28] sm:$0xff]   ;;  %s5323_s14 = sadd.s32 32767, %s5322_s13  ;;  %s16614_s24 = sor.u32 %s5308_s11, %s5307_s1 }
 0x1c5   :  { %13338 = vmatprep.subr.bf16.mxu1 %v14284_v60  ;;  %v16568_v33 = vadd.f32 %v2298_v31, %v16274_v48  ;;  %v14294_v48 = vld [vmem:[#allocation7 + $0x980] sm:$0xff]   ;;  %13352 = vmatprep.subr.bf16.mxu0 %v14299_v7  ;;  %v14303_v60 = vld [vmem:[#allocation7 + $0xa68] sm:$0xff]   ;;  %v14311_v31 = vld [vmem:[#allocation7 + $0xa58] sm:$0xff]   ;;  %s5324_s29 = sadd.s32 %s16594_s16, %s5323_s14  ;;  %s16617_s18 = sld [smem:[#allocation2 + $0x385]] }
 0x1c6   :  { %v4708_v6 = vadd.bf16 %v4705_v57, %v4687_v24  ;;  %5231 = vmatprep.mubr.bf16.mxu0 %v12284_v18  ;;  %v14308_v24 = vld [vmem:[#allocation7 + $0xae0] sm:$0xff]   ;;  %v14312_v9 = vld [vmem:[#allocation7 + $0xad8] sm:$0xff]   ;;  %v5253_v57 = vstv %s16578_s8  ;;  %s5325_s10 = sand.u32 4294901760, %s5324_s29  ;;  %v14320_v18 = vld [vmem:[#allocation7 + $0xac8] sm:$0xff]   ;;  %s16643_s25 = sld [smem:[#allocation2 + $0x386]] }
 0x1c7   :  { %v14313_v34 = vld [vmem:[#allocation7 + $0xa18] sm:$0xff]   ;;  %s18597_s10 = smov (%p5320_p0, %s5325_s10), 2143289344  ;;  %v5256_v50 = vmul.bf16 %v16351_v55, %v5253_v57  ;;  %v5257_v0 = vmul.bf16 %v16360_v21, %v5253_v57  ;;  %v14318_v55 = vld [vmem:[#allocation7 + $0xa90] sm:$0xff]   ;;  %s16652_s7 = sld [smem:[#allocation2 + $0x387]] }
 0x1c8   :  { %13339 = vmatpush3.bf16.msra.mxu1 %v14286_v12  ;;  %v4711_v54 = vmax.bf16 %v15004_v13, %v4708_v6  ;;  %13353 = vmatpush3.bf16.msra.mxu0 %v14301_v11  ;;  %v14304_v12 = vld [vmem:[#allocation7 + $0xae8] sm:$0xff]   ;;  %p5341_p1 = scmp.ne.f32.partialorder %s16611_s6, %s16611_s6  ;;  %s5342_s8 = sshrl.u32 %s16611_s6, 16  ;;  %v5292_v11 = vmul.bf16 %v16377_v27, %v5289_v30 }
 0x1c9   :  { %13340 = vmatprep.subr.bf16.mxu1 %v14288_v14  ;;  %13354 = vmatprep.subr.bf16.mxu0 %v14303_v60  ;;  %v14310_v14 = vld [vmem:[#allocation7 + $0xaa0] sm:$0xff]   ;;  %s5328_s12 = sshrl.u32 %s18597_s10, 16  ;;  %s5343_s21 = sand.u32 1, %s5342_s8 }
 0x1ca   :  { %v12282_v35 = vcombine.high %v4711_v54, %v4711_v54  ;;  %v12281_v23 = vcombine.low %v4711_v54, %v4711_v54  ;;  %s5329_s0 = sshll.u32 %s5328_s12, 16  ;;  %s5344_s20 = sadd.s32 32767, %s5343_s21 }
 0x1cb   :  { %s16630_s22 = sor.u32 %s5329_s0, %s5328_s12  ;;  %s5345_s9 = sadd.s32 %s16611_s6, %s5344_s20 }
 0x1cc   :  { %13341 = vmatpush3.bf16.msra.mxu1 %v14290_v53  ;;  %5191 = vmatprep.mubr.bf16.mxu1 %v12282_v35  ;;  %v5271_v35 = vstv %s16591_s4  ;;  %s5346_s4 = sand.u32 4294901760, %s5345_s9  ;;  %p5362_p2 = scmp.ne.f32.partialorder %s16617_s18, %s16617_s18 }
 0x1cd   :  { %13342 = vmatprep.subr.bf16.mxu1 %v14292_v47  ;;  %13355 = vmatpush3.bf16.msra.mxu0 %v14305_v42  ;;  %v5255_v47 = vmul.bf16 %v16342_v20, %v5253_v57  ;;  %v5274_v21 = vadd.bf16 %v5271_v35, %v5256_v50  ;;  %v5310_v42 = vstv %s16614_s24  ;;  %s18599_s4 = smov (%p5341_p1, %s5346_s4), 2143289344  ;;  %s5363_s23 = sshrl.u32 %s16617_s18, 16 }
 0x1ce   :  { %13356 = vmatprep.subr.bf16.mxu0 %v14307_v58  ;;  %v5293_v58 = vmul.bf16 %v16389_v49, %v5289_v30  ;;  %s5349_s16 = sshrl.u32 %s18599_s4, 16  ;;  %s5364_s3 = sand.u32 1, %s5363_s23 }
 0x1cf   :  { %s5350_s17 = sshll.u32 %s5349_s16, 16  ;;  %s5365_s27 = sadd.s32 32767, %s5364_s3  ;;  %v5295_v49 = vadd.bf16 %v5292_v11, %v5274_v21  ;;  %v14341_v21 = vld [vmem:[#allocation7 + $0xb20] sm:$0xff]  }
 0x1d0   :  { %13343 = vmatpush3.bf16.msra.mxu1 %v14294_v48  ;;  %s5351_s26 = sor.u32 %s5350_s17, %s5349_s16  ;;  %s5366_s19 = sadd.s32 %s16617_s18, %s5365_s27 }
 0x1d1   :  { %13372 = vmatprep.subr.bf16.mxu1 %v14296_v43  ;;  %13357 = vmatpush3.bf16.msra.mxu0 %v14309_v45  ;;  %v14317_v43 = vld [vmem:[#allocation7 + $0xa10] sm:$0xff]   ;;  %v14324_v45 = vld [vmem:[#allocation7 + $0xac0] sm:$0xff]   ;;  %s5367_s30 = sand.u32 4294901760, %s5366_s19  ;;  %p5383_p3 = scmp.ne.f32.partialorder %s16643_s25, %s16643_s25 }
 0x1d2   :  { %13358 = vmatprep.subr.bf16.mxu0 %v14311_v31  ;;  %v14325_v31 = vld [vmem:[#allocation7 + $0xa00] sm:$0xff]   ;;  %s18601_s30 = smov (%p5362_p2, %s5367_s30), 2143289344  ;;  %s5384_s28 = sshrl.u32 %s16643_s25, 16 }
 0x1d3   :  { %5192 = vmatmul.mubr.bf16.vlgmr.msra.gmra.mxu1 %v12281_v23  ;;  %v5273_v23 = vadd.bf16 %v5271_v35, %v5255_v47  ;;  %s5370_s15 = sshrl.u32 %s18601_s30, 16  ;;  %s5385_s6 = sand.u32 1, %s5384_s28 }
 0x1d4   :  { %13373 = vmatpush3.bf16.msra.mxu1 %v14298_v41  ;;  %s5371_s1 = sshll.u32 %s5370_s15, 16  ;;  %s5386_s13 = sadd.s32 32767, %s5385_s6 }
 0x1d5   :  { %13374 = vmatprep.subr.bf16.mxu1 %v14300_v4  ;;  %v13124_v32 = vpop.f32.mrf.mxu1  ;;  %13359 = vmatpush3.bf16.msra.mxu0 %v14313_v34  ;;  %v5291_v4 = vmul.bf16 %v16369_v51, %v5289_v30  ;;  %v14323_v51 = vld [vmem:[#allocation7 + $0xa40] sm:$0xff]   ;;  %v5313_v34 = vmul.bf16 %v16404_v2, %v5310_v42  ;;  %v12283_v2 = vcombine.low %v16576_v19, %v16576_v19  ;;  %s5372_s11 = sor.u32 %s5371_s1, %s5370_s15  ;;  %s5387_s14 = sadd.s32 %s16643_s25, %s5386_s13  ;;  %v14333_v30 = vld [vmem:[#allocation7 + $0xb30] sm:$0xff]  }
 0x1d6   :  { %13360 = vmatprep.subr.bf16.mxu0 %v14315_v56  ;;  %v5314_v56 = vmul.bf16 %v16412_v15, %v5310_v42  ;;  %s5388_s24 = sand.u32 4294901760, %s5387_s14  ;;  %p5404_p4 = scmp.ne.f32.partialorder %s16652_s7, %s16652_s7 }
 0x1d7   :  { %v13125_v53 = vpop.f32.mrf.mxu1  ;;  %v5316_v15 = vadd.bf16 %v5313_v34, %v5295_v49  ;;  %s18603_s24 = smov (%p5383_p3, %s5388_s24), 2143289344  ;;  %s5405_s29 = sshrl.u32 %s16652_s7, 16  ;;  %v14349_v49 = vld [vmem:[#allocation7 + $0xb10] sm:$0xff]  }
 0x1d8   :  { %13375 = vmatpush3.bf16.msra.mxu1 %v14302_v25  ;;  %v13126_v6 = vadd.f32 %v13125_v53, %v13124_v32  ;;  %v14321_v25 = vld [vmem:[#allocation7 + $0xa08] sm:$0xff]   ;;  %v5331_v32 = vstv %s16630_s22  ;;  %v14326_v53 = vld [vmem:[#allocation7 + $0xa80] sm:$0xff]   ;;  %s16675_s10 = sld [smem:[#allocation2 + $0x388]]  ;;  %s5391_s18 = sshrl.u32 %s18603_s24, 16 }
 0x1d9   :  { %13376 = vmatprep.subr.bf16.mxu1 %v14304_v12  ;;  %v13127_v48 = vpop.f32.mrf.mxu1  ;;  %13361 = vmatpush3.bf16.msra.mxu0 %v14317_v43  ;;  %v5275_v12 = vadd.bf16 %v5271_v35, %v5257_v0  ;;  %v5334_v47 = vmul.bf16 %v16434_v10, %v5331_v32  ;;  %v5335_v19 = vmul.bf16 %v16440_v36, %v5331_v32  ;;  %v5373_v35 = vstv %s5372_s11  ;;  %s5406_s8 = sand.u32 1, %s5405_s29  ;;  %s5392_s12 = sshll.u32 %s5391_s18, 16 }
 0x1da   :  { %13362 = vmatprep.subr.bf16.mxu0 %v14319_v5  ;;  %v5352_v48 = vstv %s5351_s26  ;;  %s5407_s21 = sadd.s32 32767, %s5406_s8  ;;  %s5393_s0 = sor.u32 %s5392_s12, %s5391_s18 }
 0x1db   :  { %v13128_v20 = vpop.f32.mrf.mxu1  ;;  %v5296_v57 = vadd.bf16 %v5293_v58, %v5275_v12  ;;  %v5354_v43 = vmul.bf16 %v16447_v16, %v5352_v48  ;;  %v5337_v5 = vadd.bf16 %v5334_v47, %v5316_v15  ;;  %v5355_v36 = vmul.bf16 %v16455_v63, %v5352_v48  ;;  %v14335_v16 = vld [vmem:[#allocation7 + $0xb68] sm:$0xff]   ;;  %s5408_s20 = sadd.s32 %s16652_s7, %s5407_s21  ;;  %s16681_s9 = sld [smem:[#allocation2 + $0x400]] }
 0x1dc   :  { %13377 = vmatpush3.bf16.msra.mxu1 %v14306_v44  ;;  %v5356_v20 = vmul.bf16 %v16464_v29, %v5352_v48  ;;  %v5375_v63 = vmul.bf16 %v16473_v38, %v5373_v35  ;;  %v14337_v29 = vld [vmem:[#allocation7 + $0xb28] sm:$0xff]   ;;  %s5409_s22 = sand.u32 4294901760, %s5408_s20  ;;  %v14339_v38 = vld [vmem:[#allocation7 + $0xb60] sm:$0xff]   ;;  %s16702_s30 = sld [smem:[#allocation5 + $0x8]] }
 0x1dd   :  { %13378 = vmatprep.subr.bf16.mxu1 %v14308_v24  ;;  %v14322_v24 = vld [vmem:[#allocation7 + $0xa88] sm:$0xff]   ;;  %13363 = vmatpush3.bf16.msra.mxu0 %v14321_v25  ;;  %v5317_v50 = vadd.bf16 %v5314_v56, %v5296_v57  ;;  %s18605_s22 = smov (%p5404_p4, %s5409_s22), 2143289344  ;;  %s16706_s14 = sld [smem:[#allocation2 + $0x401]] }
 0x1de   :  { %v13146_v54 = vpop.f32.mrf.mxu0  ;;  %13364 = vmatprep.subr.bf16.mxu0 %v14323_v51  ;;  %p5425_p5 = scmp.ne.f32.partialorder %s16675_s10, %s16675_s10  ;;  %s5426_s4 = sshrl.u32 %s16675_s10, 16  ;;  %v14353_v15 = vld [vmem:[#allocation7 + $0xb08] sm:$0xff]  }
 0x1df   :  { %v5338_v0 = vadd.bf16 %v5335_v19, %v5317_v50  ;;  %s5412_s23 = sshrl.u32 %s18605_s22, 16  ;;  %s5427_s25 = sand.u32 1, %s5426_s4 }
 0x1e0   :  { %13379 = vmatpush3.bf16.msra.mxu1 %v14310_v14  ;;  %v13147_v7 = vpop.f32.mrf.mxu0  ;;  %v5294_v14 = vadd.bf16 %v5291_v4, %v5273_v23  ;;  %v5377_v23 = vmul.bf16 %v16486_v52, %v5373_v35  ;;  %v5394_v4 = vstv %s5393_s0  ;;  %s5413_s16 = sshll.u32 %s5412_s23, 16  ;;  %s5428_s3 = sadd.s32 32767, %s5427_s25 }
 0x1e1   :  { %13380 = vmatprep.subr.bf16.mxu1 %v14312_v9  ;;  %v13148_v41 = vadd.f32 %v13147_v7, %v13146_v54  ;;  %v5312_v9 = vmul.bf16 %v16398_v1, %v5310_v42  ;;  %v14327_v1 = vld [vmem:[#allocation7 + $0xb78] sm:$0xff]   ;;  %13365 = vmatpush3.bf16.msra.mxu0 %v14325_v31  ;;  %v14331_v54 = vld [vmem:[#allocation7 + $0xb70] sm:$0xff]   ;;  %v5397_v52 = vmul.bf16 %v16506_v62, %v5394_v4  ;;  %s5414_s17 = sor.u32 %s5413_s16, %s5412_s23  ;;  %s5429_s27 = sadd.s32 %s16675_s10, %s5428_s3 }
 0x1e2   :  { %v13149_v60 = vpop.f32.mrf.mxu0  ;;  %13394 = vmatprep.subr.bf16.mxu0 %v14327_v1  ;;  %v5398_v12 = vmul.bf16 %v16512_v28, %v5394_v4  ;;  %v5415_v58 = vstv %s5414_s17  ;;  %s5430_s26 = sand.u32 4294901760, %s5429_s27  ;;  %p5976_p6 = scmp.ne.f32.partialorder %s16681_s9, %s16681_s9  ;;  %v14351_v1 = vld [vmem:[#allocation7 + $0xb48] sm:$0xff]  }
 0x1e3   :  { %v16645_v44 = vadd.f32 %v13148_v41, %v13126_v6  ;;  %v5333_v6 = vmul.bf16 %v16425_v39, %v5331_v32  ;;  %v14328_v39 = vld [vmem:[#allocation7 + $0xbf8] sm:$0xff]   ;;  %v5376_v41 = vmul.bf16 %v16479_v37, %v5373_v35  ;;  %v5396_v37 = vmul.bf16 %v16497_v17, %v5394_v4  ;;  %s18607_s26 = smov (%p5425_p5, %s5430_s26), 2143289344  ;;  %s5977_s19 = sshrl.u32 %s16681_s9, 16  ;;  %v14371_v4 = vld [vmem:[#allocation7 + $0xc60] sm:$0xff]  }
 0x1e4   :  { %13381 = vmatpush3.bf16.msra.mxu1 %v14314_v59  ;;  %v13150_v27 = vpop.f32.mrf.mxu0  ;;  %v5315_v59 = vadd.bf16 %v5312_v9, %v5294_v14  ;;  %5232 = vmatmul.mubr.bf16.vlgmr.msra.gmra.mxu0 %v12283_v2  ;;  %v14343_v60 = vld [vmem:[#allocation7 + $0xb58] sm:$0xff]   ;;  %v5418_v28 = vmul.bf16 %v16530_v26, %v5415_v58  ;;  %v5419_v31 = vmul.bf16 %v16536_v40, %v5415_v58  ;;  %v14347_v14 = vld [vmem:[#allocation7 + $0xb50] sm:$0xff]   ;;  %s5433_s7 = sshrl.u32 %s18607_s26, 16  ;;  %s5978_s28 = sand.u32 1, %s5977_s19 }
 0x1e5   :  { %13382 = vmatprep.subr.bf16.mxu1 %v14316_v61  ;;  %v14329_v61 = vld [vmem:[#allocation7 + $0xb38] sm:$0xff]   ;;  %v5417_v27 = vmul.bf16 %v16521_v8, %v5415_v58  ;;  %s5434_s15 = sshll.u32 %s5433_s7, 16  ;;  %s5979_s6 = sadd.s32 32767, %s5978_s28  ;;  %v16783_v58 = vld [vmem:[%s18444_s2 + $0x8] sm:$0xff] }
 0x1e6   :  { %v5336_v10 = vadd.bf16 %v5333_v6, %v5315_v59  ;;  %13395 = vmatpush3.bf16.msra.mxu0 %v14329_v61  ;;  %s5435_s1 = sor.u32 %s5434_s15, %s5433_s7  ;;  %s5980_s13 = sadd.s32 %s16681_s9, %s5979_s6 }
 0x1e7   :  { %13396 = vmatprep.subr.bf16.mxu0 %v14331_v54  ;;  %v5436_v56 = vstv %s5435_s1  ;;  %s5981_s11 = sand.u32 4294901760, %s5980_s13  ;;  %p5994_p7 = scmp.ne.f32.partialorder %s16702_s30, %s16702_s30  ;;  %v14357_v54 = vld [vmem:[#allocation7 + $0xb00] sm:$0xff]  }
 0x1e8   :  { %13383 = vmatpush3.bf16.msra.mxu1 %v14318_v55  ;;  %v5357_v7 = vadd.bf16 %v5354_v43, %v5336_v10  ;;  %v5358_v55 = vadd.bf16 %v5355_v36, %v5337_v5  ;;  %v5438_v2 = vmul.bf16 %v16549_v22, %v5436_v56  ;;  %v5439_v59 = vmul.bf16 %v16555_v3, %v5436_v56  ;;  %s18609_s11 = smov (%p5976_p6, %s5981_s11), 2143289344  ;;  %s5995_s24 = sshrl.u32 %s16702_s30, 16  ;;  %v14355_v22 = vld [vmem:[#allocation7 + $0xb40] sm:$0xff]   ;;  %v14332_v43 = vld [vmem:[#allocation7 + $0xbf0] sm:$0xff]   ;;  %v14359_v36 = vld [vmem:[#allocation7 + $0xc78] sm:$0xff]  }
 0x1e9   :  { %13384 = vmatprep.subr.bf16.mxu1 %v14320_v18  ;;  %v5359_v18 = vadd.bf16 %v5356_v20, %v5338_v0  ;;  %v5440_v6 = vmul.bf16 %v16561_v46, %v5436_v56  ;;  %s5984_s29 = sshrl.u32 %s18609_s11, 16  ;;  %s5996_s10 = sand.u32 1, %s5995_s24  ;;  %v14361_v0 = vld [vmem:[#allocation7 + $0xc38] sm:$0xff]   ;;  %v14336_v20 = vld [vmem:[#allocation7 + $0xbe8] sm:$0xff]  }
 0x1ea   :  { %13397 = vmatpush3.bf16.msra.mxu0 %v14333_v30  ;;  %v5378_v11 = vadd.bf16 %v5375_v63, %v5357_v7  ;;  %v5379_v25 = vadd.bf16 %v5376_v41, %v5358_v55  ;;  %s5985_s18 = sshll.u32 %s5984_s29, 16  ;;  %s5997_s8 = sadd.s32 32767, %s5996_s10  ;;  %v14334_v30 = vld [vmem:[#allocation7 + $0xbb0] sm:$0xff]   ;;  %v14338_v7 = vld [vmem:[#allocation7 + $0xba8] sm:$0xff]   ;;  %v14340_v55 = vld [vmem:[#allocation7 + $0xbe0] sm:$0xff]  }
 0x1eb   :  { %13398 = vmatprep.subr.bf16.mxu0 %v14335_v16  ;;  %v5380_v42 = vadd.bf16 %v5377_v23, %v5359_v18  ;;  %s16725_s12 = sor.u32 %s5985_s18, %s5984_s29  ;;  %s5998_s21 = sadd.s32 %s16702_s30, %s5997_s8  ;;  %v14363_v16 = vld [vmem:[#allocation7 + $0xc70] sm:$0xff]   ;;  %v14367_v41 = vld [vmem:[#allocation7 + $0xc68] sm:$0xff]   ;;  %v14344_v23 = vld [vmem:[#allocation7 + $0xbd8] sm:$0xff]  }
 0x1ec   :  { %13385 = vmatpush3.bf16.msra.mxu1 %v14322_v24  ;;  %v5399_v17 = vadd.bf16 %v5396_v37, %v5378_v11  ;;  %v5400_v51 = vadd.bf16 %v5397_v52, %v5379_v25  ;;  %v14345_v24 = vld [vmem:[#allocation7 + $0xb18] sm:$0xff]   ;;  %s5999_s0 = sand.u32 4294901760, %s5998_s21  ;;  %p6012_p8 = scmp.ne.f32.partialorder %s16706_s14, %s16706_s14  ;;  %v14365_v63 = vld [vmem:[#allocation7 + $0xc30] sm:$0xff]   ;;  %v14369_v18 = vld [vmem:[#allocation7 + $0xc28] sm:$0xff]   ;;  %v5987_v37 = vstv %s16725_s12 }
 0x1ed   :  { %13386 = vmatprep.subr.bf16.mxu1 %v14324_v45  ;;  %v5401_v45 = vadd.bf16 %v5398_v12, %v5380_v42  ;;  %s18611_s0 = smov (%p5994_p7, %s5999_s0), 2143289344  ;;  %s6013_s20 = sshrl.u32 %s16706_s14, 16  ;;  %v14373_v11 = vld [vmem:[#allocation7 + $0xc20] sm:$0xff]   ;;  %v14375_v25 = vld [vmem:[#allocation7 + $0xc58] sm:$0xff]  }
 0x1ee   :  { %13399 = vmatpush3.bf16.msra.mxu0 %v14337_v29  ;;  %v5420_v32 = vadd.bf16 %v5417_v27, %v5399_v17  ;;  %v5421_v26 = vadd.bf16 %v5418_v28, %v5400_v51  ;;  %s16736_s22 = sld [smem:[#allocation2 + $0x402]]  ;;  %s6002_s9 = sshrl.u32 %s18611_s0, 16  ;;  %v14342_v29 = vld [vmem:[#allocation7 + $0xba0] sm:$0xff]   ;;  %v5990_v51 = vmul.bf16 %v16783_v58, %v5987_v37  ;;  %v14377_v28 = vld [vmem:[#allocation7 + $0xc18] sm:$0xff]  }
 0x1ef   :  { %13400 = vmatprep.subr.bf16.mxu0 %v14339_v38  ;;  %v5422_v40 = vadd.bf16 %v5419_v31, %v5401_v45  ;;  %s6014_s4 = sand.u32 1, %s6013_s20  ;;  %s6003_s23 = sshll.u32 %s6002_s9, 16  ;;  %v16774_v12 = vld [vmem:[%s18444_s2] sm:$0xff]  ;;  %v16801_v56 = vld [vmem:[%s18444_s2 + $0x18] sm:$0xff] }
 0x1f0   :  { %13387 = vmatpush3.bf16.msra.mxu1 %v14326_v53  ;;  %v5442_v47 = vadd.bf16 %v5439_v59, %v5421_v26  ;;  %s6015_s25 = sadd.s32 32767, %s6014_s4  ;;  %s16738_s16 = sor.u32 %s6003_s23, %s6002_s9  ;;  %v5989_v17 = vmul.bf16 %v16774_v12, %v5987_v37 }
 0x1f1   :  { %13416 = vmatprep.subr.bf16.mxu1 %v14328_v39  ;;  %v5443_v48 = vadd.bf16 %v5440_v6, %v5422_v40  ;;  %v14330_v39 = vld [vmem:[#allocation7 + $0xbb8] sm:$0xff]   ;;  %s6016_s3 = sadd.s32 %s16706_s14, %s6015_s25  ;;  %s16741_s27 = sld [smem:[#allocation2 + $0x403]]  ;;  %v6005_v45 = vstv %s16738_s16  ;;  %v14354_v40 = vld [vmem:[#allocation7 + $0xb88] sm:$0xff]  }
 0x1f2   :  { %13401 = vmatpush3.bf16.msra.mxu0 %v14341_v21  ;;  %v5445_v46 = vmax.bf16 %v15004_v13, %v5442_v47  ;;  %s6017_s17 = sand.u32 4294901760, %s6016_s3  ;;  %s16758_s11 = sld [smem:[#allocation2 + $0x404]]  ;;  %v14346_v21 = vld [vmem:[#allocation7 + $0xb98] sm:$0xff]  }
 0x1f3   :  { %13402 = vmatprep.subr.bf16.mxu0 %v14343_v60  ;;  %s18613_s17 = smov (%p6012_p8, %s6017_s17), 2143289344  ;;  %v14348_v60 = vld [vmem:[#allocation7 + $0xbd0] sm:$0xff]   ;;  %s16764_s0 = sld [smem:[#allocation2 + $0x405]] }
 0x1f4   :  { %v12346_v10 = vcombine.high %v5445_v46, %v5445_v46  ;;  %v12345_v35 = vcombine.low %v5445_v46, %v5445_v46  ;;  %p6033_p9 = scmp.ne.f32.partialorder %s16736_s22, %s16736_s22  ;;  %s6034_s26 = sshrl.u32 %s16736_s22, 16  ;;  %v14356_v46 = vld [vmem:[#allocation7 + $0xbc0] sm:$0xff]  }
 0x1f5   :  { %v13168_v62 = vpop.f32.mrf.mxu1  ;;  %s6020_s19 = sshrl.u32 %s18613_s17, 16  ;;  %s6035_s30 = sand.u32 1, %s6034_s26 }
 0x1f6   :  { %13403 = vmatpush3.bf16.msra.mxu0 %v14345_v24  ;;  %5925 = vmatprep.mubr.bf16.mxu0 %v12346_v10  ;;  %s6021_s7 = sshll.u32 %s6020_s19, 16  ;;  %s6036_s28 = sadd.s32 32767, %s6035_s30  ;;  %v14350_v24 = vld [vmem:[#allocation7 + $0xb90] sm:$0xff]  }
 0x1f7   :  { %v13169_v9 = vpop.f32.mrf.mxu1  ;;  %13404 = vmatprep.subr.bf16.mxu0 %v14347_v14  ;;  %s16749_s15 = sor.u32 %s6021_s7, %s6020_s19  ;;  %s6037_s6 = sadd.s32 %s16736_s22, %s6036_s28  ;;  %v16792_v14 = vld [vmem:[%s18444_s2 + $0x10] sm:$0xff] }
 0x1f8   :  { %v13170_v34 = vadd.f32 %v13169_v9, %v13168_v62  ;;  %s6038_s1 = sand.u32 4294901760, %s6037_s6  ;;  %p6054_p10 = scmp.ne.f32.partialorder %s16741_s27, %s16741_s27  ;;  %v6023_v31 = vstv %s16749_s15  ;;  %v5991_v9 = vmul.bf16 %v16792_v14, %v5987_v37 }
 0x1f9   :  { %v13171_v8 = vpop.f32.mrf.mxu1  ;;  %s18615_s1 = smov (%p6033_p9, %s6038_s1), 2143289344  ;;  %s6055_s13 = sshrl.u32 %s16741_s27, 16 }
 0x1fa   :  { %v3032_v57 = vadd.f32 %v13170_v34, %v16645_v44  ;;  %v5441_v44 = vadd.bf16 %v5438_v2, %v5420_v32  ;;  %13405 = vmatpush3.bf16.msra.mxu0 %v14349_v49  ;;  %s6041_s14 = sshrl.u32 %s18615_s1, 16  ;;  %s6056_s24 = sand.u32 1, %s6055_s13  ;;  %v14352_v49 = vld [vmem:[#allocation7 + $0xbc8] sm:$0xff]   ;;  %v14379_v34 = vld [vmem:[#allocation7 + $0xc50] sm:$0xff]   ;;  %v16809_v2 = vld [vmem:[%s18444_s2 + $0x20] sm:$0xff] }
 0x1fb   :  { %v13172_v53 = vpop.f32.mrf.mxu1  ;;  %13406 = vmatprep.subr.bf16.mxu0 %v14351_v1  ;;  %s6042_s29 = sshll.u32 %s6041_s14, 16  ;;  %s6057_s10 = sadd.s32 32767, %s6056_s24  ;;  %v6025_v1 = vmul.bf16 %v16801_v56, %v6023_v31  ;;  %v6026_v59 = vmul.bf16 %v16809_v2, %v6023_v31 }
 0x1fc   :  { %v16712_v61 = vadd.f32 %v3032_v57, %v16568_v33  ;;  %v5444_v3 = vmax.bf16 %v15004_v13, %v5441_v44  ;;  %v16723_v33 = vmax.bf16 %v15004_v13, %v5443_v48  ;;  %s16761_s18 = sor.u32 %s6042_s29, %s6041_s14  ;;  %s6058_s8 = sadd.s32 %s16741_s27, %s6057_s10  ;;  %v6007_v57 = vadd.bf16 %v6005_v45, %v5989_v17  ;;  %v14381_v44 = vld [vmem:[#allocation7 + $0xc10] sm:$0xff]   ;;  %v14391_v17 = vld [vmem:[#allocation7 + $0xd78] sm:$0xff]  }
 0x1fd   :  { %s6059_s21 = sand.u32 4294901760, %s6058_s8  ;;  %p6075_p11 = scmp.ne.f32.partialorder %s16758_s11, %s16758_s11  ;;  %v6008_v53 = vadd.bf16 %v6005_v45, %v5990_v51  ;;  %v6009_v48 = vadd.bf16 %v6005_v45, %v5991_v9 }
 0x1fe   :  { %v12344_v50 = vcombine.high %v5444_v3, %v5444_v3  ;;  %v12343_v19 = vcombine.low %v5444_v3, %v5444_v3  ;;  %13407 = vmatpush3.bf16.msra.mxu0 %v14353_v15  ;;  %v12348_v5 = vcombine.high %v16723_v33, %v16723_v33  ;;  %s18617_s21 = smov (%p6054_p10, %s6059_s21), 2143289344  ;;  %s6076_s22 = sshrl.u32 %s16758_s11, 16  ;;  %v6044_v15 = vstv %s16761_s18 }
 0x1ff   :  { %13408 = vmatprep.subr.bf16.mxu0 %v14355_v22  ;;  %s6062_s23 = sshrl.u32 %s18617_s21, 16  ;;  %s6077_s25 = sand.u32 1, %s6076_s22  ;;  %v16823_v22 = vld [vmem:[%s18444_s2 + $0x28] sm:$0xff]  ;;  %v6028_v10 = vadd.bf16 %v6025_v1, %v6007_v57 }
 0x200   :  { %5885 = vmatprep.mubr.bf16.mxu1 %v12344_v50  ;;  %s6063_s27 = sshll.u32 %s6062_s23, 16  ;;  %s6078_s26 = sadd.s32 32767, %s6077_s25  ;;  %v6027_v3 = vmul.bf16 %v16823_v22, %v6023_v31  ;;  %v14383_v50 = vld [vmem:[#allocation7 + $0xc48] sm:$0xff]   ;;  %v14366_v31 = vld [vmem:[#allocation7 + $0xcb0] sm:$0xff]  }
 0x201   :  { %5886 = vmatmul.mubr.bf16.vlgmr.msra.gmra.mxu1 %v12343_v19  ;;  %s16795_s16 = sor.u32 %s6063_s27, %s6062_s23  ;;  %s6079_s19 = sadd.s32 %s16758_s11, %s6078_s26 }
 0x202   :  { %13417 = vmatpush3.bf16.msra.mxu1 %v14330_v39  ;;  %13409 = vmatpush3.bf16.msra.mxu0 %v14357_v54  ;;  %s6080_s28 = sand.u32 4294901760, %s6079_s19  ;;  %p6096_p12 = scmp.ne.f32.partialorder %s16764_s0, %s16764_s0  ;;  %v14358_v39 = vld [vmem:[#allocation7 + $0xb80] sm:$0xff]   ;;  %v14360_v54 = vld [vmem:[#allocation7 + $0xcf8] sm:$0xff]  }
 0x203   :  { %13418 = vmatprep.subr.bf16.mxu1 %v14332_v43  ;;  %5965 = vmatprep.mubr.bf16.mxu1 %v12348_v5  ;;  %s18619_s28 = smov (%p6075_p11, %s6080_s28), 2143289344  ;;  %s6097_s14 = sshrl.u32 %s16764_s0, 16  ;;  %v16833_v43 = vld [vmem:[%s18444_s2 + $0x30] sm:$0xff] }
 0x204   :  { %13438 = vmatprep.subr.bf16.mxu0 %v14359_v36  ;;  %s16827_s24 = sld [smem:[#allocation2 + $0x406]]  ;;  %s6083_s11 = sshrl.u32 %s18619_s28, 16  ;;  %v6046_v5 = vmul.bf16 %v16833_v43, %v6044_v15  ;;  %v6029_v36 = vadd.bf16 %v6026_v59, %v6008_v53  ;;  %v16914_v53 = vld [vmem:[%s18444_s2 + $0x80] sm:$0xff] }
 0x205   :  { %5926 = vmatmul.mubr.bf16.vlgmr.msra.gmra.mxu0 %v12345_v35  ;;  %s6098_s29 = sand.u32 1, %s6097_s14  ;;  %s6084_s8 = sshll.u32 %s6083_s11, 16  ;;  %v16839_v35 = vld [vmem:[%s18444_s2 + $0x38] sm:$0xff] }
 0x206   :  { %13419 = vmatpush3.bf16.msra.mxu1 %v14334_v30  ;;  %13439 = vmatpush3.bf16.msra.mxu0 %v14361_v0  ;;  %s6099_s21 = sadd.s32 32767, %s6098_s29  ;;  %v6047_v30 = vmul.bf16 %v16839_v35, %v6044_v15  ;;  %v14385_v0 = vld [vmem:[#allocation7 + $0xc08] sm:$0xff]   ;;  %s6085_s22 = sor.u32 %s6084_s8, %s6083_s11 }
 0x207   :  { %13420 = vmatprep.subr.bf16.mxu1 %v14336_v20  ;;  %13440 = vmatprep.subr.bf16.mxu0 %v14363_v16  ;;  %v6065_v20 = vstv %s16795_s16  ;;  %s6100_s9 = sadd.s32 %s16764_s0, %s6099_s21  ;;  %v6030_v16 = vadd.bf16 %v6027_v3, %v6009_v48  ;;  %s16850_s3 = sld [smem:[#allocation2 + $0x407]]  ;;  %v6086_v37 = vstv %s6085_s22  ;;  %v14372_v3 = vld [vmem:[#allocation7 + $0xce0] sm:$0xff]  }
 0x208   :  { %s6101_s25 = sand.u32 4294901760, %s6100_s9  ;;  %s16903_s12 = sld [smem:[#allocation2 + $0x408]] }
 0x209   :  { %s18621_s25 = smov (%p6096_p12, %s6101_s25), 2143289344  ;;  %s16924_s7 = sld [smem:[#allocation2 + $0x480]] }
 0x20a   :  { %13421 = vmatpush3.bf16.msra.mxu1 %v14338_v7  ;;  %13441 = vmatpush3.bf16.msra.mxu0 %v14365_v63  ;;  %v16847_v7 = vld [vmem:[%s18444_s2 + $0x40] sm:$0xff]  ;;  %p6117_p13 = scmp.ne.f32.partialorder %s16827_s24, %s16827_s24  ;;  %s6118_s26 = sshrl.u32 %s16827_s24, 16 }
 0x20b   :  { %13422 = vmatprep.subr.bf16.mxu1 %v14340_v55  ;;  %13442 = vmatprep.subr.bf16.mxu0 %v14367_v41  ;;  %v13190_v38 = vpop.f32.mrf.mxu0  ;;  %v6048_v63 = vmul.bf16 %v16847_v7, %v6044_v15  ;;  %v14387_v55 = vld [vmem:[#allocation7 + $0xc40] sm:$0xff]   ;;  %v12347_v41 = vcombine.low %v16723_v33, %v16723_v33  ;;  %v16869_v33 = vld [vmem:[%s18444_s2 + $0x50] sm:$0xff]  ;;  %s6104_s0 = sshrl.u32 %s18621_s25, 16  ;;  %s6119_s30 = sand.u32 1, %s6118_s26  ;;  %v16921_v15 = vld [vmem:[%s18444_s2 + $0x88] sm:$0xff] }
 0x20c   :  { %s6105_s15 = sshll.u32 %s6104_s0, 16  ;;  %s6120_s6 = sadd.s32 32767, %s6119_s30 }
 0x20d   :  { %v13191_v52 = vpop.f32.mrf.mxu0  ;;  %s6106_s1 = sor.u32 %s6105_s15, %s6104_s0  ;;  %s6121_s13 = sadd.s32 %s16827_s24, %s6120_s6 }
 0x20e   :  { %13423 = vmatpush3.bf16.msra.mxu1 %v14342_v29  ;;  %13443 = vmatpush3.bf16.msra.mxu0 %v14369_v18  ;;  %v13192_v42 = vadd.f32 %v13191_v52, %v13190_v38  ;;  %v14362_v29 = vld [vmem:[#allocation7 + $0xcb8] sm:$0xff]   ;;  %v14389_v18 = vld [vmem:[#allocation7 + $0xc00] sm:$0xff]   ;;  %s6122_s29 = sand.u32 4294901760, %s6121_s13  ;;  %p6138_p0 = scmp.ne.f32.partialorder %s16850_s3, %s16850_s3  ;;  %v6107_v9 = vstv %s6106_s1 }
 0x20f   :  { %13424 = vmatprep.subr.bf16.mxu1 %v14344_v23  ;;  %13444 = vmatprep.subr.bf16.mxu0 %v14371_v4  ;;  %v13193_v27 = vpop.f32.mrf.mxu0  ;;  %v6049_v23 = vadd.bf16 %v6046_v5, %v6028_v10  ;;  %v16860_v4 = vld [vmem:[%s18444_s2 + $0x48] sm:$0xff]  ;;  %s18623_s29 = smov (%p6117_p13, %s6122_s29), 2143289344  ;;  %s6139_s20 = sshrl.u32 %s16850_s3, 16  ;;  %v6110_v59 = vmul.bf16 %v16914_v53, %v6107_v9  ;;  %v6111_v48 = vmul.bf16 %v16921_v15, %v6107_v9  ;;  %v16941_v5 = vld [vmem:[%s18444_s2 + $0x98] sm:$0xff] }
 0x210   :  { %v6067_v38 = vmul.bf16 %v16860_v4, %v6065_v20  ;;  %s6125_s22 = sshrl.u32 %s18623_s29, 16  ;;  %s6140_s9 = sand.u32 1, %s6139_s20 }
 0x211   :  { %v13194_v32 = vpop.f32.mrf.mxu0  ;;  %s6126_s23 = sshll.u32 %s6125_s22, 16  ;;  %s6141_s25 = sadd.s32 32767, %s6140_s9 }
 0x212   :  { %13425 = vmatpush3.bf16.msra.mxu1 %v14346_v21  ;;  %13445 = vmatpush3.bf16.msra.mxu0 %v14373_v11  ;;  %v6050_v21 = vadd.bf16 %v6047_v30, %v6029_v36  ;;  %v6068_v11 = vmul.bf16 %v16869_v33, %v6065_v20  ;;  %v6070_v51 = vadd.bf16 %v6067_v38, %v6049_v23  ;;  %v14368_v32 = vld [vmem:[#allocation7 + $0xce8] sm:$0xff]   ;;  %s6127_s26 = sor.u32 %s6126_s23, %s6125_s22  ;;  %s6142_s16 = sadd.s32 %s16850_s3, %s6141_s25 }
 0x213   :  { %13426 = vmatprep.subr.bf16.mxu1 %v14348_v60  ;;  %13446 = vmatprep.subr.bf16.mxu0 %v14375_v25  ;;  %v6051_v60 = vadd.bf16 %v6048_v63, %v6030_v16  ;;  %v16875_v25 = vld [vmem:[%s18444_s2 + $0x58] sm:$0xff]  ;;  %s6143_s30 = sand.u32 4294901760, %s6142_s16  ;;  %p6159_p1 = scmp.ne.f32.partialorder %s16903_s12, %s16903_s12  ;;  %v16956_v23 = vld [vmem:[%s18444_s2 + $0xa8] sm:$0xff] }
 0x214   :  { %v6069_v52 = vmul.bf16 %v16875_v25, %v6065_v20  ;;  %s18625_s30 = smov (%p6138_p0, %s6143_s30), 2143289344  ;;  %s6160_s6 = sshrl.u32 %s16903_s12, 16  ;;  %v14376_v16 = vld [vmem:[#allocation7 + $0xcd8] sm:$0xff]  }
 0x215   :  { %s6146_s3 = sshrl.u32 %s18625_s30, 16  ;;  %s6161_s14 = sand.u32 1, %s6160_s6 }
 0x216   :  { %13427 = vmatpush3.bf16.msra.mxu1 %v14350_v24  ;;  %13447 = vmatpush3.bf16.msra.mxu0 %v14377_v28  ;;  %v6071_v24 = vadd.bf16 %v6068_v11, %v6050_v21  ;;  %v16890_v28 = vld [vmem:[%s18444_s2 + $0x68] sm:$0xff]  ;;  %s6147_s10 = sshll.u32 %s6146_s3, 16  ;;  %s6162_s18 = sadd.s32 32767, %s6161_s14  ;;  %v16965_v21 = vld [vmem:[%s18444_s2 + $0xb0] sm:$0xff] }
 0x217   :  { %13428 = vmatprep.subr.bf16.mxu1 %v14352_v49  ;;  %13448 = vmatprep.subr.bf16.mxu0 %v14379_v34  ;;  %v6089_v45 = vmul.bf16 %v16890_v28, %v6086_v37  ;;  %v6072_v49 = vadd.bf16 %v6069_v52, %v6051_v60  ;;  %v16899_v34 = vld [vmem:[%s18444_s2 + $0x70] sm:$0xff]  ;;  %s6148_s8 = sor.u32 %s6147_s10, %s6146_s3  ;;  %s6163_s21 = sadd.s32 %s16903_s12, %s6162_s18  ;;  %v16971_v60 = vld [vmem:[%s18444_s2 + $0xb8] sm:$0xff] }
 0x218   :  { %s6164_s20 = sand.u32 4294901760, %s6163_s21  ;;  %p6710_p2 = scmp.ne.f32.partialorder %s16924_s7, %s16924_s7 }
 0x219   :  { %v6092_v1 = vadd.bf16 %v6089_v45, %v6071_v24  ;;  %s18627_s20 = smov (%p6159_p1, %s6164_s20), 2143289344  ;;  %s6711_s12 = sshrl.u32 %s16924_s7, 16 }
 0x21a   :  { %13429 = vmatpush3.bf16.msra.mxu1 %v14354_v40  ;;  %13449 = vmatpush3.bf16.msra.mxu0 %v14381_v44  ;;  %v16908_v40 = vld [vmem:[%s18444_s2 + $0x78] sm:$0xff]  ;;  %s16975_s17 = sld [smem:[#allocation5 + $0x9]]  ;;  %s6167_s27 = sshrl.u32 %s18627_s20, 16 }
 0x21b   :  { %13430 = vmatprep.subr.bf16.mxu1 %v14356_v46  ;;  %13450 = vmatprep.subr.bf16.mxu0 %v14383_v50  ;;  %v6109_v57 = vmul.bf16 %v16908_v40, %v6107_v9  ;;  %v6128_v46 = vstv %s6127_s26  ;;  %v14374_v50 = vld [vmem:[#allocation7 + $0xca0] sm:$0xff]   ;;  %v6113_v10 = vadd.bf16 %v6110_v59, %v6092_v1  ;;  %s6712_s26 = sand.u32 1, %s6711_s12  ;;  %s6168_s16 = sshll.u32 %s6167_s27, 16  ;;  %v16990_v59 = vld [vmem:[%s18444_s2 + $0xc8] sm:$0xff] }
 0x21c   :  { %v6131_v36 = vmul.bf16 %v16941_v5, %v6128_v46  ;;  %s6713_s19 = sadd.s32 32767, %s6712_s26  ;;  %s6169_s0 = sor.u32 %s6168_s16, %s6167_s27 }
 0x21d   :  { %s6714_s30 = sadd.s32 %s16924_s7, %s6713_s19  ;;  %s16979_s15 = sld [smem:[#allocation2 + $0x481]] }
 0x21e   :  { %v13212_v62 = vpop.f32.mrf.mxu1  ;;  %13431 = vmatpush3.bf16.msra.mxu1 %v14358_v39  ;;  %13451 = vmatpush3.bf16.msra.mxu0 %v14385_v0  ;;  %v16932_v39 = vld [vmem:[%s18444_s2 + $0x90] sm:$0xff]  ;;  %v16947_v0 = vld [vmem:[%s18444_s2 + $0xa0] sm:$0xff]  ;;  %s6715_s28 = sand.u32 4294901760, %s6714_s30  ;;  %s17022_s24 = sld [smem:[#allocation2 + $0x482]] }
 0x21f   :  { %13460 = vmatprep.subr.bf16.mxu1 %v14360_v54  ;;  %13452 = vmatprep.subr.bf16.mxu0 %v14387_v55  ;;  %v6130_v54 = vmul.bf16 %v16932_v39, %v6128_v46  ;;  %v6132_v20 = vmul.bf16 %v16947_v0, %v6128_v46  ;;  %v6149_v55 = vstv %s6148_s8  ;;  %s18629_s28 = smov (%p6710_p2, %s6715_s28), 2143289344  ;;  %v14388_v46 = vld [vmem:[#allocation7 + $0xcc0] sm:$0xff]   ;;  %s17029_s16 = sld [smem:[#allocation2 + $0x483]] }
 0x220   :  { %v13213_v8 = vpop.f32.mrf.mxu1  ;;  %v6151_v38 = vmul.bf16 %v16956_v23, %v6149_v55  ;;  %v6152_v11 = vmul.bf16 %v16965_v21, %v6149_v55  ;;  %v6153_v52 = vmul.bf16 %v16971_v60, %v6149_v55  ;;  %p6728_p3 = scmp.ne.f32.partialorder %s16975_s17, %s16975_s17  ;;  %s6729_s29 = sshrl.u32 %s16975_s17, 16 }
 0x221   :  { %v13214_v26 = vadd.f32 %v13213_v8, %v13212_v62  ;;  %5966 = vmatmul.mubr.bf16.vlgmr.msra.gmra.mxu1 %v12347_v41  ;;  %v16882_v62 = vld [vmem:[%s18444_s2 + $0x60] sm:$0xff]  ;;  %v6090_v8 = vmul.bf16 %v16899_v34, %v6086_v37  ;;  %v6134_v41 = vadd.bf16 %v6131_v36, %v6113_v10  ;;  %s6718_s10 = sshrl.u32 %s18629_s28, 16  ;;  %s6730_s18 = sand.u32 1, %s6729_s29 }
 0x222   :  { %v13215_v6 = vpop.f32.mrf.mxu1  ;;  %v6088_v27 = vmul.bf16 %v16882_v62, %v6086_v37  ;;  %13461 = vmatpush3.bf16.msra.mxu1 %v14362_v29  ;;  %13453 = vmatpush3.bf16.msra.mxu0 %v14389_v18  ;;  %v14378_v18 = vld [vmem:[#allocation7 + $0xc98] sm:$0xff]   ;;  %s6719_s8 = sshll.u32 %s6718_s10, 16  ;;  %s6731_s7 = sadd.s32 32767, %s6730_s18 }
 0x223   :  { %v16818_v47 = vadd.f32 %v13214_v26, %v13192_v42  ;;  %v14364_v42 = vld [vmem:[#allocation7 + $0xcf0] sm:$0xff]   ;;  %13482 = vmatprep.subr.bf16.mxu0 %v14391_v17  ;;  %v14370_v6 = vld [vmem:[#allocation7 + $0xca8] sm:$0xff]   ;;  %v6093_v44 = vadd.bf16 %v6090_v8, %v6072_v49  ;;  %s17013_s21 = sor.u32 %s6719_s8, %s6718_s10  ;;  %s6732_s20 = sadd.s32 %s16975_s17, %s6731_s7 }
 0x224   :  { %v13216_v19 = vpop.f32.mrf.mxu1  ;;  %13462 = vmatprep.subr.bf16.mxu1 %v14364_v42  ;;  %v6091_v26 = vadd.bf16 %v6088_v27, %v6070_v51  ;;  %v14380_v42 = vld [vmem:[#allocation7 + $0xcd0] sm:$0xff]   ;;  %v14384_v8 = vld [vmem:[#allocation7 + $0xcc8] sm:$0xff]   ;;  %s6733_s22 = sand.u32 4294901760, %s6732_s20  ;;  %p6746_p4 = scmp.ne.f32.partialorder %s16979_s15, %s16979_s15 }
 0x225   :  { %v6114_v30 = vadd.bf16 %v6111_v48, %v6093_v44  ;;  %v14382_v27 = vld [vmem:[#allocation7 + $0xc90] sm:$0xff]   ;;  %s18631_s22 = smov (%p6728_p3, %s6733_s22), 2143289344  ;;  %s6747_s9 = sshrl.u32 %s16979_s15, 16 }
 0x226   :  { %13463 = vmatpush3.bf16.msra.mxu1 %v14366_v31  ;;  %v6112_v19 = vadd.bf16 %v6109_v57, %v6091_v26  ;;  %v6155_v31 = vadd.bf16 %v6152_v11, %v6134_v41  ;;  %v16984_v57 = vld [vmem:[%s18444_s2 + $0xc0] sm:$0xff]  ;;  %v14393_v41 = vld [vmem:[#allocation7 + $0xd38] sm:$0xff]   ;;  %s6736_s4 = sshrl.u32 %s18631_s22, 16  ;;  %s6748_s23 = sand.u32 1, %s6747_s9 }
 0x227   :  { %13464 = vmatprep.subr.bf16.mxu1 %v14368_v32  ;;  %v6135_v37 = vadd.bf16 %v6132_v20, %v6114_v30  ;;  %v6170_v32 = vstv %s6169_s0  ;;  %v14392_v20 = vld [vmem:[#allocation7 + $0xdf8] sm:$0xff]   ;;  %s6737_s25 = sshll.u32 %s6736_s4, 16  ;;  %s6749_s12 = sadd.s32 32767, %s6748_s23 }
 0x228   :  { %v6133_v63 = vadd.bf16 %v6130_v54, %v6112_v19  ;;  %v6172_v1 = vmul.bf16 %v16984_v57, %v6170_v32  ;;  %s17026_s17 = sor.u32 %s6737_s25, %s6736_s4  ;;  %s6750_s27 = sadd.s32 %s16979_s15, %s6749_s12 }
 0x229   :  { %v6156_v9 = vadd.bf16 %v6153_v52, %v6135_v37  ;;  %v14396_v37 = vld [vmem:[#allocation7 + $0xdf0] sm:$0xff]   ;;  %s6751_s26 = sand.u32 4294901760, %s6750_s27  ;;  %p6767_p5 = scmp.ne.f32.partialorder %s17022_s24, %s17022_s24 }
 0x22a   :  { %13465 = vmatpush3.bf16.msra.mxu1 %v14370_v6  ;;  %v6154_v45 = vadd.bf16 %v6151_v38, %v6133_v63  ;;  %v16996_v6 = vld [vmem:[%s18444_s2 + $0xd0] sm:$0xff]  ;;  %s18633_s26 = smov (%p6746_p4, %s6751_s26), 2143289344  ;;  %s6768_s19 = sshrl.u32 %s17022_s24, 16 }
 0x22b   :  { %13466 = vmatprep.subr.bf16.mxu1 %v14372_v3  ;;  %v6174_v44 = vmul.bf16 %v16996_v6, %v6170_v32  ;;  %v14386_v3 = vld [vmem:[#allocation7 + $0xc88] sm:$0xff]   ;;  %v14397_v52 = vld [vmem:[#allocation7 + $0xd30] sm:$0xff]   ;;  %s6754_s0 = sshrl.u32 %s18633_s26, 16  ;;  %s6769_s30 = sand.u32 1, %s6768_s19 }
 0x22c   :  { %s6755_s28 = sshll.u32 %s6754_s0, 16  ;;  %s6770_s15 = sadd.s32 32767, %s6769_s30 }
 0x22d   :  { %v13234_v29 = vpop.f32.mrf.mxu0  ;;  %v6177_v54 = vadd.bf16 %v6174_v44, %v6156_v9  ;;  %s17037_s6 = sor.u32 %s6755_s28, %s6754_s0  ;;  %s6771_s1 = sadd.s32 %s17022_s24, %s6770_s15  ;;  %v14405_v9 = vld [vmem:[#allocation7 + $0xd20] sm:$0xff]   ;;  %v14411_v44 = vld [vmem:[#allocation7 + $0xd50] sm:$0xff]  }
 0x22e   :  { %13467 = vmatpush3.bf16.msra.mxu1 %v14374_v50  ;;  %v6175_v50 = vadd.bf16 %v6172_v1, %v6154_v45  ;;  %v14402_v45 = vld [vmem:[#allocation7 + $0xda8] sm:$0xff]   ;;  %s6772_s13 = sand.u32 4294901760, %s6771_s1  ;;  %p6788_p6 = scmp.ne.f32.partialorder %s17029_s16, %s17029_s16  ;;  %v14409_v1 = vld [vmem:[#allocation7 + $0xd18] sm:$0xff]  }
 0x22f   :  { %13468 = vmatprep.subr.bf16.mxu1 %v14376_v16  ;;  %v13235_v17 = vpop.f32.mrf.mxu0  ;;  %v17011_v30 = vmax.bf16 %v15004_v13, %v6177_v54  ;;  %s18635_s13 = smov (%p6767_p5, %s6772_s13), 2143289344  ;;  %s6789_s3 = sshrl.u32 %s17029_s16, 16 }
 0x230   :  { %v13236_v51 = vadd.f32 %v13235_v17, %v13234_v29  ;;  %v6178_v10 = vmax.bf16 %v15004_v13, %v6175_v50  ;;  %v14395_v29 = vld [vmem:[#allocation7 + $0xd70] sm:$0xff]   ;;  %s17046_s14 = sld [smem:[#allocation2 + $0x484]]  ;;  %s6775_s11 = sshrl.u32 %s18635_s13, 16 }
 0x231   :  { %v13237_v24 = vpop.f32.mrf.mxu0  ;;  %v12412_v38 = vcombine.high %v17011_v30, %v17011_v30  ;;  %v14398_v17 = vld [vmem:[#allocation7 + $0xdb0] sm:$0xff]   ;;  %s6790_s29 = sand.u32 1, %s6789_s3  ;;  %s6776_s10 = sshll.u32 %s6775_s11, 16 }
 0x232   :  { %13469 = vmatpush3.bf16.msra.mxu1 %v14378_v18  ;;  %v3766_v49 = vadd.f32 %v13236_v51, %v16818_v47  ;;  %v6173_v47 = vmul.bf16 %v16990_v59, %v6170_v32  ;;  %v12408_v16 = vcombine.high %v6178_v10, %v6178_v10  ;;  %v12407_v55 = vcombine.low %v6178_v10, %v6178_v10  ;;  %v14394_v18 = vld [vmem:[#allocation7 + $0xdb8] sm:$0xff]   ;;  %v14401_v51 = vld [vmem:[#allocation7 + $0xd28] sm:$0xff]   ;;  %v14403_v24 = vld [vmem:[#allocation7 + $0xd60] sm:$0xff]   ;;  %s6791_s18 = sadd.s32 32767, %s6790_s29  ;;  %s17049_s8 = sor.u32 %s6776_s10, %s6775_s11 }
 0x233   :  { %13470 = vmatprep.subr.bf16.mxu1 %v14380_v42  ;;  %v13238_v26 = vpop.f32.mrf.mxu0  ;;  %v14399_v42 = vld [vmem:[#allocation7 + $0xd68] sm:$0xff]   ;;  %v14408_v32 = vld [vmem:[#allocation7 + $0xdd8] sm:$0xff]   ;;  %s6792_s7 = sadd.s32 %s17029_s16, %s6791_s18  ;;  %s17052_s22 = sld [smem:[#allocation2 + $0x485]] }
 0x234   :  { %v17003_v48 = vadd.f32 %v3766_v49, %v16712_v61  ;;  %v6176_v19 = vadd.bf16 %v6173_v47, %v6155_v31  ;;  %v14390_v61 = vld [vmem:[#allocation7 + $0xc80] sm:$0xff]   ;;  %6619 = vmatprep.mubr.bf16.mxu0 %v12408_v16  ;;  %v14407_v49 = vld [vmem:[#allocation7 + $0xd58] sm:$0xff]   ;;  %v6721_v47 = vstv %s17013_s21  ;;  %s6793_s20 = sand.u32 4294901760, %s6792_s7  ;;  %v6757_v16 = vstv %s17037_s6  ;;  %s17078_s26 = sld [smem:[#allocation2 + $0x486]] }
 0x235   :  { %6620 = vmatmul.mubr.bf16.vlgmr.msra.gmra.mxu0 %v12407_v55  ;;  %v14404_v31 = vld [vmem:[#allocation7 + $0xde0] sm:$0xff]   ;;  %s18637_s20 = smov (%p6788_p6, %s6793_s20), 2143289344  ;;  %v6723_v54 = vmul.bf16 %v16774_v12, %v6721_v47  ;;  %v6724_v10 = vmul.bf16 %v16783_v58, %v6721_v47  ;;  %v14412_v12 = vld [vmem:[#allocation7 + $0xdd0] sm:$0xff]   ;;  %v14415_v55 = vld [vmem:[#allocation7 + $0xd48] sm:$0xff]   ;;  %s17087_s1 = sld [smem:[#allocation2 + $0x487]] }
 0x236   :  { %13471 = vmatpush3.bf16.msra.mxu1 %v14382_v27  ;;  %v6179_v36 = vmax.bf16 %v15004_v13, %v6176_v19  ;;  %13483 = vmatpush3.bf16.msra.mxu0 %v14393_v41  ;;  %v14400_v27 = vld [vmem:[#allocation7 + $0xde8] sm:$0xff]   ;;  %v14413_v19 = vld [vmem:[#allocation7 + $0xd10] sm:$0xff]   ;;  %p6809_p7 = scmp.ne.f32.partialorder %s17046_s14, %s17046_s14  ;;  %s6810_s21 = sshrl.u32 %s17046_s14, 16 }
 0x237   :  { %13472 = vmatprep.subr.bf16.mxu1 %v14384_v8  ;;  %13484 = vmatprep.subr.bf16.mxu0 %v14395_v29  ;;  %v14406_v8 = vld [vmem:[#allocation7 + $0xda0] sm:$0xff]   ;;  %s6796_s9 = sshrl.u32 %s18637_s20, 16  ;;  %s6811_s24 = sand.u32 1, %s6810_s21  ;;  %v14414_v58 = vld [vmem:[#allocation7 + $0xd90] sm:$0xff]  }
 0x238   :  { %v12410_v63 = vcombine.high %v6179_v36, %v6179_v36  ;;  %v12409_v11 = vcombine.low %v6179_v36, %v6179_v36  ;;  %6699 = vmatprep.mubr.bf16.mxu0 %v12412_v38  ;;  %s6797_s4 = sshll.u32 %s6796_s9, 16  ;;  %s6812_s23 = sadd.s32 32767, %s6811_s24  ;;  %v14416_v38 = vld [vmem:[#allocation7 + $0xdc8] sm:$0xff]  }
 0x239   :  { %s17065_s25 = sor.u32 %s6797_s4, %s6796_s9  ;;  %s6813_s12 = sadd.s32 %s17046_s14, %s6812_s23 }
 0x23a   :  { %13473 = vmatpush3.bf16.msra.mxu1 %v14386_v3  ;;  %6659 = vmatprep.mubr.bf16.mxu1 %v12410_v63  ;;  %v6725_v63 = vmul.bf16 %v16792_v14, %v6721_v47  ;;  %v6759_v14 = vmul.bf16 %v16801_v56, %v6757_v16  ;;  %p6830_p8 = scmp.ne.f32.partialorder %s17052_s22, %s17052_s22  ;;  %v14419_v56 = vld [vmem:[#allocation7 + $0xd40] sm:$0xff]   ;;  %s6831_s27 = sshrl.u32 %s17052_s22, 16 }
 0x23b   :  { %13474 = vmatprep.subr.bf16.mxu1 %v14388_v46  ;;  %13485 = vmatpush3.bf16.msra.mxu0 %v14397_v52  ;;  %v14410_v46 = vld [vmem:[#allocation7 + $0xd98] sm:$0xff]   ;;  %v6760_v52 = vmul.bf16 %v16809_v2, %v6757_v16  ;;  %s6832_s19 = sand.u32 1, %s6831_s27  ;;  %p6851_p9 = scmp.ne.f32.partialorder %s17078_s26, %s17078_s26 }
 0x23c   :  { %13486 = vmatprep.subr.bf16.mxu0 %v14399_v42  ;;  %s6833_s30 = sadd.s32 32767, %s6832_s19  ;;  %s6852_s13 = sshrl.u32 %s17078_s26, 16 }
 0x23d   :  { %s6834_s15 = sadd.s32 %s17052_s22, %s6833_s30  ;;  %s6853_s14 = sand.u32 1, %s6852_s13 }
 0x23e   :  { %13475 = vmatpush3.bf16.msra.mxu1 %v14390_v61  ;;  %s6835_s6 = sand.u32 4294901760, %s6834_s15  ;;  %s6854_s29 = sadd.s32 32767, %s6853_s14 }
 0x23f   :  { %13504 = vmatprep.subr.bf16.mxu1 %v14392_v20  ;;  %13487 = vmatpush3.bf16.msra.mxu0 %v14401_v51  ;;  %v6739_v20 = vstv %s17026_s17  ;;  %s6814_s17 = sand.u32 4294901760, %s6813_s12  ;;  %v6778_v51 = vstv %s17049_s8  ;;  %s18641_s6 = smov (%p6830_p8, %s6835_s6), 2143289344 }
 0x240   :  { %13488 = vmatprep.subr.bf16.mxu0 %v14403_v24  ;;  %s18639_s17 = smov (%p6809_p7, %s6814_s17), 2143289344  ;;  %v6761_v24 = vmul.bf16 %v16823_v22, %v6757_v16  ;;  %s6838_s3 = sshrl.u32 %s18641_s6, 16 }
 0x241   :  { %6660 = vmatmul.mubr.bf16.vlgmr.msra.gmra.mxu1 %v12409_v11  ;;  %v6741_v11 = vadd.bf16 %v6739_v20, %v6723_v54  ;;  %s6817_s16 = sshrl.u32 %s18639_s17, 16  ;;  %s6839_s11 = sshll.u32 %s6838_s3, 16 }
 0x242   :  { %13505 = vmatpush3.bf16.msra.mxu1 %v14394_v18  ;;  %s6818_s0 = sshll.u32 %s6817_s16, 16  ;;  %s6840_s10 = sor.u32 %s6839_s11, %s6838_s3 }
 0x243   :  { %13506 = vmatprep.subr.bf16.mxu1 %v14396_v37  ;;  %13489 = vmatpush3.bf16.msra.mxu0 %v14405_v9  ;;  %v6742_v37 = vadd.bf16 %v6739_v20, %v6724_v10  ;;  %v14420_v9 = vld [vmem:[#allocation7 + $0xdc0] sm:$0xff]   ;;  %s6819_s28 = sor.u32 %s6818_s0, %s6817_s16  ;;  %v14425_v10 = vld [vmem:[#allocation7 + $0xe38] sm:$0xff]   ;;  %s6855_s18 = sadd.s32 %s17078_s26, %s6854_s29 }
 0x244   :  { %13490 = vmatprep.subr.bf16.mxu0 %v14407_v49  ;;  %v14421_v49 = vld [vmem:[#allocation7 + $0xd00] sm:$0xff]   ;;  %s6856_s8 = sand.u32 4294901760, %s6855_s18  ;;  %p6872_p10 = scmp.ne.f32.partialorder %s17087_s1, %s17087_s1 }
 0x245   :  { %v6763_v22 = vadd.bf16 %v6760_v52, %v6742_v37  ;;  %s18643_s8 = smov (%p6851_p9, %s6856_s8), 2143289344  ;;  %s6873_s7 = sshrl.u32 %s17087_s1, 16  ;;  %v14435_v37 = vld [vmem:[#allocation7 + $0xe60] sm:$0xff]  }
 0x246   :  { %13507 = vmatpush3.bf16.msra.mxu1 %v14398_v17  ;;  %v14417_v17 = vld [vmem:[#allocation7 + $0xd08] sm:$0xff]   ;;  %s17110_s20 = sld [smem:[#allocation2 + $0x488]]  ;;  %s6859_s22 = sshrl.u32 %s18643_s8, 16 }
 0x247   :  { %13508 = vmatprep.subr.bf16.mxu1 %v14400_v27  ;;  %13491 = vmatpush3.bf16.msra.mxu0 %v14409_v1  ;;  %v6743_v27 = vadd.bf16 %v6739_v20, %v6725_v63  ;;  %v6799_v1 = vstv %s17065_s25  ;;  %s6874_s21 = sand.u32 1, %s6873_s7  ;;  %s6860_s9 = sshll.u32 %s6859_s22, 16 }
 0x248   :  { %13492 = vmatprep.subr.bf16.mxu0 %v14411_v44  ;;  %v6782_v44 = vmul.bf16 %v16847_v7, %v6778_v51  ;;  %v6802_v54 = vmul.bf16 %v16869_v33, %v6799_v1  ;;  %v6803_v20 = vmul.bf16 %v16875_v25, %v6799_v1  ;;  %v6841_v25 = vstv %s6840_s10  ;;  %s6875_s24 = sadd.s32 32767, %s6874_s21  ;;  %s6861_s4 = sor.u32 %s6860_s9, %s6859_s22 }
 0x249   :  { %v6764_v47 = vadd.bf16 %v6761_v24, %v6743_v27  ;;  %s6876_s23 = sadd.s32 %s17087_s1, %s6875_s24  ;;  %s17116_s12 = sld [smem:[#allocation2 + $0x500]] }
 0x24a   :  { %13509 = vmatpush3.bf16.msra.mxu1 %v14402_v45  ;;  %s6877_s25 = sand.u32 4294901760, %s6876_s23  ;;  %s17137_s6 = sld [smem:[#allocation5 + $0xa]] }
 0x24b   :  { %13510 = vmatprep.subr.bf16.mxu1 %v14404_v31  ;;  %13493 = vmatpush3.bf16.msra.mxu0 %v14413_v19  ;;  %v14418_v31 = vld [vmem:[#allocation7 + $0xd88] sm:$0xff]   ;;  %v14424_v19 = vld [vmem:[#allocation7 + $0xef8] sm:$0xff]   ;;  %s18645_s25 = smov (%p6872_p10, %s6877_s25), 2143289344  ;;  %s17141_s18 = sld [smem:[#allocation2 + $0x501]] }
 0x24c   :  { %13494 = vmatprep.subr.bf16.mxu0 %v14415_v55  ;;  %p6893_p11 = scmp.ne.f32.partialorder %s17110_s20, %s17110_s20  ;;  %s6894_s17 = sshrl.u32 %s17110_s20, 16 }
 0x24d   :  { %s6880_s27 = sshrl.u32 %s18645_s25, 16  ;;  %s6895_s26 = sand.u32 1, %s6894_s17 }
 0x24e   :  { %13511 = vmatpush3.bf16.msra.mxu1 %v14406_v8  ;;  %v6762_v8 = vadd.bf16 %v6759_v14, %v6741_v11  ;;  %v6845_v11 = vmul.bf16 %v16921_v15, %v6841_v25  ;;  %v6862_v14 = vstv %s6861_s4  ;;  %s6881_s16 = sshll.u32 %s6880_s27, 16  ;;  %s6896_s19 = sadd.s32 32767, %s6895_s26 }
 0x24f   :  { %13512 = vmatprep.subr.bf16.mxu1 %v14408_v32  ;;  %v6780_v32 = vmul.bf16 %v16833_v43, %v6778_v51  ;;  %13495 = vmatpush3.bf16.msra.mxu0 %v14417_v17  ;;  %v14423_v43 = vld [vmem:[#allocation7 + $0xe78] sm:$0xff]   ;;  %v6865_v15 = vmul.bf16 %v16941_v5, %v6862_v14  ;;  %v6866_v27 = vmul.bf16 %v16947_v0, %v6862_v14  ;;  %s6882_s0 = sor.u32 %s6881_s16, %s6880_s27  ;;  %s6897_s30 = sadd.s32 %s17110_s20, %s6896_s19 }
 0x250   :  { %v13278_v36 = vpop.f32.mrf.mxu0  ;;  %13496 = vmatprep.subr.bf16.mxu0 %v14419_v56  ;;  %v6883_v24 = vstv %s6882_s0  ;;  %p7444_p12 = scmp.ne.f32.partialorder %s17116_s12, %s17116_s12  ;;  %s7445_s15 = sshrl.u32 %s17116_s12, 16 }
 0x251   :  { %v6886_v0 = vmul.bf16 %v16965_v21, %v6883_v24  ;;  %s7446_s13 = sand.u32 1, %s7445_s15  ;;  %p7462_p13 = scmp.ne.f32.partialorder %s17137_s6, %s17137_s6 }
 0x252   :  { %v13279_v29 = vpop.f32.mrf.mxu0  ;;  %13513 = vmatpush3.bf16.msra.mxu1 %v14410_v46  ;;  %v6783_v46 = vadd.bf16 %v6780_v32, %v6762_v8  ;;  %v14443_v8 = vld [vmem:[#allocation7 + $0xe50] sm:$0xff]   ;;  %s7447_s14 = sadd.s32 32767, %s7446_s13  ;;  %s7463_s8 = sshrl.u32 %s17137_s6, 16 }
 0x253   :  { %v13256_v26 = vpop.f32.mrf.mxu1  ;;  %v13280_v18 = vadd.f32 %v13279_v29, %v13278_v36  ;;  %13514 = vmatprep.subr.bf16.mxu1 %v14412_v12  ;;  %13497 = vmatpush3.bf16.msra.mxu0 %v14421_v49  ;;  %v14427_v36 = vld [vmem:[#allocation7 + $0xe70] sm:$0xff]   ;;  %v14433_v29 = vld [vmem:[#allocation7 + $0xe28] sm:$0xff]   ;;  %v6887_v49 = vmul.bf16 %v16971_v60, %v6883_v24  ;;  %s7448_s29 = sadd.s32 %s17116_s12, %s7447_s14  ;;  %s7464_s20 = sand.u32 1, %s7463_s8 }
 0x254   :  { %v13281_v42 = vpop.f32.mrf.mxu0  ;;  %13526 = vmatprep.subr.bf16.mxu0 %v14423_v43  ;;  %v14429_v12 = vld [vmem:[#allocation7 + $0xe30] sm:$0xff]   ;;  %v14447_v43 = vld [vmem:[#allocation7 + $0xe48] sm:$0xff]   ;;  %s7449_s10 = sand.u32 4294901760, %s7448_s29  ;;  %s7465_s21 = sadd.s32 32767, %s7464_s20 }
 0x255   :  { %v13257_v3 = vpop.f32.mrf.mxu1  ;;  %v14439_v42 = vld [vmem:[#allocation7 + $0xe58] sm:$0xff]   ;;  %s18649_s10 = smov (%p7444_p12, %s7449_s10), 2143289344  ;;  %s7466_s24 = sadd.s32 %s17137_s6, %s7465_s21 }
 0x256   :  { %v13258_v50 = vadd.f32 %v13257_v3, %v13256_v26  ;;  %v13282_v2 = vpop.f32.mrf.mxu0  ;;  %v6781_v26 = vmul.bf16 %v16839_v35, %v6778_v51  ;;  %13515 = vmatpush3.bf16.msra.mxu1 %v14414_v58  ;;  %v14422_v3 = vld [vmem:[#allocation7 + $0xd80] sm:$0xff]   ;;  %v12411_v35 = vcombine.low %v17011_v30, %v17011_v30  ;;  %v6785_v30 = vadd.bf16 %v6782_v44, %v6764_v47  ;;  %s7452_s7 = sshrl.u32 %s18649_s10, 16  ;;  %s7467_s4 = sand.u32 4294901760, %s7466_s24 }
 0x257   :  { %v13259_v61 = vpop.f32.mrf.mxu1  ;;  %13516 = vmatprep.subr.bf16.mxu1 %v14416_v38  ;;  %v6843_v58 = vmul.bf16 %v16908_v40, %v6841_v25  ;;  %v14437_v40 = vld [vmem:[#allocation7 + $0xe20] sm:$0xff]   ;;  %v6885_v2 = vmul.bf16 %v16956_v23, %v6883_v24  ;;  %s7453_s22 = sshll.u32 %s7452_s7, 16  ;;  %p7480_p0 = scmp.ne.f32.partialorder %s17141_s18, %s17141_s18  ;;  %v17218_v24 = vld [vmem:[%s18444_s2 + $0x8] sm:$0xff] }
 0x258   :  { %v17080_v45 = vadd.f32 %v13280_v18, %v13258_v50  ;;  %v6801_v50 = vmul.bf16 %v16860_v4, %v6799_v1  ;;  %v6784_v7 = vadd.bf16 %v6781_v26, %v6763_v22  ;;  %v6820_v61 = vstv %s6819_s28  ;;  %6700 = vmatmul.mubr.bf16.vlgmr.msra.gmra.mxu0 %v12411_v35  ;;  %s6898_s28 = sand.u32 4294901760, %s6897_s30  ;;  %v14445_v22 = vld [vmem:[#allocation7 + $0xe10] sm:$0xff]   ;;  %s17160_s9 = sor.u32 %s7453_s22, %s7452_s7 }
 0x259   :  { %v13260_v41 = vpop.f32.mrf.mxu1  ;;  %v6822_v33 = vmul.bf16 %v16882_v62, %v6820_v61  ;;  %v6823_v63 = vmul.bf16 %v16890_v28, %v6820_v61  ;;  %13527 = vmatpush3.bf16.msra.mxu0 %v14425_v10  ;;  %v6806_v55 = vadd.bf16 %v6803_v20, %v6785_v30  ;;  %v14431_v62 = vld [vmem:[#allocation7 + $0xe68] sm:$0xff]   ;;  %s18647_s28 = smov (%p6893_p11, %s6898_s28), 2143289344  ;;  %v14426_v30 = vld [vmem:[#allocation7 + $0xeb8] sm:$0xff]   ;;  %v14453_v20 = vld [vmem:[#allocation7 + $0xe00] sm:$0xff]   ;;  %s18651_s4 = smov (%p7462_p13, %s7467_s4), 2143289344 }
 0x25a   :  { %13517 = vmatpush3.bf16.msra.mxu1 %v14418_v31  ;;  %v6804_v4 = vadd.bf16 %v6801_v50, %v6783_v46  ;;  %v6805_v16 = vadd.bf16 %v6802_v54, %v6784_v7  ;;  %v6824_v41 = vmul.bf16 %v16899_v34, %v6820_v61  ;;  %13528 = vmatprep.subr.bf16.mxu0 %v14427_v36  ;;  %v14441_v31 = vld [vmem:[#allocation7 + $0xe18] sm:$0xff]   ;;  %s6901_s1 = sshrl.u32 %s18647_s28, 16  ;;  %v14449_v7 = vld [vmem:[#allocation7 + $0xe08] sm:$0xff]   ;;  %s7481_s23 = sshrl.u32 %s17141_s18, 16 }
 0x25b   :  { %13518 = vmatprep.subr.bf16.mxu1 %v14420_v9  ;;  %v6844_v34 = vmul.bf16 %v16914_v53, %v6841_v25  ;;  %v6864_v53 = vmul.bf16 %v16932_v39, %v6862_v14  ;;  %s6902_s3 = sshll.u32 %s6901_s1, 16  ;;  %s17171_s25 = sld [smem:[#allocation2 + $0x502]]  ;;  %v14467_v14 = vld [vmem:[#allocation7 + $0xf60] sm:$0xff]  }
 0x25c   :  { %v6825_v28 = vadd.bf16 %v6822_v33, %v6804_v4  ;;  %v6826_v18 = vadd.bf16 %v6823_v63, %v6805_v16  ;;  %v6827_v38 = vadd.bf16 %v6824_v41, %v6806_v55  ;;  %s6903_s11 = sor.u32 %s6902_s3, %s6901_s1  ;;  %v14428_v33 = vld [vmem:[#allocation7 + $0xef0] sm:$0xff]   ;;  %v14455_v63 = vld [vmem:[#allocation7 + $0xf78] sm:$0xff]   ;;  %s7470_s12 = sshrl.u32 %s18651_s4, 16  ;;  %v14432_v41 = vld [vmem:[#allocation7 + $0xee8] sm:$0xff]  }
 0x25d   :  { %13529 = vmatpush3.bf16.msra.mxu0 %v14429_v12  ;;  %v6904_v44 = vstv %s6903_s11  ;;  %s7482_s17 = sand.u32 1, %s7481_s23  ;;  %s7471_s27 = sshll.u32 %s7470_s12, 16  ;;  %v14430_v12 = vld [vmem:[#allocation7 + $0xeb0] sm:$0xff]   ;;  %v14457_v55 = vld [vmem:[#allocation7 + $0xf38] sm:$0xff]  }
 0x25e   :  { %13519 = vmatpush3.bf16.msra.mxu1 %v14422_v3  ;;  %13530 = vmatprep.subr.bf16.mxu0 %v14431_v62  ;;  %v6846_v52 = vadd.bf16 %v6843_v58, %v6825_v28  ;;  %v6847_v17 = vadd.bf16 %v6844_v34, %v6826_v18  ;;  %v6848_v51 = vadd.bf16 %v6845_v11, %v6827_v38  ;;  %s7483_s26 = sadd.s32 32767, %s7482_s17  ;;  %s17173_s16 = sor.u32 %s7471_s27, %s7470_s12  ;;  %v14459_v62 = vld [vmem:[#allocation7 + $0xf70] sm:$0xff]   ;;  %v14436_v58 = vld [vmem:[#allocation7 + $0xee0] sm:$0xff]   ;;  %v14463_v18 = vld [vmem:[#allocation7 + $0xf68] sm:$0xff]  }
 0x25f   :  { %13548 = vmatprep.subr.bf16.mxu1 %v14424_v19  ;;  %v6906_v35 = vmul.bf16 %v16984_v57, %v6904_v44  ;;  %v6907_v46 = vmul.bf16 %v16990_v59, %v6904_v44  ;;  %v6908_v50 = vmul.bf16 %v16996_v6, %v6904_v44  ;;  %v14451_v57 = vld [vmem:[#allocation7 + $0xe40] sm:$0xff]   ;;  %s7484_s19 = sadd.s32 %s17141_s18, %s7483_s26  ;;  %s17176_s30 = sld [smem:[#allocation2 + $0x503]]  ;;  %v14461_v28 = vld [vmem:[#allocation7 + $0xf30] sm:$0xff]   ;;  %v14465_v38 = vld [vmem:[#allocation7 + $0xf28] sm:$0xff]  }
 0x260   :  { %v6867_v39 = vadd.bf16 %v6864_v53, %v6846_v52  ;;  %v6868_v56 = vadd.bf16 %v6865_v15, %v6847_v17  ;;  %v6869_v9 = vadd.bf16 %v6866_v27, %v6848_v51  ;;  %s7485_s0 = sand.u32 4294901760, %s7484_s19  ;;  %v14438_v34 = vld [vmem:[#allocation7 + $0xea0] sm:$0xff]   ;;  %v14440_v11 = vld [vmem:[#allocation7 + $0xed8] sm:$0xff]   ;;  %s17193_s10 = sld [smem:[#allocation2 + $0x504]]  ;;  %v7455_v53 = vstv %s17160_s9 }
 0x261   :  { %13531 = vmatpush3.bf16.msra.mxu0 %v14433_v29  ;;  %s18653_s0 = smov (%p7480_p0, %s7485_s0), 2143289344  ;;  %p7501_p1 = scmp.ne.f32.partialorder %s17171_s25, %s17171_s25  ;;  %v14434_v29 = vld [vmem:[#allocation7 + $0xea8] sm:$0xff]   ;;  %v14469_v52 = vld [vmem:[#allocation7 + $0xf20] sm:$0xff]   ;;  %v14471_v17 = vld [vmem:[#allocation7 + $0xf58] sm:$0xff]  }
 0x262   :  { %13532 = vmatprep.subr.bf16.mxu0 %v14435_v37  ;;  %v6888_v1 = vadd.bf16 %v6885_v2, %v6867_v39  ;;  %v6889_v21 = vadd.bf16 %v6886_v0, %v6868_v56  ;;  %v6890_v60 = vadd.bf16 %v6887_v49, %v6869_v9  ;;  %s7502_s28 = sshrl.u32 %s17171_s25, 16  ;;  %s7488_s15 = sshrl.u32 %s18653_s0, 16  ;;  %v17209_v27 = vld [vmem:[%s18444_s2] sm:$0xff]  ;;  %v7458_v56 = vmul.bf16 %v17218_v24, %v7455_v53  ;;  %v14473_v0 = vld [vmem:[#allocation7 + $0xf18] sm:$0xff]  }
 0x263   :  { %s7503_s6 = sand.u32 1, %s7502_s28  ;;  %s7489_s1 = sshll.u32 %s7488_s15, 16  ;;  %v7457_v39 = vmul.bf16 %v17209_v27, %v7455_v53  ;;  %v7473_v9 = vstv %s17173_s16  ;;  %v17236_v44 = vld [vmem:[%s18444_s2 + $0x18] sm:$0xff] }
 0x264   :  { %v6910_v54 = vadd.bf16 %v6907_v46, %v6889_v21  ;;  %v6911_v61 = vadd.bf16 %v6908_v50, %v6890_v60  ;;  %s7504_s13 = sadd.s32 32767, %s7503_s6  ;;  %s17184_s3 = sor.u32 %s7489_s1, %s7488_s15  ;;  %v14450_v60 = vld [vmem:[#allocation7 + $0xe88] sm:$0xff]  }
 0x265   :  { %13533 = vmatpush3.bf16.msra.mxu0 %v14437_v40  ;;  %s7505_s14 = sadd.s32 %s17171_s25, %s7504_s13  ;;  %p7522_p2 = scmp.ne.f32.partialorder %s17176_s30, %s17176_s30  ;;  %v14442_v40 = vld [vmem:[#allocation7 + $0xe98] sm:$0xff]   ;;  %v7491_v49 = vstv %s17184_s3 }
 0x266   :  { %13534 = vmatprep.subr.bf16.mxu0 %v14439_v42  ;;  %v6913_v6 = vmax.bf16 %v15004_v13, %v6910_v54  ;;  %s7506_s11 = sand.u32 4294901760, %s7505_s14  ;;  %s7523_s29 = sshrl.u32 %s17176_s30, 16  ;;  %v14444_v42 = vld [vmem:[#allocation7 + $0xed0] sm:$0xff]  }
 0x267   :  { %s18655_s11 = smov (%p7501_p1, %s7506_s11), 2143289344  ;;  %s7524_s8 = sand.u32 1, %s7523_s29 }
 0x268   :  { %v12474_v4 = vcombine.high %v6913_v6, %v6913_v6  ;;  %v12473_v25 = vcombine.low %v6913_v6, %v6913_v6  ;;  %s7509_s18 = sshrl.u32 %s18655_s11, 16  ;;  %s7525_s20 = sadd.s32 32767, %s7524_s8  ;;  %v14452_v6 = vld [vmem:[#allocation7 + $0xec0] sm:$0xff]  }
 0x269   :  { %13535 = vmatpush3.bf16.msra.mxu0 %v14441_v31  ;;  %s7510_s7 = sshll.u32 %s7509_s18, 16  ;;  %s7526_s21 = sadd.s32 %s17176_s30, %s7525_s20  ;;  %v14446_v31 = vld [vmem:[#allocation7 + $0xe90] sm:$0xff]  }
 0x26a   :  { %13536 = vmatprep.subr.bf16.mxu0 %v14443_v8  ;;  %7393 = vmatprep.mubr.bf16.mxu0 %v12474_v4  ;;  %s17196_s22 = sor.u32 %s7510_s7, %s7509_s18  ;;  %s7527_s24 = sand.u32 4294901760, %s7526_s21  ;;  %v17227_v8 = vld [vmem:[%s18444_s2 + $0x10] sm:$0xff] }
 0x26b   :  { %s17199_s4 = sld [smem:[#allocation2 + $0x505]]  ;;  %s18657_s24 = smov (%p7522_p2, %s7527_s24), 2143289344 }
 0x26c   :  { %p7543_p3 = scmp.ne.f32.partialorder %s17193_s10, %s17193_s10  ;;  %s7544_s25 = sshrl.u32 %s17193_s10, 16 }
 0x26d   :  { %13537 = vmatpush3.bf16.msra.mxu0 %v14445_v22  ;;  %s7530_s27 = sshrl.u32 %s18657_s24, 16  ;;  %s7545_s26 = sand.u32 1, %s7544_s25  ;;  %v14448_v22 = vld [vmem:[#allocation7 + $0xec8] sm:$0xff]  }
 0x26e   :  { %13538 = vmatprep.subr.bf16.mxu0 %v14447_v43  ;;  %s7531_s30 = sshll.u32 %s7530_s27, 16  ;;  %s7546_s28 = sadd.s32 32767, %s7545_s26  ;;  %v7493_v43 = vmul.bf16 %v17236_v44, %v7491_v49 }
 0x26f   :  { %s17230_s16 = sor.u32 %s7531_s30, %s7530_s27  ;;  %s7547_s15 = sadd.s32 %s17193_s10, %s7546_s28 }
 0x270   :  { %s7548_s13 = sand.u32 4294901760, %s7547_s15  ;;  %s17260_s8 = sld [smem:[#allocation2 + $0x506]] }
 0x271   :  { %13539 = vmatpush3.bf16.msra.mxu0 %v14449_v7  ;;  %p7564_p4 = scmp.ne.f32.partialorder %s17199_s4, %s17199_s4  ;;  %v7512_v7 = vstv %s17196_s22  ;;  %s18659_s13 = smov (%p7543_p3, %s7548_s13), 2143289344 }
 0x272   :  { %13540 = vmatprep.subr.bf16.mxu0 %v14451_v57  ;;  %v17256_v57 = vld [vmem:[%s18444_s2 + $0x28] sm:$0xff]  ;;  %s7565_s18 = sshrl.u32 %s17199_s4, 16  ;;  %s7551_s10 = sshrl.u32 %s18659_s13, 16 }
 0x273   :  { %v13300_v5 = vpop.f32.mrf.mxu1  ;;  %s7566_s7 = sand.u32 1, %s7565_s18  ;;  %s7552_s21 = sshll.u32 %s7551_s10, 16 }
 0x274   :  { %s7567_s24 = sadd.s32 32767, %s7566_s7  ;;  %s7553_s25 = sor.u32 %s7552_s21, %s7551_s10 }
 0x275   :  { %v13301_v32 = vpop.f32.mrf.mxu1  ;;  %13541 = vmatpush3.bf16.msra.mxu0 %v14453_v20  ;;  %v17265_v20 = vld [vmem:[%s18444_s2 + $0x30] sm:$0xff]  ;;  %s7568_s12 = sadd.s32 %s17199_s4, %s7567_s24  ;;  %s17282_s19 = sld [smem:[#allocation2 + $0x507]] }
 0x276   :  { %v13302_v26 = vadd.f32 %v13301_v32, %v13300_v5  ;;  %13570 = vmatprep.subr.bf16.mxu0 %v14455_v63  ;;  %v7459_v32 = vmul.bf16 %v17227_v8, %v7455_v53  ;;  %v7514_v4 = vmul.bf16 %v17265_v20, %v7512_v7  ;;  %s7569_s26 = sand.u32 4294901760, %s7568_s12  ;;  %p7585_p5 = scmp.ne.f32.partialorder %s17260_s8, %s17260_s8  ;;  %v7554_v53 = vstv %s7553_s25 }
 0x277   :  { %v13303_v23 = vpop.f32.mrf.mxu1  ;;  %s18661_s26 = smov (%p7564_p4, %s7569_s26), 2143289344  ;;  %s7586_s28 = sshrl.u32 %s17260_s8, 16 }
 0x278   :  { %v4500_v47 = vadd.f32 %v13302_v26, %v17080_v45  ;;  %v6909_v45 = vadd.bf16 %v6906_v35, %v6888_v1  ;;  %7394 = vmatmul.mubr.bf16.vlgmr.msra.gmra.mxu0 %v12473_v25  ;;  %v14475_v26 = vld [vmem:[#allocation7 + $0xf50] sm:$0xff]   ;;  %v17244_v35 = vld [vmem:[%s18444_s2 + $0x20] sm:$0xff]  ;;  %s7572_s4 = sshrl.u32 %s18661_s26, 16  ;;  %s7587_s6 = sand.u32 1, %s7586_s28 }
 0x279   :  { %v13304_v3 = vpop.f32.mrf.mxu1  ;;  %13571 = vmatpush3.bf16.msra.mxu0 %v14457_v55  ;;  %v7494_v46 = vmul.bf16 %v17244_v35, %v7491_v49  ;;  %v14454_v25 = vld [vmem:[#allocation7 + $0xe80] sm:$0xff]   ;;  %v7533_v55 = vstv %s17230_s16  ;;  %s7573_s3 = sshll.u32 %s7572_s4, 16  ;;  %s7588_s14 = sadd.s32 32767, %s7587_s6 }
 0x27a   :  { %v17147_v19 = vadd.f32 %v4500_v47, %v17003_v48  ;;  %v6912_v59 = vmax.bf16 %v15004_v13, %v6909_v45  ;;  %v17158_v48 = vmax.bf16 %v15004_v13, %v6911_v61  ;;  %13572 = vmatprep.subr.bf16.mxu0 %v14459_v62  ;;  %v7475_v47 = vadd.bf16 %v7473_v9, %v7457_v39  ;;  %v14477_v45 = vld [vmem:[#allocation7 + $0xf10] sm:$0xff]   ;;  %v17279_v62 = vld [vmem:[%s18444_s2 + $0x40] sm:$0xff]  ;;  %v14487_v39 = vld [vmem:[#allocation7 + $0x1078] sm:$0xff]   ;;  %s7574_s11 = sor.u32 %s7573_s3, %s7572_s4  ;;  %s7589_s29 = sadd.s32 %s17260_s8, %s7588_s14 }
 0x27b   :  { %v7476_v3 = vadd.bf16 %v7473_v9, %v7458_v56  ;;  %v7477_v61 = vadd.bf16 %v7473_v9, %v7459_v32  ;;  %s7590_s7 = sand.u32 4294901760, %s7589_s29  ;;  %p7606_p6 = scmp.ne.f32.partialorder %s17282_s19, %s17282_s19  ;;  %v7575_v32 = vstv %s7574_s11 }
 0x27c   :  { %v12472_v10 = vcombine.high %v6912_v59, %v6912_v59  ;;  %v12471_v36 = vcombine.low %v6912_v59, %v6912_v59  ;;  %v12476_v16 = vcombine.high %v17158_v48, %v17158_v48  ;;  %v7495_v59 = vmul.bf16 %v17256_v57, %v7491_v49  ;;  %v14462_v49 = vld [vmem:[#allocation7 + $0xfb0] sm:$0xff]   ;;  %s18663_s7 = smov (%p7585_p5, %s7590_s7), 2143289344  ;;  %s7607_s23 = sshrl.u32 %s17282_s19, 16 }
 0x27d   :  { %13573 = vmatpush3.bf16.msra.mxu0 %v14461_v28  ;;  %v14456_v28 = vld [vmem:[#allocation7 + $0xff8] sm:$0xff]   ;;  %s17335_s9 = sld [smem:[#allocation2 + $0x508]]  ;;  %s7593_s25 = sshrl.u32 %s18663_s7, 16 }
 0x27e   :  { %7353 = vmatprep.mubr.bf16.mxu1 %v12472_v10  ;;  %13574 = vmatprep.subr.bf16.mxu0 %v14463_v18  ;;  %v14479_v10 = vld [vmem:[#allocation7 + $0xf48] sm:$0xff]   ;;  %v12475_v18 = vcombine.low %v17158_v48, %v17158_v48  ;;  %s7608_s12 = sand.u32 1, %s7607_s23  ;;  %s7594_s27 = sshll.u32 %s7593_s25, 16 }
 0x27f   :  { %7354 = vmatmul.mubr.bf16.vlgmr.msra.gmra.mxu1 %v12471_v36  ;;  %s7609_s26 = sadd.s32 32767, %s7608_s12  ;;  %s7595_s28 = sor.u32 %s7594_s27, %s7593_s25 }
 0x280   :  { %13549 = vmatpush3.bf16.msra.mxu1 %v14426_v30  ;;  %7433 = vmatprep.mubr.bf16.mxu1 %v12476_v16  ;;  %v7496_v30 = vadd.bf16 %v7493_v43, %v7475_v47  ;;  %v17271_v16 = vld [vmem:[%s18444_s2 + $0x38] sm:$0xff]  ;;  %s7610_s16 = sadd.s32 %s17282_s19, %s7609_s26  ;;  %s17356_s1 = sld [smem:[#allocation2 + $0x580]] }
 0x281   :  { %13550 = vmatprep.subr.bf16.mxu1 %v14428_v33  ;;  %13575 = vmatpush3.bf16.msra.mxu0 %v14465_v38  ;;  %v7497_v33 = vadd.bf16 %v7494_v46, %v7476_v3  ;;  %v7515_v63 = vmul.bf16 %v17271_v16, %v7512_v7  ;;  %v17292_v38 = vld [vmem:[%s18444_s2 + $0x48] sm:$0xff]  ;;  %v17346_v3 = vld [vmem:[%s18444_s2 + $0x80] sm:$0xff]  ;;  %s7611_s6 = sand.u32 4294901760, %s7610_s16  ;;  %s17407_s0 = sld [smem:[#allocation5 + $0xb]] }
 0x282   :  { %13576 = vmatprep.subr.bf16.mxu0 %v14467_v14  ;;  %v7578_v46 = vmul.bf16 %v17346_v3, %v7575_v32  ;;  %s18665_s6 = smov (%p7606_p6, %s7611_s6), 2143289344  ;;  %s17411_s3 = sld [smem:[#allocation2 + $0x581]] }
 0x283   :  { %v13322_v37 = vpop.f32.mrf.mxu0  ;;  %v7518_v14 = vadd.bf16 %v7515_v63, %v7497_v33  ;;  %p7627_p7 = scmp.ne.f32.partialorder %s17335_s9, %s17335_s9  ;;  %s7628_s14 = sshrl.u32 %s17335_s9, 16  ;;  %v17373_v33 = vld [vmem:[%s18444_s2 + $0x98] sm:$0xff] }
 0x284   :  { %13551 = vmatpush3.bf16.msra.mxu1 %v14430_v12  ;;  %v14481_v12 = vld [vmem:[#allocation7 + $0xf08] sm:$0xff]   ;;  %s7614_s19 = sshrl.u32 %s18665_s6, 16  ;;  %s7629_s18 = sand.u32 1, %s7628_s14 }
 0x285   :  { %13552 = vmatprep.subr.bf16.mxu1 %v14432_v41  ;;  %v13323_v15 = vpop.f32.mrf.mxu0  ;;  %13577 = vmatpush3.bf16.msra.mxu0 %v14469_v52  ;;  %v7498_v41 = vadd.bf16 %v7495_v59, %v7477_v61  ;;  %v14485_v52 = vld [vmem:[#allocation7 + $0xf00] sm:$0xff]   ;;  %s7615_s20 = sshll.u32 %s7614_s19, 16  ;;  %s7630_s22 = sadd.s32 32767, %s7629_s18 }
 0x286   :  { %v13324_v51 = vadd.f32 %v13323_v15, %v13322_v37  ;;  %13578 = vmatprep.subr.bf16.mxu0 %v14471_v17  ;;  %v17301_v37 = vld [vmem:[%s18444_s2 + $0x50] sm:$0xff]  ;;  %v17307_v17 = vld [vmem:[%s18444_s2 + $0x58] sm:$0xff]  ;;  %v14468_v59 = vld [vmem:[#allocation7 + $0xfe0] sm:$0xff]   ;;  %s7616_s21 = sor.u32 %s7615_s20, %s7614_s19  ;;  %s7631_s24 = sadd.s32 %s17335_s9, %s7630_s22 }
 0x287   :  { %v13325_v2 = vpop.f32.mrf.mxu0  ;;  %v7536_v48 = vmul.bf16 %v17301_v37, %v7533_v55  ;;  %v7537_v15 = vmul.bf16 %v17307_v17, %v7533_v55  ;;  %s7632_s23 = sand.u32 4294901760, %s7631_s24  ;;  %p8178_p8 = scmp.ne.f32.partialorder %s17356_s1, %s17356_s1 }
 0x288   :  { %13553 = vmatpush3.bf16.msra.mxu1 %v14434_v29  ;;  %v7516_v29 = vmul.bf16 %v17279_v62, %v7512_v7  ;;  %v17353_v7 = vld [vmem:[%s18444_s2 + $0x88] sm:$0xff]  ;;  %s18667_s23 = smov (%p7627_p7, %s7632_s23), 2143289344  ;;  %s8179_s9 = sshrl.u32 %s17356_s1, 16 }
 0x289   :  { %13554 = vmatprep.subr.bf16.mxu1 %v14436_v58  ;;  %v13326_v1 = vpop.f32.mrf.mxu0  ;;  %13579 = vmatpush3.bf16.msra.mxu0 %v14473_v0  ;;  %v14483_v58 = vld [vmem:[#allocation7 + $0xf40] sm:$0xff]   ;;  %v17322_v0 = vld [vmem:[%s18444_s2 + $0x68] sm:$0xff]  ;;  %v7579_v61 = vmul.bf16 %v17353_v7, %v7575_v32  ;;  %s7635_s30 = sshrl.u32 %s18667_s23, 16  ;;  %p8196_p9 = scmp.ne.f32.partialorder %s17407_s0, %s17407_s0 }
 0x28a   :  { %13580 = vmatprep.subr.bf16.mxu0 %v14475_v26  ;;  %v7557_v9 = vmul.bf16 %v17322_v0, %v7554_v53  ;;  %v17331_v26 = vld [vmem:[%s18444_s2 + $0x70] sm:$0xff]  ;;  %v14464_v1 = vld [vmem:[#allocation7 + $0xfe8] sm:$0xff]   ;;  %s7636_s16 = sshll.u32 %s7635_s30, 16  ;;  %s8197_s7 = sshrl.u32 %s17407_s0, 16 }
 0x28b   :  { %s7637_s4 = sor.u32 %s7636_s16, %s7635_s30  ;;  %s8198_s22 = sand.u32 1, %s8197_s7 }
 0x28c   :  { %13555 = vmatpush3.bf16.msra.mxu1 %v14438_v34  ;;  %v7517_v34 = vadd.bf16 %v7514_v4, %v7496_v30  ;;  %p8214_p10 = scmp.ne.f32.partialorder %s17411_s3, %s17411_s3  ;;  %s8215_s12 = sshrl.u32 %s17411_s3, 16 }
 0x28d   :  { %13556 = vmatprep.subr.bf16.mxu1 %v14440_v11  ;;  %13581 = vmatpush3.bf16.msra.mxu0 %v14477_v45  ;;  %v7535_v11 = vmul.bf16 %v17292_v38, %v7533_v55  ;;  %v17379_v55 = vld [vmem:[%s18444_s2 + $0xa0] sm:$0xff]  ;;  %s17454_s8 = sld [smem:[#allocation2 + $0x582]]  ;;  %s8216_s27 = sand.u32 1, %s8215_s12 }
 0x28e   :  { %13582 = vmatprep.subr.bf16.mxu0 %v14479_v10  ;;  %s17461_s16 = sld [smem:[#allocation2 + $0x583]] }
 0x28f   :  { %v7538_v56 = vadd.bf16 %v7535_v11, %v7517_v34  ;;  %v14474_v11 = vld [vmem:[#allocation7 + $0xf98] sm:$0xff]   ;;  %s17478_s18 = sld [smem:[#allocation2 + $0x584]] }
 0x290   :  { %13557 = vmatpush3.bf16.msra.mxu1 %v14442_v40  ;;  %v14458_v40 = vld [vmem:[#allocation7 + $0xfb8] sm:$0xff]  }
 0x291   :  { %13558 = vmatprep.subr.bf16.mxu1 %v14444_v42  ;;  %13583 = vmatpush3.bf16.msra.mxu0 %v14481_v12  ;;  %v7519_v42 = vadd.bf16 %v7516_v29, %v7498_v41  ;;  %v14472_v29 = vld [vmem:[#allocation7 + $0xfd8] sm:$0xff]  }
 0x292   :  { %13584 = vmatprep.subr.bf16.mxu0 %v14483_v58  ;;  %v7617_v58 = vstv %s7616_s21 }
 0x293   :  { %v13344_v5 = vpop.f32.mrf.mxu1  ;;  %p8235_p11 = scmp.ne.f32.partialorder %s17454_s8, %s17454_s8 }
 0x294   :  { %13559 = vmatpush3.bf16.msra.mxu1 %v14446_v31  ;;  %v7539_v31 = vadd.bf16 %v7536_v48, %v7518_v14  ;;  %v17388_v14 = vld [vmem:[%s18444_s2 + $0xa8] sm:$0xff]  ;;  %p8256_p12 = scmp.ne.f32.partialorder %s17461_s16, %s17461_s16  ;;  %s8257_s19 = sshrl.u32 %s17461_s16, 16 }
 0x295   :  { %v13345_v23 = vpop.f32.mrf.mxu1  ;;  %13560 = vmatprep.subr.bf16.mxu1 %v14448_v22  ;;  %13585 = vmatpush3.bf16.msra.mxu0 %v14485_v52  ;;  %v7540_v22 = vadd.bf16 %v7537_v15, %v7519_v42  ;;  %v7619_v48 = vmul.bf16 %v17388_v14, %v7617_v58  ;;  %v17403_v42 = vld [vmem:[%s18444_s2 + $0xb8] sm:$0xff]  ;;  %s8258_s7 = sand.u32 1, %s8257_s19  ;;  %p8277_p13 = scmp.ne.f32.partialorder %s17478_s18, %s17478_s18 }
 0x296   :  { %v13346_v21 = vadd.f32 %v13345_v23, %v13344_v5  ;;  %v17314_v5 = vld [vmem:[%s18444_s2 + $0x60] sm:$0xff]  ;;  %v7558_v23 = vmul.bf16 %v17331_v26, %v7554_v53  ;;  %13614 = vmatprep.subr.bf16.mxu0 %v14487_v39  ;;  %v7560_v43 = vadd.bf16 %v7557_v9, %v7539_v31  ;;  %v7621_v15 = vmul.bf16 %v17403_v42, %v7617_v58  ;;  %v14478_v31 = vld [vmem:[#allocation7 + $0xf90] sm:$0xff]  }
 0x297   :  { %v13347_v50 = vpop.f32.mrf.mxu1  ;;  %v7556_v2 = vmul.bf16 %v17314_v5, %v7554_v53 }
 0x298   :  { %v17251_v54 = vadd.f32 %v13346_v21, %v13324_v51  ;;  %13561 = vmatpush3.bf16.msra.mxu1 %v14450_v60  ;;  %v14460_v51 = vld [vmem:[#allocation7 + $0xff0] sm:$0xff]   ;;  %v17340_v60 = vld [vmem:[%s18444_s2 + $0x78] sm:$0xff]  ;;  %v14466_v50 = vld [vmem:[#allocation7 + $0xfa8] sm:$0xff]   ;;  %v7561_v45 = vadd.bf16 %v7558_v23, %v7540_v22  ;;  %v7581_v4 = vadd.bf16 %v7578_v46, %v7560_v43 }
 0x299   :  { %v13348_v36 = vpop.f32.mrf.mxu1  ;;  %13562 = vmatprep.subr.bf16.mxu1 %v14452_v6  ;;  %v7559_v21 = vadd.bf16 %v7556_v2, %v7538_v56  ;;  %v7577_v47 = vmul.bf16 %v17340_v60, %v7575_v32  ;;  %v7596_v6 = vstv %s7595_s28  ;;  %s8180_s28 = sand.u32 1, %s8179_s9  ;;  %v14480_v23 = vld [vmem:[#allocation7 + $0xfc8] sm:$0xff]   ;;  %s8217_s9 = sadd.s32 32767, %s8216_s27 }
 0x29a   :  { %v17364_v36 = vld [vmem:[%s18444_s2 + $0x90] sm:$0xff]  ;;  %v7599_v63 = vmul.bf16 %v17373_v33, %v7596_v6  ;;  %v7582_v12 = vadd.bf16 %v7579_v61, %v7561_v45  ;;  %v7600_v41 = vmul.bf16 %v17379_v55, %v7596_v6  ;;  %s8181_s15 = sadd.s32 32767, %s8180_s28  ;;  %s8218_s30 = sadd.s32 %s17411_s3, %s8217_s9 }
 0x29b   :  { %v7580_v10 = vadd.bf16 %v7577_v47, %v7559_v21  ;;  %v7598_v30 = vmul.bf16 %v17364_v36, %v7596_v6  ;;  %s8182_s6 = sadd.s32 %s17356_s1, %s8181_s15  ;;  %v17416_v47 = vld [vmem:[%s18444_s2 + $0xc0] sm:$0xff]  ;;  %s8199_s1 = sadd.s32 32767, %s8198_s22 }
 0x29c   :  { %13563 = vmatpush3.bf16.msra.mxu1 %v14454_v25  ;;  %v14470_v25 = vld [vmem:[#allocation7 + $0xfa0] sm:$0xff]   ;;  %v7603_v53 = vadd.bf16 %v7600_v41, %v7582_v12  ;;  %s8183_s13 = sand.u32 4294901760, %s8182_s6  ;;  %s8200_s23 = sadd.s32 %s17407_s0, %s8199_s1  ;;  %v14488_v41 = vld [vmem:[#allocation7 + $0x10f8] sm:$0xff]  }
 0x29d   :  { %13592 = vmatprep.subr.bf16.mxu1 %v14456_v28  ;;  %v7601_v28 = vadd.bf16 %v7598_v30, %v7580_v10  ;;  %s18669_s13 = smov (%p8178_p8, %s8183_s13), 2143289344  ;;  %s8201_s25 = sand.u32 4294901760, %s8200_s23 }
 0x29e   :  { %v7624_v32 = vadd.bf16 %v7621_v15, %v7603_v53  ;;  %s8186_s20 = sshrl.u32 %s18669_s13, 16  ;;  %s18671_s25 = smov (%p8196_p9, %s8201_s25), 2143289344  ;;  %v14492_v53 = vld [vmem:[#allocation7 + $0x10f0] sm:$0xff]  }
 0x29f   :  { %7434 = vmatmul.mubr.bf16.vlgmr.msra.gmra.mxu1 %v12475_v18  ;;  %v7602_v18 = vadd.bf16 %v7599_v63, %v7581_v4  ;;  %v7622_v9 = vadd.bf16 %v7619_v48, %v7601_v28  ;;  %v14484_v4 = vld [vmem:[#allocation7 + $0xfc0] sm:$0xff]   ;;  %s8187_s21 = sshll.u32 %s8186_s20, 16  ;;  %s8204_s17 = sshrl.u32 %s18671_s25, 16  ;;  %v14493_v15 = vld [vmem:[#allocation7 + $0x1030] sm:$0xff]  }
 0x2a0   :  { %13593 = vmatpush3.bf16.msra.mxu1 %v14458_v40  ;;  %v17397_v40 = vld [vmem:[%s18444_s2 + $0xb0] sm:$0xff]  ;;  %s17445_s24 = sor.u32 %s8187_s21, %s8186_s20  ;;  %s8205_s26 = sshll.u32 %s8204_s17, 16 }
 0x2a1   :  { %13594 = vmatprep.subr.bf16.mxu1 %v14460_v51  ;;  %v7620_v52 = vmul.bf16 %v17397_v40, %v7617_v58  ;;  %v14476_v51 = vld [vmem:[#allocation7 + $0xfd0] sm:$0xff]   ;;  %s17458_s0 = sor.u32 %s8205_s26, %s8204_s17  ;;  %s8219_s28 = sand.u32 4294901760, %s8218_s30 }
 0x2a2   :  { %s18673_s28 = smov (%p8214_p10, %s8219_s28), 2143289344  ;;  %s8236_s15 = sshrl.u32 %s17454_s8, 16 }
 0x2a3   :  { %s8237_s6 = sand.u32 1, %s8236_s15  ;;  %s8259_s22 = sadd.s32 32767, %s8258_s7 }
 0x2a4   :  { %13595 = vmatpush3.bf16.msra.mxu1 %v14462_v49  ;;  %v13366_v34 = vpop.f32.mrf.mxu0  ;;  %v7623_v49 = vadd.bf16 %v7620_v52, %v7602_v18  ;;  %v14489_v18 = vld [vmem:[#allocation7 + $0x1038] sm:$0xff]   ;;  %s8238_s3 = sadd.s32 32767, %s8237_s6  ;;  %s8260_s1 = sadd.s32 %s17461_s16, %s8259_s22 }
 0x2a5   :  { %13596 = vmatprep.subr.bf16.mxu1 %v14464_v1  ;;  %v7638_v1 = vstv %s7637_s4  ;;  %s8222_s4 = sshrl.u32 %s18673_s28, 16  ;;  %s8239_s11 = sadd.s32 %s17454_s8, %s8238_s3 }
 0x2a6   :  { %v13367_v39 = vpop.f32.mrf.mxu0  ;;  %v7640_v43 = vmul.bf16 %v17416_v47, %v7638_v1  ;;  %s8223_s13 = sshll.u32 %s8222_s4, 16  ;;  %s8240_s29 = sand.u32 4294901760, %s8239_s11 }
 0x2a7   :  { %v13368_v56 = vadd.f32 %v13367_v39, %v13366_v34  ;;  %v14491_v34 = vld [vmem:[#allocation7 + $0x1070] sm:$0xff]   ;;  %s17469_s14 = sor.u32 %s8223_s13, %s8222_s4  ;;  %s18675_s29 = smov (%p8235_p11, %s8240_s29), 2143289344 }
 0x2a8   :  { %13597 = vmatpush3.bf16.msra.mxu1 %v14466_v50  ;;  %v13369_v2 = vpop.f32.mrf.mxu0  ;;  %v17428_v50 = vld [vmem:[%s18444_s2 + $0xd0] sm:$0xff]  ;;  %v7643_v6 = vadd.bf16 %v7640_v43, %v7622_v9  ;;  %v14498_v9 = vld [vmem:[#allocation7 + $0x10a8] sm:$0xff]   ;;  %s8243_s10 = sshrl.u32 %s18675_s29, 16  ;;  %s8261_s23 = sand.u32 4294901760, %s8260_s1 }
 0x2a9   :  { %13598 = vmatprep.subr.bf16.mxu1 %v14468_v59  ;;  %v5234_v22 = vadd.f32 %v13368_v56, %v17251_v54  ;;  %v17422_v54 = vld [vmem:[%s18444_s2 + $0xc8] sm:$0xff]  ;;  %v7642_v45 = vmul.bf16 %v17428_v50, %v7638_v1  ;;  %v14494_v39 = vld [vmem:[#allocation7 + $0x10b0] sm:$0xff]   ;;  %s8244_s20 = sshll.u32 %s8243_s10, 16  ;;  %s17484_s25 = sld [smem:[#allocation2 + $0x585]] }
 0x2aa   :  { %v13370_v21 = vpop.f32.mrf.mxu0  ;;  %v7641_v46 = vmul.bf16 %v17422_v54, %v7638_v1  ;;  %v14482_v59 = vld [vmem:[#allocation7 + $0xf88] sm:$0xff]   ;;  %v7646_v63 = vmax.bf16 %v15004_v13, %v7643_v6  ;;  %v14504_v1 = vld [vmem:[#allocation7 + $0x10d8] sm:$0xff]   ;;  %s17481_s21 = sor.u32 %s8244_s20, %s8243_s10  ;;  %s18677_s23 = smov (%p8256_p12, %s8261_s23), 2143289344 }
 0x2ab   :  { %v17435_v61 = vadd.f32 %v5234_v22, %v17147_v19  ;;  %v7645_v30 = vadd.bf16 %v7642_v45, %v7624_v32  ;;  %v14486_v19 = vld [vmem:[#allocation7 + $0xf80] sm:$0xff]   ;;  %v14496_v56 = vld [vmem:[#allocation7 + $0x10e8] sm:$0xff]   ;;  %v14503_v22 = vld [vmem:[#allocation7 + $0x1058] sm:$0xff]   ;;  %s8264_s12 = sshrl.u32 %s18677_s23, 16  ;;  %s17510_s28 = sld [smem:[#allocation2 + $0x586]] }
 0x2ac   :  { %13599 = vmatpush3.bf16.msra.mxu1 %v14470_v25  ;;  %v7644_v10 = vadd.bf16 %v7641_v46, %v7623_v49  ;;  %v12535_v58 = vcombine.low %v7646_v63, %v7646_v63  ;;  %v14497_v2 = vld [vmem:[#allocation7 + $0x1028] sm:$0xff]   ;;  %v14500_v49 = vld [vmem:[#allocation7 + $0x10e0] sm:$0xff]   ;;  %v14505_v21 = vld [vmem:[#allocation7 + $0x1018] sm:$0xff]   ;;  %v8189_v46 = vstv %s17445_s24  ;;  %s8278_s24 = sshrl.u32 %s17478_s18, 16  ;;  %s8265_s17 = sshll.u32 %s8264_s12, 16 }
 0x2ad   :  { %13600 = vmatprep.subr.bf16.mxu1 %v14472_v29  ;;  %v17443_v12 = vmax.bf16 %v15004_v13, %v7645_v30  ;;  %v12536_v29 = vcombine.high %v7646_v63, %v7646_v63  ;;  %v14501_v32 = vld [vmem:[#allocation7 + $0x1020] sm:$0xff]   ;;  %v14507_v45 = vld [vmem:[#allocation7 + $0x1050] sm:$0xff]   ;;  %v14506_v6 = vld [vmem:[#allocation7 + $0x1098] sm:$0xff]   ;;  %v8192_v63 = vmul.bf16 %v17218_v24, %v8189_v46  ;;  %s8279_s8 = sand.u32 1, %s8278_s24  ;;  %s17497_s26 = sor.u32 %s8265_s17, %s8264_s12 }
 0x2ae   :  { %v7647_v25 = vmax.bf16 %v15004_v13, %v7644_v10  ;;  %v14509_v30 = vld [vmem:[#allocation7 + $0x1010] sm:$0xff]   ;;  %s8280_s27 = sadd.s32 32767, %s8279_s8  ;;  %s17519_s11 = sld [smem:[#allocation2 + $0x587]] }
 0x2af   :  { %8087 = vmatprep.mubr.bf16.mxu0 %v12536_v29  ;;  %v12540_v48 = vcombine.high %v17443_v12, %v17443_v12  ;;  %v8225_v29 = vstv %s17469_s14  ;;  %v14510_v24 = vld [vmem:[#allocation7 + $0x1090] sm:$0xff]   ;;  %s8281_s9 = sadd.s32 %s17478_s18, %s8280_s27  ;;  %p8298_p0 = scmp.ne.f32.partialorder %s17484_s25, %s17484_s25 }
 0x2b0   :  { %13601 = vmatpush3.bf16.msra.mxu1 %v14474_v11  ;;  %v12538_v28 = vcombine.high %v7647_v25, %v7647_v25  ;;  %v14490_v11 = vld [vmem:[#allocation7 + $0x10b8] sm:$0xff]   ;;  %8088 = vmatmul.mubr.bf16.vlgmr.msra.gmra.mxu0 %v12535_v58  ;;  %v12537_v52 = vcombine.low %v7647_v25, %v7647_v25  ;;  %v14511_v58 = vld [vmem:[#allocation7 + $0x1048] sm:$0xff]   ;;  %s8299_s30 = sshrl.u32 %s17484_s25, 16  ;;  %s17542_s23 = sld [smem:[#allocation2 + $0x588]] }
 0x2b1   :  { %13602 = vmatprep.subr.bf16.mxu1 %v14476_v51  ;;  %13615 = vmatpush3.bf16.msra.mxu0 %v14489_v18  ;;  %v14495_v51 = vld [vmem:[#allocation7 + $0x1068] sm:$0xff]   ;;  %s8300_s15 = sand.u32 1, %s8299_s30  ;;  %p8319_p1 = scmp.ne.f32.partialorder %s17510_s28, %s17510_s28 }
 0x2b2   :  { %8127 = vmatprep.mubr.bf16.mxu1 %v12538_v28  ;;  %13616 = vmatprep.subr.bf16.mxu0 %v14491_v34  ;;  %v8193_v28 = vmul.bf16 %v17227_v8, %v8189_v46  ;;  %v8227_v8 = vmul.bf16 %v17236_v44, %v8225_v29  ;;  %v14515_v44 = vld [vmem:[#allocation7 + $0x1040] sm:$0xff]   ;;  %s8301_s6 = sadd.s32 32767, %s8300_s15  ;;  %s8320_s29 = sshrl.u32 %s17510_s28, 16 }
 0x2b3   :  { %8167 = vmatprep.mubr.bf16.mxu0 %v12540_v48  ;;  %v14512_v48 = vld [vmem:[#allocation7 + $0x10c8] sm:$0xff]   ;;  %s8302_s3 = sadd.s32 %s17484_s25, %s8301_s6  ;;  %s8321_s18 = sand.u32 1, %s8320_s29 }
 0x2b4   :  { %13603 = vmatpush3.bf16.msra.mxu1 %v14478_v31  ;;  %v14499_v31 = vld [vmem:[#allocation7 + $0x1060] sm:$0xff]   ;;  %s8303_s14 = sand.u32 4294901760, %s8302_s3  ;;  %s8322_s7 = sadd.s32 32767, %s8321_s18 }
 0x2b5   :  { %13604 = vmatprep.subr.bf16.mxu1 %v14480_v23  ;;  %13617 = vmatpush3.bf16.msra.mxu0 %v14493_v15  ;;  %v14502_v23 = vld [vmem:[#allocation7 + $0x10a0] sm:$0xff]   ;;  %v8228_v15 = vmul.bf16 %v17244_v35, %v8225_v29  ;;  %s18681_s14 = smov (%p8298_p0, %s8303_s14), 2143289344  ;;  %s8323_s22 = sadd.s32 %s17510_s28, %s8322_s7 }
 0x2b6   :  { %13618 = vmatprep.subr.bf16.mxu0 %v14495_v51  ;;  %s8306_s19 = sshrl.u32 %s18681_s14, 16  ;;  %p8340_p2 = scmp.ne.f32.partialorder %s17519_s11, %s17519_s11 }
 0x2b7   :  { %s8307_s10 = sshll.u32 %s8306_s19, 16  ;;  %s8341_s1 = sshrl.u32 %s17519_s11, 16 }
 0x2b8   :  { %13605 = vmatpush3.bf16.msra.mxu1 %v14482_v59  ;;  %s8308_s20 = sor.u32 %s8307_s10, %s8306_s19  ;;  %s8342_s24 = sand.u32 1, %s8341_s1 }
 0x2b9   :  { %13606 = vmatprep.subr.bf16.mxu1 %v14484_v4  ;;  %13619 = vmatpush3.bf16.msra.mxu0 %v14497_v2  ;;  %v8191_v4 = vmul.bf16 %v17209_v27, %v8189_v46  ;;  %v14508_v27 = vld [vmem:[#allocation7 + $0x10d0] sm:$0xff]   ;;  %s8343_s8 = sadd.s32 32767, %s8342_s24  ;;  %p8361_p3 = scmp.ne.f32.partialorder %s17542_s23, %s17542_s23 }
 0x2ba   :  { %13620 = vmatprep.subr.bf16.mxu0 %v14499_v31  ;;  %v8229_v31 = vmul.bf16 %v17256_v57, %v8225_v29  ;;  %s8344_s27 = sadd.s32 %s17519_s11, %s8343_s8  ;;  %s17569_s14 = sld [smem:[#allocation5 + $0xc]] }
 0x2bc   :  { %13607 = vmatpush3.bf16.msra.mxu1 %v14486_v19 }
 0x2bd   :  { %13636 = vmatprep.subr.bf16.mxu1 %v14488_v41  ;;  %13621 = vmatpush3.bf16.msra.mxu0 %v14501_v32  ;;  %v8207_v41 = vstv %s17458_s0  ;;  %s8282_s0 = sand.u32 4294901760, %s8281_s9  ;;  %v14516_v32 = vld [vmem:[#allocation7 + $0x10c0] sm:$0xff]   ;;  %s17548_s9 = sld [smem:[#allocation2 + $0x600]] }
 0x2be   :  { %13622 = vmatprep.subr.bf16.mxu0 %v14503_v22  ;;  %s18679_s0 = smov (%p8277_p13, %s8282_s0), 2143289344  ;;  %v8211_v2 = vadd.bf16 %v8207_v41, %v8193_v28 }
 0x2bf   :  { %8128 = vmatmul.mubr.bf16.vlgmr.msra.gmra.mxu1 %v12537_v52  ;;  %v8209_v52 = vadd.bf16 %v8207_v41, %v8191_v4  ;;  %s8285_s16 = sshrl.u32 %s18679_s0, 16  ;;  %v14523_v4 = vld [vmem:[#allocation7 + $0x1170] sm:$0xff]   ;;  %s8362_s0 = sshrl.u32 %s17542_s23, 16 }
 0x2c0   :  { %13637 = vmatpush3.bf16.msra.mxu1 %v14490_v11  ;;  %s8286_s4 = sshll.u32 %s8285_s16, 16  ;;  %v8232_v46 = vadd.bf16 %v8229_v31, %v8211_v2  ;;  %s8363_s28 = sand.u32 1, %s8362_s0 }
 0x2c1   :  { %13638 = vmatprep.subr.bf16.mxu1 %v14492_v53  ;;  %v13388_v43 = vpop.f32.mrf.mxu1  ;;  %13623 = vmatpush3.bf16.msra.mxu0 %v14505_v21  ;;  %v8210_v53 = vadd.bf16 %v8207_v41, %v8192_v63  ;;  %v8230_v22 = vadd.bf16 %v8227_v8, %v8209_v52  ;;  %v14517_v21 = vld [vmem:[#allocation7 + $0x1000] sm:$0xff]   ;;  %s8287_s13 = sor.u32 %s8286_s4, %s8285_s16  ;;  %s8364_s15 = sadd.s32 32767, %s8363_s28 }
 0x2c2   :  { %13624 = vmatprep.subr.bf16.mxu0 %v14507_v45  ;;  %s8365_s6 = sadd.s32 %s17542_s23, %s8364_s15  ;;  %p8930_p5 = scmp.ne.f32.partialorder %s17569_s14, %s17569_s14 }
 0x2c3   :  { %v13389_v59 = vpop.f32.mrf.mxu1  ;;  %v8231_v57 = vadd.bf16 %v8228_v15, %v8210_v53  ;;  %v14531_v53 = vld [vmem:[#allocation7 + $0x1160] sm:$0xff]   ;;  %p8912_p4 = scmp.ne.f32.partialorder %s17548_s9, %s17548_s9  ;;  %s8913_s3 = sshrl.u32 %s17548_s9, 16 }
 0x2c4   :  { %13639 = vmatpush3.bf16.msra.mxu1 %v14494_v39  ;;  %v13390_v10 = vadd.f32 %v13389_v59, %v13388_v43  ;;  %v14513_v39 = vld [vmem:[#allocation7 + $0x1008] sm:$0xff]   ;;  %v8267_v43 = vstv %s17497_s26  ;;  %v14518_v59 = vld [vmem:[#allocation7 + $0x1080] sm:$0xff]   ;;  %s8345_s26 = sand.u32 4294901760, %s8344_s27  ;;  %s8914_s29 = sand.u32 1, %s8913_s3 }
 0x2c5   :  { %13640 = vmatprep.subr.bf16.mxu1 %v14496_v56  ;;  %v13391_v19 = vpop.f32.mrf.mxu1  ;;  %v13410_v25 = vpop.f32.mrf.mxu0  ;;  %13625 = vmatpush3.bf16.msra.mxu0 %v14509_v30  ;;  %v8246_v56 = vstv %s17481_s21  ;;  %v8269_v30 = vmul.bf16 %v17292_v38, %v8267_v43  ;;  %v8270_v63 = vmul.bf16 %v17301_v37, %v8267_v43  ;;  %v8271_v41 = vmul.bf16 %v17307_v17, %v8267_v43  ;;  %s8324_s21 = sand.u32 4294901760, %s8323_s22  ;;  %s18685_s26 = smov (%p8340_p2, %s8345_s26), 2143289344 }
 0x2c6   :  { %13626 = vmatprep.subr.bf16.mxu0 %v14511_v58  ;;  %v8250_v45 = vmul.bf16 %v17279_v62, %v8246_v56  ;;  %v14520_v62 = vld [vmem:[#allocation7 + $0x11f8] sm:$0xff]   ;;  %v8309_v17 = vstv %s8308_s20  ;;  %s18683_s21 = smov (%p8319_p1, %s8324_s21), 2143289344  ;;  %s8348_s30 = sshrl.u32 %s18685_s26, 16 }
 0x2c7   :  { %v13392_v18 = vpop.f32.mrf.mxu1  ;;  %v13411_v34 = vpop.f32.mrf.mxu0  ;;  %s8327_s25 = sshrl.u32 %s18683_s21, 16  ;;  %v8313_v52 = vmul.bf16 %v17353_v7, %v8309_v17  ;;  %s8349_s16 = sshll.u32 %s8348_s30, 16 }
 0x2c8   :  { %13641 = vmatpush3.bf16.msra.mxu1 %v14498_v9  ;;  %v13412_v11 = vadd.f32 %v13411_v34, %v13410_v25  ;;  %v8288_v25 = vstv %s8287_s13  ;;  %v14529_v34 = vld [vmem:[#allocation7 + $0x1128] sm:$0xff]   ;;  %s8328_s12 = sshll.u32 %s8327_s25, 16  ;;  %s8350_s4 = sor.u32 %s8349_s16, %s8348_s30 }
 0x2c9   :  { %13642 = vmatprep.subr.bf16.mxu1 %v14500_v49  ;;  %v13413_v51 = vpop.f32.mrf.mxu0  ;;  %v14514_v49 = vld [vmem:[#allocation7 + $0x1088] sm:$0xff]   ;;  %13627 = vmatpush3.bf16.msra.mxu0 %v14513_v39  ;;  %v8290_v37 = vmul.bf16 %v17314_v5, %v8288_v25  ;;  %v8291_v28 = vmul.bf16 %v17322_v0, %v8288_v25  ;;  %v8292_v18 = vmul.bf16 %v17331_v26, %v8288_v25  ;;  %s8329_s17 = sor.u32 %s8328_s12, %s8327_s25  ;;  %v8351_v31 = vstv %s8350_s4  ;;  %s8366_s13 = sand.u32 4294901760, %s8365_s6 }
 0x2ca   :  { %v17512_v9 = vadd.f32 %v13412_v11, %v13390_v10  ;;  %13628 = vmatprep.subr.bf16.mxu0 %v14515_v44  ;;  %v14527_v5 = vld [vmem:[#allocation7 + $0x1168] sm:$0xff]   ;;  %v8312_v26 = vmul.bf16 %v17346_v3, %v8309_v17  ;;  %v8330_v8 = vstv %s8329_s17  ;;  %v14535_v51 = vld [vmem:[#allocation7 + $0x1158] sm:$0xff]   ;;  %s18687_s13 = smov (%p8361_p3, %s8366_s13), 2143289344  ;;  %s8915_s18 = sadd.s32 32767, %s8914_s29 }
 0x2cb   :  { %v13414_v35 = vpop.f32.mrf.mxu0  ;;  %v8332_v3 = vmul.bf16 %v17364_v36, %v8330_v8  ;;  %v8333_v7 = vmul.bf16 %v17373_v33, %v8330_v8  ;;  %v8334_v2 = vmul.bf16 %v17379_v55, %v8330_v8  ;;  %v8354_v55 = vmul.bf16 %v17397_v40, %v8351_v31  ;;  %s8369_s11 = sshrl.u32 %s18687_s13, 16  ;;  %s8916_s7 = sadd.s32 %s17548_s9, %s8915_s18  ;;  %v14563_v8 = vld [vmem:[#allocation7 + $0x1260] sm:$0xff]  }
 0x2cc   :  { %13643 = vmatpush3.bf16.msra.mxu1 %v14502_v23  ;;  %v8248_v23 = vmul.bf16 %v17265_v20, %v8246_v56  ;;  %v14519_v20 = vld [vmem:[#allocation7 + $0x1178] sm:$0xff]   ;;  %v8353_v35 = vmul.bf16 %v17388_v14, %v8351_v31  ;;  %s8370_s19 = sshll.u32 %s8369_s11, 16  ;;  %s8917_s20 = sand.u32 4294901760, %s8916_s7 }
 0x2cd   :  { %13644 = vmatprep.subr.bf16.mxu1 %v14504_v1  ;;  %v8249_v1 = vmul.bf16 %v17271_v16, %v8246_v56  ;;  %v12539_v16 = vcombine.low %v17443_v12, %v17443_v12  ;;  %13629 = vmatpush3.bf16.msra.mxu0 %v14517_v21  ;;  %v8253_v12 = vadd.bf16 %v8250_v45, %v8232_v46  ;;  %s8371_s10 = sor.u32 %s8370_s19, %s8369_s11  ;;  %s17573_s22 = sld [smem:[#allocation2 + $0x601]] }
 0x2ce   :  { %v8251_v10 = vadd.bf16 %v8248_v23, %v8230_v22  ;;  %13658 = vmatprep.subr.bf16.mxu0 %v14519_v20  ;;  %v8355_v22 = vmul.bf16 %v17403_v42, %v8351_v31  ;;  %v14539_v23 = vld [vmem:[#allocation7 + $0x1150] sm:$0xff]   ;;  %v8372_v45 = vstv %s8371_s10  ;;  %v14543_v20 = vld [vmem:[#allocation7 + $0x1148] sm:$0xff]   ;;  %s18689_s20 = smov (%p8912_p4, %s8917_s20), 2143289344  ;;  %s8931_s21 = sshrl.u32 %s17569_s14, 16 }
 0x2cf   :  { %v8252_v19 = vadd.bf16 %v8249_v1, %v8231_v57  ;;  %v8274_v58 = vadd.bf16 %v8271_v41, %v8253_v12  ;;  %v14541_v1 = vld [vmem:[#allocation7 + $0x1110] sm:$0xff]   ;;  %s8920_s1 = sshrl.u32 %s18689_s20, 16  ;;  %s8932_s23 = sand.u32 1, %s8931_s21  ;;  %v14522_v12 = vld [vmem:[#allocation7 + $0x11b8] sm:$0xff]   ;;  %v14549_v41 = vld [vmem:[#allocation7 + $0x1100] sm:$0xff]  }
 0x2d0   :  { %13645 = vmatpush3.bf16.msra.mxu1 %v14506_v6  ;;  %v14521_v6 = vld [vmem:[#allocation7 + $0x1138] sm:$0xff]   ;;  %v8272_v38 = vadd.bf16 %v8269_v30, %v8251_v10  ;;  %8168 = vmatmul.mubr.bf16.vlgmr.msra.gmra.mxu0 %v12539_v16  ;;  %v8374_v16 = vmul.bf16 %v17416_v47, %v8372_v45  ;;  %v8376_v10 = vmul.bf16 %v17428_v50, %v8372_v45  ;;  %v14547_v47 = vld [vmem:[#allocation7 + $0x1140] sm:$0xff]   ;;  %s8921_s25 = sshll.u32 %s8920_s1, 16  ;;  %s8933_s24 = sadd.s32 32767, %s8932_s23  ;;  %v17650_v31 = vld [vmem:[%s18444_s2 + $0x8] sm:$0xff] }
 0x2d1   :  { %13646 = vmatprep.subr.bf16.mxu1 %v14508_v27  ;;  %v8273_v29 = vadd.bf16 %v8270_v63, %v8252_v19  ;;  %13659 = vmatpush3.bf16.msra.mxu0 %v14521_v6  ;;  %v14525_v27 = vld [vmem:[#allocation7 + $0x1130] sm:$0xff]   ;;  %v8375_v6 = vmul.bf16 %v17422_v54, %v8372_v45  ;;  %s17592_s12 = sor.u32 %s8921_s25, %s8920_s1  ;;  %s8934_s8 = sadd.s32 %s17569_s14, %s8933_s24  ;;  %v17668_v45 = vld [vmem:[%s18444_s2 + $0x18] sm:$0xff] }
 0x2d2   :  { %13660 = vmatprep.subr.bf16.mxu0 %v14523_v4  ;;  %v8293_v0 = vadd.bf16 %v8290_v37, %v8272_v38  ;;  %s8935_s17 = sand.u32 4294901760, %s8934_s8  ;;  %v14524_v37 = vld [vmem:[#allocation7 + $0x11f0] sm:$0xff]   ;;  %s17603_s26 = sld [smem:[#allocation2 + $0x602]] }
 0x2d3   :  { %v8294_v11 = vadd.bf16 %v8291_v28, %v8273_v29  ;;  %p8948_p6 = scmp.ne.f32.partialorder %s17573_s22, %s17573_s22  ;;  %s18691_s17 = smov (%p8930_p5, %s8935_s17), 2143289344  ;;  %v14551_v28 = vld [vmem:[#allocation7 + $0x1278] sm:$0xff]  }
 0x2d4   :  { %13647 = vmatpush3.bf16.msra.mxu1 %v14510_v24  ;;  %v8311_v24 = vmul.bf16 %v17340_v60, %v8309_v17  ;;  %v14533_v60 = vld [vmem:[#allocation7 + $0x1120] sm:$0xff]   ;;  %s8949_s27 = sshrl.u32 %s17573_s22, 16  ;;  %s8938_s9 = sshrl.u32 %s18691_s17, 16 }
 0x2d5   :  { %13648 = vmatprep.subr.bf16.mxu1 %v14512_v48  ;;  %13661 = vmatpush3.bf16.msra.mxu0 %v14525_v27  ;;  %v8295_v48 = vadd.bf16 %v8292_v18, %v8274_v58  ;;  %v8315_v39 = vadd.bf16 %v8312_v26, %v8294_v11  ;;  %s8950_s0 = sand.u32 1, %s8949_s27  ;;  %s8939_s30 = sshll.u32 %s8938_s9, 16  ;;  %v14526_v27 = vld [vmem:[#allocation7 + $0x11b0] sm:$0xff]   ;;  %v14553_v58 = vld [vmem:[#allocation7 + $0x1238] sm:$0xff]   ;;  %v14528_v18 = vld [vmem:[#allocation7 + $0x11e8] sm:$0xff]  }
 0x2d6   :  { %13662 = vmatprep.subr.bf16.mxu0 %v14527_v5  ;;  %v8314_v15 = vadd.bf16 %v8311_v24, %v8293_v0  ;;  %s8951_s28 = sadd.s32 32767, %s8950_s0  ;;  %s17605_s16 = sor.u32 %s8939_s30, %s8938_s9  ;;  %v14555_v5 = vld [vmem:[#allocation7 + $0x1270] sm:$0xff]   ;;  %v14532_v24 = vld [vmem:[#allocation7 + $0x11e0] sm:$0xff]   ;;  %v14559_v11 = vld [vmem:[#allocation7 + $0x1268] sm:$0xff]  }
 0x2d7   :  { %v8316_v56 = vadd.bf16 %v8313_v52, %v8295_v48  ;;  %v8336_v44 = vadd.bf16 %v8333_v7, %v8315_v39  ;;  %s8952_s15 = sadd.s32 %s17573_s22, %s8951_s28  ;;  %s17608_s6 = sld [smem:[#allocation2 + $0x603]]  ;;  %v14557_v0 = vld [vmem:[#allocation7 + $0x1230] sm:$0xff]   ;;  %v14534_v26 = vld [vmem:[#allocation7 + $0x11a0] sm:$0xff]   ;;  %v14561_v48 = vld [vmem:[#allocation7 + $0x1228] sm:$0xff]  }
 0x2d8   :  { %13649 = vmatpush3.bf16.msra.mxu1 %v14514_v49  ;;  %v8335_v36 = vadd.bf16 %v8332_v3, %v8314_v15  ;;  %v14537_v49 = vld [vmem:[#allocation7 + $0x1118] sm:$0xff]   ;;  %s8953_s4 = sand.u32 4294901760, %s8952_s15  ;;  %p8969_p7 = scmp.ne.f32.partialorder %s17603_s26, %s17603_s26  ;;  %v14565_v15 = vld [vmem:[#allocation7 + $0x1220] sm:$0xff]   ;;  %v8923_v3 = vstv %s17592_s12 }
 0x2d9   :  { %13650 = vmatprep.subr.bf16.mxu1 %v14516_v32  ;;  %13663 = vmatpush3.bf16.msra.mxu0 %v14529_v34  ;;  %v8337_v32 = vadd.bf16 %v8334_v2, %v8316_v56  ;;  %v8357_v40 = vadd.bf16 %v8354_v55, %v8336_v44  ;;  %s18693_s4 = smov (%p8948_p6, %s8953_s4), 2143289344  ;;  %s8970_s13 = sshrl.u32 %s17603_s26, 16  ;;  %v14530_v34 = vld [vmem:[#allocation7 + $0x11a8] sm:$0xff]   ;;  %v14536_v52 = vld [vmem:[#allocation7 + $0x11d8] sm:$0xff]   ;;  %v17641_v2 = vld [vmem:[%s18444_s2] sm:$0xff]  ;;  %v8926_v44 = vmul.bf16 %v17650_v31, %v8923_v3 }
 0x2da   :  { %13664 = vmatprep.subr.bf16.mxu0 %v14531_v53  ;;  %v8356_v43 = vadd.bf16 %v8353_v35, %v8335_v36  ;;  %s8956_s3 = sshrl.u32 %s18693_s4, 16  ;;  %s8971_s14 = sand.u32 1, %s8970_s13  ;;  %v14567_v39 = vld [vmem:[#allocation7 + $0x1258] sm:$0xff]   ;;  %v8925_v36 = vmul.bf16 %v17641_v2, %v8923_v3 }
 0x2db   :  { %v8358_v42 = vadd.bf16 %v8355_v22, %v8337_v32  ;;  %v8378_v4 = vadd.bf16 %v8375_v6, %v8357_v40  ;;  %s8957_s11 = sshll.u32 %s8956_s3, 16  ;;  %s8972_s29 = sadd.s32 32767, %s8971_s14  ;;  %v14569_v55 = vld [vmem:[#allocation7 + $0x1218] sm:$0xff]   ;;  %v8941_v32 = vstv %s17605_s16 }
 0x2dc   :  { %13651 = vmatpush3.bf16.msra.mxu1 %v14518_v59  ;;  %s17616_s19 = sor.u32 %s8957_s11, %s8956_s3  ;;  %s8973_s18 = sadd.s32 %s17603_s26, %s8972_s29 }
 0x2dd   :  { %13680 = vmatprep.subr.bf16.mxu1 %v14520_v62  ;;  %13665 = vmatpush3.bf16.msra.mxu0 %v14533_v60  ;;  %v14545_v62 = vld [vmem:[#allocation7 + $0x1108] sm:$0xff]   ;;  %v8379_v19 = vadd.bf16 %v8376_v10, %v8358_v42  ;;  %v8381_v50 = vmax.bf16 %v15004_v13, %v8378_v4  ;;  %s8974_s10 = sand.u32 4294901760, %s8973_s18  ;;  %p8990_p8 = scmp.ne.f32.partialorder %s17608_s6, %s17608_s6  ;;  %v14538_v60 = vld [vmem:[#allocation7 + $0x1198] sm:$0xff]   ;;  %v8959_v22 = vstv %s17616_s19 }
 0x2de   :  { %13666 = vmatprep.subr.bf16.mxu0 %v14535_v51  ;;  %s18695_s10 = smov (%p8969_p7, %s8974_s10), 2143289344  ;;  %s8991_s7 = sshrl.u32 %s17608_s6, 16  ;;  %v14540_v51 = vld [vmem:[#allocation7 + $0x11d0] sm:$0xff]   ;;  %v14546_v42 = vld [vmem:[#allocation7 + $0x1188] sm:$0xff]  }
 0x2df   :  { %v12602_v38 = vcombine.high %v8381_v50, %v8381_v50  ;;  %v12601_v17 = vcombine.low %v8381_v50, %v8381_v50  ;;  %s17625_s20 = sld [smem:[#allocation2 + $0x604]]  ;;  %s8977_s22 = sshrl.u32 %s18695_s10, 16  ;;  %v14548_v50 = vld [vmem:[#allocation7 + $0x11c0] sm:$0xff]  }
 0x2e0   :  { %s8992_s21 = sand.u32 1, %s8991_s7  ;;  %s8978_s1 = sshll.u32 %s8977_s22, 16 }
 0x2e1   :  { %v13432_v33 = vpop.f32.mrf.mxu1  ;;  %13667 = vmatpush3.bf16.msra.mxu0 %v14537_v49  ;;  %8861 = vmatprep.mubr.bf16.mxu0 %v12602_v38  ;;  %s8993_s23 = sadd.s32 32767, %s8992_s21  ;;  %s17628_s25 = sor.u32 %s8978_s1, %s8977_s22  ;;  %v14542_v49 = vld [vmem:[#allocation7 + $0x1190] sm:$0xff]  }
 0x2e2   :  { %13668 = vmatprep.subr.bf16.mxu0 %v14539_v23  ;;  %s8994_s24 = sadd.s32 %s17608_s6, %s8993_s23  ;;  %s17631_s17 = sld [smem:[#allocation2 + $0x605]]  ;;  %v17659_v23 = vld [vmem:[%s18444_s2 + $0x10] sm:$0xff] }
 0x2e3   :  { %v13433_v57 = vpop.f32.mrf.mxu1  ;;  %s8995_s8 = sand.u32 4294901760, %s8994_s24  ;;  %s17692_s21 = sld [smem:[#allocation2 + $0x606]] }
 0x2e4   :  { %v13434_v21 = vadd.f32 %v13433_v57, %v13432_v33  ;;  %s18697_s8 = smov (%p8990_p8, %s8995_s8), 2143289344  ;;  %v8927_v57 = vmul.bf16 %v17659_v23, %v8923_v3  ;;  %s17714_s15 = sld [smem:[#allocation2 + $0x607]] }
 0x2e5   :  { %v13435_v14 = vpop.f32.mrf.mxu1  ;;  %13669 = vmatpush3.bf16.msra.mxu0 %v14541_v1  ;;  %p9011_p9 = scmp.ne.f32.partialorder %s17625_s20, %s17625_s20  ;;  %s9012_s26 = sshrl.u32 %s17625_s20, 16  ;;  %v14544_v1 = vld [vmem:[#allocation7 + $0x11c8] sm:$0xff]  }
 0x2e6   :  { %v5968_v46 = vadd.f32 %v13434_v21, %v17512_v9  ;;  %v8377_v9 = vadd.bf16 %v8374_v16, %v8356_v43  ;;  %13670 = vmatprep.subr.bf16.mxu0 %v14543_v20  ;;  %s8998_s30 = sshrl.u32 %s18697_s8, 16  ;;  %s9013_s28 = sand.u32 1, %s9012_s26  ;;  %v14571_v21 = vld [vmem:[#allocation7 + $0x1250] sm:$0xff]   ;;  %v8961_v20 = vmul.bf16 %v17668_v45, %v8959_v22  ;;  %v17676_v16 = vld [vmem:[%s18444_s2 + $0x20] sm:$0xff] }
 0x2e7   :  { %v13436_v59 = vpop.f32.mrf.mxu1  ;;  %s8999_s6 = sshll.u32 %s8998_s30, 16  ;;  %s9014_s13 = sadd.s32 32767, %s9013_s28  ;;  %v8962_v6 = vmul.bf16 %v17676_v16, %v8959_v22 }
 0x2e8   :  { %v17579_v30 = vadd.f32 %v5968_v46, %v17435_v61  ;;  %v8380_v54 = vmax.bf16 %v15004_v13, %v8377_v9  ;;  %v17590_v61 = vmax.bf16 %v15004_v13, %v8379_v19  ;;  %s17662_s16 = sor.u32 %s8999_s6, %s8998_s30  ;;  %s9015_s3 = sadd.s32 %s17625_s20, %s9014_s13  ;;  %v8943_v46 = vadd.bf16 %v8941_v32, %v8925_v36  ;;  %v14573_v9 = vld [vmem:[#allocation7 + $0x1210] sm:$0xff]   ;;  %v14583_v36 = vld [vmem:[#allocation7 + $0x1378] sm:$0xff]  }
 0x2e9   :  { %13671 = vmatpush3.bf16.msra.mxu0 %v14545_v62  ;;  %s9016_s29 = sand.u32 4294901760, %s9015_s3  ;;  %p9032_p10 = scmp.ne.f32.partialorder %s17631_s17, %s17631_s17  ;;  %v8944_v59 = vadd.bf16 %v8941_v32, %v8926_v44  ;;  %v8980_v62 = vstv %s17628_s25  ;;  %v8945_v19 = vadd.bf16 %v8941_v32, %v8927_v57 }
 0x2ea   :  { %v12600_v63 = vcombine.high %v8380_v54, %v8380_v54  ;;  %v12599_v25 = vcombine.low %v8380_v54, %v8380_v54  ;;  %13672 = vmatprep.subr.bf16.mxu0 %v14547_v47  ;;  %v12604_v29 = vcombine.high %v17590_v61, %v17590_v61  ;;  %s18699_s29 = smov (%p9011_p9, %s9016_s29), 2143289344  ;;  %v17688_v47 = vld [vmem:[%s18444_s2 + $0x28] sm:$0xff]  ;;  %s9033_s22 = sshrl.u32 %s17631_s17, 16 }
 0x2eb   :  { %v8963_v54 = vmul.bf16 %v17688_v47, %v8959_v22  ;;  %s9019_s20 = sshrl.u32 %s18699_s29, 16  ;;  %s9034_s1 = sand.u32 1, %s9033_s22  ;;  %v14558_v22 = vld [vmem:[#allocation7 + $0x12b0] sm:$0xff]  }
 0x2ec   :  { %8821 = vmatprep.mubr.bf16.mxu1 %v12600_v63  ;;  %v14575_v63 = vld [vmem:[#allocation7 + $0x1248] sm:$0xff]   ;;  %s9020_s24 = sshll.u32 %s9019_s20, 16  ;;  %s9035_s8 = sadd.s32 32767, %s9034_s1 }
 0x2ed   :  { %8822 = vmatmul.mubr.bf16.vlgmr.msra.gmra.mxu1 %v12599_v25  ;;  %13673 = vmatpush3.bf16.msra.mxu0 %v14549_v41  ;;  %v17697_v41 = vld [vmem:[%s18444_s2 + $0x30] sm:$0xff]  ;;  %s9021_s26 = sor.u32 %s9020_s24, %s9019_s20  ;;  %s9036_s9 = sadd.s32 %s17631_s17, %s9035_s8 }
 0x2ee   :  { %13681 = vmatpush3.bf16.msra.mxu1 %v14522_v12  ;;  %8901 = vmatprep.mubr.bf16.mxu1 %v12604_v29  ;;  %v8964_v12 = vadd.bf16 %v8961_v20, %v8943_v46  ;;  %v8982_v38 = vmul.bf16 %v17697_v41, %v8980_v62  ;;  %v17703_v29 = vld [vmem:[%s18444_s2 + $0x38] sm:$0xff]  ;;  %s9037_s28 = sand.u32 4294901760, %s9036_s9  ;;  %p9053_p11 = scmp.ne.f32.partialorder %s17692_s21, %s17692_s21  ;;  %v9022_v3 = vstv %s9021_s26 }
 0x2ef   :  { %13682 = vmatprep.subr.bf16.mxu1 %v14524_v37  ;;  %13702 = vmatprep.subr.bf16.mxu0 %v14551_v28  ;;  %v8965_v37 = vadd.bf16 %v8962_v6, %v8944_v59  ;;  %v8983_v28 = vmul.bf16 %v17703_v29, %v8980_v62  ;;  %s18701_s28 = smov (%p9032_p10, %s9037_s28), 2143289344  ;;  %s9054_s13 = sshrl.u32 %s17692_s21, 16  ;;  %v17778_v59 = vld [vmem:[%s18444_s2 + $0x80] sm:$0xff] }
 0x2f0   :  { %8862 = vmatmul.mubr.bf16.vlgmr.msra.gmra.mxu0 %v12601_v17  ;;  %v14550_v17 = vld [vmem:[#allocation7 + $0x1180] sm:$0xff]   ;;  %s9040_s17 = sshrl.u32 %s18701_s28, 16  ;;  %s9055_s14 = sand.u32 1, %s9054_s13 }
 0x2f1   :  { %13703 = vmatpush3.bf16.msra.mxu0 %v14553_v58  ;;  %v9001_v58 = vstv %s17662_s16  ;;  %s9041_s19 = sshll.u32 %s9040_s17, 16  ;;  %s9056_s18 = sadd.s32 32767, %s9055_s14 }
 0x2f2   :  { %13683 = vmatpush3.bf16.msra.mxu1 %v14526_v27  ;;  %13704 = vmatprep.subr.bf16.mxu0 %v14555_v5  ;;  %v14577_v27 = vld [vmem:[#allocation7 + $0x1208] sm:$0xff]   ;;  %v17711_v5 = vld [vmem:[%s18444_s2 + $0x40] sm:$0xff]  ;;  %s9042_s10 = sor.u32 %s9041_s19, %s9040_s17  ;;  %s9057_s7 = sadd.s32 %s17692_s21, %s9056_s18 }
 0x2f3   :  { %13684 = vmatprep.subr.bf16.mxu1 %v14528_v18  ;;  %v8966_v18 = vadd.bf16 %v8963_v54, %v8945_v19  ;;  %s9058_s1 = sand.u32 4294901760, %s9057_s7  ;;  %p9074_p12 = scmp.ne.f32.partialorder %s17714_s15, %s17714_s15  ;;  %v9043_v57 = vstv %s9042_s10  ;;  %v14564_v54 = vld [vmem:[#allocation7 + $0x12e0] sm:$0xff]  }
 0x2f4   :  { %s18703_s1 = smov (%p9053_p11, %s9058_s1), 2143289344  ;;  %s9075_s27 = sshrl.u32 %s17714_s15, 16  ;;  %v9046_v6 = vmul.bf16 %v17778_v59, %v9043_v57 }
 0x2f5   :  { %13705 = vmatpush3.bf16.msra.mxu0 %v14557_v0  ;;  %v13454_v53 = vpop.f32.mrf.mxu0  ;;  %v14552_v0 = vld [vmem:[#allocation7 + $0x12f8] sm:$0xff]   ;;  %s17767_s12 = sld [smem:[#allocation2 + $0x608]]  ;;  %s9061_s26 = sshrl.u32 %s18703_s1, 16 }
 0x2f6   :  { %13685 = vmatpush3.bf16.msra.mxu1 %v14530_v34  ;;  %13706 = vmatprep.subr.bf16.mxu0 %v14559_v11  ;;  %v8984_v34 = vmul.bf16 %v17711_v5, %v8980_v62  ;;  %v12603_v11 = vcombine.low %v17590_v61, %v17590_v61  ;;  %s9076_s9 = sand.u32 1, %s9075_s27  ;;  %s9062_s30 = sshll.u32 %s9061_s26, 16  ;;  %v17785_v62 = vld [vmem:[%s18444_s2 + $0x88] sm:$0xff] }
 0x2f7   :  { %13686 = vmatprep.subr.bf16.mxu1 %v14532_v24  ;;  %v13455_v7 = vpop.f32.mrf.mxu0  ;;  %v14579_v24 = vld [vmem:[#allocation7 + $0x1240] sm:$0xff]   ;;  %s9077_s28 = sadd.s32 32767, %s9076_s9  ;;  %s9063_s13 = sor.u32 %s9062_s30, %s9061_s26  ;;  %v9047_v19 = vmul.bf16 %v17785_v62, %v9043_v57 }
 0x2f8   :  { %v13456_v56 = vadd.f32 %v13455_v7, %v13454_v53  ;;  %v17733_v53 = vld [vmem:[%s18444_s2 + $0x50] sm:$0xff]  ;;  %s9078_s16 = sadd.s32 %s17714_s15, %s9077_s28  ;;  %s17788_s11 = sld [smem:[#allocation2 + $0x680]] }
 0x2f9   :  { %13707 = vmatpush3.bf16.msra.mxu0 %v14561_v48  ;;  %v13457_v35 = vpop.f32.mrf.mxu0  ;;  %v17724_v48 = vld [vmem:[%s18444_s2 + $0x48] sm:$0xff]  ;;  %v9004_v61 = vmul.bf16 %v17733_v53, %v9001_v58  ;;  %s9079_s14 = sand.u32 4294901760, %s9078_s16  ;;  %s17839_s4 = sld [smem:[#allocation5 + $0xd]] }
 0x2fa   :  { %13687 = vmatpush3.bf16.msra.mxu1 %v14534_v26  ;;  %13708 = vmatprep.subr.bf16.mxu0 %v14563_v8  ;;  %v8985_v26 = vadd.bf16 %v8982_v38, %v8964_v12  ;;  %v8986_v8 = vadd.bf16 %v8983_v28, %v8965_v37  ;;  %s18705_s14 = smov (%p9074_p12, %s9079_s14), 2143289344  ;;  %v17805_v37 = vld [vmem:[%s18444_s2 + $0x98] sm:$0xff]  ;;  %s17843_s19 = sld [smem:[#allocation2 + $0x681]] }
 0x2fb   :  { %13688 = vmatprep.subr.bf16.mxu1 %v14536_v52  ;;  %v13458_v43 = vpop.f32.mrf.mxu0  ;;  %v9003_v52 = vmul.bf16 %v17724_v48, %v9001_v58  ;;  %p9095_p13 = scmp.ne.f32.partialorder %s17767_s12, %s17767_s12  ;;  %s9096_s18 = sshrl.u32 %s17767_s12, 16 }
 0x2fc   :  { %v14560_v43 = vld [vmem:[#allocation7 + $0x12e8] sm:$0xff]   ;;  %s9082_s15 = sshrl.u32 %s18705_s14, 16  ;;  %s9097_s22 = sand.u32 1, %s9096_s18 }
 0x2fd   :  { %13709 = vmatpush3.bf16.msra.mxu0 %v14565_v15  ;;  %v14581_v15 = vld [vmem:[#allocation7 + $0x1200] sm:$0xff]   ;;  %v9006_v44 = vadd.bf16 %v9003_v52, %v8985_v26  ;;  %s9083_s23 = sshll.u32 %s9082_s15, 16  ;;  %s9098_s25 = sadd.s32 32767, %s9097_s22  ;;  %v14570_v52 = vld [vmem:[#allocation7 + $0x1298] sm:$0xff]  }
 0x2fe   :  { %13689 = vmatpush3.bf16.msra.mxu1 %v14538_v60  ;;  %13710 = vmatprep.subr.bf16.mxu0 %v14567_v39  ;;  %v14554_v60 = vld [vmem:[#allocation7 + $0x12b8] sm:$0xff]   ;;  %s9084_s24 = sor.u32 %s9083_s23, %s9082_s15  ;;  %s9099_s8 = sadd.s32 %s17767_s12, %s9098_s25 }
 0x2ff   :  { %13690 = vmatprep.subr.bf16.mxu1 %v14540_v51  ;;  %v8987_v51 = vadd.bf16 %v8984_v34, %v8966_v18  ;;  %v17739_v39 = vld [vmem:[%s18444_s2 + $0x58] sm:$0xff]  ;;  %s9100_s27 = sand.u32 4294901760, %s9099_s8  ;;  %p9646_p0 = scmp.ne.f32.partialorder %s17788_s11, %s17788_s11 }
 0x300   :  { %v9005_v7 = vmul.bf16 %v17739_v39, %v9001_v58  ;;  %v17811_v58 = vld [vmem:[%s18444_s2 + $0xa0] sm:$0xff]  ;;  %v14568_v34 = vld [vmem:[#allocation7 + $0x12d8] sm:$0xff]   ;;  %s18707_s27 = smov (%p9095_p13, %s9100_s27), 2143289344  ;;  %s9647_s12 = sshrl.u32 %s17788_s11, 16 }
 0x301   :  { %v13476_v33 = vpop.f32.mrf.mxu1  ;;  %13711 = vmatpush3.bf16.msra.mxu0 %v14569_v55  ;;  %v17754_v55 = vld [vmem:[%s18444_s2 + $0x68] sm:$0xff]  ;;  %s9103_s6 = sshrl.u32 %s18707_s27, 16  ;;  %p9664_p1 = scmp.ne.f32.partialorder %s17839_s4, %s17839_s4 }
 0x302   :  { %13691 = vmatpush3.bf16.msra.mxu1 %v14542_v49  ;;  %13712 = vmatprep.subr.bf16.mxu0 %v14571_v21  ;;  %v9007_v49 = vadd.bf16 %v9004_v61, %v8986_v8  ;;  %v9025_v32 = vmul.bf16 %v17754_v55, %v9022_v3  ;;  %v17763_v21 = vld [vmem:[%s18444_s2 + $0x70] sm:$0xff]  ;;  %v17820_v8 = vld [vmem:[%s18444_s2 + $0xa8] sm:$0xff]  ;;  %s9104_s16 = sshll.u32 %s9103_s6, 16  ;;  %s9665_s1 = sshrl.u32 %s17839_s4, 16 }
 0x303   :  { %v13477_v14 = vpop.f32.mrf.mxu1  ;;  %13692 = vmatprep.subr.bf16.mxu1 %v14544_v1  ;;  %v9008_v1 = vadd.bf16 %v9005_v7, %v8987_v51  ;;  %v17835_v51 = vld [vmem:[%s18444_s2 + $0xb8] sm:$0xff]  ;;  %s9105_s17 = sor.u32 %s9104_s16, %s9103_s6  ;;  %s9666_s25 = sand.u32 1, %s9665_s1 }
 0x304   :  { %v13478_v40 = vadd.f32 %v13477_v14, %v13476_v33  ;;  %v17746_v33 = vld [vmem:[%s18444_s2 + $0x60] sm:$0xff]  ;;  %v9026_v14 = vmul.bf16 %v17763_v21, %v9022_v3  ;;  %v9028_v20 = vadd.bf16 %v9025_v32, %v9007_v49  ;;  %v14574_v49 = vld [vmem:[#allocation7 + $0x1290] sm:$0xff]   ;;  %p9682_p2 = scmp.ne.f32.partialorder %s17843_s19, %s17843_s19  ;;  %s9683_s9 = sshrl.u32 %s17843_s19, 16 }
 0x305   :  { %v13479_v10 = vpop.f32.mrf.mxu1  ;;  %13713 = vmatpush3.bf16.msra.mxu0 %v14573_v9  ;;  %v9024_v35 = vmul.bf16 %v17746_v33, %v9022_v3  ;;  %s17886_s21 = sld [smem:[#allocation2 + $0x682]]  ;;  %s9684_s30 = sand.u32 1, %s9683_s9 }
 0x306   :  { %v17683_v4 = vadd.f32 %v13478_v40, %v13456_v56  ;;  %13693 = vmatpush3.bf16.msra.mxu1 %v14546_v42  ;;  %13714 = vmatprep.subr.bf16.mxu0 %v14575_v63  ;;  %v14556_v56 = vld [vmem:[#allocation7 + $0x12f0] sm:$0xff]   ;;  %v17772_v42 = vld [vmem:[%s18444_s2 + $0x78] sm:$0xff]  ;;  %v14562_v10 = vld [vmem:[#allocation7 + $0x12a8] sm:$0xff]   ;;  %v9029_v9 = vadd.bf16 %v9026_v14, %v9008_v1  ;;  %v9049_v38 = vadd.bf16 %v9046_v6, %v9028_v20  ;;  %s17893_s16 = sld [smem:[#allocation2 + $0x683]] }
 0x307   :  { %v13480_v25 = vpop.f32.mrf.mxu1  ;;  %13694 = vmatprep.subr.bf16.mxu1 %v14548_v50  ;;  %v9027_v40 = vadd.bf16 %v9024_v35, %v9006_v44  ;;  %v9045_v46 = vmul.bf16 %v17772_v42, %v9043_v57  ;;  %v9064_v50 = vstv %s9063_s13  ;;  %s9648_s13 = sand.u32 1, %s9647_s12  ;;  %v14576_v14 = vld [vmem:[#allocation7 + $0x12c8] sm:$0xff]   ;;  %s9685_s12 = sadd.s32 32767, %s9684_s30 }
 0x308   :  { %v17796_v25 = vld [vmem:[%s18444_s2 + $0x90] sm:$0xff]  ;;  %v9067_v28 = vmul.bf16 %v17805_v37, %v9064_v50  ;;  %v9068_v18 = vmul.bf16 %v17811_v58, %v9064_v50  ;;  %s9649_s3 = sadd.s32 32767, %s9648_s13  ;;  %s9686_s6 = sadd.s32 %s17843_s19, %s9685_s12 }
 0x309   :  { %13715 = vmatpush3.bf16.msra.mxu0 %v14577_v27  ;;  %v9048_v63 = vadd.bf16 %v9045_v46, %v9027_v40  ;;  %v9066_v12 = vmul.bf16 %v17796_v25, %v9064_v50  ;;  %v9050_v27 = vadd.bf16 %v9047_v19, %v9029_v9  ;;  %s9650_s14 = sadd.s32 %s17788_s11, %s9649_s3  ;;  %v17848_v46 = vld [vmem:[%s18444_s2 + $0xc0] sm:$0xff]  ;;  %s9667_s11 = sadd.s32 32767, %s9666_s25 }
 0x30a   :  { %13695 = vmatpush3.bf16.msra.mxu1 %v14550_v17  ;;  %13716 = vmatprep.subr.bf16.mxu0 %v14579_v24  ;;  %v14566_v17 = vld [vmem:[#allocation7 + $0x12a0] sm:$0xff]   ;;  %v9085_v24 = vstv %s9084_s24  ;;  %s9651_s29 = sand.u32 4294901760, %s9650_s14  ;;  %s9668_s27 = sadd.s32 %s17839_s4, %s9667_s11 }
 0x30b   :  { %13724 = vmatprep.subr.bf16.mxu1 %v14552_v0  ;;  %v9069_v0 = vadd.bf16 %v9066_v12, %v9048_v63  ;;  %v9087_v61 = vmul.bf16 %v17820_v8, %v9085_v24  ;;  %v9071_v3 = vadd.bf16 %v9068_v18, %v9050_v27  ;;  %v9089_v7 = vmul.bf16 %v17835_v51, %v9085_v24  ;;  %s18709_s29 = smov (%p9646_p0, %s9651_s29), 2143289344  ;;  %v14584_v18 = vld [vmem:[#allocation7 + $0x13f8] sm:$0xff]   ;;  %s9669_s26 = sand.u32 4294901760, %s9668_s27 }
 0x30c   :  { %s9654_s23 = sshrl.u32 %s18709_s29, 16  ;;  %s18711_s26 = smov (%p9664_p1, %s9669_s26), 2143289344 }
 0x30d   :  { %8902 = vmatmul.mubr.bf16.vlgmr.msra.gmra.mxu1 %v12603_v11  ;;  %13717 = vmatpush3.bf16.msra.mxu0 %v14581_v15  ;;  %v9070_v11 = vadd.bf16 %v9067_v28, %v9049_v38  ;;  %v9090_v32 = vadd.bf16 %v9087_v61, %v9069_v0  ;;  %v9092_v57 = vadd.bf16 %v9089_v7, %v9071_v3  ;;  %v14580_v38 = vld [vmem:[#allocation7 + $0x12c0] sm:$0xff]   ;;  %s9655_s24 = sshll.u32 %s9654_s23, 16  ;;  %s9672_s0 = sshrl.u32 %s18711_s26, 16  ;;  %v14588_v3 = vld [vmem:[#allocation7 + $0x13f0] sm:$0xff]  }
 0x30e   :  { %13725 = vmatpush3.bf16.msra.mxu1 %v14554_v60  ;;  %13746 = vmatprep.subr.bf16.mxu0 %v14583_v36  ;;  %v17829_v60 = vld [vmem:[%s18444_s2 + $0xb0] sm:$0xff]  ;;  %s17877_s8 = sor.u32 %s9655_s24, %s9654_s23  ;;  %s9673_s28 = sshll.u32 %s9672_s0, 16 }
 0x30f   :  { %13726 = vmatprep.subr.bf16.mxu1 %v14556_v56  ;;  %v9088_v15 = vmul.bf16 %v17829_v60, %v9085_v24  ;;  %v14572_v56 = vld [vmem:[#allocation7 + $0x12d0] sm:$0xff]   ;;  %s17890_s4 = sor.u32 %s9673_s28, %s9672_s0  ;;  %s9687_s13 = sand.u32 4294901760, %s9686_s6 }
 0x310   :  { %v14589_v7 = vld [vmem:[#allocation7 + $0x1330] sm:$0xff]   ;;  %s18713_s13 = smov (%p9682_p2, %s9687_s13), 2143289344  ;;  %p9703_p3 = scmp.ne.f32.partialorder %s17886_s21, %s17886_s21 }
 0x311   :  { %s9704_s3 = sshrl.u32 %s17886_s21, 16  ;;  %p9724_p4 = scmp.ne.f32.partialorder %s17893_s16, %s17893_s16 }
 0x312   :  { %13727 = vmatpush3.bf16.msra.mxu1 %v14558_v22  ;;  %v9091_v22 = vadd.bf16 %v9088_v15, %v9070_v11  ;;  %v14585_v11 = vld [vmem:[#allocation7 + $0x1338] sm:$0xff]   ;;  %s9705_s14 = sand.u32 1, %s9704_s3  ;;  %s9725_s15 = sshrl.u32 %s17893_s16, 16 }
 0x313   :  { %13728 = vmatprep.subr.bf16.mxu1 %v14560_v43  ;;  %v9106_v43 = vstv %s9105_s17  ;;  %s9690_s17 = sshrl.u32 %s18713_s13, 16  ;;  %s9706_s19 = sadd.s32 32767, %s9705_s14 }
 0x314   :  { %v9108_v20 = vmul.bf16 %v17848_v46, %v9106_v43  ;;  %s9691_s29 = sshll.u32 %s9690_s17, 16  ;;  %s9707_s10 = sadd.s32 %s17886_s21, %s9706_s19 }
 0x315   :  { %s17901_s18 = sor.u32 %s9691_s29, %s9690_s17  ;;  %s9708_s7 = sand.u32 4294901760, %s9707_s10 }
 0x316   :  { %13729 = vmatpush3.bf16.msra.mxu1 %v14562_v10  ;;  %v17860_v10 = vld [vmem:[%s18444_s2 + $0xd0] sm:$0xff]  ;;  %v9111_v50 = vadd.bf16 %v9108_v20, %v9090_v32  ;;  %v14594_v32 = vld [vmem:[#allocation7 + $0x13a8] sm:$0xff]   ;;  %s18715_s7 = smov (%p9703_p3, %s9708_s7), 2143289344  ;;  %s17910_s22 = sld [smem:[#allocation2 + $0x684]] }
 0x317   :  { %13730 = vmatprep.subr.bf16.mxu1 %v14564_v54  ;;  %v9110_v9 = vmul.bf16 %v17860_v10, %v9106_v43  ;;  %v14578_v54 = vld [vmem:[#allocation7 + $0x1288] sm:$0xff]   ;;  %s9711_s20 = sshrl.u32 %s18715_s7, 16  ;;  %s9726_s1 = sand.u32 1, %s9725_s15 }
 0x318   :  { %v13498_v26 = vpop.f32.mrf.mxu0  ;;  %v9114_v28 = vmax.bf16 %v15004_v13, %v9111_v50  ;;  %s9712_s23 = sshll.u32 %s9711_s20, 16  ;;  %s9727_s25 = sadd.s32 32767, %s9726_s1  ;;  %v14602_v50 = vld [vmem:[#allocation7 + $0x1398] sm:$0xff]  }
 0x319   :  { %v9113_v12 = vadd.bf16 %v9110_v9, %v9092_v57  ;;  %v14597_v57 = vld [vmem:[#allocation7 + $0x1320] sm:$0xff]   ;;  %s17913_s24 = sor.u32 %s9712_s23, %s9711_s20  ;;  %s9728_s11 = sadd.s32 %s17893_s16, %s9727_s25  ;;  %v14603_v9 = vld [vmem:[#allocation7 + $0x1350] sm:$0xff]  }
 0x31a   :  { %13731 = vmatpush3.bf16.msra.mxu1 %v14566_v17  ;;  %v13499_v36 = vpop.f32.mrf.mxu0  ;;  %v12663_v24 = vcombine.low %v9114_v28, %v9114_v28  ;;  %s9729_s27 = sand.u32 4294901760, %s9728_s11  ;;  %s17916_s26 = sld [smem:[#allocation2 + $0x685]] }
 0x31b   :  { %13732 = vmatprep.subr.bf16.mxu1 %v14568_v34  ;;  %v13500_v44 = vadd.f32 %v13499_v36, %v13498_v26  ;;  %v17875_v27 = vmax.bf16 %v15004_v13, %v9113_v12  ;;  %v12664_v34 = vcombine.high %v9114_v28, %v9114_v28  ;;  %v14587_v26 = vld [vmem:[#allocation7 + $0x1370] sm:$0xff]   ;;  %s18717_s27 = smov (%p9724_p4, %s9729_s27), 2143289344  ;;  %s17942_s13 = sld [smem:[#allocation2 + $0x686]] }
 0x31c   :  { %v13501_v35 = vpop.f32.mrf.mxu0  ;;  %v14590_v36 = vld [vmem:[#allocation7 + $0x13b0] sm:$0xff]   ;;  %p9745_p5 = scmp.ne.f32.partialorder %s17910_s22, %s17910_s22  ;;  %s9732_s9 = sshrl.u32 %s18717_s27, 16 }
 0x31d   :  { %v6702_v1 = vadd.f32 %v13500_v44, %v17683_v4  ;;  %v17854_v4 = vld [vmem:[%s18444_s2 + $0xc8] sm:$0xff]  ;;  %9555 = vmatprep.mubr.bf16.mxu0 %v12664_v34  ;;  %v12668_v61 = vcombine.high %v17875_v27, %v17875_v27  ;;  %v14604_v12 = vld [vmem:[#allocation7 + $0x13d0] sm:$0xff]   ;;  %s9733_s0 = sshll.u32 %s9732_s9, 16  ;;  %s17951_s10 = sld [smem:[#allocation2 + $0x687]] }
 0x31e   :  { %13733 = vmatpush3.bf16.msra.mxu1 %v14570_v52  ;;  %v13502_v40 = vpop.f32.mrf.mxu0  ;;  %v9109_v6 = vmul.bf16 %v17854_v4, %v9106_v43  ;;  %v14586_v52 = vld [vmem:[#allocation7 + $0x13b8] sm:$0xff]   ;;  %9556 = vmatmul.mubr.bf16.vlgmr.msra.gmra.mxu0 %v12663_v24  ;;  %v14593_v44 = vld [vmem:[#allocation7 + $0x1328] sm:$0xff]   ;;  %v9693_v24 = vstv %s17901_s18  ;;  %s17929_s28 = sor.u32 %s9733_s0, %s9732_s9  ;;  %s17974_s27 = sld [smem:[#allocation2 + $0x688]] }
 0x31f   :  { %13734 = vmatprep.subr.bf16.mxu1 %v14572_v56  ;;  %v17867_v19 = vadd.f32 %v6702_v1, %v17579_v30  ;;  %v14582_v30 = vld [vmem:[#allocation7 + $0x1280] sm:$0xff]   ;;  %13747 = vmatpush3.bf16.msra.mxu0 %v14585_v11  ;;  %v14591_v56 = vld [vmem:[#allocation7 + $0x1368] sm:$0xff]   ;;  %v14599_v1 = vld [vmem:[#allocation7 + $0x1358] sm:$0xff]  }
 0x320   :  { %v9112_v63 = vadd.bf16 %v9109_v6, %v9091_v22  ;;  %13748 = vmatprep.subr.bf16.mxu0 %v14587_v26  ;;  %9635 = vmatprep.mubr.bf16.mxu0 %v12668_v61  ;;  %v14592_v35 = vld [vmem:[#allocation7 + $0x13e8] sm:$0xff]   ;;  %v14596_v22 = vld [vmem:[#allocation7 + $0x13e0] sm:$0xff]   ;;  %v14600_v43 = vld [vmem:[#allocation7 + $0x13d8] sm:$0xff]   ;;  %v9657_v6 = vstv %s17877_s8  ;;  %s9746_s8 = sshrl.u32 %s17910_s22, 16  ;;  %p9766_p6 = scmp.ne.f32.partialorder %s17916_s26, %s17916_s26 }
 0x321   :  { %v14601_v40 = vld [vmem:[#allocation7 + $0x1318] sm:$0xff]   ;;  %v9660_v28 = vmul.bf16 %v17650_v31, %v9657_v6  ;;  %v14607_v34 = vld [vmem:[#allocation7 + $0x1348] sm:$0xff]   ;;  %s9747_s21 = sand.u32 1, %s9746_s8  ;;  %v9661_v11 = vmul.bf16 %v17659_v23, %v9657_v6  ;;  %v14606_v31 = vld [vmem:[#allocation7 + $0x1390] sm:$0xff]   ;;  %s9767_s6 = sshrl.u32 %s17916_s26, 16 }
 0x322   :  { %13735 = vmatpush3.bf16.msra.mxu1 %v14574_v49  ;;  %v9115_v17 = vmax.bf16 %v15004_v13, %v9112_v63  ;;  %v14595_v49 = vld [vmem:[#allocation7 + $0x1360] sm:$0xff]   ;;  %s9748_s30 = sadd.s32 32767, %s9747_s21  ;;  %v14608_v61 = vld [vmem:[#allocation7 + $0x13c8] sm:$0xff]   ;;  %s9768_s3 = sand.u32 1, %s9767_s6 }
 0x323   :  { %13736 = vmatprep.subr.bf16.mxu1 %v14576_v14  ;;  %13749 = vmatpush3.bf16.msra.mxu0 %v14589_v7  ;;  %v14598_v14 = vld [vmem:[#allocation7 + $0x13a0] sm:$0xff]   ;;  %s9749_s12 = sadd.s32 %s17910_s22, %s9748_s30  ;;  %v9696_v7 = vmul.bf16 %v17676_v16, %v9693_v24  ;;  %s9769_s14 = sadd.s32 32767, %s9768_s3 }
 0x324   :  { %v12666_v0 = vcombine.high %v9115_v17, %v9115_v17  ;;  %v12665_v15 = vcombine.low %v9115_v17, %v9115_v17  ;;  %13750 = vmatprep.subr.bf16.mxu0 %v14591_v56  ;;  %s9770_s19 = sadd.s32 %s17916_s26, %s9769_s14  ;;  %p9787_p7 = scmp.ne.f32.partialorder %s17942_s13, %s17942_s13 }
 0x325   :  { %s9771_s18 = sand.u32 4294901760, %s9770_s19  ;;  %s9788_s7 = sshrl.u32 %s17942_s13, 16 }
 0x326   :  { %13737 = vmatpush3.bf16.msra.mxu1 %v14578_v54  ;;  %9595 = vmatprep.mubr.bf16.mxu1 %v12666_v0  ;;  %v9675_v0 = vstv %s17890_s4  ;;  %s9750_s4 = sand.u32 4294901760, %s9749_s12  ;;  %s18721_s18 = smov (%p9766_p6, %s9771_s18), 2143289344 }
 0x327   :  { %13738 = vmatprep.subr.bf16.mxu1 %v14580_v38  ;;  %13751 = vmatpush3.bf16.msra.mxu0 %v14593_v44  ;;  %v9659_v38 = vmul.bf16 %v17641_v2, %v9657_v6  ;;  %v9678_v23 = vadd.bf16 %v9675_v0, %v9660_v28  ;;  %v9714_v44 = vstv %s17913_s24  ;;  %s18719_s4 = smov (%p9745_p5, %s9750_s4), 2143289344  ;;  %s9774_s15 = sshrl.u32 %s18721_s18, 16 }
 0x328   :  { %13752 = vmatprep.subr.bf16.mxu0 %v14595_v49  ;;  %v9697_v49 = vmul.bf16 %v17688_v47, %v9693_v24  ;;  %s9753_s16 = sshrl.u32 %s18719_s4, 16  ;;  %s9789_s22 = sand.u32 1, %s9788_s7 }
 0x329   :  { %s9754_s17 = sshll.u32 %s9753_s16, 16  ;;  %v9699_v47 = vadd.bf16 %v9696_v7, %v9678_v23  ;;  %s9775_s20 = sshll.u32 %s9774_s15, 16  ;;  %v14627_v23 = vld [vmem:[#allocation7 + $0x1460] sm:$0xff]  }
 0x32a   :  { %13739 = vmatpush3.bf16.msra.mxu1 %v14582_v30  ;;  %s9755_s29 = sor.u32 %s9754_s17, %s9753_s16  ;;  %s9790_s1 = sadd.s32 32767, %s9789_s22 }
 0x32b   :  { %13768 = vmatprep.subr.bf16.mxu1 %v14584_v18  ;;  %13753 = vmatpush3.bf16.msra.mxu0 %v14597_v57  ;;  %v14605_v18 = vld [vmem:[#allocation7 + $0x1310] sm:$0xff]   ;;  %v14612_v57 = vld [vmem:[#allocation7 + $0x13c0] sm:$0xff]   ;;  %s9776_s23 = sor.u32 %s9775_s20, %s9774_s15  ;;  %s9791_s25 = sadd.s32 %s17942_s13, %s9790_s1 }
 0x32c   :  { %13754 = vmatprep.subr.bf16.mxu0 %v14599_v1  ;;  %v14613_v1 = vld [vmem:[#allocation7 + $0x1300] sm:$0xff]   ;;  %s9792_s24 = sand.u32 4294901760, %s9791_s25  ;;  %p9808_p8 = scmp.ne.f32.partialorder %s17951_s10, %s17951_s10 }
 0x32d   :  { %9596 = vmatmul.mubr.bf16.vlgmr.msra.gmra.mxu1 %v12665_v15  ;;  %v9677_v15 = vadd.bf16 %v9675_v0, %v9659_v38  ;;  %v14619_v38 = vld [vmem:[#allocation7 + $0x1470] sm:$0xff]   ;;  %s18723_s24 = smov (%p9787_p7, %s9792_s24), 2143289344  ;;  %s9809_s11 = sshrl.u32 %s17951_s10, 16 }
 0x32e   :  { %13769 = vmatpush3.bf16.msra.mxu1 %v14586_v52  ;;  %s9795_s26 = sshrl.u32 %s18723_s24, 16  ;;  %s9810_s8 = sand.u32 1, %s9809_s11 }
 0x32f   :  { %13770 = vmatprep.subr.bf16.mxu1 %v14588_v3  ;;  %13755 = vmatpush3.bf16.msra.mxu0 %v14601_v40  ;;  %v9695_v3 = vmul.bf16 %v17668_v45, %v9693_v24  ;;  %v14611_v45 = vld [vmem:[#allocation7 + $0x1340] sm:$0xff]   ;;  %v9717_v40 = vmul.bf16 %v17703_v29, %v9714_v44  ;;  %v12667_v29 = vcombine.low %v17875_v27, %v17875_v27  ;;  %v14621_v24 = vld [vmem:[#allocation7 + $0x1430] sm:$0xff]   ;;  %s9796_s9 = sshll.u32 %s9795_s26, 16  ;;  %s9811_s21 = sadd.s32 32767, %s9810_s8 }
 0x330   :  { %13756 = vmatprep.subr.bf16.mxu0 %v14603_v9  ;;  %v9718_v9 = vmul.bf16 %v17711_v5, %v9714_v44  ;;  %v14616_v5 = vld [vmem:[#allocation7 + $0x14f8] sm:$0xff]   ;;  %s9797_s0 = sor.u32 %s9796_s9, %s9795_s26  ;;  %s9812_s30 = sadd.s32 %s17951_s10, %s9811_s21 }
 0x331   :  { %s17980_s12 = sld [smem:[#allocation2 + $0x700]]  ;;  %p9829_p9 = scmp.ne.f32.partialorder %s17974_s27, %s17974_s27 }
 0x332   :  { %13771 = vmatpush3.bf16.msra.mxu1 %v14590_v36  ;;  %v14609_v36 = vld [vmem:[#allocation7 + $0x1308] sm:$0xff]   ;;  %s9830_s4 = sshrl.u32 %s17974_s27, 16  ;;  %s18001_s18 = sld [smem:[#allocation5 + $0xe]] }
 0x333   :  { %13772 = vmatprep.subr.bf16.mxu1 %v14592_v35  ;;  %13757 = vmatpush3.bf16.msra.mxu0 %v14605_v18  ;;  %v9679_v35 = vadd.bf16 %v9675_v0, %v9661_v11  ;;  %s9831_s13 = sand.u32 1, %s9830_s4  ;;  %s18005_s25 = sld [smem:[#allocation2 + $0x701]] }
 0x334   :  { %13758 = vmatprep.subr.bf16.mxu0 %v14607_v34  ;;  %s9832_s3 = sadd.s32 32767, %s9831_s13 }
 0x335   :  { %v9700_v6 = vadd.bf16 %v9697_v49, %v9679_v35  ;;  %s9833_s14 = sadd.s32 %s17974_s27, %s9832_s3 }
 0x336   :  { %13773 = vmatpush3.bf16.msra.mxu1 %v14594_v32 }
 0x337   :  { %13774 = vmatprep.subr.bf16.mxu1 %v14596_v22  ;;  %v14610_v22 = vld [vmem:[#allocation7 + $0x1388] sm:$0xff]   ;;  %13759 = vmatpush3.bf16.msra.mxu0 %v14609_v36  ;;  %v9721_v27 = vadd.bf16 %v9718_v9, %v9700_v6  ;;  %p10380_p10 = scmp.ne.f32.partialorder %s17980_s12, %s17980_s12  ;;  %s10381_s19 = sshrl.u32 %s17980_s12, 16 }
 0x338   :  { %v13542_v17 = vpop.f32.mrf.mxu0  ;;  %13760 = vmatprep.subr.bf16.mxu0 %v14611_v45  ;;  %s10382_s7 = sand.u32 1, %s10381_s19  ;;  %p10398_p11 = scmp.ne.f32.partialorder %s18001_s18, %s18001_s18 }
 0x339   :  { %s10383_s22 = sadd.s32 32767, %s10382_s7  ;;  %s10399_s24 = sshrl.u32 %s18001_s18, 16 }
 0x33a   :  { %13775 = vmatpush3.bf16.msra.mxu1 %v14598_v14  ;;  %v13543_v26 = vpop.f32.mrf.mxu0  ;;  %v9698_v14 = vadd.bf16 %v9695_v3, %v9677_v15  ;;  %v9798_v3 = vstv %s9797_s0  ;;  %s10384_s1 = sadd.s32 %s17980_s12, %s10383_s22  ;;  %s10400_s27 = sand.u32 1, %s10399_s24 }
 0x33b   :  { %13776 = vmatprep.subr.bf16.mxu1 %v14600_v43  ;;  %v13544_v52 = vadd.f32 %v13543_v26, %v13542_v17  ;;  %v9716_v43 = vmul.bf16 %v17697_v41, %v9714_v44  ;;  %v14615_v41 = vld [vmem:[#allocation7 + $0x1478] sm:$0xff]   ;;  %13761 = vmatpush3.bf16.msra.mxu0 %v14613_v1  ;;  %v9756_v17 = vstv %s9755_s29  ;;  %v14625_v26 = vld [vmem:[#allocation7 + $0x1428] sm:$0xff]   ;;  %v9802_v35 = vmul.bf16 %v17811_v58, %v9798_v3  ;;  %s9834_s29 = sand.u32 4294901760, %s9833_s14  ;;  %s10401_s8 = sadd.s32 32767, %s10400_s27 }
 0x33c   :  { %v13545_v56 = vpop.f32.mrf.mxu0  ;;  %13790 = vmatprep.subr.bf16.mxu0 %v14615_v41  ;;  %v9759_v0 = vmul.bf16 %v17754_v55, %v9756_v17  ;;  %s18727_s29 = smov (%p9829_p9, %s9834_s29), 2143289344  ;;  %v14639_v41 = vld [vmem:[#allocation7 + $0x1448] sm:$0xff]   ;;  %s10402_s21 = sadd.s32 %s18001_s18, %s10401_s8 }
 0x33d   :  { %v14631_v56 = vld [vmem:[#allocation7 + $0x1458] sm:$0xff]   ;;  %s9837_s10 = sshrl.u32 %s18727_s29, 16  ;;  %s10403_s0 = sand.u32 4294901760, %s10402_s21 }
 0x33e   :  { %13777 = vmatpush3.bf16.msra.mxu1 %v14602_v50  ;;  %v13546_v16 = vpop.f32.mrf.mxu0  ;;  %v14617_v50 = vld [vmem:[#allocation7 + $0x1438] sm:$0xff]   ;;  %9636 = vmatmul.mubr.bf16.vlgmr.msra.gmra.mxu0 %v12667_v29  ;;  %s9838_s15 = sshll.u32 %s9837_s10, 16  ;;  %p10416_p12 = scmp.ne.f32.partialorder %s18005_s25, %s18005_s25 }
 0x33f   :  { %v13520_v20 = vpop.f32.mrf.mxu1  ;;  %13778 = vmatprep.subr.bf16.mxu1 %v14604_v12  ;;  %13791 = vmatpush3.bf16.msra.mxu0 %v14617_v50  ;;  %s9839_s20 = sor.u32 %s9838_s15, %s9837_s10  ;;  %s18731_s0 = smov (%p10398_p11, %s10403_s0), 2143289344 }
 0x340   :  { %13792 = vmatprep.subr.bf16.mxu0 %v14619_v38  ;;  %v9840_v9 = vstv %s9839_s20  ;;  %s10406_s12 = sshrl.u32 %s18731_s0, 16  ;;  %s18040_s14 = sld [smem:[#allocation2 + $0x703]] }
 0x341   :  { %v13521_v54 = vpop.f32.mrf.mxu1  ;;  %v9842_v29 = vmul.bf16 %v17848_v46, %v9840_v9  ;;  %v9843_v50 = vmul.bf16 %v17854_v4, %v9840_v9  ;;  %v14643_v46 = vld [vmem:[#allocation7 + $0x1440] sm:$0xff]   ;;  %s18063_s0 = sld [smem:[#allocation2 + $0x705]] }
 0x342   :  { %v13522_v63 = vadd.f32 %v13521_v54, %v13520_v20  ;;  %13779 = vmatpush3.bf16.msra.mxu1 %v14606_v31  ;;  %v9735_v20 = vstv %s17929_s28  ;;  %v14614_v54 = vld [vmem:[#allocation7 + $0x1380] sm:$0xff]   ;;  %s9813_s28 = sand.u32 4294901760, %s9812_s30  ;;  %s10417_s30 = sshrl.u32 %s18005_s25, 16 }
 0x343   :  { %v13523_v30 = vpop.f32.mrf.mxu1  ;;  %13780 = vmatprep.subr.bf16.mxu1 %v14608_v61  ;;  %v9737_v12 = vmul.bf16 %v17724_v48, %v9735_v20  ;;  %v9738_v28 = vmul.bf16 %v17733_v53, %v9735_v20  ;;  %v9739_v18 = vmul.bf16 %v17739_v39, %v9735_v20  ;;  %v9758_v53 = vmul.bf16 %v17746_v33, %v9756_v17  ;;  %v14623_v33 = vld [vmem:[#allocation7 + $0x1468] sm:$0xff]   ;;  %s18725_s28 = smov (%p9808_p8, %s9813_s28), 2143289344  ;;  %s10418_s4 = sand.u32 1, %s10417_s30 }
 0x344   :  { %v17944_v32 = vadd.f32 %v13544_v52, %v13522_v63  ;;  %v9719_v63 = vadd.bf16 %v9716_v43, %v9698_v14  ;;  %v9720_v30 = vadd.bf16 %v9717_v40, %v9699_v47  ;;  %v9777_v39 = vstv %s9776_s23  ;;  %13793 = vmatpush3.bf16.msra.mxu0 %v14621_v24  ;;  %s9816_s6 = sshrl.u32 %s18725_s28, 16  ;;  %v14635_v14 = vld [vmem:[#allocation7 + $0x1450] sm:$0xff]   ;;  %s10385_s23 = sand.u32 4294901760, %s10384_s1 }
 0x345   :  { %v13524_v2 = vpop.f32.mrf.mxu1  ;;  %v9742_v11 = vadd.bf16 %v9739_v18, %v9721_v27  ;;  %v9779_v31 = vmul.bf16 %v17772_v42, %v9777_v39  ;;  %v9781_v15 = vmul.bf16 %v17785_v62, %v9777_v39  ;;  %13794 = vmatprep.subr.bf16.mxu0 %v14623_v33  ;;  %v14629_v42 = vld [vmem:[#allocation7 + $0x1420] sm:$0xff]   ;;  %v9801_v62 = vmul.bf16 %v17805_v37, %v9798_v3  ;;  %s9817_s16 = sshll.u32 %s9816_s6, 16  ;;  %v14637_v47 = vld [vmem:[#allocation7 + $0x1410] sm:$0xff]   ;;  %s18729_s23 = smov (%p10380_p10, %s10385_s23), 2143289344  ;;  %v14618_v27 = vld [vmem:[#allocation7 + $0x14b8] sm:$0xff]  }
 0x346   :  { %13781 = vmatpush3.bf16.msra.mxu1 %v14610_v22  ;;  %v9740_v48 = vadd.bf16 %v9737_v12, %v9719_v63  ;;  %v9741_v34 = vadd.bf16 %v9738_v28, %v9720_v30  ;;  %v9760_v2 = vmul.bf16 %v17763_v21, %v9756_v17  ;;  %v9780_v21 = vmul.bf16 %v17778_v59, %v9777_v39  ;;  %s9818_s17 = sor.u32 %s9817_s16, %s9816_s6  ;;  %v14633_v22 = vld [vmem:[#allocation7 + $0x1418] sm:$0xff]   ;;  %s10388_s11 = sshrl.u32 %s18729_s23, 16  ;;  %v14645_v18 = vld [vmem:[#allocation7 + $0x1400] sm:$0xff]   ;;  %v14622_v24 = vld [vmem:[#allocation7 + $0x14b0] sm:$0xff]  }
 0x347   :  { %13782 = vmatprep.subr.bf16.mxu1 %v14612_v57  ;;  %v9800_v59 = vmul.bf16 %v17796_v25, %v9798_v3  ;;  %v9819_v49 = vstv %s9818_s17  ;;  %v9844_v63 = vmul.bf16 %v17860_v10, %v9840_v9  ;;  %s10389_s26 = sshll.u32 %s10388_s11, 16  ;;  %s18035_s28 = sld [smem:[#allocation2 + $0x702]]  ;;  %v14651_v33 = vld [vmem:[#allocation7 + $0x1570] sm:$0xff]   ;;  %v14659_v3 = vld [vmem:[#allocation7 + $0x1560] sm:$0xff]  }
 0x348   :  { %v9761_v55 = vadd.bf16 %v9758_v53, %v9740_v48  ;;  %v9762_v52 = vadd.bf16 %v9759_v0, %v9741_v34  ;;  %v9763_v61 = vadd.bf16 %v9760_v2, %v9742_v11  ;;  %13795 = vmatpush3.bf16.msra.mxu0 %v14625_v26  ;;  %v9821_v16 = vmul.bf16 %v17820_v8, %v9819_v49  ;;  %s18024_s9 = sor.u32 %s10389_s26, %s10388_s11  ;;  %v14620_v53 = vld [vmem:[#allocation7 + $0x14f0] sm:$0xff]   ;;  %v14647_v0 = vld [vmem:[#allocation7 + $0x1578] sm:$0xff]   ;;  %s10407_s6 = sshll.u32 %s10406_s12, 16  ;;  %v14624_v2 = vld [vmem:[#allocation7 + $0x14e8] sm:$0xff]  }
 0x349   :  { %13796 = vmatprep.subr.bf16.mxu0 %v14627_v23  ;;  %v9822_v58 = vmul.bf16 %v17829_v60, %v9819_v49  ;;  %v9823_v1 = vmul.bf16 %v17835_v51, %v9819_v49  ;;  %s10419_s13 = sadd.s32 32767, %s10418_s4  ;;  %v14649_v11 = vld [vmem:[#allocation7 + $0x1538] sm:$0xff]   ;;  %s18037_s16 = sor.u32 %s10407_s6, %s10406_s12  ;;  %v14626_v26 = vld [vmem:[#allocation7 + $0x14a8] sm:$0xff]  }
 0x34a   :  { %13783 = vmatpush3.bf16.msra.mxu1 %v14614_v54  ;;  %v9782_v7 = vadd.bf16 %v9779_v31, %v9761_v55  ;;  %v9783_v36 = vadd.bf16 %v9780_v21, %v9762_v52  ;;  %v9784_v44 = vadd.bf16 %v9781_v15, %v9763_v61  ;;  %s10420_s3 = sadd.s32 %s18005_s25, %s10419_s13  ;;  %v14653_v55 = vld [vmem:[#allocation7 + $0x1530] sm:$0xff]   ;;  %v14628_v31 = vld [vmem:[#allocation7 + $0x14e0] sm:$0xff]   ;;  %v14655_v52 = vld [vmem:[#allocation7 + $0x1568] sm:$0xff]   ;;  %p10458_p0 = scmp.ne.f32.partialorder %s18040_s14, %s18040_s14 }
 0x34b   :  { %13812 = vmatprep.subr.bf16.mxu1 %v14616_v5  ;;  %v14641_v5 = vld [vmem:[#allocation7 + $0x1408] sm:$0xff]   ;;  %s10421_s17 = sand.u32 4294901760, %s10420_s3  ;;  %v14630_v21 = vld [vmem:[#allocation7 + $0x14a0] sm:$0xff]   ;;  %v14632_v15 = vld [vmem:[#allocation7 + $0x14d8] sm:$0xff]   ;;  %s10459_s1 = sshrl.u32 %s18040_s14, 16 }
 0x34c   :  { %v9803_v25 = vadd.bf16 %v9800_v59, %v9782_v7  ;;  %v9804_v45 = vadd.bf16 %v9801_v62, %v9783_v36  ;;  %13797 = vmatpush3.bf16.msra.mxu0 %v14629_v42  ;;  %v9805_v57 = vadd.bf16 %v9802_v35, %v9784_v44  ;;  %s18733_s17 = smov (%p10416_p12, %s10421_s17), 2143289344  ;;  %v14657_v61 = vld [vmem:[#allocation7 + $0x1528] sm:$0xff]   ;;  %s18057_s23 = sld [smem:[#allocation2 + $0x704]]  ;;  %v14634_v42 = vld [vmem:[#allocation7 + $0x1498] sm:$0xff]   ;;  %v14661_v7 = vld [vmem:[#allocation7 + $0x1520] sm:$0xff]   ;;  %v10391_v59 = vstv %s18024_s9 }
 0x34d   :  { %13798 = vmatprep.subr.bf16.mxu0 %v14631_v56  ;;  %p10437_p13 = scmp.ne.f32.partialorder %s18035_s28, %s18035_s28  ;;  %s10438_s29 = sshrl.u32 %s18035_s28, 16  ;;  %v14636_v56 = vld [vmem:[#allocation7 + $0x14d0] sm:$0xff]   ;;  %v14663_v36 = vld [vmem:[#allocation7 + $0x1558] sm:$0xff]   ;;  %v18073_v35 = vld [vmem:[%s18444_s2] sm:$0xff] }
 0x34e   :  { %v9824_v20 = vadd.bf16 %v9821_v16, %v9803_v25  ;;  %v9825_v60 = vadd.bf16 %v9822_v58, %v9804_v45  ;;  %v9826_v51 = vadd.bf16 %v9823_v1, %v9805_v57  ;;  %s10424_s19 = sshrl.u32 %s18733_s17, 16  ;;  %s10439_s18 = sand.u32 1, %s10438_s29  ;;  %v10393_v25 = vmul.bf16 %v18073_v35, %v10391_v59  ;;  %v18082_v49 = vld [vmem:[%s18444_s2 + $0x8] sm:$0xff]  ;;  %v14665_v58 = vld [vmem:[#allocation7 + $0x1518] sm:$0xff]  }
 0x34f   :  { %s10425_s10 = sshll.u32 %s10424_s19, 16  ;;  %s10440_s7 = sadd.s32 32767, %s10439_s18  ;;  %v10394_v45 = vmul.bf16 %v18082_v49, %v10391_v59  ;;  %v10409_v57 = vstv %s18037_s16 }
 0x350   :  { %13799 = vmatpush3.bf16.msra.mxu0 %v14633_v22  ;;  %v9846_v38 = vadd.bf16 %v9843_v50, %v9825_v60  ;;  %v9847_v30 = vadd.bf16 %v9844_v63, %v9826_v51  ;;  %s18048_s15 = sor.u32 %s10425_s10, %s10424_s19  ;;  %s10441_s22 = sadd.s32 %s18035_s28, %s10440_s7  ;;  %v14638_v22 = vld [vmem:[#allocation7 + $0x1490] sm:$0xff]   ;;  %v10411_v51 = vadd.bf16 %v10409_v57, %v10393_v25  ;;  %v14642_v63 = vld [vmem:[#allocation7 + $0x1488] sm:$0xff]   ;;  %v14679_v25 = vld [vmem:[#allocation7 + $0x1678] sm:$0xff]  }
 0x351   :  { %13800 = vmatprep.subr.bf16.mxu0 %v14635_v14  ;;  %s10442_s20 = sand.u32 4294901760, %s10441_s22  ;;  %s10460_s24 = sand.u32 1, %s10459_s1  ;;  %v10427_v1 = vstv %s18048_s15  ;;  %v18091_v14 = vld [vmem:[%s18444_s2 + $0x10] sm:$0xff] }
 0x352   :  { %v9849_v10 = vmax.bf16 %v15004_v13, %v9846_v38  ;;  %s18735_s20 = smov (%p10437_p13, %s10442_s20), 2143289344  ;;  %s10461_s27 = sadd.s32 32767, %s10460_s24 }
 0x353   :  { %s10445_s25 = sshrl.u32 %s18735_s20, 16  ;;  %s10462_s8 = sadd.s32 %s18040_s14, %s10461_s27 }
 0x354   :  { %13801 = vmatpush3.bf16.msra.mxu0 %v14637_v47  ;;  %v12730_v48 = vcombine.high %v9849_v10, %v9849_v10  ;;  %v12729_v39 = vcombine.low %v9849_v10, %v9849_v10  ;;  %s10446_s11 = sshll.u32 %s10445_s25, 16  ;;  %s10463_s21 = sand.u32 4294901760, %s10462_s8  ;;  %v14640_v47 = vld [vmem:[#allocation7 + $0x14c8] sm:$0xff]   ;;  %v14644_v10 = vld [vmem:[#allocation7 + $0x14c0] sm:$0xff]  }
 0x355   :  { %13802 = vmatprep.subr.bf16.mxu0 %v14639_v41  ;;  %s18060_s26 = sor.u32 %s10446_s11, %s10445_s25  ;;  %s18737_s21 = smov (%p10458_p0, %s10463_s21), 2143289344  ;;  %v10412_v41 = vadd.bf16 %v10409_v57, %v10394_v45 }
 0x356   :  { %10329 = vmatprep.mubr.bf16.mxu0 %v12730_v48  ;;  %p10479_p1 = scmp.ne.f32.partialorder %s18057_s23, %s18057_s23  ;;  %s10480_s28 = sshrl.u32 %s18057_s23, 16 }
 0x357   :  { %s10466_s6 = sshrl.u32 %s18737_s21, 16  ;;  %s10481_s13 = sand.u32 1, %s10480_s28 }
 0x358   :  { %13803 = vmatpush3.bf16.msra.mxu0 %v14641_v5  ;;  %s10467_s14 = sshll.u32 %s10466_s6, 16  ;;  %s10482_s29 = sadd.s32 32767, %s10481_s13  ;;  %v10448_v5 = vstv %s18060_s26 }
 0x359   :  { %13804 = vmatprep.subr.bf16.mxu0 %v14643_v46  ;;  %s18094_s16 = sor.u32 %s10467_s14, %s10466_s6  ;;  %s10483_s19 = sadd.s32 %s18057_s23, %s10482_s29  ;;  %v18120_v46 = vld [vmem:[%s18444_s2 + $0x28] sm:$0xff] }
 0x35a   :  { %s10484_s7 = sand.u32 4294901760, %s10483_s19  ;;  %p10500_p2 = scmp.ne.f32.partialorder %s18063_s0, %s18063_s0 }
 0x35b   :  { %s18739_s7 = smov (%p10479_p1, %s10484_s7), 2143289344  ;;  %s10501_s25 = sshrl.u32 %s18063_s0, 16 }
 0x35c   :  { %13805 = vmatpush3.bf16.msra.mxu0 %v14645_v18  ;;  %s18124_s24 = sld [smem:[#allocation2 + $0x706]]  ;;  %s10487_s23 = sshrl.u32 %s18739_s7, 16  ;;  %v18129_v18 = vld [vmem:[%s18444_s2 + $0x30] sm:$0xff] }
 0x35d   :  { %13834 = vmatprep.subr.bf16.mxu0 %v14647_v0  ;;  %s10502_s11 = sand.u32 1, %s10501_s25  ;;  %v10450_v48 = vmul.bf16 %v18129_v18, %v10448_v5  ;;  %s10488_s8 = sshll.u32 %s10487_s23, 16 }
 0x35e   :  { %s10503_s21 = sadd.s32 32767, %s10502_s11  ;;  %s10489_s28 = sor.u32 %s10488_s8, %s10487_s23 }
 0x35f   :  { %v13564_v37 = vpop.f32.mrf.mxu1  ;;  %10330 = vmatmul.mubr.bf16.vlgmr.msra.gmra.mxu0 %v12729_v39  ;;  %v14646_v39 = vld [vmem:[#allocation7 + $0x1480] sm:$0xff]   ;;  %s10504_s12 = sadd.s32 %s18063_s0, %s10503_s21  ;;  %s18146_s3 = sld [smem:[#allocation2 + $0x707]] }
 0x360   :  { %13835 = vmatpush3.bf16.msra.mxu0 %v14649_v11  ;;  %v10469_v11 = vstv %s18094_s16  ;;  %s10505_s13 = sand.u32 4294901760, %s10504_s12  ;;  %s18199_s9 = sld [smem:[#allocation2 + $0x708]] }
 0x361   :  { %v13565_v43 = vpop.f32.mrf.mxu1  ;;  %13836 = vmatprep.subr.bf16.mxu0 %v14651_v33  ;;  %v18143_v33 = vld [vmem:[%s18444_s2 + $0x40] sm:$0xff]  ;;  %s18741_s13 = smov (%p10500_p2, %s10505_s13), 2143289344  ;;  %s18220_s10 = sld [smem:[#allocation2 + $0x780]] }
 0x362   :  { %v13566_v40 = vadd.f32 %v13565_v43, %v13564_v37  ;;  %v10395_v43 = vmul.bf16 %v18091_v14, %v10391_v59  ;;  %p10521_p3 = scmp.ne.f32.partialorder %s18124_s24, %s18124_s24  ;;  %s10522_s29 = sshrl.u32 %s18124_s24, 16  ;;  %v10490_v59 = vstv %s10489_s28 }
 0x363   :  { %v13567_v8 = vpop.f32.mrf.mxu1  ;;  %s10508_s0 = sshrl.u32 %s18741_s13, 16  ;;  %s10523_s18 = sand.u32 1, %s10522_s29 }
 0x364   :  { %v7436_v6 = vadd.f32 %v13566_v40, %v17944_v32  ;;  %v9845_v32 = vadd.bf16 %v9842_v29, %v9824_v20  ;;  %13837 = vmatpush3.bf16.msra.mxu0 %v14653_v55  ;;  %v14667_v40 = vld [vmem:[#allocation7 + $0x1550] sm:$0xff]   ;;  %v14648_v55 = vld [vmem:[#allocation7 + $0x15f8] sm:$0xff]   ;;  %s10509_s15 = sshll.u32 %s10508_s0, 16  ;;  %s10524_s22 = sadd.s32 32767, %s10523_s18 }
 0x365   :  { %v13568_v54 = vpop.f32.mrf.mxu1  ;;  %13838 = vmatprep.subr.bf16.mxu0 %v14655_v52  ;;  %s10510_s20 = sor.u32 %s10509_s15, %s10508_s0  ;;  %s10525_s1 = sadd.s32 %s18124_s24, %s10524_s22 }
 0x366   :  { %v18011_v12 = vadd.f32 %v7436_v6, %v17867_v19  ;;  %v9848_v4 = vmax.bf16 %v15004_v13, %v9845_v32  ;;  %v18022_v19 = vmax.bf16 %v15004_v13, %v9847_v30  ;;  %v18100_v6 = vld [vmem:[%s18444_s2 + $0x18] sm:$0xff]  ;;  %v18108_v54 = vld [vmem:[%s18444_s2 + $0x20] sm:$0xff]  ;;  %v14669_v32 = vld [vmem:[#allocation7 + $0x1510] sm:$0xff]   ;;  %v10413_v30 = vadd.bf16 %v10409_v57, %v10395_v43  ;;  %s10526_s11 = sand.u32 4294901760, %s10525_s1  ;;  %p10542_p4 = scmp.ne.f32.partialorder %s18146_s3, %s18146_s3 }
 0x367   :  { %v10429_v9 = vmul.bf16 %v18100_v6, %v10427_v1  ;;  %v10430_v29 = vmul.bf16 %v18108_v54, %v10427_v1  ;;  %v10511_v43 = vstv %s10510_s20  ;;  %s18743_s11 = smov (%p10521_p3, %s10526_s11), 2143289344  ;;  %s10543_s30 = sshrl.u32 %s18146_s3, 16 }
 0x368   :  { %v12728_v28 = vcombine.high %v9848_v4, %v9848_v4  ;;  %v12727_v17 = vcombine.low %v9848_v4, %v9848_v4  ;;  %v12732_v34 = vcombine.high %v18022_v19, %v18022_v19  ;;  %13839 = vmatpush3.bf16.msra.mxu0 %v14657_v61  ;;  %v10431_v4 = vmul.bf16 %v18120_v46, %v10427_v1  ;;  %v18156_v61 = vld [vmem:[%s18444_s2 + $0x48] sm:$0xff]  ;;  %v14654_v1 = vld [vmem:[#allocation7 + $0x15b0] sm:$0xff]   ;;  %s10529_s28 = sshrl.u32 %s18743_s11, 16  ;;  %s10544_s12 = sand.u32 1, %s10543_s30 }
 0x369   :  { %13840 = vmatprep.subr.bf16.mxu0 %v14659_v3  ;;  %v12731_v52 = vcombine.low %v18022_v19, %v18022_v19  ;;  %s10530_s6 = sshll.u32 %s10529_s28, 16  ;;  %s10545_s13 = sadd.s32 32767, %s10544_s12 }
 0x36a   :  { %10289 = vmatprep.mubr.bf16.mxu1 %v12728_v28  ;;  %v14671_v28 = vld [vmem:[#allocation7 + $0x1548] sm:$0xff]   ;;  %s10531_s29 = sor.u32 %s10530_s6, %s10529_s28  ;;  %s10546_s16 = sadd.s32 %s18146_s3, %s10545_s13 }
 0x36b   :  { %10290 = vmatmul.mubr.bf16.vlgmr.msra.gmra.mxu1 %v12727_v17  ;;  %s10547_s18 = sand.u32 4294901760, %s10546_s16  ;;  %p10563_p5 = scmp.ne.f32.partialorder %s18199_s9, %s18199_s9 }
 0x36c   :  { %13813 = vmatpush3.bf16.msra.mxu1 %v14618_v27  ;;  %10369 = vmatprep.mubr.bf16.mxu1 %v12732_v34  ;;  %v10432_v27 = vadd.bf16 %v10429_v9, %v10411_v51  ;;  %v18135_v34 = vld [vmem:[%s18444_s2 + $0x38] sm:$0xff]  ;;  %s18745_s18 = smov (%p10542_p4, %s10547_s18), 2143289344  ;;  %s10564_s22 = sshrl.u32 %s18199_s9, 16 }
 0x36d   :  { %13814 = vmatprep.subr.bf16.mxu1 %v14620_v53  ;;  %13841 = vmatpush3.bf16.msra.mxu0 %v14661_v7  ;;  %v10433_v53 = vadd.bf16 %v10430_v29, %v10412_v41  ;;  %v10451_v0 = vmul.bf16 %v18135_v34, %v10448_v5  ;;  %v14677_v7 = vld [vmem:[#allocation7 + $0x1500] sm:$0xff]   ;;  %v18204_v51 = vld [vmem:[%s18444_s2 + $0x78] sm:$0xff]  ;;  %s10550_s3 = sshrl.u32 %s18745_s18, 16  ;;  %s10565_s25 = sand.u32 1, %s10564_s22 }
 0x36e   :  { %13842 = vmatprep.subr.bf16.mxu0 %v14663_v36  ;;  %v18171_v36 = vld [vmem:[%s18444_s2 + $0x58] sm:$0xff]  ;;  %v10513_v9 = vmul.bf16 %v18204_v51, %v10511_v43  ;;  %v18210_v29 = vld [vmem:[%s18444_s2 + $0x80] sm:$0xff]  ;;  %s10551_s27 = sshll.u32 %s10550_s3, 16  ;;  %s10566_s26 = sadd.s32 32767, %s10565_s25 }
 0x36f   :  { %v10454_v3 = vadd.bf16 %v10451_v0, %v10433_v53  ;;  %v18237_v53 = vld [vmem:[%s18444_s2 + $0x98] sm:$0xff]  ;;  %s10552_s8 = sor.u32 %s10551_s27, %s10550_s3  ;;  %s10567_s21 = sadd.s32 %s18199_s9, %s10566_s26 }
 0x370   :  { %13815 = vmatpush3.bf16.msra.mxu1 %v14622_v24  ;;  %v13586_v23 = vpop.f32.mrf.mxu0  ;;  %v14673_v24 = vld [vmem:[#allocation7 + $0x1508] sm:$0xff]   ;;  %s10568_s30 = sand.u32 4294901760, %s10567_s21  ;;  %p11114_p6 = scmp.ne.f32.partialorder %s18220_s10, %s18220_s10 }
 0x371   :  { %13816 = vmatprep.subr.bf16.mxu1 %v14624_v2  ;;  %13843 = vmatpush3.bf16.msra.mxu0 %v14665_v58  ;;  %v10434_v2 = vadd.bf16 %v10431_v4, %v10413_v30  ;;  %v18186_v58 = vld [vmem:[%s18444_s2 + $0x68] sm:$0xff]  ;;  %v14660_v4 = vld [vmem:[#allocation7 + $0x15e0] sm:$0xff]   ;;  %s18747_s30 = smov (%p10563_p5, %s10568_s30), 2143289344  ;;  %s11115_s9 = sshrl.u32 %s18220_s10, 16 }
 0x372   :  { %v13587_v62 = vpop.f32.mrf.mxu0  ;;  %13844 = vmatprep.subr.bf16.mxu0 %v14667_v40  ;;  %v10493_v57 = vmul.bf16 %v18186_v58, %v10490_v59  ;;  %v18195_v40 = vld [vmem:[%s18444_s2 + $0x70] sm:$0xff]  ;;  %s18271_s17 = sld [smem:[#allocation5 + $0xf]]  ;;  %s10571_s14 = sshrl.u32 %s18747_s30, 16 }
 0x373   :  { %v13588_v44 = vadd.f32 %v13587_v62, %v13586_v23  ;;  %v18165_v23 = vld [vmem:[%s18444_s2 + $0x50] sm:$0xff]  ;;  %v10473_v62 = vmul.bf16 %v18171_v36, %v10469_v11  ;;  %s10572_s16 = sshll.u32 %s10571_s14, 16  ;;  %s18275_s15 = sld [smem:[#allocation2 + $0x781]] }
 0x374   :  { %13817 = vmatpush3.bf16.msra.mxu1 %v14626_v26  ;;  %v13589_v16 = vpop.f32.mrf.mxu0  ;;  %v10452_v26 = vmul.bf16 %v18143_v33, %v10448_v5  ;;  %v10472_v19 = vmul.bf16 %v18165_v23, %v10469_v11  ;;  %v18217_v5 = vld [vmem:[%s18444_s2 + $0x88] sm:$0xff]  ;;  %s10573_s0 = sor.u32 %s10572_s16, %s10571_s14  ;;  %s18318_s12 = sld [smem:[#allocation2 + $0x782]] }
 0x375   :  { %13818 = vmatprep.subr.bf16.mxu1 %v14628_v31  ;;  %13845 = vmatpush3.bf16.msra.mxu0 %v14669_v32  ;;  %v14675_v31 = vld [vmem:[#allocation7 + $0x1540] sm:$0xff]   ;;  %v10515_v30 = vmul.bf16 %v18217_v5, %v10511_v43  ;;  %s18342_s3 = sld [smem:[#allocation2 + $0x784]] }
 0x376   :  { %v13590_v20 = vpop.f32.mrf.mxu0  ;;  %13846 = vmatprep.subr.bf16.mxu0 %v14671_v28 }
 0x377   :  { %v14656_v20 = vld [vmem:[#allocation7 + $0x15e8] sm:$0xff]  }
 0x378   :  { %13819 = vmatpush3.bf16.msra.mxu1 %v14630_v21  ;;  %v10453_v21 = vadd.bf16 %v10450_v48, %v10432_v27  ;;  %p11132_p7 = scmp.ne.f32.partialorder %s18271_s17, %s18271_s17  ;;  %s11133_s11 = sshrl.u32 %s18271_s17, 16 }
 0x379   :  { %13820 = vmatprep.subr.bf16.mxu1 %v14632_v15  ;;  %v10471_v15 = vmul.bf16 %v18156_v61, %v10469_v11  ;;  %13847 = vmatpush3.bf16.msra.mxu0 %v14673_v24  ;;  %v18243_v11 = vld [vmem:[%s18444_s2 + $0xa0] sm:$0xff]  ;;  %p11150_p8 = scmp.ne.f32.partialorder %s18275_s15, %s18275_s15  ;;  %s11151_s28 = sshrl.u32 %s18275_s15, 16 }
 0x37a   :  { %13848 = vmatprep.subr.bf16.mxu0 %v14675_v31  ;;  %v10553_v31 = vstv %s10552_s8  ;;  %s11152_s4 = sand.u32 1, %s11151_s28  ;;  %p11171_p9 = scmp.ne.f32.partialorder %s18318_s12, %s18318_s12 }
 0x37b   :  { %v10474_v45 = vadd.bf16 %v10471_v15, %v10453_v21  ;;  %v14666_v15 = vld [vmem:[#allocation7 + $0x1598] sm:$0xff]   ;;  %s11153_s13 = sadd.s32 32767, %s11152_s4  ;;  %s11172_s16 = sshrl.u32 %s18318_s12, 16 }
 0x37c   :  { %13821 = vmatpush3.bf16.msra.mxu1 %v14634_v42  ;;  %v14650_v42 = vld [vmem:[#allocation7 + $0x15b8] sm:$0xff]   ;;  %p11213_p11 = scmp.ne.f32.partialorder %s18342_s3, %s18342_s3 }
 0x37d   :  { %13822 = vmatprep.subr.bf16.mxu1 %v14636_v56  ;;  %v10455_v56 = vadd.bf16 %v10452_v26, %v10434_v2  ;;  %13849 = vmatpush3.bf16.msra.mxu0 %v14677_v7  ;;  %v14664_v26 = vld [vmem:[#allocation7 + $0x15d8] sm:$0xff]  }
 0x37e   :  { %13878 = vmatprep.subr.bf16.mxu0 %v14679_v25 }
 0x37f   :  { %v13608_v37 = vpop.f32.mrf.mxu1 }
 0x380   :  { %13823 = vmatpush3.bf16.msra.mxu1 %v14638_v22  ;;  %v10475_v22 = vadd.bf16 %v10472_v19, %v10454_v3  ;;  %v18252_v3 = vld [vmem:[%s18444_s2 + $0xa8] sm:$0xff] }
 0x381   :  { %v13609_v8 = vpop.f32.mrf.mxu1  ;;  %13824 = vmatprep.subr.bf16.mxu1 %v14640_v47  ;;  %v10476_v47 = vadd.bf16 %v10473_v62, %v10455_v56  ;;  %v10555_v19 = vmul.bf16 %v18252_v3, %v10553_v31  ;;  %v18267_v56 = vld [vmem:[%s18444_s2 + $0xb8] sm:$0xff] }
 0x382   :  { %v13610_v60 = vadd.f32 %v13609_v8, %v13608_v37  ;;  %v18178_v37 = vld [vmem:[%s18444_s2 + $0x60] sm:$0xff]  ;;  %v10494_v8 = vmul.bf16 %v18195_v40, %v10490_v59  ;;  %v10496_v41 = vadd.bf16 %v10493_v57, %v10475_v22  ;;  %v10557_v62 = vmul.bf16 %v18267_v56, %v10553_v31  ;;  %v14670_v22 = vld [vmem:[#allocation7 + $0x1590] sm:$0xff]  }
 0x383   :  { %v13611_v50 = vpop.f32.mrf.mxu1  ;;  %v10492_v16 = vmul.bf16 %v18178_v37, %v10490_v59 }
 0x384   :  { %v18115_v38 = vadd.f32 %v13610_v60, %v13588_v44  ;;  %13825 = vmatpush3.bf16.msra.mxu1 %v14642_v63  ;;  %v14652_v44 = vld [vmem:[#allocation7 + $0x15f0] sm:$0xff]   ;;  %v10514_v50 = vmul.bf16 %v18210_v29, %v10511_v43  ;;  %v14658_v63 = vld [vmem:[#allocation7 + $0x15a8] sm:$0xff]   ;;  %v10497_v32 = vadd.bf16 %v10494_v8, %v10476_v47 }
 0x385   :  { %v13612_v17 = vpop.f32.mrf.mxu1  ;;  %13826 = vmatprep.subr.bf16.mxu1 %v14644_v10  ;;  %v10495_v60 = vadd.bf16 %v10492_v16, %v10474_v45  ;;  %v10532_v10 = vstv %s10531_s29  ;;  %s11116_s29 = sand.u32 1, %s11115_s9  ;;  %v14672_v8 = vld [vmem:[#allocation7 + $0x15c8] sm:$0xff]  }
 0x386   :  { %v18228_v17 = vld [vmem:[%s18444_s2 + $0x90] sm:$0xff]  ;;  %v10517_v48 = vadd.bf16 %v10514_v50, %v10496_v41  ;;  %v10535_v0 = vmul.bf16 %v18237_v53, %v10532_v10  ;;  %v10518_v24 = vadd.bf16 %v10515_v30, %v10497_v32  ;;  %v10536_v2 = vmul.bf16 %v18243_v11, %v10532_v10  ;;  %s11117_s19 = sadd.s32 32767, %s11116_s29  ;;  %v18286_v50 = vld [vmem:[%s18444_s2 + $0xc8] sm:$0xff]  ;;  %s18325_s29 = sld [smem:[#allocation2 + $0x783]] }
 0x387   :  { %v10516_v28 = vadd.bf16 %v10513_v9, %v10495_v60  ;;  %v10534_v27 = vmul.bf16 %v18228_v17, %v10532_v10  ;;  %s11118_s18 = sadd.s32 %s18220_s10, %s11117_s19  ;;  %v18280_v9 = vld [vmem:[%s18444_s2 + $0xc0] sm:$0xff] }
 0x388   :  { %13827 = vmatpush3.bf16.msra.mxu1 %v14646_v39  ;;  %v14662_v39 = vld [vmem:[#allocation7 + $0x15a0] sm:$0xff]   ;;  %v10539_v59 = vadd.bf16 %v10536_v2, %v10518_v24  ;;  %s11119_s7 = sand.u32 4294901760, %s11118_s18 }
 0x389   :  { %13856 = vmatprep.subr.bf16.mxu1 %v14648_v55  ;;  %v10537_v55 = vadd.bf16 %v10534_v27, %v10516_v28  ;;  %s18749_s7 = smov (%p11114_p6, %s11119_s7), 2143289344  ;;  %v14678_v24 = vld [vmem:[#allocation7 + $0x1580] sm:$0xff]  }
 0x38a   :  { %v10560_v43 = vadd.bf16 %v10557_v62, %v10539_v59  ;;  %s11122_s27 = sshrl.u32 %s18749_s7, 16  ;;  %v14685_v59 = vld [vmem:[#allocation7 + $0x1630] sm:$0xff]  }
 0x38b   :  { %10370 = vmatmul.mubr.bf16.vlgmr.msra.gmra.mxu1 %v12731_v52  ;;  %v10538_v52 = vadd.bf16 %v10535_v0, %v10517_v48  ;;  %v10558_v57 = vadd.bf16 %v10555_v19, %v10537_v55  ;;  %v14676_v48 = vld [vmem:[#allocation7 + $0x15c0] sm:$0xff]   ;;  %s11123_s10 = sshll.u32 %s11122_s27, 16  ;;  %v14684_v62 = vld [vmem:[#allocation7 + $0x16f0] sm:$0xff]  }
 0x38c   :  { %13857 = vmatpush3.bf16.msra.mxu1 %v14650_v42  ;;  %v18261_v42 = vld [vmem:[%s18444_s2 + $0xb0] sm:$0xff]  ;;  %s18309_s8 = sor.u32 %s11123_s10, %s11122_s27  ;;  %p11192_p10 = scmp.ne.f32.partialorder %s18325_s29, %s18325_s29 }
 0x38d   :  { %13858 = vmatprep.subr.bf16.mxu1 %v14652_v44  ;;  %v10556_v7 = vmul.bf16 %v18261_v42, %v10553_v31  ;;  %v14668_v44 = vld [vmem:[#allocation7 + $0x15d0] sm:$0xff]   ;;  %v14681_v31 = vld [vmem:[#allocation7 + $0x1638] sm:$0xff]   ;;  %s11193_s1 = sshrl.u32 %s18325_s29, 16 }
 0x38e   :  { %s11194_s23 = sand.u32 1, %s11193_s1 }
 0x38f   :  { %s11195_s27 = sadd.s32 32767, %s11194_s23 }
 0x390   :  { %13859 = vmatpush3.bf16.msra.mxu1 %v14654_v1  ;;  %v13630_v21 = vpop.f32.mrf.mxu0  ;;  %v10559_v1 = vadd.bf16 %v10556_v7, %v10538_v52  ;;  %v14680_v52 = vld [vmem:[#allocation7 + $0x16f8] sm:$0xff]   ;;  %s11196_s10 = sadd.s32 %s18325_s29, %s11195_s27 }
 0x391   :  { %13860 = vmatprep.subr.bf16.mxu1 %v14656_v20  ;;  %v10574_v20 = vstv %s10573_s0  ;;  %v14682_v7 = vld [vmem:[#allocation7 + $0x16b8] sm:$0xff]   ;;  %s11173_s0 = sand.u32 1, %s11172_s16 }
 0x392   :  { %v13631_v25 = vpop.f32.mrf.mxu0  ;;  %v10576_v41 = vmul.bf16 %v18280_v9, %v10574_v20  ;;  %s11174_s7 = sadd.s32 32767, %s11173_s0 }
 0x393   :  { %v13632_v45 = vadd.f32 %v13631_v25, %v13630_v21  ;;  %v14683_v21 = vld [vmem:[#allocation7 + $0x1670] sm:$0xff]   ;;  %s11175_s22 = sadd.s32 %s18318_s12, %s11174_s7 }
 0x394   :  { %13861 = vmatpush3.bf16.msra.mxu1 %v14658_v63  ;;  %v13633_v16 = vpop.f32.mrf.mxu0  ;;  %v18292_v63 = vld [vmem:[%s18444_s2 + $0xd0] sm:$0xff]  ;;  %v10579_v10 = vadd.bf16 %v10576_v41, %v10558_v57  ;;  %s11134_s2 = sand.u32 1, %s11133_s11  ;;  %s11176_s20 = sand.u32 4294901760, %s11175_s22  ;;  %v14690_v57 = vld [vmem:[#allocation7 + $0x16a8] sm:$0xff]   ;;  %v11125_v41 = vstv %s18309_s8 }
 0x395   :  { %13862 = vmatprep.subr.bf16.mxu1 %v14660_v4  ;;  %v8170_v47 = vadd.f32 %v13632_v45, %v18115_v38  ;;  %v10577_v38 = vmul.bf16 %v18286_v50, %v10574_v20  ;;  %v10578_v32 = vmul.bf16 %v18292_v63, %v10574_v20  ;;  %v14674_v4 = vld [vmem:[#allocation7 + $0x1588] sm:$0xff]   ;;  %s11135_s26 = sadd.s32 32767, %s11134_s2  ;;  %v14686_v25 = vld [vmem:[#allocation7 + $0x16b0] sm:$0xff]   ;;  %s18755_s20 = smov (%p11171_p9, %s11176_s20), 2143289344  ;;  %v14694_v20 = vld [vmem:[#allocation7 + $0x16a0] sm:$0xff]  }
 0x396   :  { %v13634_v60 = vpop.f32.mrf.mxu0  ;;  %s11136_s21 = sadd.s32 %s18271_s17, %s11135_s26  ;;  %s11154_s17 = sadd.s32 %s18275_s15, %s11153_s13  ;;  %v14689_v45 = vld [vmem:[#allocation7 + $0x1628] sm:$0xff]  }
 0x397   :  { %v18299_v30 = vadd.f32 %v8170_v47, %v18011_v12  ;;  %v10580_v28 = vadd.bf16 %v10577_v38, %v10559_v1  ;;  %v10581_v27 = vadd.bf16 %v10578_v32, %v10560_v43  ;;  %v10582_v12 = vmax.bf16 %v15004_v13, %v10579_v10  ;;  %s11137_s30 = sand.u32 4294901760, %s11136_s21  ;;  %s11155_s14 = sand.u32 4294901760, %s11154_s17  ;;  %v14688_v16 = vld [vmem:[#allocation7 + $0x16e8] sm:$0xff]   ;;  %v14693_v1 = vld [vmem:[#allocation7 + $0x1620] sm:$0xff]   ;;  %v14695_v47 = vld [vmem:[#allocation7 + $0x1658] sm:$0xff]  }
 0x398   :  { %13863 = vmatpush3.bf16.msra.mxu1 %v14662_v39  ;;  %s18751_s30 = smov (%p11132_p7, %s11137_s30), 2143289344  ;;  %s18753_s14 = smov (%p11150_p8, %s11155_s14), 2143289344  ;;  %v14692_v43 = vld [vmem:[#allocation7 + $0x16e0] sm:$0xff]   ;;  %v14697_v60 = vld [vmem:[#allocation7 + $0x1618] sm:$0xff]   ;;  %v14699_v32 = vld [vmem:[#allocation7 + $0x1650] sm:$0xff]  }
 0x399   :  { %13864 = vmatprep.subr.bf16.mxu1 %v14664_v26  ;;  %v10583_v0 = vmax.bf16 %v15004_v13, %v10580_v28  ;;  %v18307_v39 = vmax.bf16 %v15004_v13, %v10581_v27  ;;  %v12792_v2 = vcombine.high %v10582_v12, %v10582_v12  ;;  %v12791_v55 = vcombine.low %v10582_v12, %v10582_v12  ;;  %s11140_s24 = sshrl.u32 %s18751_s30, 16  ;;  %s11158_s19 = sshrl.u32 %s18753_s14, 16  ;;  %v14696_v38 = vld [vmem:[#allocation7 + $0x16d8] sm:$0xff]  }
 0x39a   :  { %s11141_s6 = sshll.u32 %s11140_s24, 16  ;;  %s11159_s18 = sshll.u32 %s11158_s19, 16  ;;  %v11127_v28 = vmul.bf16 %v18073_v35, %v11125_v41  ;;  %v14700_v35 = vld [vmem:[#allocation7 + $0x16d0] sm:$0xff]  }
 0x39b   :  { %v12794_v26 = vcombine.high %v10583_v0, %v10583_v0  ;;  %11023 = vmatprep.mubr.bf16.mxu0 %v12792_v2  ;;  %v12793_v19 = vcombine.low %v10583_v0, %v10583_v0  ;;  %s18322_s9 = sor.u32 %s11141_s6, %s11140_s24  ;;  %s18333_s15 = sor.u32 %s11159_s18, %s11158_s19  ;;  %v14698_v0 = vld [vmem:[#allocation7 + $0x1698] sm:$0xff]  }
 0x39c   :  { %13865 = vmatpush3.bf16.msra.mxu1 %v14666_v15  ;;  %v12796_v15 = vcombine.high %v18307_v39, %v18307_v39  ;;  %11024 = vmatmul.mubr.bf16.vlgmr.msra.gmra.mxu0 %v12791_v55  ;;  %s11179_s25 = sshrl.u32 %s18755_s20, 16  ;;  %s11197_s26 = sand.u32 4294901760, %s11196_s10  ;;  %v11143_v2 = vstv %s18322_s9  ;;  %v11129_v55 = vmul.bf16 %v18091_v14, %v11125_v41 }
 0x39d   :  { %13866 = vmatprep.subr.bf16.mxu1 %v14668_v44  ;;  %11063 = vmatprep.mubr.bf16.mxu1 %v12794_v26  ;;  %v14687_v44 = vld [vmem:[#allocation7 + $0x1668] sm:$0xff]   ;;  %s11180_s11 = sshll.u32 %s11179_s25, 16  ;;  %s18348_s21 = sld [smem:[#allocation2 + $0x785]]  ;;  %v11161_v26 = vstv %s18333_s15 }
 0x39e   :  { %13879 = vmatpush3.bf16.msra.mxu0 %v14681_v31  ;;  %11103 = vmatprep.mubr.bf16.mxu0 %v12796_v15  ;;  %s18345_s2 = sor.u32 %s11180_s11, %s11179_s25  ;;  %s18757_s26 = smov (%p11192_p10, %s11197_s26), 2143289344  ;;  %v14703_v31 = vld [vmem:[#allocation7 + $0x1648] sm:$0xff]   ;;  %v11145_v15 = vadd.bf16 %v11143_v2, %v11127_v28 }
 0x39f   :  { %13880 = vmatprep.subr.bf16.mxu0 %v14683_v21  ;;  %s11214_s8 = sshrl.u32 %s18342_s3, 16  ;;  %s11200_s30 = sshrl.u32 %s18757_s26, 16 }
 0x3a0   :  { %13867 = vmatpush3.bf16.msra.mxu1 %v14670_v22  ;;  %v14691_v22 = vld [vmem:[#allocation7 + $0x1660] sm:$0xff]   ;;  %s11215_s28 = sand.u32 1, %s11214_s8  ;;  %s11201_s12 = sshll.u32 %s11200_s30, 16 }
 0x3a1   :  { %13868 = vmatprep.subr.bf16.mxu1 %v14672_v8  ;;  %s11216_s24 = sadd.s32 32767, %s11215_s28  ;;  %s18361_s4 = sor.u32 %s11201_s12, %s11200_s30 }
 0x3a2   :  { %13881 = vmatpush3.bf16.msra.mxu0 %v14685_v59  ;;  %s11217_s6 = sadd.s32 %s18342_s3, %s11216_s24  ;;  %s18374_s17 = sld [smem:[#allocation2 + $0x786]] }
 0x3a3   :  { %13882 = vmatprep.subr.bf16.mxu0 %v14687_v44  ;;  %s11218_s13 = sand.u32 4294901760, %s11217_s6  ;;  %p11234_p12 = scmp.ne.f32.partialorder %s18348_s21, %s18348_s21  ;;  %v14705_v44 = vld [vmem:[#allocation7 + $0x1608] sm:$0xff]  }
 0x3a4   :  { %13869 = vmatpush3.bf16.msra.mxu1 %v14674_v4  ;;  %s18759_s13 = smov (%p11213_p11, %s11218_s13), 2143289344  ;;  %s11235_s9 = sshrl.u32 %s18348_s21, 16 }
 0x3a5   :  { %13870 = vmatprep.subr.bf16.mxu1 %v14676_v48  ;;  %v11128_v48 = vmul.bf16 %v18082_v49, %v11125_v41  ;;  %s11221_s14 = sshrl.u32 %s18759_s13, 16  ;;  %s11236_s29 = sand.u32 1, %s11235_s9 }
 0x3a6   :  { %13883 = vmatpush3.bf16.msra.mxu0 %v14689_v45  ;;  %v11147_v45 = vadd.bf16 %v11143_v2, %v11129_v55  ;;  %s11222_s16 = sshll.u32 %s11221_s14, 16  ;;  %s11237_s19 = sadd.s32 32767, %s11236_s29 }
 0x3a7   :  { %13884 = vmatprep.subr.bf16.mxu0 %v14691_v22  ;;  %v11146_v14 = vadd.bf16 %v11143_v2, %v11128_v48  ;;  %v14707_v22 = vld [vmem:[#allocation7 + $0x1640] sm:$0xff]   ;;  %s11223_s0 = sor.u32 %s11222_s16, %s11221_s14  ;;  %s11238_s18 = sadd.s32 %s18348_s21, %s11237_s19 }
 0x3a8   :  { %13871 = vmatpush3.bf16.msra.mxu1 %v14678_v24  ;;  %v14701_v24 = vld [vmem:[#allocation7 + $0x1610] sm:$0xff]   ;;  %s11239_s7 = sand.u32 4294901760, %s11238_s18  ;;  %s18383_s15 = sld [smem:[#allocation2 + $0x787]]  ;;  %v11224_v48 = vstv %s11223_s0 }
 0x3a9   :  { %13900 = vmatprep.subr.bf16.mxu1 %v14680_v52  ;;  %s18761_s7 = smov (%p11234_p12, %s11239_s7), 2143289344  ;;  %p11255_p13 = scmp.ne.f32.partialorder %s18374_s17, %s18374_s17  ;;  %v11226_v2 = vmul.bf16 %v18178_v37, %v11224_v48  ;;  %v14719_v37 = vld [vmem:[#allocation7 + $0x1768] sm:$0xff]  }
 0x3aa   :  { %13885 = vmatpush3.bf16.msra.mxu0 %v14693_v1  ;;  %s11256_s22 = sshrl.u32 %s18374_s17, 16  ;;  %s11242_s20 = sshrl.u32 %s18761_s7, 16 }
 0x3ab   :  { %11064 = vmatmul.mubr.bf16.vlgmr.msra.gmra.mxu1 %v12793_v19  ;;  %13886 = vmatprep.subr.bf16.mxu0 %v14695_v47  ;;  %v11163_v19 = vmul.bf16 %v18100_v6, %v11161_v26  ;;  %v14704_v6 = vld [vmem:[#allocation7 + $0x16c8] sm:$0xff]   ;;  %s11257_s1 = sand.u32 1, %s11256_s22  ;;  %s11243_s3 = sshll.u32 %s11242_s20, 16 }
 0x3ac   :  { %13901 = vmatpush3.bf16.msra.mxu1 %v14682_v7  ;;  %v11164_v7 = vmul.bf16 %v18108_v54, %v11161_v26  ;;  %s11258_s25 = sadd.s32 32767, %s11257_s1  ;;  %s11244_s23 = sor.u32 %s11243_s3, %s11242_s20 }
 0x3ad   :  { %13902 = vmatprep.subr.bf16.mxu1 %v14684_v62  ;;  %v13652_v8 = vpop.f32.mrf.mxu1  ;;  %v14702_v62 = vld [vmem:[#allocation7 + $0x1690] sm:$0xff]   ;;  %v11166_v1 = vadd.bf16 %v11163_v19, %v11145_v15  ;;  %s11259_s11 = sadd.s32 %s18374_s17, %s11258_s25  ;;  %v11245_v55 = vstv %s11244_s23  ;;  %s18406_s10 = sld [smem:[#allocation2 + $0x788]]  ;;  %v14721_v15 = vld [vmem:[#allocation7 + $0x1728] sm:$0xff]  }
 0x3ae   :  { %13887 = vmatpush3.bf16.msra.mxu0 %v14697_v60  ;;  %v11203_v60 = vstv %s18361_s4  ;;  %s11260_s27 = sand.u32 4294901760, %s11259_s11  ;;  %p11276_p0 = scmp.ne.f32.partialorder %s18383_s15, %s18383_s15 }
 0x3af   :  { %v13653_v4 = vpop.f32.mrf.mxu1  ;;  %13888 = vmatprep.subr.bf16.mxu0 %v14699_v32  ;;  %v12795_v32 = vcombine.low %v18307_v39, %v18307_v39  ;;  %v11207_v39 = vmul.bf16 %v18171_v36, %v11203_v60  ;;  %v11227_v36 = vmul.bf16 %v18186_v58, %v11224_v48  ;;  %s18763_s27 = smov (%p11255_p13, %s11260_s27), 2143289344  ;;  %v11247_v58 = vmul.bf16 %v18204_v51, %v11245_v55 }
 0x3b0   :  { %13903 = vmatpush3.bf16.msra.mxu1 %v14686_v25  ;;  %v13654_v10 = vadd.f32 %v13653_v4, %v13652_v8  ;;  %v13674_v12 = vpop.f32.mrf.mxu0  ;;  %v11182_v25 = vstv %s18345_s2  ;;  %v14706_v8 = vld [vmem:[#allocation7 + $0x1688] sm:$0xff]   ;;  %s11277_s2 = sshrl.u32 %s18383_s15, 16  ;;  %s11263_s26 = sshrl.u32 %s18763_s27, 16 }
 0x3b1   :  { %13904 = vmatprep.subr.bf16.mxu1 %v14688_v16  ;;  %v13655_v27 = vpop.f32.mrf.mxu1  ;;  %v11165_v16 = vmul.bf16 %v18120_v46, %v11161_v26  ;;  %v11167_v46 = vadd.bf16 %v11164_v7, %v11146_v14  ;;  %v11185_v47 = vmul.bf16 %v18135_v34, %v11182_v25  ;;  %v14711_v34 = vld [vmem:[#allocation7 + $0x1778] sm:$0xff]   ;;  %s11278_s21 = sand.u32 1, %s11277_s2  ;;  %s11264_s8 = sshll.u32 %s11263_s26, 16  ;;  %v11249_v14 = vmul.bf16 %v18217_v5, %v11245_v55  ;;  %v14725_v5 = vld [vmem:[#allocation7 + $0x1720] sm:$0xff]  }
 0x3b2   :  { %v13675_v52 = vpop.f32.mrf.mxu0  ;;  %13889 = vmatpush3.bf16.msra.mxu0 %v14701_v24  ;;  %v14710_v27 = vld [vmem:[#allocation7 + $0x1680] sm:$0xff]   ;;  %s11279_s30 = sadd.s32 32767, %s11278_s21  ;;  %s11265_s28 = sor.u32 %s11264_s8, %s11263_s26 }
 0x3b3   :  { %v13656_v49 = vpop.f32.mrf.mxu1  ;;  %v13676_v21 = vadd.f32 %v13675_v52, %v13674_v12  ;;  %13890 = vmatprep.subr.bf16.mxu0 %v14703_v31  ;;  %v11168_v41 = vadd.bf16 %v11165_v16, %v11147_v45  ;;  %v11188_v28 = vadd.bf16 %v11185_v47, %v11167_v46  ;;  %v14713_v12 = vld [vmem:[#allocation7 + $0x1738] sm:$0xff]   ;;  %s11280_s12 = sadd.s32 %s18383_s15, %s11279_s30  ;;  %v11266_v7 = vstv %s11265_s28  ;;  %p11297_p1 = scmp.ne.f32.partialorder %s18406_s10, %s18406_s10  ;;  %v14731_v47 = vld [vmem:[#allocation7 + $0x1750] sm:$0xff]  }
 0x3b4   :  { %13905 = vmatpush3.bf16.msra.mxu1 %v14690_v57  ;;  %v13677_v59 = vpop.f32.mrf.mxu0  ;;  %v11228_v49 = vmul.bf16 %v18195_v40, %v11224_v48  ;;  %v11248_v40 = vmul.bf16 %v18210_v29, %v11245_v55  ;;  %s11281_s24 = sand.u32 4294901760, %s11280_s12  ;;  %s11298_s4 = sshrl.u32 %s18406_s10, 16  ;;  %v11270_v45 = vmul.bf16 %v18243_v11, %v11266_v7  ;;  %v14737_v48 = vld [vmem:[#allocation7 + $0x1708] sm:$0xff]   ;;  %v14718_v55 = vld [vmem:[#allocation7 + $0x17b0] sm:$0xff]  }
 0x3b5   :  { %13906 = vmatprep.subr.bf16.mxu1 %v14692_v43  ;;  %v18376_v54 = vadd.f32 %v13676_v21, %v13654_v10  ;;  %v11184_v43 = vmul.bf16 %v18129_v18, %v11182_v25  ;;  %v14708_v18 = vld [vmem:[#allocation7 + $0x16c0] sm:$0xff]   ;;  %v11205_v10 = vmul.bf16 %v18156_v61, %v11203_v60  ;;  %v14712_v61 = vld [vmem:[#allocation7 + $0x17f8] sm:$0xff]   ;;  %s18765_s24 = smov (%p11276_p0, %s11281_s24), 2143289344  ;;  %s11299_s13 = sand.u32 1, %s11298_s4 }
 0x3b6   :  { %v13678_v57 = vpop.f32.mrf.mxu0  ;;  %13891 = vmatpush3.bf16.msra.mxu0 %v14705_v44  ;;  %v14723_v59 = vld [vmem:[#allocation7 + $0x1760] sm:$0xff]   ;;  %v11269_v44 = vmul.bf16 %v18237_v53, %v11266_v7  ;;  %s11284_s6 = sshrl.u32 %s18765_s24, 16  ;;  %s11300_s17 = sadd.s32 32767, %s11299_s13 }
 0x3b7   :  { %13892 = vmatprep.subr.bf16.mxu0 %v14707_v22  ;;  %v11187_v4 = vadd.bf16 %v11184_v43, %v11166_v1  ;;  %s11285_s9 = sshll.u32 %s11284_s6, 16  ;;  %s11301_s29 = sadd.s32 %s18406_s10, %s11300_s17  ;;  %v14729_v1 = vld [vmem:[#allocation7 + $0x1718] sm:$0xff]  }
 0x3b8   :  { %13907 = vmatpush3.bf16.msra.mxu1 %v14694_v20  ;;  %v14709_v20 = vld [vmem:[#allocation7 + $0x1600] sm:$0xff]   ;;  %s11286_s14 = sor.u32 %s11285_s9, %s11284_s6  ;;  %s11302_s16 = sand.u32 4294901760, %s11301_s29 }
 0x3b9   :  { %13908 = vmatprep.subr.bf16.mxu1 %v14696_v38  ;;  %v11186_v38 = vmul.bf16 %v18143_v33, %v11182_v25  ;;  %v11206_v33 = vmul.bf16 %v18165_v23, %v11203_v60  ;;  %v14715_v23 = vld [vmem:[#allocation7 + $0x1770] sm:$0xff]   ;;  %v11208_v24 = vadd.bf16 %v11205_v10, %v11187_v4  ;;  %s18767_s16 = smov (%p11297_p1, %s11302_s16), 2143289344 }
 0x3ba   :  { %13893 = vmatpush3.bf16.msra.mxu0 %v14709_v20  ;;  %s11305_s19 = sshrl.u32 %s18767_s16, 16 }
 0x3bb   :  { %13922 = vmatprep.subr.bf16.mxu0 %v14711_v34  ;;  %v11209_v26 = vadd.bf16 %v11206_v33, %v11188_v28  ;;  %v11229_v52 = vadd.bf16 %v11226_v2, %v11208_v24  ;;  %s11306_s0 = sshll.u32 %s11305_s19, 16  ;;  %v14714_v24 = vld [vmem:[#allocation7 + $0x17b8] sm:$0xff]   ;;  %v14716_v2 = vld [vmem:[#allocation7 + $0x17f0] sm:$0xff]  }
 0x3bc   :  { %13909 = vmatpush3.bf16.msra.mxu1 %v14698_v0  ;;  %v11189_v0 = vadd.bf16 %v11186_v38, %v11168_v41  ;;  %s11307_s18 = sor.u32 %s11306_s0, %s11305_s19 }
 0x3bd   :  { %13910 = vmatprep.subr.bf16.mxu1 %v14700_v35  ;;  %11104 = vmatmul.mubr.bf16.vlgmr.msra.gmra.mxu0 %v12795_v32  ;;  %v14717_v35 = vld [vmem:[#allocation7 + $0x1730] sm:$0xff]   ;;  %v11230_v21 = vadd.bf16 %v11227_v36, %v11209_v26  ;;  %v11250_v51 = vadd.bf16 %v11247_v58, %v11229_v52  ;;  %v11308_v32 = vstv %s11307_s18  ;;  %v14730_v58 = vld [vmem:[#allocation7 + $0x1798] sm:$0xff]  }
 0x3be   :  { %13923 = vmatpush3.bf16.msra.mxu0 %v14713_v12  ;;  %v11210_v31 = vadd.bf16 %v11207_v39, %v11189_v0  ;;  %v11311_v10 = vmul.bf16 %v18286_v50, %v11308_v32  ;;  %v11312_v28 = vmul.bf16 %v18292_v63, %v11308_v32  ;;  %v14741_v63 = vld [vmem:[#allocation7 + $0x1700] sm:$0xff]  }
 0x3bf   :  { %13924 = vmatprep.subr.bf16.mxu0 %v14715_v23  ;;  %v11251_v29 = vadd.bf16 %v11248_v40, %v11230_v21  ;;  %v14732_v21 = vld [vmem:[#allocation7 + $0x17d0] sm:$0xff]  }
 0x3c0   :  { %13911 = vmatpush3.bf16.msra.mxu1 %v14702_v62  ;;  %v11231_v19 = vadd.bf16 %v11228_v49, %v11210_v31  ;;  %v11268_v62 = vmul.bf16 %v18228_v17, %v11266_v7  ;;  %v14727_v17 = vld [vmem:[#allocation7 + $0x1758] sm:$0xff]   ;;  %v14724_v31 = vld [vmem:[#allocation7 + $0x17e0] sm:$0xff]   ;;  %v14734_v7 = vld [vmem:[#allocation7 + $0x1790] sm:$0xff]  }
 0x3c1   :  { %13912 = vmatprep.subr.bf16.mxu1 %v14704_v6  ;;  %v11287_v6 = vstv %s11286_s14  ;;  %v11272_v22 = vadd.bf16 %v11269_v44, %v11251_v29  ;;  %v14726_v49 = vld [vmem:[#allocation7 + $0x17a0] sm:$0xff]  }
 0x3c2   :  { %13925 = vmatpush3.bf16.msra.mxu0 %v14717_v35  ;;  %v11252_v25 = vadd.bf16 %v11249_v14, %v11231_v19  ;;  %v11271_v16 = vadd.bf16 %v11268_v62, %v11250_v51  ;;  %v11289_v57 = vmul.bf16 %v18252_v3, %v11287_v6  ;;  %v11290_v43 = vmul.bf16 %v18261_v42, %v11287_v6  ;;  %v14733_v3 = vld [vmem:[#allocation7 + $0x1710] sm:$0xff]   ;;  %v14735_v42 = vld [vmem:[#allocation7 + $0x1748] sm:$0xff]  }
 0x3c3   :  { %13926 = vmatprep.subr.bf16.mxu0 %v14719_v37  ;;  %v11291_v46 = vmul.bf16 %v18267_v56, %v11287_v6  ;;  %v11310_v56 = vmul.bf16 %v18280_v9, %v11308_v32  ;;  %v14720_v35 = vld [vmem:[#allocation7 + $0x17e8] sm:$0xff]   ;;  %v14728_v37 = vld [vmem:[#allocation7 + $0x17d8] sm:$0xff]  }
 0x3c4   :  { %13913 = vmatpush3.bf16.msra.mxu1 %v14706_v8  ;;  %v11273_v11 = vadd.bf16 %v11270_v45, %v11252_v25  ;;  %v11292_v41 = vadd.bf16 %v11289_v57, %v11271_v16  ;;  %v11293_v38 = vadd.bf16 %v11290_v43, %v11272_v22  ;;  %v14740_v45 = vld [vmem:[#allocation7 + $0x17c0] sm:$0xff]  }
 0x3c5   :  { %13914 = vmatprep.subr.bf16.mxu1 %v14708_v18  ;;  %v14742_v16 = vld [vmem:[#allocation7 + $0x1780] sm:$0xff]  }
 0x3c6   :  { %13927 = vmatpush3.bf16.msra.mxu0 %v14721_v15  ;;  %v11294_v18 = vadd.bf16 %v11291_v46, %v11273_v11  ;;  %v11314_v12 = vadd.bf16 %v11311_v10, %v11293_v38 }
 0x3c7   :  { %13928 = vmatprep.subr.bf16.mxu0 %v14723_v59  ;;  %v14736_v59 = vld [vmem:[#allocation7 + $0x17c8] sm:$0xff]  }
 0x3c8   :  { %13915 = vmatpush3.bf16.msra.mxu1 %v14710_v27  ;;  %v11313_v27 = vadd.bf16 %v11310_v56, %v11292_v41  ;;  %v11315_v0 = vadd.bf16 %v11312_v28, %v11294_v18 }
 0x3c9   :  { %13944 = vmatprep.subr.bf16.mxu1 %v14712_v61  ;;  %v11317_v61 = vmax.bf16 %v15004_v13, %v11314_v12 }
 0x3ca   :  { %13929 = vmatpush3.bf16.msra.mxu0 %v14725_v5  ;;  %v11316_v39 = vmax.bf16 %v15004_v13, %v11313_v27  ;;  %v11318_v9 = vmax.bf16 %v15004_v13, %v11315_v0  ;;  %v14722_v13 = vld [vmem:[#allocation7 + $0x17a8] sm:$0xff]  }
 0x3cb   :  { %13930 = vmatprep.subr.bf16.mxu0 %v14727_v17  ;;  %v12857_v36 = vcombine.low %v11317_v61, %v11317_v61  ;;  %v14738_v5 = vld [vmem:[#allocation7 + $0x1788] sm:$0xff]  }
 0x3cc   :  { %v12856_v23 = vcombine.high %v11316_v39, %v11316_v39  ;;  %v12855_v50 = vcombine.low %v11316_v39, %v11316_v39  ;;  %v12860_v26 = vcombine.high %v11318_v9, %v11318_v9  ;;  %v12859_v6 = vcombine.low %v11318_v9, %v11318_v9 }
 0x3cd   :  { %v13696_v53 = vpop.f32.mrf.mxu1 }
 0x3ce   :  { %13931 = vmatpush3.bf16.msra.mxu0 %v14729_v1  ;;  %11757 = vmatprep.mubr.bf16.mxu1 %v12856_v23 }
 0x3cf   :  { %v13697_v8 = vpop.f32.mrf.mxu1  ;;  %13932 = vmatprep.subr.bf16.mxu0 %v14731_v47  ;;  %11758 = vmatmul.mubr.bf16.vlgmr.msra.gmra.mxu1 %v12855_v50 }
 0x3d0   :  { %v13698_v20 = vadd.f32 %v13697_v8, %v13696_v53  ;;  %13945 = vmatpush3.bf16.msra.mxu1 %v14714_v24  ;;  %11837 = vmatprep.mubr.bf16.mxu1 %v12860_v26 }
 0x3d1   :  { %v13699_v60 = vpop.f32.mrf.mxu1  ;;  %13946 = vmatprep.subr.bf16.mxu1 %v14716_v2 }
 0x3d2   :  { %v8904_v34 = vadd.f32 %v13698_v20, %v18376_v54  ;;  %13933 = vmatpush3.bf16.msra.mxu0 %v14733_v3  ;;  %v14739_v54 = vld [vmem:[#allocation7 + $0x1740] sm:$0xff]  }
 0x3d3   :  { %v13700_v4 = vpop.f32.mrf.mxu1  ;;  %13934 = vmatprep.subr.bf16.mxu0 %v14735_v42 }
 0x3d4   :  { %v18433_v33 = vadd.f32 %v8904_v34, %v18299_v30  ;;  %v12858_v30 = vcombine.high %v11317_v61, %v11317_v61  ;;  %13947 = vmatpush3.bf16.msra.mxu1 %v14718_v55 }
 0x3d5   :  { %13948 = vmatprep.subr.bf16.mxu1 %v14720_v35 }
 0x3d6   :  { %13935 = vmatpush3.bf16.msra.mxu0 %v14737_v48  ;;  %11797 = vmatprep.mubr.bf16.mxu0 %v12858_v30 }
 0x3d7   :  { %13936 = vmatprep.subr.bf16.mxu0 %v14739_v54 }
 0x3d8   :  { %13949 = vmatpush3.bf16.msra.mxu1 %v14722_v13 }
 0x3d9   :  { %13950 = vmatprep.subr.bf16.mxu1 %v14724_v31 }
 0x3da   :  { %13937 = vmatpush3.bf16.msra.mxu0 %v14741_v63 }
 0x3dc   :  { %13951 = vmatpush3.bf16.msra.mxu1 %v14726_v49 }
 0x3dd   :  { %11798 = vmatmul.mubr.bf16.vlgmr.msra.gmra.mxu0 %v12857_v36  ;;  %13952 = vmatprep.subr.bf16.mxu1 %v14728_v37 }
 0x3de   :  { %v13718_v52 = vpop.f32.mrf.mxu0 }
 0x3e0   :  { %v13719_v40 = vpop.f32.mrf.mxu0  ;;  %13953 = vmatpush3.bf16.msra.mxu1 %v14730_v58 }
 0x3e1   :  { %v13720_v15 = vadd.f32 %v13719_v40, %v13718_v52  ;;  %13954 = vmatprep.subr.bf16.mxu1 %v14732_v21 }
 0x3e2   :  { %v13721_v14 = vpop.f32.mrf.mxu0 }
 0x3e4   :  { %v13722_v62 = vpop.f32.mrf.mxu0  ;;  %13955 = vmatpush3.bf16.msra.mxu1 %v14734_v7 }
 0x3e5   :  { %13956 = vmatprep.subr.bf16.mxu1 %v14736_v59 }
 0x3e8   :  { %13957 = vmatpush3.bf16.msra.mxu1 %v14738_v5 }
 0x3e9   :  { %13958 = vmatprep.subr.bf16.mxu1 %v14740_v45 }
 0x3ec   :  { %13959 = vmatpush3.bf16.msra.mxu1 %v14742_v16 }
 0x3ed   :  { %v13740_v19 = vpop.f32.mrf.mxu1 }
 0x3ef   :  { %v13741_v51 = vpop.f32.mrf.mxu1  ;;  %11838 = vmatmul.mubr.bf16.vlgmr.msra.gmra.mxu1 %v12859_v6 }
 0x3f0   :  { %v13742_v29 = vadd.f32 %v13741_v51, %v13740_v19 }
 0x3f1   :  { %v13743_v44 = vpop.f32.mrf.mxu1 }
 0x3f2   :  { %v9598_v25 = vadd.f32 %v13742_v29, %v13720_v15 }
 0x3f3   :  { %v13744_v17 = vpop.f32.mrf.mxu1 }
 0x3fe   :  { %v13762_v22 = vpop.f32.mrf.mxu0 }
 0x400   :  { %v13763_v53 = vpop.f32.mrf.mxu0 }
 0x401   :  { %v13764_v57 = vadd.f32 %v13763_v53, %v13762_v22 }
 0x402   :  { %v13765_v1 = vpop.f32.mrf.mxu0 }
 0x403   :  { %v9638_v43 = vadd.f32 %v13764_v57, %v9598_v25  ;;  %v12909_v25 = vld [vmem:[#allocation8] ss:$0 sm:$0xff] }
 0x404   :  { %v13766_v11 = vpop.f32.mrf.mxu0 }
 0x405   :  { %v9643_v46 = vadd.f32 %v9638_v43, %v18433_v33 }
 0x41f   :  { %v13806_v41 = vpop.f32.mrf.mxu0 }
 0x421   :  { %v13807_v38 = vpop.f32.mrf.mxu0 }
 0x422   :  { %v13808_v18 = vadd.f32 %v13807_v38, %v13806_v41 }
 0x423   :  { %v13809_v34 = vpop.f32.mrf.mxu0 }
 0x425   :  { %v13810_v42 = vpop.f32.mrf.mxu0 }
 0x42b   :  { %v13784_v47 = vpop.f32.mrf.mxu1 }
 0x42d   :  { %v13785_v8 = vpop.f32.mrf.mxu1 }
 0x42e   :  { %v13786_v20 = vadd.f32 %v13785_v8, %v13784_v47 }
 0x42f   :  { %v13787_v60 = vpop.f32.mrf.mxu1 }
 0x430   :  { %v10332_v32 = vadd.f32 %v13808_v18, %v13786_v20 }
 0x431   :  { %v13788_v3 = vpop.f32.mrf.mxu1 }
 0x44b   :  { %v13828_v4 = vpop.f32.mrf.mxu1 }
 0x44d   :  { %v13829_v56 = vpop.f32.mrf.mxu1 }
 0x44e   :  { %v13830_v10 = vadd.f32 %v13829_v56, %v13828_v4 }
 0x44f   :  { %v13831_v28 = vpop.f32.mrf.mxu1 }
 0x450   :  { %v10372_v27 = vadd.f32 %v13830_v10, %v10332_v32 }
 0x451   :  { %v13832_v48 = vpop.f32.mrf.mxu1 }
 0x452   :  { %v10377_v12 = vadd.f32 %v10372_v27, %v9643_v46 }
 0x45c   :  { %v13850_v0 = vpop.f32.mrf.mxu0 }
 0x45e   :  { %v13851_v33 = vpop.f32.mrf.mxu0 }
 0x45f   :  { %v13852_v54 = vadd.f32 %v13851_v33, %v13850_v0 }
 0x460   :  { %v13853_v61 = vpop.f32.mrf.mxu0 }
 0x462   :  { %v13854_v23 = vpop.f32.mrf.mxu0 }
 0x46b   :  { %v13872_v39 = vpop.f32.mrf.mxu1 }
 0x46d   :  { %v13873_v9 = vpop.f32.mrf.mxu1 }
 0x46e   :  { %v13874_v50 = vadd.f32 %v13873_v9, %v13872_v39 }
 0x46f   :  { %v13875_v24 = vpop.f32.mrf.mxu1 }
 0x470   :  { %v11066_v63 = vadd.f32 %v13874_v50, %v13852_v54 }
 0x471   :  { %v13876_v30 = vpop.f32.mrf.mxu1 }
 0x47d   :  { %v13894_v2 = vpop.f32.mrf.mxu0 }
 0x47f   :  { %v13895_v26 = vpop.f32.mrf.mxu0 }
 0x480   :  { %v13896_v36 = vadd.f32 %v13895_v26, %v13894_v2 }
 0x481   :  { %v13897_v55 = vpop.f32.mrf.mxu0 }
 0x482   :  { %v11106_v35 = vadd.f32 %v13896_v36, %v11066_v63 }
 0x483   :  { %v13898_v13 = vpop.f32.mrf.mxu0 }
 0x484   :  { %v11111_v31 = vadd.f32 %v11106_v35, %v10377_v12 }
 0x48f   :  { %v13916_v49 = vpop.f32.mrf.mxu1 }
 0x491   :  { %v13917_v37 = vpop.f32.mrf.mxu1 }
 0x492   :  { %v13918_v7 = vadd.f32 %v13917_v37, %v13916_v49 }
 0x493   :  { %v13919_v52 = vpop.f32.mrf.mxu1 }
 0x495   :  { %v13920_v21 = vpop.f32.mrf.mxu1 }
 0x49d   :  { %v13938_v58 = vpop.f32.mrf.mxu0 }
 0x49f   :  { %v13939_v40 = vpop.f32.mrf.mxu0 }
 0x4a0   :  { %v13940_v14 = vadd.f32 %v13939_v40, %v13938_v58 }
 0x4a1   :  { %v13941_v15 = vpop.f32.mrf.mxu0 }
 0x4a2   :  { %v11800_v51 = vadd.f32 %v13940_v14, %v13918_v7 }
 0x4a3   :  { %v13942_v19 = vpop.f32.mrf.mxu0 }
 0x4af   :  { %v13960_v59 = vpop.f32.mrf.mxu1 }
 0x4b1   :  { %v13961_v62 = vpop.f32.mrf.mxu1 }
 0x4b2   :  { %v13962_v29 = vadd.f32 %v13961_v62, %v13960_v59 }
 0x4b3   :  { %v13963_v44 = vpop.f32.mrf.mxu1 }
 0x4b4   :  { %v11840_v5 = vadd.f32 %v13962_v29, %v11800_v51 }
 0x4b5   :  { %v13964_v45 = vpop.f32.mrf.mxu1 }
 0x4b6   :  { %v11845_v17 = vadd.f32 %v11840_v5, %v11111_v31 }
 0x4b8   :  { %v11853_v16 = vadd.f32 %v12909_v25, %v11845_v17 }
 0x4ba   :  { %11854 = vst [vmem:[%s18447_s5] sm:$0xff] %v11853_v16 }
 0x4bb   :  { %11859 = vsyncpa [#allocation3], 1 }
 0x4bc   :  { %11860 = vsyncpa [#allocation9], 1 }
 0x4bd   :  { %11861 = vsyncpa [#allocation4], 1 }
 0x4be   :  { %11862 = vsyncpa [#allocation6], 1 }

</bundles_post_ra>
